<compile_context>
chip_gen: v5e
topology: v5e:2x2
jax: 0.10.0
libtpu: 0.0.40
codegen_flags: <defaults>
</compile_context>

<pallas_src>
import functools

import jax
import jax.numpy as jnp
from jax.experimental import pallas as pl
from jax.experimental.pallas import tpu as pltpu


def _bn_conv1x1_kernel(x_ref, gamma_ref, beta_ref, w_ref, o_ref, *, eps):
    """Fused BatchNorm2d (batch stats) + 1x1 conv, one Cout tile per grid step.

    x_ref:     [Cin, P]   flattened input (P = N*H*W), resident block
    gamma_ref: [Cin, 1]
    beta_ref:  [Cin, 1]
    w_ref:     [TN, Cin]  bf16 weight tile (native Conv2d [Cout, Cin] layout)
    o_ref:     [TN, P]    output tile ([Cout, P] orientation -> free NCHW reshape)
    """
    x = x_ref[...].astype(jnp.float32)                         # [Cin, P]
    p = x.shape[1]

    # Single-pass per-channel batch statistics (biased variance, matches the
    # BN training forward): var = E[x^2] - mean^2.
    inv_p = jnp.float32(1.0 / p)
    mean = jnp.sum(x, axis=1, keepdims=True) * inv_p           # [Cin, 1]
    ex2 = jnp.sum(x * x, axis=1, keepdims=True) * inv_p        # [Cin, 1]
    var = ex2 - mean * mean
    inv_std = jax.lax.rsqrt(var + eps)

    # Fold affine: x_bn = x * s + b  (one FMA per element).
    s = gamma_ref[...].astype(jnp.float32) * inv_std           # [Cin, 1]
    b = beta_ref[...].astype(jnp.float32) - mean * s           # [Cin, 1]
    x_bn = (x * s + b).astype(w_ref.dtype)                     # bf16 [Cin, P]

    # 1x1 conv == channel-mixing matmul on the MXU (f32 accumulation).
    out = jnp.dot(w_ref[...], x_bn, preferred_element_type=jnp.float32)  # [TN, P]
    o_ref[...] = out.astype(o_ref.dtype)


def _default_tile_n(cout):
    """Two balanced Cout tiles on dual-TC chips (v7x), one tile otherwise."""
    try:
        kind = jax.devices()[0].device_kind.lower()
    except Exception:  # pragma: no cover - defensive; any choice is correct
        kind = ""
    if "v7" in kind or "7x" in kind:
        return cout // 2
    return cout


def bn_conv2d_1x1(x_nchw, gamma, beta, w_bf16, *, eps=1e-3, tile_n=None):
    """Fused BatchNorm2d + Conv2d(1x1, bias=False), NCHW in / NCHW out.

    x_nchw:  [1, Cin, H, W] input (NCHW, PyTorch convention; N must be 1)
    gamma:   [Cin] BN weight
    beta:    [Cin] BN bias
    w_bf16:  [Cout, Cin] bf16 conv weight (native layout, pre-cast once)
    returns  [1, Cout, H, W]
    """
    N, Cin, H, W = x_nchw.shape
    # TODO(synk): generalize to N>1 (would need [N, Cout, H*W] output blocking
    # or a transpose); the module's forward uses N=1.
    assert N == 1, "free [Cout,P] <-> NCHW reshape requires N == 1"
    Cout = w_bf16.shape[0]
    P = N * H * W

    if tile_n is None:
        tile_n = _default_tile_n(Cout)
    assert Cout % tile_n == 0, (Cout, tile_n)
    assert tile_n % 128 == 0, tile_n  # lane/sublane-friendly weight tiles
    grid = (Cout // tile_n,)

    # NCHW with N=1 -> [Cin, P] is a zero-copy reshape (no transpose HLO).
    x2d = x_nchw.reshape(Cin, P)
    gamma2 = gamma.reshape(Cin, 1)
    beta2 = beta.reshape(Cin, 1)

    kernel = functools.partial(_bn_conv1x1_kernel, eps=eps)

    out2d = pl.pallas_call(
        kernel,
        out_shape=jax.ShapeDtypeStruct((Cout, P), x_nchw.dtype),
        grid=grid,
        in_specs=[
            # Resident across all Cout tiles (constant block index).
            pl.BlockSpec((Cin, P), lambda j: (0, 0)),
            pl.BlockSpec((Cin, 1), lambda j: (0, 0)),
            pl.BlockSpec((Cin, 1), lambda j: (0, 0)),
            # Only the weight tile streams per grid step (double-buffered).
            pl.BlockSpec((tile_n, Cin), lambda j: (j, 0)),
        ],
        out_specs=pl.BlockSpec((tile_n, P), lambda j: (j, 0)),
        compiler_params=pltpu.CompilerParams(
            # Cout tiles are fully independent -> shard across TCs on v7x.
            dimension_semantics=("parallel",),
        ),
    )(x2d, gamma2, beta2, w_bf16)

    # [Cout, P] -> [1, Cout, H, W] is a free reshape for N=1 (no data movement).
    return out2d.reshape(N, Cout, H, W)


def prepare_conv_weight(w_oihw):
    """One-time parameter prep: [Cout, Cin, 1, 1] -> [Cout, Cin] bf16 (no transpose)."""
    Cout, Cin = w_oihw.shape[0], w_oihw.shape[1]
    return w_oihw.reshape(Cout, Cin).astype(jnp.bfloat16)


def _reference(x_nchw, gamma, beta, w_oihw, eps=1e-3):
    """Pure-JAX reference mirroring the kernel's bf16 matmul operands."""
    mean = jnp.mean(x_nchw, axis=(0, 2, 3), keepdims=True)
    var = jnp.mean((x_nchw - mean) ** 2, axis=(0, 2, 3), keepdims=True)
    x_bn = (x_nchw - mean) * jax.lax.rsqrt(var + eps)
    x_bn = x_bn * gamma[None, :, None, None] + beta[None, :, None, None]
    w2d = w_oihw.reshape(w_oihw.shape[0], w_oihw.shape[1])  # [Cout, Cin]
    x_bf = x_bn.astype(jnp.bfloat16).astype(jnp.float32)
    w_bf = w2d.astype(jnp.bfloat16).astype(jnp.float32)
    return jnp.einsum("nchw,oc->nohw", x_bf, w_bf,
                      precision=jax.lax.Precision.HIGHEST)


if __name__ == "__main__":
    # Shapes implied by the module's forward: x590 = randn([1, 384, 7, 7]).
    N, Cin, H, W = 1, 384, 7, 7
    Cout = 2304
    eps = 1e-3

    key = jax.random.PRNGKey(0)
    kx, kw = jax.random.split(key)

    x = jax.random.normal(kx, (N, Cin, H, W), dtype=jnp.float32)
    gamma = jnp.ones((Cin,), dtype=jnp.float32)   # PyTorch BN affine defaults
    beta = jnp.zeros((Cin,), dtype=jnp.float32)
    w = jax.random.normal(kw, (Cout, Cin, 1, 1), dtype=jnp.float32) * 0.02

    # Hoisted out of the per-call path: constant-parameter reshape + bf16 cast.
    w2d = prepare_conv_weight(w)
    tile_n = _default_tile_n(Cout)  # resolved outside jit (static)

    forward = jax.jit(functools.partial(bn_conv2d_1x1, eps=eps, tile_n=tile_n))

    out = jax.block_until_ready(forward(x, gamma, beta, w2d))

    ref = jax.block_until_ready(_reference(x, gamma, beta, w, eps=eps))
    assert out.shape == (N, Cout, H, W), out.shape
    assert jnp.allclose(out, ref, atol=1e-2, rtol=1e-2), "mismatch vs reference"

    print("KERNEL_OK")
</pallas_src>

<mosaic_0001>
module attributes {stable_mosaic.version = 11 : i64} {
  func.func @_bn_conv1x1_kernel(%arg0: i32, %arg1: memref<384x49xf32, #tpu.memory_space<vmem>>, %arg2: memref<384x1xf32, #tpu.memory_space<vmem>>, %arg3: memref<384x1xf32, #tpu.memory_space<vmem>>, %arg4: memref<2304x384xbf16, #tpu.memory_space<vmem>>, %arg5: memref<2304x49xf32, #tpu.memory_space<vmem>>) attributes {dimension_semantics = [#tpu.dimension_semantics<parallel>], iteration_bounds = array<i64: 1>, scalar_prefetch = 0 : i64, scratch_operands = 0 : i64, tpu.core_type = #tpu.core_type<tc>, window_params = [{pipeline_mode = #tpu.pipeline_mode<synchronous>, transform_indices = @transform_0, window_bounds = array<i64: 384, 49>}, {pipeline_mode = #tpu.pipeline_mode<synchronous>, transform_indices = @transform_1, window_bounds = array<i64: 384, 1>}, {pipeline_mode = #tpu.pipeline_mode<synchronous>, transform_indices = @transform_2, window_bounds = array<i64: 384, 1>}, {transform_indices = @transform_3, window_bounds = array<i64: 2304, 384>}, {transform_indices = @transform_4, window_bounds = array<i64: 2304, 49>}]} {
    %c0 = arith.constant 0 : index
    %c0_0 = arith.constant 0 : index
    %0 = vector.load %arg1[%c0, %c0_0] : memref<384x49xf32, #tpu.memory_space<vmem>>, vector<384x49xf32>
    %cst = arith.constant dense<0.000000e+00> : vector<384xf32>
    %1 = vector.multi_reduction <add>, %0, %cst [1] : vector<384x49xf32> to vector<384xf32>
    %2 = vector.shape_cast %1 : vector<384xf32> to vector<384x1xf32>
    %cst_1 = arith.constant 0.0204081628 : f32
    %3 = vector.broadcast %cst_1 : f32 to vector<384x1xf32>
    %4 = arith.mulf %2, %3 : vector<384x1xf32>
    %5 = arith.mulf %0, %0 : vector<384x49xf32>
    %cst_2 = arith.constant dense<0.000000e+00> : vector<384xf32>
    %6 = vector.multi_reduction <add>, %5, %cst_2 [1] : vector<384x49xf32> to vector<384xf32>
    %7 = vector.shape_cast %6 : vector<384xf32> to vector<384x1xf32>
    %cst_3 = arith.constant 0.0204081628 : f32
    %8 = vector.broadcast %cst_3 : f32 to vector<384x1xf32>
    %9 = arith.mulf %7, %8 : vector<384x1xf32>
    %10 = arith.mulf %4, %4 : vector<384x1xf32>
    %11 = arith.subf %9, %10 : vector<384x1xf32>
    %cst_4 = arith.constant 1.000000e-03 : f32
    %12 = vector.broadcast %cst_4 : f32 to vector<384x1xf32>
    %13 = arith.addf %11, %12 : vector<384x1xf32>
    %14 = math.rsqrt %13 : vector<384x1xf32>
    %c0_5 = arith.constant 0 : index
    %c0_6 = arith.constant 0 : index
    %15 = vector.load %arg2[%c0_5, %c0_6] : memref<384x1xf32, #tpu.memory_space<vmem>>, vector<384x1xf32>
    %16 = arith.mulf %15, %14 : vector<384x1xf32>
    %c0_7 = arith.constant 0 : index
    %c0_8 = arith.constant 0 : index
    %17 = vector.load %arg3[%c0_7, %c0_8] : memref<384x1xf32, #tpu.memory_space<vmem>>, vector<384x1xf32>
    %18 = arith.mulf %4, %16 : vector<384x1xf32>
    %19 = arith.subf %17, %18 : vector<384x1xf32>
    %20 = vector.broadcast %16 : vector<384x1xf32> to vector<384x49xf32>
    %21 = arith.mulf %0, %20 : vector<384x49xf32>
    %22 = vector.broadcast %19 : vector<384x1xf32> to vector<384x49xf32>
    %23 = arith.addf %21, %22 : vector<384x49xf32>
    %24 = arith.truncf %23 : vector<384x49xf32> to vector<384x49xbf16>
    %c0_9 = arith.constant 0 : index
    %c0_10 = arith.constant 0 : index
    %25 = vector.load %arg4[%c0_9, %c0_10] : memref<2304x384xbf16, #tpu.memory_space<vmem>>, vector<2304x384xbf16>
    %cst_11 = arith.constant dense<0.000000e+00> : vector<2304x49xf32>
    %26 = tpu.matmul %25, %24, %cst_11 {dimension_numbers = #tpu.dot_dimension_numbers<[1], [0], [0], [1], [0, 0, 1, 1], [], []>} : vector<2304x384xbf16>, vector<384x49xbf16>, vector<2304x49xf32> -> vector<2304x49xf32>
    %c0_12 = arith.constant 0 : index
    %c0_13 = arith.constant 0 : index
    %27 = vector.load %arg5[%c0_12, %c0_13] : memref<2304x49xf32, #tpu.memory_space<vmem>>, vector<2304x49xf32>
    tpu.vector_store %arg5[%c0_12, %c0_13], %26 {strides = array<i32>} : memref<2304x49xf32, #tpu.memory_space<vmem>>, vector<2304x49xf32>,
    return
  }
  func.func @transform_0(%arg0: i32) -> (i32, i32) {
    %c0_i32 = arith.constant 0 : i32
    %c0_i32_0 = arith.constant 0 : i32
    %c0_i32_1 = arith.constant 0 : i32
    return %c0_i32, %c0_i32_0 : i32, i32
  }
  func.func @transform_1(%arg0: i32) -> (i32, i32) {
    %c0_i32 = arith.constant 0 : i32
    %c0_i32_0 = arith.constant 0 : i32
    %c0_i32_1 = arith.constant 0 : i32
    return %c0_i32, %c0_i32_0 : i32, i32
  }
  func.func @transform_2(%arg0: i32) -> (i32, i32) {
    %c0_i32 = arith.constant 0 : i32
    %c0_i32_0 = arith.constant 0 : i32
    %c0_i32_1 = arith.constant 0 : i32
    return %c0_i32, %c0_i32_0 : i32, i32
  }
  func.func @transform_3(%arg0: i32) -> (i32, i32) {
    %c0_i32 = arith.constant 0 : i32
    %c0_i32_0 = arith.constant 0 : i32
    return %arg0, %c0_i32 : i32, i32
  }
  func.func @transform_4(%arg0: i32) -> (i32, i32) {
    %c0_i32 = arith.constant 0 : i32
    %c0_i32_0 = arith.constant 0 : i32
    return %arg0, %c0_i32 : i32, i32
  }
}

</mosaic_0001>

<bundles_post_ra>
// kernel: bn_conv2d_1x1.1
= control target key start
LH: loop header
LB: loop body
LE: loop exit
PB: predicated region body
PF: predicated region fallthrough
CT: control target
= control target key end

     0   :  { %9 = vsyncpa [#allocation3], 0  ;;  %s9699_s18 = smov [#allocation2]   ;;  %s9700_s20 = smov 192   ;;  %s13879_s0 = inlined_call_operand.vmem [shape: f32[384,49], index: 0, kind: input, shape index: {}]   ;;  %s13880_s1 = inlined_call_operand.vmem [shape: f32[384,1], index: 1, kind: input, shape index: {}]   ;;  %s13881_s2 = inlined_call_operand.vmem [shape: f32[384,1], index: 2, kind: input, shape index: {}]   ;;  %s13882_s3 = inlined_call_operand.hbm [shape: bf16[2304,384], index: 3, kind: input, shape index: {}]   ;;  %s13883_s4 = inlined_call_operand.vmem [shape: f32[2304,49], index: 4, kind: output, shape index: {}]  }
   0x1   :  { %s20_s17 = sshll.u32 %s13882_s3, 4  ;;  %s22_s19 = sshll.u32 %s9699_s18, 4  ;;  %s21_s17 = int_to_ptr.hbm [resolvable:$true] %s20_s17  ;;  %s23_s19 = int_to_ptr.vmem [resolvable:$true] %s22_s19 }
   0x2   :  { %s9701_s21 = smov 12  }
   0x3   :  { %28 = dma.hbm_to_vmem [thread:$0]  %s21_s17, 55296, %s23_s19, [#allocation3], %s9700_s20, %s9700_s20, %s9701_s21  }
   0x4   :  { %9697 = dma.done.wait [#allocation3], 55296  }
   0x5   :  { %9698 = vsyncadd [#allocation3], 4294912000  ;;  %vm81_vm0 = vcmask 400384   ;;  %v79_v0 = vld [vmem:[%s13879_s0 + $0x170] sm:$0xff]  ;;  %v48_v5 = vld [vmem:[%s13879_s0 + $0x78] sm:$0xff] }
   0x6   :  { %v47_v1 = vld [vmem:[%s13879_s0 + $0x70] sm:$0xff]  ;;  %v220_v2 = vsel %vm81_vm0, %v79_v0, 0.0  ;;  %v80_v7 = vld [vmem:[%s13879_s0 + $0x178] sm:$0xff]  ;;  %v289_v8 = vmul.f32 %v48_v5, %v48_v5  ;;  %v127_v10 = vsel %vm81_vm0, %v48_v5, 0.0  ;;  %v320_v13 = vmul.f32 %v79_v0, %v79_v0  ;;  %v45_v14 = vld [vmem:[%s13879_s0 + $0x60] sm:$0xff] }
   0x7   :  { %v124_v3 = vsel %vm81_vm0, %v47_v1, 0.0  ;;  %v288_v4 = vmul.f32 %v47_v1, %v47_v1  ;;  %221 = vadd.xlane.f32.xlu1 %v220_v2  ;;  %v223_v9 = vsel %vm81_vm0, %v80_v7, 0.0  ;;  %v321_v12 = vmul.f32 %v80_v7, %v80_v7  ;;  %v63_v18 = vld [vmem:[%s13879_s0 + $0xf0] sm:$0xff]  ;;  %v46_v19 = vld [vmem:[%s13879_s0 + $0x68] sm:$0xff]  ;;  %v64_v20 = vld [vmem:[%s13879_s0 + $0xf8] sm:$0xff] }
   0x8   :  { %125 = vadd.xlane.f32.xlu0 %v124_v3  ;;  %v367_v11 = vsel %vm81_vm0, %v289_v8, 0.0  ;;  %v460_v16 = vsel %vm81_vm0, %v320_v13, 0.0  ;;  %v118_v17 = vsel %vm81_vm0, %v45_v14, 0.0  ;;  %v172_v21 = vsel %vm81_vm0, %v63_v18, 0.0  ;;  %v78_v24 = vld [vmem:[%s13879_s0 + $0x168] sm:$0xff]  ;;  %v77_v25 = vld [vmem:[%s13879_s0 + $0x160] sm:$0xff] }
   0x9   :  { %v364_v6 = vsel %vm81_vm0, %v288_v4, 0.0  ;;  %v463_v15 = vsel %vm81_vm0, %v321_v12, 0.0  ;;  %v121_v22 = vsel %vm81_vm0, %v46_v19, 0.0  ;;  %v175_v23 = vsel %vm81_vm0, %v64_v20, 0.0  ;;  %v43_v38 = vld [vmem:[%s13879_s0 + $0x50] sm:$0xff]  ;;  %v61_v42 = vld [vmem:[%s13879_s0 + $0xe0] sm:$0xff] }
   0xa   :  { %365 = vadd.xlane.f32.xlu2 %v364_v6  ;;  %v286_v26 = vmul.f32 %v45_v14, %v45_v14  ;;  %v217_v27 = vsel %vm81_vm0, %v78_v24, 0.0  ;;  %v214_v28 = vsel %vm81_vm0, %v77_v25, 0.0  ;;  %v304_v30 = vmul.f32 %v63_v18, %v63_v18  ;;  %v44_v43 = vld [vmem:[%s13879_s0 + $0x58] sm:$0xff]  ;;  %v62_v44 = vld [vmem:[%s13879_s0 + $0xe8] sm:$0xff]  ;;  %v75_v49 = vld [vmem:[%s13879_s0 + $0x150] sm:$0xff] }
   0xb   :  { %v287_v31 = vmul.f32 %v46_v19, %v46_v19  ;;  %v305_v32 = vmul.f32 %v64_v20, %v64_v20  ;;  %v319_v36 = vmul.f32 %v78_v24, %v78_v24  ;;  %v318_v37 = vmul.f32 %v77_v25, %v77_v25  ;;  %v76_v48 = vld [vmem:[%s13879_s0 + $0x158] sm:$0xff]  ;;  %v41_v62 = vld [vmem:[%s13879_s0 + $0x40] sm:$0xff]  ;;  %v59_v2 = vld [vmem:[%s13879_s0 + $0xd0] sm:$0xff] }
   0xc   :  { %v358_v29 = vsel %vm81_vm0, %v286_v26, 0.0  ;;  %v412_v33 = vsel %vm81_vm0, %v304_v30, 0.0  ;;  %v112_v41 = vsel %vm81_vm0, %v43_v38, 0.0  ;;  %v166_v45 = vsel %vm81_vm0, %v61_v42, 0.0  ;;  %v42_v3 = vld [vmem:[%s13879_s0 + $0x48] sm:$0xff]  ;;  %v60_v4 = vld [vmem:[%s13879_s0 + $0xd8] sm:$0xff] }
   0xd   :  { %v361_v34 = vsel %vm81_vm0, %v287_v31, 0.0  ;;  %v415_v35 = vsel %vm81_vm0, %v305_v32, 0.0  ;;  %v457_v39 = vsel %vm81_vm0, %v319_v36, 0.0  ;;  %v454_v40 = vsel %vm81_vm0, %v318_v37, 0.0  ;;  %v74_v8 = vld [vmem:[%s13879_s0 + $0x148] sm:$0xff]  ;;  %v57_v26 = vld [vmem:[%s13879_s0 + $0xc0] sm:$0xff] }
   0xe   :  { %v115_v46 = vsel %vm81_vm0, %v44_v43, 0.0  ;;  %v169_v47 = vsel %vm81_vm0, %v62_v44, 0.0  ;;  %v284_v50 = vmul.f32 %v43_v38, %v43_v38  ;;  %v211_v51 = vsel %vm81_vm0, %v76_v48, 0.0  ;;  %v58_v30 = vld [vmem:[%s13879_s0 + $0xc8] sm:$0xff]  ;;  %v71_v36 = vld [vmem:[%s13879_s0 + $0x130] sm:$0xff] }
   0xf   :  { %224 = vadd.xlane.f32.xlu1 %v223_v9  ;;  %v208_v52 = vsel %vm81_vm0, %v75_v49, 0.0  ;;  %v302_v54 = vmul.f32 %v61_v42, %v61_v42  ;;  %v285_v55 = vmul.f32 %v44_v43, %v44_v43  ;;  %v303_v56 = vmul.f32 %v62_v44, %v62_v44  ;;  %v73_v9 = vld [vmem:[%s13879_s0 + $0x140] sm:$0xff] }
  0x10   :  { %128 = vadd.xlane.f32.xlu0 %v127_v10  ;;  %v352_v53 = vsel %vm81_vm0, %v284_v50, 0.0  ;;  %v317_v60 = vmul.f32 %v76_v48, %v76_v48  ;;  %v316_v61 = vmul.f32 %v75_v49, %v75_v49  ;;  %v106_v1 = vsel %vm81_vm0, %v41_v62, 0.0 }
  0x11   :  { %v406_v57 = vsel %vm81_vm0, %v302_v54, 0.0  ;;  %v355_v58 = vsel %vm81_vm0, %v285_v55, 0.0  ;;  %v409_v59 = vsel %vm81_vm0, %v303_v56, 0.0  ;;  %v160_v5 = vsel %vm81_vm0, %v59_v2, 0.0 }
  0x12   :  { %368 = vadd.xlane.f32.xlu2 %v367_v11  ;;  %v451_v63 = vsel %vm81_vm0, %v317_v60, 0.0  ;;  %v448_v0 = vsel %vm81_vm0, %v316_v61, 0.0  ;;  %v109_v6 = vsel %vm81_vm0, %v42_v3, 0.0  ;;  %v163_v7 = vsel %vm81_vm0, %v60_v4, 0.0 }
  0x13   :  { %v282_v10 = vmul.f32 %v41_v62, %v41_v62  ;;  %v205_v11 = vsel %vm81_vm0, %v74_v8, 0.0  ;;  %v202_v12 = vsel %vm81_vm0, %v73_v9, 0.0  ;;  %v300_v14 = vmul.f32 %v59_v2, %v59_v2  ;;  %v55_v62 = vld [vmem:[%s13879_s0 + $0xb0] sm:$0xff]  ;;  %v56_v2 = vld [vmem:[%s13879_s0 + $0xb8] sm:$0xff] }
  0x14   :  { %v315_v20 = vmul.f32 %v74_v8, %v74_v8  ;;  %v154_v32 = vsel %vm81_vm0, %v57_v26, 0.0  ;;  %v196_v42 = vsel %vm81_vm0, %v71_v36, 0.0  ;;  %v298_v44 = vmul.f32 %v57_v26, %v57_v26  ;;  %v69_v8 = vld [vmem:[%s13879_s0 + $0x120] sm:$0xff] }
  0x15   :  { %v346_v13 = vsel %vm81_vm0, %v282_v10, 0.0  ;;  %v299_v48 = vmul.f32 %v58_v30, %v58_v30  ;;  %v312_v54 = vmul.f32 %v71_v36, %v71_v36 }
  0x16   :  { %v394_v50 = vsel %vm81_vm0, %v298_v44, 0.0 }
  0x17   :  { %464 = vadd.xlane.f32.xlu1 %v463_v15  ;;  %v283_v15 = vmul.f32 %v42_v3, %v42_v3  ;;  %v436_v60 = vsel %vm81_vm0, %v312_v54, 0.0 }
  0x18   :  { %461 = vadd.xlane.f32.xlu0 %v460_v16  ;;  %v301_v16 = vmul.f32 %v60_v4, %v60_v4  ;;  %v148_v4 = vsel %vm81_vm0, %v55_v62, 0.0 }
  0x19   :  { %v349_v18 = vsel %vm81_vm0, %v283_v15, 0.0 }
  0x1a   :  { %119 = vadd.xlane.f32.xlu2 %v118_v17  ;;  %v400_v17 = vsel %vm81_vm0, %v300_v14, 0.0  ;;  %v403_v19 = vsel %vm81_vm0, %v301_v16, 0.0  ;;  %v190_v14 = vsel %vm81_vm0, %v69_v8, 0.0  ;;  %v296_v16 = vmul.f32 %v55_v62, %v55_v62 }
  0x1f   :  { %173 = vadd.xlane.f32.xlu1 %v172_v21  ;;  %v314_v21 = vmul.f32 %v73_v9, %v73_v9 }
  0x20   :  { %122 = vadd.xlane.f32.xlu0 %v121_v22  ;;  %v39_v22 = vld [vmem:[%s13879_s0 + $0x30] sm:$0xff] }
  0x21   :  { %v442_v24 = vsel %vm81_vm0, %v314_v21, 0.0  ;;  %v100_v25 = vsel %vm81_vm0, %v39_v22, 0.0 }
  0x22   :  { %176 = vadd.xlane.f32.xlu2 %v175_v23  ;;  %v445_v23 = vsel %vm81_vm0, %v315_v20, 0.0 }
  0x27   :  { %218 = vadd.xlane.f32.xlu1 %v217_v27  ;;  %v40_v27 = vld [vmem:[%s13879_s0 + $0x38] sm:$0xff] }
  0x28   :  { %215 = vadd.xlane.f32.xlu0 %v214_v28 }
  0x2a   :  { %359 = vadd.xlane.f32.xlu2 %v358_v29 }
  0x2f   :  { %413 = vadd.xlane.f32.xlu1 %v412_v33  ;;  %v103_v33 = vsel %vm81_vm0, %v40_v27, 0.0 }
  0x30   :  { %362 = vadd.xlane.f32.xlu0 %v361_v34  ;;  %v157_v34 = vsel %vm81_vm0, %v58_v30, 0.0 }
  0x32   :  { %416 = vadd.xlane.f32.xlu2 %v415_v35  ;;  %v72_v35 = vld [vmem:[%s13879_s0 + $0x138] sm:$0xff] }
  0x37   :  { %458 = vadd.xlane.f32.xlu1 %v457_v39  ;;  %v280_v39 = vmul.f32 %v39_v22, %v39_v22  ;;  %v297_v22 = vmul.f32 %v56_v2, %v56_v2 }
  0x38   :  { %455 = vadd.xlane.f32.xlu0 %v454_v40 }
  0x39   :  { %v340_v43 = vsel %vm81_vm0, %v280_v39, 0.0 }
  0x3a   :  { %113 = vadd.xlane.f32.xlu2 %v112_v41  ;;  %v199_v41 = vsel %vm81_vm0, %v72_v35, 0.0 }
  0x3f   :  { %167 = vadd.xlane.f32.xlu1 %v166_v45  ;;  %v281_v45 = vmul.f32 %v40_v27, %v40_v27 }
  0x40   :  { %116 = vadd.xlane.f32.xlu0 %v115_v46 }
  0x42   :  { %170 = vadd.xlane.f32.xlu2 %v169_v47 }
  0x47   :  { %212 = vadd.xlane.f32.xlu1 %v211_v51  ;;  %v343_v51 = vsel %vm81_vm0, %v281_v45, 0.0 }
  0x48   :  { %209 = vadd.xlane.f32.xlu0 %v208_v52  ;;  %v397_v52 = vsel %vm81_vm0, %v299_v48, 0.0 }
  0x4a   :  { %353 = vadd.xlane.f32.xlu2 %v352_v53  ;;  %v313_v53 = vmul.f32 %v72_v35, %v72_v35 }
  0x4f   :  { %407 = vadd.xlane.f32.xlu1 %v406_v57  ;;  %v37_v57 = vld [vmem:[%s13879_s0 + $0x20] sm:$0xff] }
  0x50   :  { %356 = vadd.xlane.f32.xlu0 %v355_v58  ;;  %v94_v61 = vsel %vm81_vm0, %v37_v57, 0.0 }
  0x52   :  { %410 = vadd.xlane.f32.xlu2 %v409_v59  ;;  %v439_v59 = vsel %vm81_vm0, %v313_v53, 0.0  ;;  %v53_v53 = vld [vmem:[%s13879_s0 + $0xa0] sm:$0xff] }
  0x57   :  { %452 = vadd.xlane.f32.xlu1 %v451_v63  ;;  %v38_v63 = vld [vmem:[%s13879_s0 + $0x28] sm:$0xff] }
  0x58   :  { %449 = vadd.xlane.f32.xlu0 %v448_v0 }
  0x5a   :  { %107 = vadd.xlane.f32.xlu2 %v106_v1 }
  0x5f   :  { %161 = vadd.xlane.f32.xlu1 %v160_v5  ;;  %v97_v5 = vsel %vm81_vm0, %v38_v63, 0.0 }
  0x60   :  { %110 = vadd.xlane.f32.xlu0 %v109_v6  ;;  %v151_v6 = vsel %vm81_vm0, %v56_v2, 0.0 }
  0x62   :  { %164 = vadd.xlane.f32.xlu2 %v163_v7  ;;  %v70_v7 = vld [vmem:[%s13879_s0 + $0x128] sm:$0xff] }
  0x67   :  { %206 = vadd.xlane.f32.xlu1 %v205_v11  ;;  %v278_v11 = vmul.f32 %v37_v57, %v37_v57 }
  0x68   :  { %203 = vadd.xlane.f32.xlu0 %v202_v12 }
  0x69   :  { %v334_v15 = vsel %vm81_vm0, %v278_v11, 0.0  ;;  %v67_v11 = vld [vmem:[%s13879_s0 + $0x110] sm:$0xff] }
  0x6a   :  { %347 = vadd.xlane.f32.xlu2 %v346_v13  ;;  %v193_v13 = vsel %vm81_vm0, %v70_v7, 0.0 }
  0x6f   :  { %401 = vadd.xlane.f32.xlu1 %v400_v17  ;;  %v279_v17 = vmul.f32 %v38_v63, %v38_v63  ;;  %v142_v63 = vsel %vm81_vm0, %v53_v53, 0.0 }
  0x70   :  { %350 = vadd.xlane.f32.xlu0 %v349_v18 }
  0x72   :  { %404 = vadd.xlane.f32.xlu2 %v403_v19 }
  0x77   :  { %446 = vadd.xlane.f32.xlu1 %v445_v23 }
  0x78   :  { %443 = vadd.xlane.f32.xlu0 %v442_v24  ;;  %v388_v24 = vsel %vm81_vm0, %v296_v16, 0.0 }
  0x7a   :  { %101 = vadd.xlane.f32.xlu2 %v100_v25  ;;  %v9851_v28 = vpop.xlane.xlu1 %221  ;;  %v337_v25 = vsel %vm81_vm0, %v279_v17, 0.0 }
  0x7b   :  { %v9853_v29 = vpop.xlane.xlu0 %125  ;;  %v9951_v36 = vmul.f32 0.020408163, %v9851_v28 }
  0x7c   :  { %v9931_v18 = vmul.f32 0.020408163, %v9853_v29 }
  0x7d   :  { %v9858_v31 = vpop.xlane.xlu2 %365  ;;  %v560_v28 = vmul.f32 %v9951_v36, %v9951_v36 }
  0x7e   :  { %v528_v26 = vmul.f32 %v9931_v18, %v9931_v18  ;;  %v480_v27 = vmul.f32 0.020408163, %v9858_v31 }
  0x7f   :  { %155 = vadd.xlane.f32.xlu1 %v154_v32  ;;  %v391_v32 = vsel %vm81_vm0, %v297_v22, 0.0 }
  0x80   :  { %104 = vadd.xlane.f32.xlu0 %v103_v33  ;;  %v311_v33 = vmul.f32 %v70_v7, %v70_v7  ;;  %v576_v35 = vsub.f32 %v480_v27, %v528_v26  ;;  %v184_v26 = vsel %vm81_vm0, %v67_v11, 0.0 }
  0x82   :  { %158 = vadd.xlane.f32.xlu2 %v157_v34  ;;  %v9869_v37 = vpop.xlane.xlu1 %224  ;;  %v310_v34 = vmul.f32 %v69_v8, %v69_v8  ;;  %v9965_v45 = vadd.f32 0.001, %v576_v35  ;;  %v68_v8 = vld [vmem:[%s13879_s0 + $0x118] sm:$0xff] }
  0x83   :  { %v129_v38 = vpop.xlane.xlu0 %128  ;;  %v9970_v48 = vmul.f32 0.020408163, %v9869_v37  ;;  %v36_v37 = vld [vmem:[%s13879_s0 + $0x18] sm:$0xff] }
  0x84   :  { %v9933_v19 = vmul.f32 0.020408163, %v129_v38  ;;  %v430_v44 = vsel %vm81_vm0, %v310_v34, 0.0  ;;  %9529 = vrsqrt.f32 %v9965_v45  ;;  %v91_v2 = vsel %vm81_vm0, %v36_v37, 0.0 }
  0x85   :  { %v9871_v40 = vpop.xlane.xlu2 %368  ;;  %v561_v54 = vmul.f32 %v9970_v48, %v9970_v48  ;;  %vm804_vm1 = vweird.f32 %v9965_v45 }
  0x86   :  { %v529_v29 = vmul.f32 %v9933_v19, %v9933_v19  ;;  %v481_v30 = vmul.f32 0.020408163, %v9871_v40  ;;  %v35_v40 = vld [vmem:[%s13879_s0 + $0x10] sm:$0xff] }
  0x87   :  { %200 = vadd.xlane.f32.xlu1 %v199_v41 }
  0x88   :  { %197 = vadd.xlane.f32.xlu0 %v196_v42  ;;  %v577_v38 = vsub.f32 %v481_v30, %v529_v29 }
  0x8a   :  { %341 = vadd.xlane.f32.xlu2 %v340_v43  ;;  %v9876_v46 = vpop.xlane.xlu1 %464  ;;  %v433_v43 = vsel %vm81_vm0, %v311_v33, 0.0 }
  0x8b   :  { %v9878_v47 = vpop.xlane.xlu0 %461 }
  0x8c   :  { %v512_v41 = vmul.f32 0.020408163, %v9878_v47  ;;  %v513_v47 = vmul.f32 0.020408163, %v9876_v46 }
  0x8d   :  { %v9880_v49 = vpop.xlane.xlu2 %119 }
  0x8e   :  { %v10022_v22 = vmul.f32 0.020408163, %v9880_v49 }
  0x8f   :  { %395 = vadd.xlane.f32.xlu1 %v394_v50  ;;  %v9972_v50 = vadd.f32 0.001, %v577_v38  ;;  %v294_v38 = vmul.f32 %v53_v53, %v53_v53 }
  0x90   :  { %344 = vadd.xlane.f32.xlu0 %v343_v51  ;;  %v88_v51 = vsel %vm81_vm0, %v35_v40, 0.0  ;;  %v526_v35 = vmul.f32 %v10022_v22, %v10022_v22 }
  0x91   :  { %9531 = vrsqrt.f32 %v9972_v50  ;;  %vm814_vm3 = vweird.f32 %v9972_v50 }
  0x92   :  { %398 = vadd.xlane.f32.xlu2 %v397_v52  ;;  %v9885_v55 = vpop.xlane.xlu1 %173  ;;  %v608_v52 = vsub.f32 %v512_v41, %v560_v28 }
  0x93   :  { %v9887_v56 = vpop.xlane.xlu0 %122  ;;  %v10030_v27 = vmul.f32 0.020408163, %v9885_v55 }
  0x95   :  { %v9892_v58 = vpop.xlane.xlu2 %176  ;;  %v544_v41 = vmul.f32 %v10030_v27, %v10030_v27 }
  0x96   :  { %v10044_v55 = vmul.f32 0.020408163, %v9892_v58 }
  0x97   :  { %440 = vadd.xlane.f32.xlu1 %v439_v59  ;;  %v54_v59 = vld [vmem:[%s13879_s0 + $0xa8] sm:$0xff] }
  0x98   :  { %437 = vadd.xlane.f32.xlu0 %v436_v60  ;;  %v609_v60 = vsub.f32 %v513_v47, %v561_v54 }
  0x9a   :  { %95 = vadd.xlane.f32.xlu2 %v94_v61  ;;  %v9903_v0 = vpop.xlane.xlu1 %218  ;;  %v9993_v61 = vadd.f32 0.001, %v608_v52  ;;  %v10004_v7 = vadd.f32 0.001, %v609_v60  ;;  %v295_v52 = vmul.f32 %v54_v59, %v54_v59 }
  0x9b   :  { %v9905_v1 = vpop.xlane.xlu0 %215  ;;  %v10064_v54 = vmul.f32 0.020408163, %v9903_v0 }
  0x9c   :  { %9533 = vrsqrt.f32 %v9993_v61  ;;  %v10056_v58 = vmul.f32 0.020408163, %v9905_v1  ;;  %vm1124_vm8 = vweird.f32 %v9993_v61  ;;  %vm1134_vm11 = vweird.f32 %v10004_v7 }
  0x9d   :  { %v9910_v3 = vpop.xlane.xlu2 %359  ;;  %9535 = vrsqrt.f32 %v10004_v7 }
  0x9e   :  { %v478_v29 = vmul.f32 0.020408163, %v9910_v3 }
  0x9f   :  { %149 = vadd.xlane.f32.xlu1 %v148_v4  ;;  %v145_v4 = vsel %vm81_vm0, %v54_v59, 0.0 }
  0xa0   :  { %98 = vadd.xlane.f32.xlu0 %v97_v5  ;;  %v10000_v5 = vpop.eup %9529 }
  0xa1   :  { %v799_v16 = vmul.f32 %v10000_v5, %v9965_v45  ;;  %vm805_vm2 = vweird.f32 %v10000_v5  ;;  %v10144_v45 = vld [vmem:[%s13879_s0 + $0x90] sm:$0xff] }
  0xa2   :  { %152 = vadd.xlane.f32.xlu2 %v151_v6  ;;  %v9921_v9 = vpop.xlane.xlu1 %413  ;;  %v10002_v6 = vpop.eup %9531  ;;  %vm10127_vm5 = vmor %vm804_vm1, %vm805_vm2 }
  0xa3   :  { %v9923_v10 = vpop.xlane.xlu0 %362  ;;  %v809_v17 = vmul.f32 %v10002_v6, %v9972_v50  ;;  %v10033_v30 = vpop.eup %9533  ;;  %v800_v33 = vmul.f32 %v10000_v5, %v799_v16  ;;  %v496_v3 = vmul.f32 0.020408163, %v9921_v9  ;;  %vm815_vm4 = vweird.f32 %v10002_v6 }
  0xa4   :  { %v479_v9 = vmul.f32 0.020408163, %v9923_v10  ;;  %v382_v10 = vsel %vm81_vm0, %v294_v38, 0.0  ;;  %vm10136_vm6 = vmor %vm814_vm3, %vm815_vm4  ;;  %vm1125_vm7 = vweird.f32 %v10033_v30 }
  0xa5   :  { %v9925_v12 = vpop.xlane.xlu2 %416  ;;  %v810_v34 = vmul.f32 %v10002_v6, %v809_v17  ;;  %v801_v53 = vmul.f32 0.5, %v800_v33  ;;  %vm10197_vm10 = vmor %vm1124_vm8, %vm1125_vm7 }
  0xa6   :  { %v497_v60 = vmul.f32 0.020408163, %v9925_v12  ;;  %v558_v12 = vmul.f32 %v10056_v58, %v10056_v58 }
  0xa7   :  { %194 = vadd.xlane.f32.xlu1 %v193_v13 }
  0xa8   :  { %191 = vadd.xlane.f32.xlu0 %v190_v14 }
  0xaa   :  { %335 = vadd.xlane.f32.xlu2 %v334_v15  ;;  %v9935_v20 = vpop.xlane.xlu1 %458  ;;  %v276_v15 = vmul.f32 %v35_v40, %v35_v40  ;;  %v277_v40 = vmul.f32 %v36_v37, %v36_v37  ;;  %v811_v37 = vmul.f32 0.5, %v810_v34  ;;  %v309_v34 = vmul.f32 %v68_v8, %v68_v8 }
  0xab   :  { %v9937_v21 = vpop.xlane.xlu0 %455  ;;  %v511_v0 = vmul.f32 0.020408163, %v9935_v20 }
  0xac   :  { %v328_v49 = vsel %vm81_vm0, %v276_v15, 0.0 }
  0xad   :  { %v9939_v23 = vpop.xlane.xlu2 %113 }
  0xaf   :  { %389 = vadd.xlane.f32.xlu1 %v388_v24 }
  0xb0   :  { %338 = vadd.xlane.f32.xlu0 %v337_v25  ;;  %v187_v25 = vsel %vm81_vm0, %v68_v8, 0.0  ;;  %v10100_v8 = vld [vmem:[%s13879_s0] sm:$0xff] }
  0xb2   :  { %392 = vadd.xlane.f32.xlu2 %v391_v32  ;;  %v9953_v39 = vpop.xlane.xlu1 %167  ;;  %v10036_v32 = vmul.f32 0.020408163, %v9887_v56  ;;  %v1119_v56 = vmul.f32 %v10033_v30, %v9993_v61 }
  0xb3   :  { %v9955_v31 = vpop.xlane.xlu0 %116 }
  0xb4   :  { %v527_v28 = vmul.f32 %v10036_v32, %v10036_v32  ;;  %v1120_v15 = vmul.f32 %v10033_v30, %v1119_v56 }
  0xb5   :  { %v9961_v42 = vpop.xlane.xlu2 %170 }
  0xb6   :  { %v575_v17 = vsub.f32 %v479_v9, %v527_v28 }
  0xb7   :  { %434 = vadd.xlane.f32.xlu1 %v433_v43  ;;  %v574_v43 = vsub.f32 %v478_v29, %v526_v35  ;;  %v559_v29 = vmul.f32 %v10064_v54, %v10064_v54  ;;  %v308_v35 = vmul.f32 %v67_v11, %v67_v11 }
  0xb8   :  { %431 = vadd.xlane.f32.xlu0 %v430_v44  ;;  %v10051_v44 = vpop.eup %9535  ;;  %v10089_v56 = vadd.f32 0.001, %v575_v17 }
  0xb9   :  { %v1129_v59 = vmul.f32 %v10051_v44, %v10004_v7  ;;  %v10076_v16 = vadd.f32 0.001, %v574_v43  ;;  %v607_v38 = vsub.f32 %v511_v0, %v559_v29  ;;  %vm1135_vm9 = vweird.f32 %v10051_v44 }
  0xba   :  { %89 = vadd.xlane.f32.xlu2 %v88_v51  ;;  %v9986_v57 = vpop.xlane.xlu1 %212  ;;  %vm10224_vm12 = vmor %vm1134_vm11, %vm1135_vm9  ;;  %vm794_vm3 = vweird.f32 %v10089_v56 }
  0xbb   :  { %v9988_v46 = vpop.xlane.xlu0 %209  ;;  %v1130_v20 = vmul.f32 %v10051_v44, %v1129_v59  ;;  %9537 = vrsqrt.f32 %v10076_v16  ;;  %vm784_vm15 = vweird.f32 %v10076_v16 }
  0xbd   :  { %v9995_v62 = vpop.xlane.xlu2 %353 }
  0xbf   :  { %143 = vadd.xlane.f32.xlu1 %v142_v63  ;;  %v545_v63 = vmul.f32 %v10044_v55, %v10044_v55 }
  0xc0   :  { %92 = vadd.xlane.f32.xlu0 %v91_v2  ;;  %v592_v2 = vsub.f32 %v496_v3, %v544_v41  ;;  %v802_v3 = vsub.f32 1.5, %v801_v53  ;;  %v424_v53 = vsel %vm81_vm0, %v308_v35, 0.0 }
  0xc2   :  { %146 = vadd.xlane.f32.xlu2 %v145_v4  ;;  %v10013_v13 = vpop.xlane.xlu1 %407  ;;  %v331_v4 = vsel %vm81_vm0, %v277_v40, 0.0  ;;  %v10085_v33 = vadd.f32 0.001, %v592_v2  ;;  %v1121_v40 = vmul.f32 0.5, %v1120_v15  ;;  %v10120_v15 = vpop.eup %9537 }
  0xc3   :  { %v10015_v14 = vpop.xlane.xlu0 %356  ;;  %v779_v35 = vmul.f32 %v10120_v15, %v10076_v16  ;;  %vm785_vm13 = vweird.f32 %v10120_v15 }
  0xc4   :  { %9539 = vrsqrt.f32 %v10085_v33  ;;  %v1122_v59 = vsub.f32 1.5, %v1121_v40  ;;  %v136_v40 = vsel %vm81_vm0, %v10144_v45, 0.0  ;;  %vm964_vm1 = vweird.f32 %v10085_v33 }
  0xc5   :  { %v10025_v24 = vpop.xlane.xlu2 %410  ;;  %9541 = vrsqrt.f32 %v10089_v56 }
  0xc7   :  { %188 = vadd.xlane.f32.xlu1 %v187_v25  ;;  %v510_v25 = vmul.f32 0.020408163, %v9937_v21  ;;  %v812_v21 = vsub.f32 1.5, %v811_v37  ;;  %v803_v37 = vmul.f32 %v10000_v5, %v802_v3 }
  0xc8   :  { %185 = vadd.xlane.f32.xlu0 %v184_v26  ;;  %v385_v26 = vsel %vm81_vm0, %v295_v52, 0.0  ;;  %v427_v52 = vsel %vm81_vm0, %v309_v34, 0.0 }
  0xc9   :  { %v606_v41 = vsub.f32 %v510_v25, %v558_v12  ;;  %v813_v2 = vmul.f32 %v10002_v6, %v812_v21  ;;  %v1152_v12 = vld [vmem:[%s13880_s1 + $0x70] sm:$0xff]  ;;  %v807_v50 = vsel %vm10127_vm5, %v10000_v5, %v803_v37  ;;  %v1123_v5 = vmul.f32 %v10033_v30, %v1122_v59 }
  0xca   :  { %329 = vadd.xlane.f32.xlu2 %v328_v49  ;;  %v10059_v51 = vpop.xlane.xlu1 %452  ;;  %v593_v49 = vsub.f32 %v497_v60, %v545_v63  ;;  %v1131_v60 = vmul.f32 0.5, %v1130_v20  ;;  %v10111_v63 = vadd.f32 0.001, %v607_v38  ;;  %v10160_v34 = vpop.eup %9539  ;;  %v780_v59 = vmul.f32 %v10120_v15, %v779_v35 }
  0xcb   :  { %v10061_v47 = vpop.xlane.xlu0 %449  ;;  %v817_v29 = vsel %vm10136_vm6, %v10002_v6, %v813_v2  ;;  %v10174_v6 = vld [vmem:[%s13879_s0 + $0x98] sm:$0xff]  ;;  %v10177_v38 = vpop.eup %9541  ;;  %v959_v61 = vmul.f32 %v10160_v34, %v10085_v33  ;;  %vm965_vm14 = vweird.f32 %v10160_v34  ;;  %vm10346_vm6 = vmor %vm784_vm15, %vm785_vm13 }
  0xcc   :  { %v10095_v9 = vadd.f32 0.001, %v593_v49  ;;  %v1132_v25 = vsub.f32 1.5, %v1131_v60  ;;  %v1153_v49 = vld [vmem:[%s13880_s1 + $0x78] sm:$0xff]  ;;  %v10195_v60 = vmul.f32 0.020408163, %v9953_v39  ;;  %vm795_vm2 = vweird.f32 %v10177_v38  ;;  %vm10358_vm7 = vmor %vm964_vm1, %vm965_vm14 }
  0xcd   :  { %v10069_v1 = vpop.xlane.xlu2 %107  ;;  %v139_v0 = vsel %vm81_vm0, %v10174_v6, 0.0  ;;  %v1184_v39 = vld [vmem:[%s13880_s1 + $0x170] sm:$0xff]  ;;  %v960_v35 = vmul.f32 %v10160_v34, %v959_v61  ;;  %v781_v61 = vmul.f32 0.5, %v780_v59  ;;  %vm1114_vm5 = vweird.f32 %v10111_v63 }
  0xce   :  { %9543 = vrsqrt.f32 %v10095_v9  ;;  %13933 = vst [vmem:[#allocation10_spill] sm:$0xff] %v10195_v60  ;;  %vm974_vm4 = vweird.f32 %v10095_v9 }
  0xcf   :  { %383 = vadd.xlane.f32.xlu1 %v382_v10  ;;  %v10116_v10 = vadd.f32 0.001, %v606_v41  ;;  %9545 = vrsqrt.f32 %v10111_v63 }
  0xd0   :  { %332 = vadd.xlane.f32.xlu0 %v331_v4  ;;  %v82_v4 = vsel %vm81_vm0, %v10100_v8, 0.0 }
  0xd1   :  { %9547 = vrsqrt.f32 %v10116_v10 }
  0xd2   :  { %386 = vadd.xlane.f32.xlu2 %v385_v26  ;;  %v10091_v43 = vpop.xlane.xlu1 %161  ;;  %v10149_v26 = vld [vmem:[%s13879_s0 + $0x8] sm:$0xff] }
  0xd3   :  { %v10093_v28 = vpop.xlane.xlu0 %110  ;;  %v85_v41 = vsel %vm81_vm0, %v10149_v26, 0.0 }
  0xd4   :  { %v10189_v37 = vpop.eup %9543 }
  0xd5   :  { %v10106_v11 = vpop.xlane.xlu2 %164  ;;  %v10213_v17 = vpop.eup %9545  ;;  %v969_v7 = vmul.f32 %v10189_v37, %v10095_v9  ;;  %vm975_vm8 = vweird.f32 %v10189_v37  ;;  %v10446_v9 = vld [vmem:[%s13881_s2 + $0x78] sm:$0xff] }
  0xd6   :  { %13924 = vst [vmem:[#allocation5_spill] sm:$0xff] %v10106_v11  ;;  %v1109_v2 = vmul.f32 %v10213_v17, %v10111_v63  ;;  %v10284_v11 = vmul.f32 0.020408163, %v9961_v42  ;;  %vm1115_vm9 = vweird.f32 %v10213_v17  ;;  %vm10423_vm13 = vmor %vm974_vm4, %vm975_vm8  ;;  %v1183_v63 = vld [vmem:[%s13880_s1 + $0x168] sm:$0xff] }
  0xd7   :  { %428 = vadd.xlane.f32.xlu1 %v427_v52  ;;  %v10185_v52 = vmul.f32 %v1152_v12, %v807_v50  ;;  %v1127_v12 = vsel %vm10197_vm10, %v10033_v30, %v1123_v5  ;;  %v494_v50 = vmul.f32 0.020408163, %v10013_v13  ;;  %v542_v5 = vmul.f32 %v10195_v60, %v10195_v60  ;;  %vm10401_vm10 = vmor %vm794_vm3, %vm795_vm2 }
  0xd8   :  { %425 = vadd.xlane.f32.xlu0 %v424_v53  ;;  %v10187_v53 = vmul.f32 %v1153_v49, %v817_v29  ;;  %v10220_v29 = vpop.eup %9547  ;;  %v789_v49 = vmul.f32 %v10177_v38, %v10089_v56  ;;  %v477_v60 = vmul.f32 0.020408163, %v10015_v14  ;;  %v1110_v14 = vmul.f32 %v10213_v17, %v1109_v2  ;;  %vm10452_vm14 = vmor %vm1114_vm5, %vm1115_vm9 }
  0xd9   :  { %13931 = vst [vmem:[#allocation8_spill] sm:$0xff] %v10185_v52  ;;  %v590_v59 = vsub.f32 %v494_v50, %v542_v5  ;;  %v476_v50 = vmul.f32 0.020408163, %v9995_v62  ;;  %v782_v62 = vsub.f32 1.5, %v781_v61  ;;  %vm1105_vm11 = vweird.f32 %v10220_v29 }
  0xda   :  { %83 = vadd.xlane.f32.xlu2 %v82_v4  ;;  %v10165_v3 = vpop.xlane.xlu1 %206  ;;  %13932 = vst [vmem:[#allocation9_spill] sm:$0xff] %v10187_v53  ;;  %v10202_v4 = vmul.f32 %v10051_v44, %v1132_v25  ;;  %v10217_v25 = vmul.f32 0.020408163, %v9955_v31  ;;  %v10234_v31 = vmul.f32 %v10185_v52, %v9931_v18  ;;  %v10238_v13 = vmul.f32 %v10187_v53, %v9933_v19  ;;  %v10251_v18 = vld [vmem:[%s13879_s0 + $0x100] sm:$0xff] }
  0xdb   :  { %13929 = vst [vmem:[#allocation6_spill] sm:$0xff] %v10165_v3  ;;  %v10167_v20 = vpop.xlane.xlu0 %203  ;;  %v10295_v5 = vadd.f32 0.001, %v590_v59  ;;  %v1111_v61 = vmul.f32 0.5, %v1110_v14  ;;  %v783_v14 = vmul.f32 %v10120_v15, %v782_v62  ;;  %v508_v62 = vmul.f32 0.020408163, %v10061_v47 }
  0xdc   :  { %13930 = vst [vmem:[#allocation7_spill] sm:$0xff] %v10167_v20  ;;  %v525_v19 = vmul.f32 %v10217_v25, %v10217_v25  ;;  %v790_v20 = vmul.f32 %v10177_v38, %v789_v49 }
  0xdd   :  { %v10179_v21 = vpop.xlane.xlu2 %347  ;;  %9549 = vrsqrt.f32 %v10295_v5  ;;  %v787_v33 = vsel %vm10346_vm6, %v10120_v15, %v783_v14  ;;  %v1150_v15 = vld [vmem:[%s13880_s1 + $0x60] sm:$0xff]  ;;  %vm944_vm1 = vweird.f32 %v10295_v5 }
  0xde   :  { %v573_v42 = vsub.f32 %v477_v60, %v525_v19  ;;  %v791_v2 = vmul.f32 0.5, %v790_v20  ;;  %v10306_v60 = vmul.f32 0.020408163, %v9986_v57  ;;  %v10309_v20 = vmul.f32 0.020408163, %v9988_v46  ;;  %v49_v14 = vld [vmem:[%s13879_s0 + $0x80] sm:$0xff] }
  0xdf   :  { %137 = vadd.xlane.f32.xlu1 %v136_v40  ;;  %v10246_v40 = vld [vmem:[%s13879_s0 + $0x108] sm:$0xff]  ;;  %v130_v30 = vsel %vm81_vm0, %v49_v14, 0.0 }
  0xe0   :  { %86 = vadd.xlane.f32.xlu0 %v85_v41  ;;  %v10253_v41 = vmul.f32 %v1184_v39, %v1127_v12  ;;  %v274_v12 = vmul.f32 %v10100_v8, %v10100_v8  ;;  %v1099_v39 = vmul.f32 %v10220_v29, %v10116_v10  ;;  %v178_v8 = vsel %vm81_vm0, %v10251_v18, 0.0 }
  0xe2   :  { %140 = vadd.xlane.f32.xlu2 %v139_v0  ;;  %v10262_v0 = vmul.f32 0.020408163, %v9939_v23  ;;  %v10264_v53 = vpop.xlane.xlu1 %401  ;;  %v970_v23 = vmul.f32 %v10189_v37, %v969_v7  ;;  %v322_v7 = vsel %vm81_vm0, %v274_v12, 0.0  ;;  %v275_v12 = vmul.f32 %v10149_v26, %v10149_v26 }
  0xe3   :  { %13939 = vst [vmem:[#allocation12_spill] sm:$0xff] %v10264_v53  ;;  %v10266_v52 = vpop.xlane.xlu0 %350  ;;  %v961_v53 = vmul.f32 0.5, %v960_v35  ;;  %v1100_v35 = vmul.f32 %v10220_v29, %v1099_v39  ;;  %v543_v39 = vmul.f32 %v10284_v11, %v10284_v11 }
  0xe4   :  { %13938 = vst [vmem:[#allocation11_spill] sm:$0xff] %v10262_v0  ;;  %v524_v49 = vmul.f32 %v10262_v0, %v10262_v0  ;;  %v292_v0 = vmul.f32 %v10144_v45, %v10144_v45  ;;  %v495_v45 = vmul.f32 0.020408163, %v10025_v24 }
  0xe5   :  { %13940 = vst [vmem:[#allocation13_spill] sm:$0xff] %v10266_v52  ;;  %v10277_v3 = vpop.xlane.xlu2 %404  ;;  %v181_v52 = vsel %vm81_vm0, %v10246_v40, 0.0  ;;  %v962_v19 = vsub.f32 1.5, %v961_v53  ;;  %v1101_v57 = vmul.f32 0.5, %v1100_v35  ;;  %v509_v53 = vmul.f32 0.020408163, %v10059_v51 }
  0xe6   :  { %13941 = vst [vmem:[#allocation14_spill] sm:$0xff] %v10277_v3  ;;  %v971_v3 = vmul.f32 0.5, %v970_v23  ;;  %v293_v23 = vmul.f32 %v10174_v6, %v10174_v6  ;;  %v376_v24 = vsel %vm81_vm0, %v292_v0, 0.0  ;;  %v792_v6 = vsub.f32 1.5, %v791_v2 }
  0xe7   :  { %182 = vadd.xlane.f32.xlu1 %v181_v52  ;;  %v572_v52 = vsub.f32 %v476_v50, %v524_v49  ;;  %v325_v50 = vsel %vm81_vm0, %v275_v12, 0.0  ;;  %v557_v49 = vmul.f32 %v10306_v60, %v10306_v60  ;;  %v963_v51 = vmul.f32 %v10160_v34, %v962_v19 }
  0xe8   :  { %179 = vadd.xlane.f32.xlu0 %v178_v8  ;;  %v10320_v8 = vadd.f32 0.001, %v573_v42  ;;  %v972_v35 = vsub.f32 1.5, %v971_v3  ;;  %v10337_v42 = vmul.f32 %v10309_v20, %v10309_v20  ;;  %v591_v0 = vsub.f32 %v495_v45, %v543_v39 }
  0xe9   :  { %v379_v12 = vsel %vm81_vm0, %v293_v23, 0.0  ;;  %v605_v2 = vsub.f32 %v509_v53, %v557_v49  ;;  %v307_v39 = vmul.f32 %v10246_v40, %v10246_v40  ;;  %v306_v19 = vmul.f32 %v10251_v18, %v10251_v18 }
  0xea   :  { %323 = vadd.xlane.f32.xlu2 %v322_v7  ;;  %v10312_v59 = vpop.xlane.xlu1 %446  ;;  %v10332_v7 = vadd.f32 0.001, %v572_v52  ;;  %9551 = vrsqrt.f32 %v10320_v8  ;;  %v1102_v52 = vsub.f32 1.5, %v1101_v57  ;;  %v793_v16 = vmul.f32 %v10177_v38, %v792_v6  ;;  %v1185_v57 = vld [vmem:[%s13880_s1 + $0x178] sm:$0xff] }
  0xeb   :  { %v10314_v26 = vpop.xlane.xlu0 %443  ;;  %v967_v40 = vsel %vm10358_vm7, %v10160_v34, %v963_v51  ;;  %v10374_v18 = vadd.f32 0.001, %v591_v0  ;;  %v1168_v34 = vld [vmem:[%s13880_s1 + $0xf0] sm:$0xff]  ;;  %v604_v6 = vsub.f32 %v508_v62, %v10337_v42  ;;  %v9702_v49 = vmov 0  }
  0xec   :  { %9553 = vrsqrt.f32 %v10332_v7  ;;  %9526 = vset.pattern.permute.xlu0 %v9702_v49  ;;  %9527 = vset.pattern.permute.xlu1 %v9702_v49  ;;  %v1103_v51 = vmul.f32 %v10220_v29, %v1102_v52  ;;  %v421_v0 = vsel %vm81_vm0, %v307_v39, 0.0  ;;  %v797_v56 = vsel %vm10401_vm10, %v10177_v38, %v793_v16  ;;  %v10439_v39 = vld [vmem:[%s13881_s2 + $0x70] sm:$0xff] }
  0xed   :  { %v10324_v46 = vpop.xlane.xlu2 %101  ;;  %9528 = vset.pattern.permute.xlu2 %v9702_v49  ;;  %v13952_v52 = vsel %vm10224_vm12, %v10051_v44, %v10202_v4  ;;  %v10456_v4 = vmul.f32 %v1150_v15, %v787_v33  ;;  %vm1104_vm12 = vweird.f32 %v10116_v10  ;;  %9555 = vrsqrt.f32 %v10374_v18 }
  0xee   :  { %13942 = vst [vmem:[#allocation15_spill] sm:$0xff] %v10324_v46  ;;  %v1112_v46 = vsub.f32 1.5, %v1111_v61  ;;  %v10364_v61 = vpop.eup %9549  ;;  %v10434_v38 = vmul.f32 %v1185_v57, %v13952_v52  ;;  %vm10469_vm15 = vmor %vm1104_vm12, %vm1105_vm11  ;;  %v50_v57 = vld [vmem:[%s13879_s0 + $0x88] sm:$0xff]  ;;  %v10531_v52 = vld [vmem:[%s13881_s2 + $0x170] sm:$0xff]  ;;  %vm774_vm2 = vweird.f32 %v10320_v8  ;;  %vm764_vm4 = vweird.f32 %v10332_v7 }
  0xef   :  { %377 = vadd.xlane.f32.xlu1 %v376_v24  ;;  %v973_v24 = vmul.f32 %v10189_v37, %v972_v35  ;;  %v939_v35 = vmul.f32 %v10364_v61, %v10295_v5  ;;  %vm945_vm3 = vweird.f32 %v10364_v61  ;;  %v1166_v5 = vld [vmem:[%s13880_s1 + $0xe0] sm:$0xff]  ;;  %vm954_vm11 = vweird.f32 %v10374_v18 }
  0xf0   :  { %326 = vadd.xlane.f32.xlu0 %v325_v50  ;;  %v1113_v53 = vmul.f32 %v10213_v17, %v1112_v46  ;;  %v10391_v50 = vadd.f32 0.001, %v605_v2  ;;  %v1151_v2 = vld [vmem:[%s13880_s1 + $0x68] sm:$0xff]  ;;  %v10427_v3 = vpop.eup %9551  ;;  %v10502_v46 = vmul.f32 %v10434_v38, %v9970_v48  ;;  %v10519_v48 = vld [vmem:[%s13881_s2 + $0x178] sm:$0xff]  ;;  %vm10670_vm7 = vmor %vm944_vm1, %vm945_vm3 }
  0xf1   :  { %v977_v10 = vsel %vm10423_vm13, %v10189_v37, %v973_v24  ;;  %v1107_v37 = vsel %vm10469_vm15, %v10220_v29, %v1103_v51  ;;  %v940_v15 = vmul.f32 %v10364_v61, %v939_v35  ;;  %v769_v24 = vmul.f32 %v10427_v3, %v10320_v8 }
  0xf2   :  { %380 = vadd.xlane.f32.xlu2 %v379_v12  ;;  %v10376_v45 = vpop.xlane.xlu1 %155  ;;  %v418_v12 = vsel %vm81_vm0, %v306_v19, 0.0  ;;  %v10441_v19 = vmul.f32 %v1168_v34, %v967_v40  ;;  %v1117_v47 = vsel %vm10452_vm14, %v10213_v17, %v1113_v53  ;;  %v1169_v40 = vld [vmem:[%s13880_s1 + $0xf8] sm:$0xff]  ;;  %v10479_v33 = vpop.eup %9553  ;;  %9557 = vrsqrt.f32 %v10391_v50  ;;  %v1182_v53 = vld [vmem:[%s13880_s1 + $0x160] sm:$0xff] }
  0xf3   :  { %v10378_v23 = vpop.xlane.xlu0 %104  ;;  %v10482_v17 = vadd.f32 0.001, %v604_v6  ;;  %v10487_v34 = vmul.f32 %v1151_v2, %v797_v56  ;;  %v290_v6 = vmul.f32 %v49_v14, %v49_v14  ;;  %v10506_v51 = vmul.f32 %v1183_v63, %v1117_v47  ;;  %v10545_v47 = vpop.eup %9555 }
  0xf4   :  { %v759_v35 = vmul.f32 %v10479_v33, %v10332_v7  ;;  %v291_v56 = vmul.f32 %v50_v57, %v50_v57  ;;  %v10523_v2 = vmul.f32 %v10253_v41, %v9951_v36  ;;  %v10525_v62 = vmul.f32 %v1182_v53, %v1107_v37  ;;  %v10565_v37 = vld [vmem:[%s13881_s2 + $0x60] sm:$0xff] }
  0xf5   :  { %v10409_v42 = vpop.xlane.xlu2 %158  ;;  %9559 = vrsqrt.f32 %v10482_v17  ;;  %v10535_v44 = vmul.f32 %v10441_v19, %v10030_v27  ;;  %v10543_v36 = vmul.f32 %v10456_v4, %v10022_v22  ;;  %v941_v63 = vmul.f32 0.5, %v940_v15  ;;  %v10560_v22 = vld [vmem:[%s13881_s2 + $0x68] sm:$0xff]  ;;  %13965 = vst [vmem:[#allocation25_spill] sm:$0xff] %v10565_v37 }
  0xf6   :  { %13949 = vst [vmem:[#allocation16_spill] sm:$0xff] %v10409_v42  ;;  %v770_v16 = vmul.f32 %v10427_v3, %v769_v24  ;;  %v133_v27 = vsel %vm81_vm0, %v50_v57, 0.0  ;;  %v10570_v15 = vmul.f32 0.020408163, %v10378_v23  ;;  %v10576_v24 = vmul.f32 %v10506_v51, %v10064_v54  ;;  %v10589_v23 = vld [vmem:[%s13881_s2 + $0x168] sm:$0xff]  ;;  %v10612_v57 = vld [vmem:[%s13881_s2 + $0x160] sm:$0xff] }
  0xf7   :  { %422 = vadd.xlane.f32.xlu1 %v421_v0  ;;  %v10508_v0 = vmul.f32 %v1169_v40, %v977_v10  ;;  %13958 = vst [vmem:[#allocation18_spill] sm:$0xff] %v10525_v62  ;;  %v370_v40 = vsel %vm81_vm0, %v290_v6, 0.0  ;;  %v760_v29 = vmul.f32 %v10479_v33, %v759_v35  ;;  %v373_v49 = vsel %vm81_vm0, %v291_v56, 0.0 }
  0xf8   :  { %419 = vadd.xlane.f32.xlu0 %v418_v12  ;;  %13959 = vst [vmem:[#allocation19_spill] sm:$0xff] %v10535_v44  ;;  %v10567_v53 = vpop.eup %9557  ;;  %v10593_v54 = vmul.f32 %v10525_v62, %v10056_v58  ;;  %v10601_v35 = vmul.f32 0.020408163, %v10376_v45  ;;  %v771_v42 = vmul.f32 0.5, %v770_v16  ;;  %v949_v45 = vmul.f32 %v10545_v47, %v10374_v18  ;;  %v13980_v62 = vld [vmem:[#allocation5_spill] sm:$0xff]  ;;  %v13982_v44 = vld [vmem:[#allocation6_spill] sm:$0xff] }
  0xf9   :  { %13957 = vst [vmem:[#allocation17_spill] sm:$0xff] %v10508_v0  ;;  %v10580_v6 = vmul.f32 %v10508_v0, %v10044_v55  ;;  %v10598_v55 = vld [vmem:[%s13881_s2 + $0xf8] sm:$0xff]  ;;  %v10628_v37 = vmul.f32 0.020408163, %v10069_v1  ;;  %vm765_vm5 = vweird.f32 %v10479_v33  ;;  %vm775_vm6 = vweird.f32 %v10427_v3 }
  0xfa   :  { %131 = vadd.xlane.f32.xlu2 %v130_v30  ;;  %v10512_v12 = vpop.xlane.xlu1 %200  ;;  %v10539_v30 = vmul.f32 %v10487_v34, %v10036_v32  ;;  %13961 = vst [vmem:[#allocation21_spill] sm:$0xff] %v10543_v36  ;;  %v10555_v32 = vld [vmem:[%s13881_s2 + $0xf0] sm:$0xff]  ;;  %v761_v36 = vmul.f32 0.5, %v760_v29  ;;  %v950_v16 = vmul.f32 %v10545_v47, %v949_v45  ;;  %vm1094_vm8 = vweird.f32 %v10391_v50  ;;  %vm10699_vm10 = vmor %vm774_vm2, %vm775_vm6 }
  0xfb   :  { %v10514_v14 = vpop.xlane.xlu0 %197  ;;  %13963 = vst [vmem:[#allocation23_spill] sm:$0xff] %v10555_v32  ;;  %v10618_v56 = vpop.eup %9559  ;;  %v10649_v45 = vmul.f32 %v10628_v37, %v10628_v37  ;;  %vm955_vm9 = vweird.f32 %v10545_v47  ;;  %v10723_v32 = vmul.f32 0.020408163, %v13982_v44  ;;  %vm1095_vm13 = vweird.f32 %v10567_v53  ;;  %vm10731_vm14 = vmor %vm764_vm4, %vm765_vm5  ;;  %v13986_v44 = vld [vmem:[#allocation7_spill] sm:$0xff] }
  0xfc   :  { %13960 = vst [vmem:[#allocation20_spill] sm:$0xff] %v10539_v30  ;;  %vm1084_vm12 = vweird.f32 %v10482_v17  ;;  %vm10795_vm15 = vmor %vm1094_vm8, %vm1095_vm13  ;;  %vm1085_vm1 = vweird.f32 %v10618_v56 }
  0xfd   :  { %v10548_v10 = vpop.xlane.xlu2 %341  ;;  %13964 = vst [vmem:[#allocation24_spill] sm:$0xff] %v10560_v22  ;;  %v1079_v22 = vmul.f32 %v10618_v56, %v10482_v17  ;;  %vm10818_vm2 = vmor %vm954_vm11, %vm955_vm9 }
  0xfe   :  { %13962 = vst [vmem:[#allocation22_spill] sm:$0xff] %v10548_v10  ;;  %v521_v10 = vmul.f32 %v10570_v15, %v10570_v15  ;;  %vm10855_vm5 = vmor %vm1084_vm12, %vm1085_vm1 }
  0xff   :  { %13966 = vst [vmem:[#allocation26_spill] sm:$0xff] %v10576_v24  ;;  %371 = vadd.xlane.f32.xlu1 %v370_v40  ;;  %v1089_v40 = vmul.f32 %v10567_v53, %v10391_v50  ;;  %v1181_v50 = vld [vmem:[%s13880_s1 + $0x158] sm:$0xff] }
 0x100   :  { %13967 = vst [vmem:[#allocation27_spill] sm:$0xff] %v10580_v6  ;;  %134 = vadd.xlane.f32.xlu0 %v133_v27  ;;  %v942_v27 = vsub.f32 1.5, %v941_v63 }
 0x101   :  { %13968 = vst [vmem:[#allocation28_spill] sm:$0xff] %v10589_v23  ;;  %v1090_v29 = vmul.f32 %v10567_v53, %v1089_v40  ;;  %v10652_v40 = vmul.f32 0.020408163, %v10091_v43 }
 0x102   :  { %13969 = vst [vmem:[#allocation29_spill] sm:$0xff] %v10593_v54  ;;  %374 = vadd.xlane.f32.xlu2 %v373_v49  ;;  %v396_v30 = vpop.xlane.xlu1 %395  ;;  %v538_v49 = vmul.f32 %v10601_v35, %v10601_v35  ;;  %v943_v6 = vmul.f32 %v10364_v61, %v942_v27  ;;  %v10644_v54 = vmul.f32 0.020408163, %v10514_v14 }
 0x103   :  { %13970 = vst [vmem:[#allocation30_spill] sm:$0xff] %v10598_v55  ;;  %v345_v63 = vpop.xlane.xlu0 %344  ;;  %v490_v58 = vmul.f32 0.020408163, %v396_v30  ;;  %v772_v55 = vsub.f32 1.5, %v771_v42  ;;  %v10656_v42 = vmul.f32 0.020408163, %v10512_v12 }
 0x104   :  { %13971 = vst [vmem:[#allocation31_spill] sm:$0xff] %v10612_v57  ;;  %v473_v24 = vmul.f32 0.020408163, %v345_v63  ;;  %v762_v63 = vsub.f32 1.5, %v761_v36  ;;  %v1080_v36 = vmul.f32 %v10618_v56, %v1079_v22 }
 0x105   :  { %13972 = vst [vmem:[#allocation32_spill] sm:$0xff] %v10628_v37  ;;  %v10638_v1 = vpop.xlane.xlu2 %398  ;;  %v586_v57 = vsub.f32 %v490_v58, %v538_v49  ;;  %v10664_v58 = vmul.f32 0.020408163, %v10093_v28  ;;  %v773_v12 = vmul.f32 %v10427_v3, %v772_v55  ;;  %v947_v28 = vsel %vm10670_vm7, %v10364_v61, %v943_v6 }
 0x106   :  { %13973 = vst [vmem:[#allocation33_spill] sm:$0xff] %v10638_v1  ;;  %v569_v30 = vsub.f32 %v473_v24, %v521_v10  ;;  %v951_v10 = vmul.f32 0.5, %v950_v16  ;;  %v1091_v24 = vmul.f32 0.5, %v1090_v29  ;;  %v10687_v16 = vmul.f32 %v10652_v40, %v10652_v40 }
 0x107   :  { %13974 = vst [vmem:[#allocation34_spill] sm:$0xff] %v10652_v40  ;;  %v10658_v27 = vadd.f32 0.001, %v586_v57  ;;  %v552_v57 = vmul.f32 %v10644_v54, %v10644_v54  ;;  %v474_v55 = vmul.f32 0.020408163, %v10179_v21  ;;  %v553_v61 = vmul.f32 %v10656_v42, %v10656_v42 }
 0x108   :  { %v10660_v14 = vadd.f32 0.001, %v569_v30  ;;  %13975 = vst [vmem:[#allocation35_spill] sm:$0xff] %v10664_v58  ;;  %v763_v21 = vmul.f32 %v10479_v33, %v762_v63  ;;  %v10707_v43 = vmul.f32 %v10664_v58, %v10664_v58  ;;  %v777_v8 = vsel %vm10699_vm10, %v10427_v3, %v773_v12  ;;  %v1149_v63 = vld [vmem:[%s13880_s1 + $0x58] sm:$0xff] }
 0x109   :  { %9561 = vrsqrt.f32 %v10658_v27  ;;  %v1081_v1 = vmul.f32 0.5, %v1080_v36  ;;  %v952_v0 = vsub.f32 1.5, %v951_v10  ;;  %v10720_v58 = vmul.f32 0.020408163, %v13980_v62  ;;  %13983 = vst [vmem:[#allocation6_spill] sm:$0xff] %v10723_v32  ;;  %v1148_v62 = vld [vmem:[%s13880_s1 + $0x50] sm:$0xff] }
 0x10a   :  { %9563 = vrsqrt.f32 %v10660_v14  ;;  %v441_v22 = vpop.xlane.xlu1 %440  ;;  %v10741_v12 = vmul.f32 0.020408163, %v13986_v44  ;;  %v767_v7 = vsel %vm10731_vm14, %v10479_v33, %v763_v21  ;;  %v10768_v33 = vld [vmem:[%s13881_s2 + $0xe0] sm:$0xff]  ;;  %vm904_vm4 = vweird.f32 %v10658_v27 }
 0x10b   :  { %v438_v49 = vpop.xlane.xlu0 %437  ;;  %v505_v6 = vmul.f32 0.020408163, %v441_v22  ;;  %v10711_v22 = vmul.f32 %v1166_v5, %v947_v28  ;;  %13981 = vst [vmem:[#allocation5_spill] sm:$0xff] %v10720_v58  ;;  %v10783_v3 = vmul.f32 %v10720_v58, %v10720_v58  ;;  %vm734_vm8 = vweird.f32 %v10660_v14 }
 0x10c   :  { %v504_v29 = vmul.f32 0.020408163, %v438_v49  ;;  %v1092_v49 = vsub.f32 1.5, %v1091_v24  ;;  %v570_v24 = vsub.f32 %v474_v55, %v10649_v45  ;;  %13987 = vst [vmem:[#allocation7_spill] sm:$0xff] %v10741_v12  ;;  %v10756_v55 = vmul.f32 %v1149_v63, %v777_v8 }
 0x10d   :  { %v10709_v40 = vpop.xlane.xlu2 %95  ;;  %v601_v37 = vsub.f32 %v505_v6, %v553_v61  ;;  %v13988_v61 = vld [vmem:[#allocation10_spill] sm:$0xff]  ;;  %13990 = vst [vmem:[#allocation36_spill] sm:$0xff] %v10768_v33  ;;  %v1082_v6 = vsub.f32 1.5, %v1081_v1  ;;  %v10779_v63 = vmul.f32 %v1148_v62, %v767_v7  ;;  %v10787_v1 = vmul.f32 %v10723_v32, %v10723_v32  ;;  %v13999_v32 = vld [vmem:[#allocation13_spill] sm:$0xff] }
 0x10e   :  { %v600_v23 = vsub.f32 %v504_v29, %v552_v57  ;;  %v1093_v5 = vmul.f32 %v10567_v53, %v1092_v49  ;;  %v953_v29 = vmul.f32 %v10545_v47, %v952_v0  ;;  %v10771_v30 = vadd.f32 0.001, %v570_v24  ;;  %v13992_v24 = vld [vmem:[#allocation8_spill] sm:$0xff] }
 0x10f   :  { %v10738_v10 = vpop.eup %9561  ;;  %v10743_v45 = vadd.f32 0.001, %v601_v37  ;;  %v10760_v37 = vmul.f32 %v10711_v22, %v13988_v61  ;;  %13991 = vst [vmem:[#allocation37_spill] sm:$0xff] %v10779_v63  ;;  %v10802_v62 = vmul.f32 %v10741_v12, %v10741_v12  ;;  %v1083_v58 = vmul.f32 %v10618_v56, %v1082_v6  ;;  %v13998_v6 = vld [vmem:[#allocation12_spill] sm:$0xff] }
 0x110   :  { %v10745_v36 = vadd.f32 0.001, %v600_v23  ;;  %v10751_v57 = vpop.eup %9563  ;;  %v899_v28 = vmul.f32 %v10738_v10, %v10658_v27  ;;  %v1097_v61 = vsel %vm10795_vm15, %v10567_v53, %v1093_v5  ;;  %v957_v53 = vsel %vm10818_vm2, %v10545_v47, %v953_v29 }
 0x111   :  { %13989 = vst [vmem:[#allocation10_spill] sm:$0xff] %v10760_v37  ;;  %v729_v23 = vmul.f32 %v10751_v57, %v10660_v14  ;;  %9565 = vrsqrt.f32 %v10743_v45  ;;  %v10828_v5 = vmul.f32 %v10756_v55, %v10217_v25  ;;  %vm905_vm3 = vweird.f32 %v10738_v10  ;;  %v1167_v25 = vld [vmem:[%s13880_s1 + $0xe8] sm:$0xff]  ;;  %v14000_v37 = vld [vmem:[#allocation9_spill] sm:$0xff] }
 0x112   :  { %v900_v21 = vmul.f32 %v10738_v10, %v899_v28  ;;  %9567 = vrsqrt.f32 %v10745_v36  ;;  %v10775_v49 = vpop.xlane.xlu1 %149  ;;  %v492_v12 = vmul.f32 0.020408163, %v13998_v6  ;;  %v10840_v29 = vmul.f32 %v1181_v50, %v1097_v61  ;;  %v1162_v50 = vld [vmem:[%s13880_s1 + $0xc0] sm:$0xff]  ;;  %vm906_vm7 = vmor %vm904_vm4, %vm905_vm3 }
 0x113   :  { %v10777_v8 = vpop.xlane.xlu0 %98  ;;  %v730_v0 = vmul.f32 %v10751_v57, %v729_v23  ;;  %9569 = vrsqrt.f32 %v10771_v30  ;;  %v13997_v23 = vld [vmem:[#allocation11_spill] sm:$0xff]  ;;  %vm735_vm6 = vweird.f32 %v10751_v57  ;;  %v1087_v17 = vsel %vm10855_vm5, %v10618_v56, %v1083_v58 }
 0x114   :  { %1450 = vperm.xlu0 %9526, %v13992_v24   ;;  %v901_v7 = vmul.f32 0.5, %v900_v21  ;;  %v10833_v18 = vmul.f32 %v10779_v63, %v13997_v23  ;;  %v475_v24 = vmul.f32 0.020408163, %v13999_v32  ;;  %v10883_v33 = vmul.f32 %v1167_v25, %v957_v53  ;;  %vm736_vm9 = vmor %vm734_vm8, %vm735_vm6  ;;  %v1145_v53 = vld [vmem:[%s13880_s1 + $0x38] sm:$0xff] }
 0x115   :  { %v10804_v28 = vpop.xlane.xlu2 %152  ;;  %v731_v21 = vmul.f32 0.5, %v730_v0  ;;  %v588_v58 = vsub.f32 %v492_v12, %v10687_v16  ;;  %v14005_v16 = vld [vmem:[#allocation14_spill] sm:$0xff]  ;;  %vm1054_vm11 = vweird.f32 %v10743_v45  ;;  %vm1044_vm12 = vweird.f32 %v10745_v36 }
 0x116   :  { %v902_v44 = vsub.f32 1.5, %v901_v7  ;;  %v571_v32 = vsub.f32 %v475_v24, %v10707_v43  ;;  %v493_v12 = vmul.f32 0.020408163, %v14005_v16 }
 0x117   :  { %v10836_v0 = vpop.eup %9565  ;;  %v732_v47 = vsub.f32 1.5, %v731_v21  ;;  %v1180_v21 = vld [vmem:[%s13880_s1 + $0x150] sm:$0xff] }
 0x118   :  { %v10845_v7 = vpop.eup %9567  ;;  %v1049_v23 = vmul.f32 %v10836_v0, %v10743_v45  ;;  %1455 = vperm.xlu1 %9527, %v14000_v37   ;;  %v903_v61 = vmul.f32 %v10738_v10, %v902_v44  ;;  %v10867_v37 = vmul.f32 0.020408163, %v10709_v40  ;;  %v10902_v25 = vmul.f32 %v1180_v21, %v1087_v17 }
 0x119   :  { %v1039_v27 = vmul.f32 %v10845_v7, %v10745_v36  ;;  %v733_v44 = vmul.f32 %v10751_v57, %v732_v47  ;;  %v14003_v47 = vsub.f32 %v10519_v48, %v10502_v46  ;;  %vm1055_vm10 = vweird.f32 %v10836_v0 }
 0x11a   :  { %1610 = vperm.xlu2 %9528, %v10253_v41   ;;  %v1050_v40 = vmul.f32 %v10836_v0, %v1049_v23  ;;  %v10881_v6 = vpop.xlane.xlu1 %194  ;;  %v907_v56 = vsel %vm906_vm7, %v10738_v10, %v903_v61  ;;  %v10899_v10 = vpop.eup %9569  ;;  %v518_v23 = vmul.f32 %v10867_v37, %v10867_v37  ;;  %v10908_v61 = vmul.f32 0.020408163, %v10777_v8  ;;  %vm10942_vm14 = vmor %vm1054_vm11, %vm1055_vm10 }
 0x11b   :  { %v192_v41 = vpop.xlane.xlu0 %191  ;;  %v1040_v63 = vmul.f32 %v10845_v7, %v1039_v27  ;;  %v10892_v14 = vmul.f32 %v1162_v50, %v907_v56  ;;  %v737_v46 = vsel %vm736_vm9, %v10751_v57, %v733_v44  ;;  %v10922_v8 = vmul.f32 0.020408163, %v10804_v28 }
 0x11c   :  { %1903 = vperm.xlu0 %9526, %v14003_v47   ;;  %v1051_v43 = vmul.f32 0.5, %v1050_v40  ;;  %v10911_v56 = vmul.f32 %v1145_v53, %v737_v46  ;;  %v14008_v21 = vsub.f32 %v10439_v39, %v10234_v31  ;;  %vm1045_vm13 = vweird.f32 %v10845_v7  ;;  %v1177_v39 = vld [vmem:[%s13880_s1 + $0x138] sm:$0xff] }
 0x11d   :  { %14004 = vst [vmem:[#allocation8_spill] sm:$0xff] %v10892_v14  ;;  %v336_v24 = vpop.xlane.xlu2 %335  ;;  %v1041_v48 = vmul.f32 0.5, %v1040_v63  ;;  %v10915_v40 = vmul.f32 %v10892_v14, %v10601_v35  ;;  %v10919_v63 = vmul.f32 0.020408163, %v10775_v49  ;;  %v10933_v45 = vadd.f32 0.001, %v588_v58  ;;  %vm1046_vm15 = vmor %vm1044_vm12, %vm1045_vm13 }
 0x11e   :  { %v470_v50 = vmul.f32 0.020408163, %v336_v24  ;;  %v1052_v27 = vsub.f32 1.5, %v1051_v43  ;;  %14006 = vst [vmem:[#allocation11_spill] sm:$0xff] %v10911_v56  ;;  %v10930_v35 = vmul.f32 %v10911_v56, %v10570_v15  ;;  %v519_v49 = vmul.f32 %v10908_v61, %v10908_v61  ;;  %v1176_v43 = vld [vmem:[%s13880_s1 + $0x130] sm:$0xff] }
 0x11f   :  { %14007 = vst [vmem:[#allocation12_spill] sm:$0xff] %v10915_v40  ;;  %v1042_v57 = vsub.f32 1.5, %v1041_v48  ;;  %v10950_v28 = vadd.f32 0.001, %v571_v32  ;;  %v589_v58 = vsub.f32 %v493_v12, %v10783_v3  ;;  %v536_v24 = vmul.f32 %v10919_v63, %v10919_v63 }
 0x120   :  { %v566_v17 = vsub.f32 %v470_v50, %v518_v23  ;;  %1738 = vperm.xlu1 %9527, %v14008_v21   ;;  %v1053_v44 = vmul.f32 %v10836_v0, %v1052_v27  ;;  %14009 = vst [vmem:[#allocation13_spill] sm:$0xff] %v10930_v35  ;;  %v537_v36 = vmul.f32 %v10922_v8, %v10922_v8  ;;  %v10968_v3 = vmul.f32 0.020408163, %v192_v41 }
 0x121   :  { %v1043_v15 = vmul.f32 %v10845_v7, %v1042_v57  ;;  %v10994_v31 = vadd.f32 0.001, %v589_v58  ;;  %vm745_vm12 = vweird.f32 %v10899_v10 }
 0x122   :  { %v10937_v47 = vadd.f32 0.001, %v566_v17  ;;  %1615 = vperm.xlu2 %9528, %v10434_v38   ;;  %v390_v53 = vpop.xlane.xlu1 %389  ;;  %v1057_v16 = vsel %vm10942_vm14, %v10836_v0, %v1053_v44  ;;  %v10979_v17 = vmul.f32 0.020408163, %v10881_v6  ;;  %v507_v6 = vmul.f32 0.020408163, %v10312_v59 }
 0x123   :  { %v339_v38 = vpop.xlane.xlu0 %338  ;;  %v488_v32 = vmul.f32 0.020408163, %v390_v53  ;;  %v10970_v12 = vmul.f32 %v1177_v39, %v1057_v16  ;;  %v1047_v48 = vsel %vm1046_vm15, %v10845_v7, %v1043_v15  ;;  %v14016_v39 = vsub.f32 %v10531_v52, %v10523_v2  ;;  %v11027_v16 = vld [vmem:[%s13881_s2 + $0x50] sm:$0xff] }
 0x124   :  { %9571 = vrsqrt.f32 %v10937_v47  ;;  %v471_v46 = vmul.f32 0.020408163, %v339_v38  ;;  %1530 = vperm.xlu0 %9526, %v10441_v19   ;;  %v10973_v57 = vmul.f32 %v1176_v43, %v1047_v48  ;;  %v739_v19 = vmul.f32 %v10899_v10, %v10771_v30 }
 0x125   :  { %v393_v0 = vpop.xlane.xlu2 %392  ;;  %14012 = vst [vmem:[#allocation9_spill] sm:$0xff] %v10970_v12  ;;  %v584_v23 = vsub.f32 %v488_v32, %v536_v24  ;;  %9573 = vrsqrt.f32 %v10933_v45  ;;  %v10983_v41 = vmul.f32 %v10970_v12, %v10656_v42  ;;  %v11002_v42 = vmul.f32 %v10840_v29, %v10306_v60  ;;  %v11018_v60 = vld [vmem:[%s13881_s2 + $0x58] sm:$0xff]  ;;  %v14033_v12 = vld [vmem:[#allocation26_spill] sm:$0xff] }
 0x126   :  { %v567_v50 = vsub.f32 %v471_v46, %v519_v49  ;;  %v489_v27 = vmul.f32 0.020408163, %v393_v0  ;;  %14013 = vst [vmem:[#allocation14_spill] sm:$0xff] %v10973_v57  ;;  %v10991_v49 = vmul.f32 %v10973_v57, %v10644_v54  ;;  %9575 = vrsqrt.f32 %v10950_v28  ;;  %v11040_v32 = vld [vmem:[%s13881_s2 + $0x158] sm:$0xff] }
 0x127   :  { %14014 = vst [vmem:[#allocation38_spill] sm:$0xff] %v10983_v41  ;;  %v10985_v21 = vadd.f32 0.001, %v584_v23  ;;  %v506_v53 = vmul.f32 0.020408163, %v10314_v26  ;;  %v550_v54 = vmul.f32 %v10968_v3, %v10968_v3  ;;  %v14017_v59 = vsub.f32 %v10446_v9, %v10238_v13 }
 0x128   :  { %v10987_v7 = vadd.f32 0.001, %v567_v50  ;;  %v585_v44 = vsub.f32 %v489_v27, %v537_v36  ;;  %14015 = vst [vmem:[#allocation39_spill] sm:$0xff] %v10991_v49  ;;  %1898 = vperm.xlu1 %9527, %v14016_v39   ;;  %v740_v2 = vmul.f32 %v10899_v10, %v739_v19  ;;  %v11031_v13 = vmul.f32 %v10883_v33, %v10284_v11  ;;  %v1142_v19 = vld [vmem:[%s13880_s1 + $0x20] sm:$0xff] }
 0x129   :  { %9577 = vrsqrt.f32 %v10985_v21  ;;  %v551_v9 = vmul.f32 %v10979_v17, %v10979_v17  ;;  %v603_v11 = vsub.f32 %v507_v6, %v10787_v1  ;;  %v602_v23 = vsub.f32 %v506_v53, %v10802_v62  ;;  %v14020_v1 = vld [vmem:[#allocation15_spill] sm:$0xff] }
 0x12a   :  { %v11004_v15 = vpop.eup %9571  ;;  %v11010_v58 = vadd.f32 0.001, %v585_v44  ;;  %1743 = vperm.xlu2 %9528, %v14017_v59   ;;  %9579 = vrsqrt.f32 %v10987_v7  ;;  %v435_v52 = vpop.xlane.xlu1 %434  ;;  %14018 = vst [vmem:[#allocation40_spill] sm:$0xff] %v11031_v13  ;;  %v11060_v6 = vmul.f32 0.020408163, %v14020_v1  ;;  %v11070_v62 = vmul.f32 0.5, %v740_v2 }
 0x12b   :  { %v699_v26 = vmul.f32 %v11004_v15, %v10937_v47  ;;  %v432_v38 = vpop.xlane.xlu0 %431  ;;  %v503_v43 = vmul.f32 0.020408163, %v435_v52  ;;  %v11042_v46 = vpop.eup %9573  ;;  %vm705_vm1 = vweird.f32 %v11004_v15  ;;  %vm704_vm2 = vweird.f32 %v10937_v47 }
 0x12c   :  { %9581 = vrsqrt.f32 %v11010_v58  ;;  %v502_v24 = vmul.f32 0.020408163, %v432_v38  ;;  %1605 = vperm.xlu0 %9526, %v10506_v51   ;;  %v11052_v51 = vld [vmem:[%s13881_s2 + $0xe8] sm:$0xff]  ;;  %v11057_v44 = vpop.eup %9575  ;;  %vm706_vm3 = vmor %vm704_vm2, %vm705_vm1  ;;  %vm884_vm6 = vweird.f32 %v10985_v21  ;;  %vm714_vm8 = vweird.f32 %v10987_v7 }
 0x12d   :  { %9583 = vrsqrt.f32 %v10994_v31  ;;  %v700_v36 = vmul.f32 %v11004_v15, %v699_v26  ;;  %v90_v0 = vpop.xlane.xlu2 %89  ;;  %14019 = vst [vmem:[#allocation41_spill] sm:$0xff] %v11052_v51  ;;  %v599_v50 = vsub.f32 %v503_v43, %v551_v9  ;;  %v11066_v26 = vmul.f32 %v10902_v25, %v10309_v20 }
 0x12e   :  { %v598_v27 = vsub.f32 %v502_v24, %v550_v54  ;;  %v11080_v43 = vadd.f32 0.001, %v603_v11  ;;  %vm894_vm11 = vweird.f32 %v11010_v58  ;;  %vm744_vm1 = vweird.f32 %v10771_v30 }
 0x12f   :  { %v701_v39 = vmul.f32 0.5, %v700_v36  ;;  %v11068_v52 = vpop.eup %9577  ;;  %v11072_v53 = vadd.f32 0.001, %v599_v50  ;;  %v919_v36 = vmul.f32 %v11042_v46, %v10933_v45  ;;  %v11090_v50 = vadd.f32 0.001, %v602_v23 }
 0x130   :  { %v11074_v54 = vadd.f32 0.001, %v598_v27  ;;  %v11078_v9 = vpop.eup %9579  ;;  %v879_v20 = vmul.f32 %v11068_v52, %v10985_v21  ;;  %1445 = vperm.xlu1 %9527, %v10487_v34   ;;  %vm885_vm4 = vweird.f32 %v11068_v52  ;;  %v14029_v21 = vld [vmem:[#allocation17_spill] sm:$0xff] }
 0x131   :  { %v702_v24 = vsub.f32 1.5, %v701_v39  ;;  %v709_v27 = vmul.f32 %v11078_v9, %v10987_v7  ;;  %9585 = vrsqrt.f32 %v11072_v53  ;;  %v11122_v40 = vmul.f32 %v11042_v46, %v919_v36  ;;  %vm11151_vm7 = vmor %vm884_vm6, %vm885_vm4 }
 0x132   :  { %v11086_v2 = vpop.eup %9581  ;;  %1440 = vperm.xlu2 %9528, %v10456_v4   ;;  %v880_v34 = vmul.f32 %v11068_v52, %v879_v20  ;;  %v11103_v23 = vpop.xlane.xlu1 %143  ;;  %v749_v4 = vmul.f32 %v11057_v44, %v10950_v28  ;;  %9587 = vrsqrt.f32 %v11074_v54  ;;  %v14022_v20 = vld [vmem:[#allocation19_spill] sm:$0xff]  ;;  %vm715_vm5 = vweird.f32 %v11078_v9 }
 0x133   :  { %v11096_v11 = vpop.eup %9583  ;;  %v703_v1 = vmul.f32 %v11004_v15, %v702_v24  ;;  %v889_v39 = vmul.f32 %v11086_v2, %v11010_v58  ;;  %v93_v38 = vpop.xlane.xlu0 %92  ;;  %v710_v47 = vmul.f32 %v11078_v9, %v709_v27  ;;  %v14021_v24 = vld [vmem:[#allocation23_spill] sm:$0xff]  ;;  %9589 = vrsqrt.f32 %v11080_v43  ;;  %vm11169_vm10 = vmor %vm714_vm8, %vm715_vm5 }
 0x134   :  { %v14023_v48 = vsub.f32 %v14021_v24, %v14022_v20  ;;  %v881_v49 = vmul.f32 0.5, %v880_v34  ;;  %v11126_v27 = vmul.f32 %v11096_v11, %v10994_v31  ;;  %9591 = vrsqrt.f32 %v11090_v50 }
 0x135   :  { %v890_v35 = vmul.f32 %v11086_v2, %v889_v39  ;;  %v147_v41 = vpop.xlane.xlu2 %146  ;;  %v707_v57 = vsel %vm706_vm3, %v11004_v15, %v703_v1  ;;  %v711_v56 = vmul.f32 0.5, %v710_v47  ;;  %v11135_v15 = vmul.f32 0.020408163, %v90_v0  ;;  %v1160_v47 = vld [vmem:[%s13880_s1 + $0xb0] sm:$0xff] }
 0x136   :  { %1818 = vperm.xlu0 %9526, %v14023_v48   ;;  %v11128_v24 = vmul.f32 %v1142_v19, %v707_v57  ;;  %v882_v48 = vsub.f32 1.5, %v881_v49  ;;  %vm895_vm9 = vweird.f32 %v11086_v2  ;;  %vm1034_vm13 = vweird.f32 %v11072_v53 }
 0x137   :  { %v891_v34 = vmul.f32 0.5, %v890_v35  ;;  %v11132_v39 = vpop.eup %9585  ;;  %v712_v20 = vsub.f32 1.5, %v711_v56  ;;  %v14026_v35 = vld [vmem:[#allocation18_spill] sm:$0xff]  ;;  %v11149_v56 = vmul.f32 %v11057_v44, %v749_v4  ;;  %vm896_vm14 = vmor %vm894_vm11, %vm895_vm9  ;;  %vm1024_vm4 = vweird.f32 %v11074_v54 }
 0x138   :  { %14024 = vst [vmem:[#allocation15_spill] sm:$0xff] %v11128_v24  ;;  %v11139_v36 = vmul.f32 %v11128_v24, %v10867_v37  ;;  %v883_v57 = vmul.f32 %v11068_v52, %v882_v48  ;;  %v1029_v49 = vmul.f32 %v11132_v39, %v11072_v53  ;;  %1600 = vperm.xlu1 %9527, %v14026_v35   ;;  %v11146_v1 = vpop.eup %9587  ;;  %v1143_v4 = vld [vmem:[%s13880_s1 + $0x28] sm:$0xff]  ;;  %v14032_v24 = vld [vmem:[#allocation28_spill] sm:$0xff]  ;;  %vm1035_vm15 = vweird.f32 %v11132_v39 }
 0x139   :  { %v892_v19 = vsub.f32 1.5, %v891_v34  ;;  %v713_v37 = vmul.f32 %v11078_v9, %v712_v20  ;;  %v11165_v48 = vpop.eup %9589  ;;  %v1019_v35 = vmul.f32 %v11146_v1, %v11074_v54  ;;  %v14034_v14 = vsub.f32 %v14032_v24, %v14033_v12  ;;  %vm11241_vm3 = vmor %vm1034_vm13, %vm1035_vm15 }
 0x13a   :  { %14025 = vst [vmem:[#allocation23_spill] sm:$0xff] %v11139_v36  ;;  %1535 = vperm.xlu2 %9528, %v14029_v21   ;;  %v1030_v20 = vmul.f32 %v11132_v39, %v1029_v49  ;;  %v11178_v21 = vpop.xlane.xlu1 %188  ;;  %v516_v36 = vmul.f32 %v11135_v15, %v11135_v15  ;;  %v887_v58 = vsel %vm11151_vm7, %v11068_v52, %v883_v57  ;;  %v1161_v49 = vld [vmem:[%s13880_s1 + $0xb8] sm:$0xff]  ;;  %v11195_v13 = vpop.eup %9591  ;;  %vm1025_vm2 = vweird.f32 %v11146_v1  ;;  %vm11300_vm7 = vmor %vm744_vm1, %vm745_vm12 }
 0x13b   :  { %v893_v7 = vmul.f32 %v11086_v2, %v892_v19  ;;  %v186_v59 = vpop.xlane.xlu0 %185  ;;  %v717_v19 = vsel %vm11169_vm10, %v11078_v9, %v713_v37  ;;  %v11201_v52 = vmul.f32 %v1160_v47, %v887_v58  ;;  %v11206_v9 = vmul.f32 0.020408163, %v93_v38  ;;  %vm1026_vm5 = vmor %vm1024_vm4, %vm1025_vm2 }
 0x13c   :  { %v1031_v51 = vmul.f32 0.5, %v1030_v20  ;;  %v11203_v24 = vmul.f32 %v1143_v4, %v717_v19  ;;  %v11217_v47 = vmul.f32 0.020408163, %v11103_v23  ;;  %v11219_v4 = vmul.f32 0.020408163, %v147_v41 }
 0x13d   :  { %v330_v12 = vpop.xlane.xlu2 %329  ;;  %14035 = vst [vmem:[#allocation19_spill] sm:$0xff] %v11201_v52  ;;  %v897_v0 = vsel %vm896_vm14, %v11086_v2, %v893_v7  ;;  %v11212_v20 = vmul.f32 %v11201_v52, %v10919_v63  ;;  %v14040_v7 = vld [vmem:[#allocation24_spill] sm:$0xff]  ;;  %v921_v41 = vmul.f32 0.5, %v11122_v40  ;;  %v1175_v40 = vld [vmem:[%s13880_s1 + $0x128] sm:$0xff]  ;;  %vm925_vm6 = vweird.f32 %v11042_v46 }
 0x13e   :  { %1893 = vperm.xlu0 %9526, %v14034_v14   ;;  %v1020_v14 = vmul.f32 %v11146_v1, %v1019_v35  ;;  %14036 = vst [vmem:[#allocation18_spill] sm:$0xff] %v11203_v24  ;;  %v468_v57 = vmul.f32 0.020408163, %v330_v12  ;;  %v1032_v37 = vsub.f32 1.5, %v1031_v51  ;;  %v11214_v35 = vmul.f32 %v1161_v49, %v897_v0  ;;  %v14041_v63 = vld [vmem:[#allocation20_spill] sm:$0xff]  ;;  %v14047_v12 = vld [vmem:[#allocation21_spill] sm:$0xff] }
 0x13f   :  { %14037 = vst [vmem:[#allocation17_spill] sm:$0xff] %v11212_v20  ;;  %v11223_v58 = vmul.f32 %v11203_v24, %v10908_v61  ;;  %v14042_v19 = vsub.f32 %v14040_v7, %v14041_v63  ;;  %v517_v49 = vmul.f32 %v11206_v9, %v11206_v9  ;;  %v1174_v7 = vld [vmem:[%s13880_s1 + $0x120] sm:$0xff]  ;;  %v534_v54 = vmul.f32 %v11217_v47, %v11217_v47 }
 0x140   :  { %v1021_v34 = vmul.f32 0.5, %v1020_v14  ;;  %14038 = vst [vmem:[#allocation28_spill] sm:$0xff] %v11214_v35  ;;  %v564_v38 = vsub.f32 %v468_v57, %v516_v36  ;;  %v1033_v51 = vmul.f32 %v11132_v39, %v1032_v37  ;;  %v11232_v23 = vmul.f32 %v11214_v35, %v10922_v8  ;;  %v14046_v8 = vld [vmem:[#allocation25_spill] sm:$0xff]  ;;  %v14071_v35 = vld [vmem:[#allocation32_spill] sm:$0xff] }
 0x141   :  { %14039 = vst [vmem:[#allocation26_spill] sm:$0xff] %v11223_v58  ;;  %1733 = vperm.xlu1 %9527, %v14042_v19   ;;  %v930_v36 = vmul.f32 %v11096_v11, %v11126_v27  ;;  %v14048_v57 = vsub.f32 %v14046_v8, %v14047_v12  ;;  %v14049_v37 = vsub.f32 1.5, %v11070_v62  ;;  %vm924_vm8 = vweird.f32 %v10933_v45 }
 0x142   :  { %v1022_v2 = vsub.f32 1.5, %v1021_v34  ;;  %14043 = vst [vmem:[#allocation24_spill] sm:$0xff] %v11232_v23  ;;  %v11247_v14 = vadd.f32 0.001, %v564_v38  ;;  %v384_v53 = vpop.xlane.xlu1 %383  ;;  %v1037_v38 = vsel %vm11241_vm3, %v11132_v39, %v1033_v51  ;;  %v535_v39 = vmul.f32 %v11219_v4, %v11219_v4  ;;  %vm11366_vm9 = vmor %vm924_vm8, %vm925_vm6 }
 0x143   :  { %1728 = vperm.xlu2 %9528, %v14048_v57   ;;  %v333_v0 = vpop.xlane.xlu0 %332  ;;  %v11260_v34 = vmul.f32 %v10899_v10, %v14049_v37  ;;  %v486_v62 = vmul.f32 0.020408163, %v384_v53  ;;  %v11277_v51 = vmul.f32 0.020408163, %v186_v59  ;;  %v11279_v19 = vmul.f32 %v1175_v40, %v1037_v38  ;;  %v14058_v38 = vld [vmem:[#allocation31_spill] sm:$0xff] }
 0x144   :  { %v1023_v27 = vmul.f32 %v11146_v1, %v1022_v2  ;;  %9593 = vrsqrt.f32 %v11247_v14  ;;  %v469_v2 = vmul.f32 0.020408163, %v333_v0  ;;  %v751_v53 = vmul.f32 0.5, %v11149_v56 }
 0x145   :  { %v387_v63 = vpop.xlane.xlu2 %386  ;;  %14050 = vst [vmem:[#allocation20_spill] sm:$0xff] %v11279_v19  ;;  %v582_v8 = vsub.f32 %v486_v62, %v534_v54  ;;  %v922_v0 = vsub.f32 1.5, %v921_v41  ;;  %v11290_v59 = vmul.f32 %v11279_v19, %v10979_v17  ;;  %v1069_v17 = vmul.f32 %v11165_v48, %v11080_v43  ;;  %v14056_v41 = vld [vmem:[#allocation16_spill] sm:$0xff] }
 0x146   :  { %1520 = vperm.xlu0 %9526, %v10711_v22   ;;  %v1027_v61 = vsel %vm1026_vm5, %v11146_v1, %v1023_v27  ;;  %v565_v12 = vsub.f32 %v469_v2, %v517_v49  ;;  %v487_v57 = vmul.f32 0.020408163, %v387_v63  ;;  %v11286_v22 = vmul.f32 0.020408163, %v11178_v21  ;;  %v14062_v63 = vld [vmem:[#allocation27_spill] sm:$0xff] }
 0x147   :  { %v11282_v37 = vmul.f32 %v1174_v7, %v1027_v61  ;;  %14052 = vst [vmem:[#allocation21_spill] sm:$0xff] %v11290_v59  ;;  %v11292_v23 = vadd.f32 0.001, %v582_v8  ;;  %v11308_v21 = vmul.f32 0.5, %v930_v36  ;;  %v11313_v27 = vmul.f32 0.020408163, %v14056_v41 }
 0x148   :  { %v11294_v40 = vadd.f32 0.001, %v565_v12  ;;  %v583_v1 = vsub.f32 %v487_v57, %v535_v39  ;;  %v14059_v7 = vld [vmem:[#allocation29_spill] sm:$0xff]  ;;  %v747_v30 = vsel %vm11300_vm7, %v10899_v10, %v11260_v34  ;;  %v548_v36 = vmul.f32 %v11277_v51, %v11277_v51  ;;  %v14061_v39 = vld [vmem:[#allocation30_spill] sm:$0xff]  ;;  %v11337_v10 = vld [vmem:[%s13881_s2 + $0x150] sm:$0xff] }
 0x149   :  { %14051 = vst [vmem:[#allocation25_spill] sm:$0xff] %v11282_v37  ;;  %v11306_v56 = vmul.f32 %v11282_v37, %v10968_v3  ;;  %v14060_v54 = vsub.f32 %v14058_v38, %v14059_v7  ;;  %v1059_v3 = vmul.f32 %v11195_v13, %v11090_v50  ;;  %9595 = vrsqrt.f32 %v11292_v23  ;;  %v1146_v7 = vld [vmem:[%s13880_s1 + $0x40] sm:$0xff] }
 0x14a   :  { %14057 = vst [vmem:[#allocation16_spill] sm:$0xff] %v11313_v27  ;;  %v11322_v62 = vpop.eup %9593  ;;  %v11329_v2 = vadd.f32 0.001, %v583_v1  ;;  %v14063_v61 = vsub.f32 %v14061_v39, %v14062_v63  ;;  %9597 = vrsqrt.f32 %v11294_v40  ;;  %v429_v8 = vpop.xlane.xlu1 %428  ;;  %v923_v57 = vmul.f32 %v11042_v46, %v922_v0 }
 0x14b   :  { %14055 = vst [vmem:[#allocation42_spill] sm:$0xff] %v11306_v56  ;;  %1888 = vperm.xlu1 %9527, %v14060_v54   ;;  %v679_v34 = vmul.f32 %v11322_v62, %v11247_v14  ;;  %v426_v12 = vpop.xlane.xlu0 %425  ;;  %v752_v1 = vsub.f32 1.5, %v751_v53  ;;  %v549_v49 = vmul.f32 %v11286_v22, %v11286_v22  ;;  %v501_v41 = vmul.f32 0.020408163, %v429_v8 }
 0x14c   :  { %1823 = vperm.xlu2 %9528, %v14063_v61   ;;  %9599 = vrsqrt.f32 %v11329_v2  ;;  %v500_v38 = vmul.f32 0.020408163, %v426_v12  ;;  %v1070_v54 = vmul.f32 %v11165_v48, %v1069_v17  ;;  %v1060_v0 = vmul.f32 %v11195_v13, %v1059_v3 }
 0x14d   :  { %v680_v39 = vmul.f32 %v11322_v62, %v679_v34  ;;  %v84_v63 = vpop.xlane.xlu2 %83  ;;  %v11358_v61 = vmul.f32 %v11060_v6, %v11060_v6  ;;  %v11362_v12 = vmul.f32 %v11313_v27, %v11313_v27  ;;  %v11370_v34 = vmul.f32 %v1146_v7, %v747_v30 }
 0x14e   :  { %1595 = vperm.xlu0 %9526, %v10840_v29   ;;  %v597_v29 = vsub.f32 %v501_v41, %v549_v49  ;;  %v596_v8 = vsub.f32 %v500_v38, %v548_v36  ;;  %v932_v3 = vsub.f32 1.5, %v11308_v21  ;;  %v927_v49 = vsel %vm11366_vm9, %v11042_v46, %v923_v57 }
 0x14f   :  { %v681_v17 = vmul.f32 0.5, %v680_v39  ;;  %v11373_v53 = vpop.eup %9595  ;;  %v11383_v41 = vmul.f32 %v11057_v44, %v752_v1  ;;  %v1071_v39 = vmul.f32 0.5, %v1070_v54  ;;  %vm685_vm10 = vweird.f32 %v11322_v62  ;;  %v14067_v1 = vld [vmem:[#allocation37_spill] sm:$0xff]  ;;  %v1164_v54 = vld [vmem:[%s13880_s1 + $0xd0] sm:$0xff] }
 0x150   :  { %v11375_v56 = vadd.f32 0.001, %v597_v29  ;;  %v11377_v36 = vadd.f32 0.001, %v596_v8  ;;  %v11385_v38 = vpop.eup %9597  ;;  %v859_v21 = vmul.f32 %v11373_v53, %v11292_v23  ;;  %v11393_v29 = vmul.f32 0.5, %v1060_v0  ;;  %v14066_v8 = vld [vmem:[#allocation22_spill] sm:$0xff] }
 0x151   :  { %v682_v30 = vsub.f32 1.5, %v681_v17  ;;  %v11396_v46 = vmul.f32 0.020408163, %v14066_v8  ;;  %v689_v57 = vmul.f32 %v11385_v38, %v11294_v40  ;;  %vm684_vm11 = vweird.f32 %v11247_v14  ;;  %v14068_v14 = vld [vmem:[#allocation36_spill] sm:$0xff] }
 0x152   :  { %v11391_v7 = vpop.eup %9599  ;;  %9601 = vrsqrt.f32 %v11375_v56  ;;  %v860_v0 = vmul.f32 %v11373_v53, %v859_v21  ;;  %v11410_v45 = vpop.xlane.xlu1 %137  ;;  %vm686_vm13 = vmor %vm684_vm11, %vm685_vm10  ;;  %v14069_v21 = vld [vmem:[#allocation10_spill] sm:$0xff]  ;;  %v11425_v59 = vmul.f32 %v11096_v11, %v932_v3  ;;  %v11429_v37 = vmul.f32 %v11370_v34, %v14071_v35 }
 0x153   :  { %1435 = vperm.xlu1 %9527, %v10756_v55   ;;  %v683_v55 = vmul.f32 %v11322_v62, %v682_v30  ;;  %v869_v17 = vmul.f32 %v11391_v7, %v11329_v2  ;;  %v11412_v8 = vpop.xlane.xlu0 %86  ;;  %v690_v30 = vmul.f32 %v11385_v38, %v689_v57  ;;  %9603 = vrsqrt.f32 %v11377_v36 }
 0x154   :  { %1430 = vperm.xlu2 %9528, %v14067_v1   ;;  %v1140_v1 = vld [vmem:[%s13880_s1 + $0x10] sm:$0xff]  ;;  %v14070_v58 = vsub.f32 %v14068_v14, %v14069_v21  ;;  %v861_v20 = vmul.f32 0.5, %v860_v0  ;;  %v11434_v52 = vmul.f32 %v1164_v54, %v927_v49  ;;  %v1062_v27 = vsub.f32 1.5, %v11393_v29 }
 0x155   :  { %v870_v24 = vmul.f32 %v11391_v7, %v869_v17  ;;  %v11432_v19 = vpop.xlane.xlu2 %140  ;;  %v687_v57 = vsel %vm686_vm13, %v11322_v62, %v683_v55  ;;  %v691_v14 = vmul.f32 0.5, %v690_v30  ;;  %vm1075_vm14 = vweird.f32 %v11165_v48 }
 0x156   :  { %1808 = vperm.xlu0 %9526, %v14070_v58   ;;  %v1072_v58 = vsub.f32 1.5, %v1071_v39  ;;  %v11439_v3 = vmul.f32 %v1140_v1, %v687_v57  ;;  %v568_v35 = vsub.f32 %v11396_v46, %v11358_v61  ;;  %v862_v0 = vsub.f32 1.5, %v861_v20  ;;  %v14085_v46 = vld [vmem:[#allocation33_spill] sm:$0xff] }
 0x157   :  { %vm865_vm12 = vweird.f32 %v11373_v53  ;;  %v871_v17 = vmul.f32 0.5, %v870_v24  ;;  %v692_v49 = vsub.f32 1.5, %v691_v14  ;;  %vm695_vm15 = vweird.f32 %v11385_v38 }
 0x158   :  { %v11444_v21 = vpop.eup %9601  ;;  %v11447_v62 = vmul.f32 0.020408163, %v84_v63  ;;  %vm1074_vm1 = vweird.f32 %v11080_v43  ;;  %v11452_v39 = vmul.f32 %v11439_v3, %v11135_v15  ;;  %v863_v54 = vmul.f32 %v11373_v53, %v862_v0 }
 0x159   :  { %vm864_vm2 = vweird.f32 %v11292_v23  ;;  %v872_v20 = vsub.f32 1.5, %v871_v17  ;;  %v1009_v24 = vmul.f32 %v11444_v21, %v11375_v56  ;;  %v11459_v55 = vpop.eup %9603  ;;  %v693_v1 = vmul.f32 %v11385_v38, %v692_v49  ;;  %v1141_v23 = vld [vmem:[%s13880_s1 + $0x18] sm:$0xff] }
 0x15a   :  { %vm11461_vm3 = vmor %vm864_vm2, %vm865_vm12  ;;  %vm694_vm4 = vweird.f32 %v11294_v40  ;;  %vm875_vm5 = vweird.f32 %v11391_v7  ;;  %v11470_v15 = vmul.f32 %v11165_v48, %v1072_v58  ;;  %vm874_vm7 = vweird.f32 %v11329_v2  ;;  %v11489_v14 = vpop.xlane.xlu1 %182 }
 0x15b   :  { %1590 = vperm.xlu1 %9527, %v10902_v25   ;;  %v1158_v25 = vld [vmem:[%s13880_s1 + $0xa0] sm:$0xff]  ;;  %vm11480_vm6 = vmor %vm694_vm4, %vm695_vm15  ;;  %v873_v40 = vmul.f32 %v11391_v7, %v872_v20  ;;  %v999_v57 = vmul.f32 %v11459_v55, %v11377_v36  ;;  %v180_v58 = vpop.xlane.xlu0 %179  ;;  %vm755_vm8 = vweird.f32 %v11057_v44  ;;  %vm1014_vm9 = vweird.f32 %v11375_v56  ;;  %v1159_v20 = vld [vmem:[%s13880_s1 + $0xa8] sm:$0xff] }
 0x15c   :  { %1525 = vperm.xlu2 %9528, %v10883_v33   ;;  %v1010_v33 = vmul.f32 %v11444_v21, %v1009_v24  ;;  %v514_v0 = vmul.f32 %v11447_v62, %v11447_v62  ;;  %v14076_v17 = vsub.f32 %v11040_v32, %v11002_v42  ;;  %v867_v2 = vsel %vm11461_vm3, %v11373_v53, %v863_v54  ;;  %vm11509_vm10 = vmor %vm874_vm7, %vm875_vm5  ;;  %v1173_v56 = vld [vmem:[%s13880_s1 + $0x118] sm:$0xff] }
 0x15d   :  { %v697_v49 = vsel %vm11480_vm6, %v11385_v38, %v693_v1  ;;  %v1000_v32 = vmul.f32 %v11459_v55, %v999_v57  ;;  %vm754_vm11 = vweird.f32 %v10950_v28  ;;  %vm935_vm13 = vweird.f32 %v11096_v11  ;;  %vm11553_vm3 = vmor %vm1074_vm1, %vm1075_vm14 }
 0x15e   :  { %1883 = vperm.xlu0 %9526, %v14076_v17   ;;  %v1011_v42 = vmul.f32 0.5, %v1010_v33  ;;  %v324_v17 = vpop.xlane.xlu2 %323  ;;  %v11516_v53 = vmul.f32 %v1158_v25, %v867_v2  ;;  %v11518_v38 = vmul.f32 %v1141_v23, %v697_v49  ;;  %vm1015_vm12 = vweird.f32 %v11444_v21  ;;  %vm11625_vm7 = vmor %vm754_vm11, %vm755_vm8 }
 0x15f   :  { %v11522_v54 = vmul.f32 0.020408163, %v11412_v8  ;;  %v466_v63 = vmul.f32 0.020408163, %v324_v17  ;;  %v877_v1 = vsel %vm11509_vm10, %v11391_v7, %v873_v40  ;;  %v1001_v33 = vmul.f32 0.5, %v1000_v32  ;;  %vm11571_vm5 = vmor %vm1014_vm9, %vm1015_vm12 }
 0x160   :  { %v1012_v30 = vsub.f32 1.5, %v1011_v42  ;;  %vm934_vm15 = vweird.f32 %v10994_v31  ;;  %v11530_v25 = vmul.f32 %v11516_v53, %v11217_v47  ;;  %v11532_v23 = vmul.f32 %v1159_v20, %v877_v1 }
 0x161   :  { %v11535_v57 = vmul.f32 0.020408163, %v11410_v45  ;;  %v11538_v8 = vmul.f32 0.020408163, %v11432_v19  ;;  %v562_v2 = vsub.f32 %v466_v63, %v514_v0  ;;  %v11542_v7 = vmul.f32 %v11518_v38, %v11206_v9  ;;  %vm11653_vm8 = vmor %vm934_vm15, %vm935_vm13 }
 0x162   :  { %v1013_v40 = vmul.f32 %v11444_v21, %v1012_v30  ;;  %v1002_v49 = vsub.f32 1.5, %v1001_v33  ;;  %vm1005_vm2 = vweird.f32 %v11459_v55  ;;  %v14079_v47 = vsub.f32 %v11018_v60, %v10828_v5  ;;  %v378_v20 = vpop.xlane.xlu1 %377  ;;  %v1147_v5 = vld [vmem:[%s13880_s1 + $0x48] sm:$0xff] }
 0x163   :  { %vm1065_vm4 = vweird.f32 %v11195_v13  ;;  %v11560_v9 = vmul.f32 %v11532_v23, %v11219_v4  ;;  %v11565_v45 = vadd.f32 0.001, %v568_v35  ;;  %v515_v60 = vmul.f32 %v11522_v54, %v11522_v54 }
 0x164   :  { %1723 = vperm.xlu1 %9527, %v14079_v47   ;;  %v11577_v43 = vadd.f32 0.001, %v562_v2  ;;  %v14084_v4 = vsub.f32 %v11027_v16, %v10833_v18  ;;  %v1077_v61 = vsel %vm11553_vm3, %v11165_v48, %v11470_v15  ;;  %vm1064_vm14 = vweird.f32 %v11090_v50  ;;  %v327_v18 = vpop.xlane.xlu0 %326  ;;  %v1172_v48 = vld [vmem:[%s13880_s1 + $0x110] sm:$0xff]  ;;  %v1178_v50 = vld [vmem:[%s13880_s1 + $0x140] sm:$0xff] }
 0x165   :  { %v491_v35 = vmul.f32 0.020408163, %v14085_v46  ;;  %v1003_v0 = vmul.f32 %v11459_v55, %v1002_v49  ;;  %vm1004_vm1 = vweird.f32 %v11377_v36  ;;  %v1017_v16 = vsel %vm11571_vm5, %v11444_v21, %v1013_v40  ;;  %v1179_v21 = vld [vmem:[%s13880_s1 + $0x148] sm:$0xff]  ;;  %vm11706_vm9 = vmor %vm1064_vm14, %vm1065_vm4 }
 0x166   :  { %1718 = vperm.xlu2 %9528, %v14084_v4   ;;  %vm11601_vm6 = vmor %vm1004_vm1, %vm1005_vm2  ;;  %v532_v24 = vmul.f32 %v11535_v57, %v11535_v57  ;;  %9605 = vrsqrt.f32 %v11577_v43  ;;  %v484_v36 = vmul.f32 0.020408163, %v378_v20  ;;  %v467_v42 = vmul.f32 0.020408163, %v327_v18  ;;  %1510 = vperm.xlu0 %9526, %v11434_v52   ;;  %v381_v63 = vpop.xlane.xlu2 %380  ;;  %v14097_v18 = vld [vmem:[#allocation6_spill] sm:$0xff] }
 0x167   :  { %v533_v32 = vmul.f32 %v11538_v8, %v11538_v8  ;;  %v11614_v17 = vmul.f32 0.020408163, %v180_v58  ;;  %v11616_v1 = vmul.f32 %v1173_v56, %v1017_v16  ;;  %v1007_v30 = vsel %vm11601_vm6, %v11459_v55, %v1003_v0  ;;  %v14096_v0 = vld [vmem:[#allocation34_spill] sm:$0xff] }
 0x168   :  { %v580_v33 = vsub.f32 %v484_v36, %v532_v24  ;;  %v563_v2 = vsub.f32 %v467_v42, %v515_v60  ;;  %v485_v40 = vmul.f32 0.020408163, %v381_v63  ;;  %v11629_v58 = vmul.f32 %v1172_v48, %v1007_v30  ;;  %v11694_v48 = vld [vmem:[%s13881_s2 + $0x40] sm:$0xff] }
 0x169   :  { %v11632_v47 = vmul.f32 0.020408163, %v11489_v14  ;;  %v1227_v19 = vmul.f32 %v1179_v21, %v1077_v61  ;;  %v757_v55 = vsel %vm11625_vm7, %v11057_v44, %v11383_v41  ;;  %v11643_v28 = vmul.f32 %v11616_v1, %v11286_v22  ;;  %v1165_v21 = vld [vmem:[%s13880_s1 + $0xd8] sm:$0xff]  ;;  %v1138_v42 = vld [vmem:[%s13880_s1] sm:$0xff] }
 0x16a   :  { %v11645_v60 = vadd.f32 0.001, %v580_v33  ;;  %v11647_v4 = vadd.f32 0.001, %v563_v2  ;;  %v581_v14 = vsub.f32 %v485_v40, %v533_v32  ;;  %v11659_v44 = vmul.f32 %v11629_v58, %v11277_v51  ;;  %v11725_v2 = vld [vmem:[%s13881_s2 + $0x148] sm:$0xff] }
 0x16b   :  { %9607 = vrsqrt.f32 %v11565_v45  ;;  %v587_v22 = vsub.f32 %v491_v35, %v11362_v12  ;;  %v14092_v41 = vsub.f32 %v11337_v10, %v11066_v26  ;;  %v1063_v31 = vmul.f32 %v11195_v13, %v1062_v27  ;;  %v14093_v26 = vld [vmem:[#allocation41_spill] sm:$0xff]  ;;  %v14094_v10 = vld [vmem:[#allocation40_spill] sm:$0xff] }
 0x16c   :  { %v937_v56 = vsel %vm11653_vm8, %v11096_v11, %v11425_v59  ;;  %v11673_v46 = vpop.eup %9605  ;;  %v546_v51 = vmul.f32 %v11614_v17, %v11614_v17  ;;  %9609 = vrsqrt.f32 %v11645_v60  ;;  %v11678_v12 = vadd.f32 0.001, %v581_v14  ;;  %v423_v11 = vpop.xlane.xlu1 %422 }
 0x16d   :  { %1878 = vperm.xlu1 %9527, %v14092_v41   ;;  %v14095_v35 = vsub.f32 %v14093_v26, %v14094_v10  ;;  %v1195_v29 = vmul.f32 %v1147_v5, %v757_v55  ;;  %v659_v27 = vmul.f32 %v11673_v46, %v11577_v43  ;;  %9611 = vrsqrt.f32 %v11647_v4  ;;  %v420_v59 = vpop.xlane.xlu0 %419 }
 0x16e   :  { %v1308_v20 = vmul.f32 %v11434_v52, %v14096_v0  ;;  %v11689_v16 = vmul.f32 %v1227_v19, %v14097_v18  ;;  %v547_v15 = vmul.f32 %v11632_v47, %v11632_v47  ;;  %9613 = vrsqrt.f32 %v11678_v12  ;;  %1585 = vperm.xlu0 %9526, %v1227_v19   ;;  %v1260_v52 = vld [vmem:[%s13881_s2 + $0xd0] sm:$0xff]  ;;  %v132_v30 = vpop.xlane.xlu2 %131 }
 0x16f   :  { %1813 = vperm.xlu2 %9528, %v14095_v35   ;;  %v499_v24 = vmul.f32 0.020408163, %v423_v11  ;;  %v498_v36 = vmul.f32 0.020408163, %v420_v59  ;;  %v11713_v32 = vadd.f32 0.001, %v587_v22  ;;  %v660_v63 = vmul.f32 %v11673_v46, %v659_v27 }
 0x170   :  { %v1067_v33 = vsel %vm11706_vm9, %v11195_v13, %v1063_v31  ;;  %v11727_v19 = vmul.f32 0.020408163, %v132_v30  ;;  %v1338_v55 = vsub.f32 %v11694_v48, %v11429_v37  ;;  %v1356_v13 = vsub.f32 %v1260_v52, %v1308_v20  ;;  %v14100_v22 = vld [vmem:[#allocation35_spill] sm:$0xff] }
 0x171   :  { %v595_v40 = vsub.f32 %v499_v24, %v547_v15  ;;  %v594_v49 = vsub.f32 %v498_v36, %v546_v51  ;;  %v11731_v5 = vpop.eup %9607  ;;  %v661_v14 = vmul.f32 0.5, %v660_v63  ;;  %v11733_v61 = vmul.f32 %v1165_v21, %v937_v56 }
 0x172   :  { %v11736_v41 = vmul.f32 %v1195_v29, %v14100_v22  ;;  %v11738_v31 = vpop.eup %9609  ;;  %v11744_v51 = vmul.f32 %v1178_v50, %v1067_v33  ;;  %v1371_v35 = vsub.f32 %v11725_v2, %v11689_v16  ;;  %9615 = vrsqrt.f32 %v11713_v32 }
 0x173   :  { %v11740_v26 = vadd.f32 0.001, %v595_v40  ;;  %v11742_v10 = vadd.f32 0.001, %v594_v49  ;;  %v11748_v27 = vpop.eup %9611  ;;  %v662_v56 = vsub.f32 1.5, %v661_v14  ;;  %vm665_vm10 = vweird.f32 %v11673_v46 }
 0x174   :  { %v839_v11 = vmul.f32 %v11738_v31, %v11645_v60  ;;  %v11754_v59 = vpop.eup %9613  ;;  %v719_v0 = vmul.f32 %v11731_v5, %v11565_v45  ;;  %v669_v20 = vmul.f32 %v11748_v27, %v11647_v4  ;;  %v530_v18 = vmul.f32 %v11727_v19, %v11727_v19  ;;  %v372_v36 = vpop.xlane.xlu1 %371 }
 0x175   :  { %1425 = vperm.xlu1 %9527, %v1195_v29   ;;  %9617 = vrsqrt.f32 %v11740_v26  ;;  %v663_v15 = vmul.f32 %v11673_v46, %v662_v56  ;;  %vm664_vm11 = vweird.f32 %v11577_v43  ;;  %v849_v24 = vmul.f32 %v11754_v59, %v11678_v12  ;;  %v135_v52 = vpop.xlane.xlu0 %134 }
 0x176   :  { %v840_v29 = vmul.f32 %v11738_v31, %v839_v11  ;;  %vm666_vm13 = vmor %vm664_vm11, %vm665_vm10  ;;  %vm844_vm12 = vweird.f32 %v11645_v60  ;;  %9619 = vrsqrt.f32 %v11742_v10  ;;  %v482_v43 = vmul.f32 0.020408163, %v372_v36  ;;  %1798 = vperm.xlu0 %9526, %v1356_v13   ;;  %v375_v33 = vpop.xlane.xlu2 %374  ;;  %v1139_v60 = vld [vmem:[%s13880_s1 + $0x8] sm:$0xff] }
 0x177   :  { %1420 = vperm.xlu2 %9528, %v11370_v34   ;;  %v670_v34 = vmul.f32 %v11748_v27, %v669_v20  ;;  %v850_v63 = vmul.f32 %v11754_v59, %v849_v24  ;;  %v11778_v30 = vmul.f32 0.020408163, %v135_v52  ;;  %v667_v50 = vsel %vm666_vm13, %v11673_v46, %v663_v15 }
 0x178   :  { %v841_v21 = vmul.f32 0.5, %v840_v29  ;;  %v578_v49 = vsub.f32 %v482_v43, %v530_v18  ;;  %v483_v14 = vmul.f32 0.020408163, %v375_v33  ;;  %v11781_v22 = vmul.f32 %v1138_v42, %v667_v50  ;;  %v11783_v56 = vpop.eup %9615  ;;  %v1156_v43 = vld [vmem:[%s13880_s1 + $0x90] sm:$0xff] }
 0x179   :  { %v671_v40 = vmul.f32 0.5, %v670_v34  ;;  %vm845_vm15 = vweird.f32 %v11738_v31  ;;  %v851_v20 = vmul.f32 0.5, %v850_v63  ;;  %v531_v13 = vmul.f32 %v11778_v30, %v11778_v30 }
 0x17a   :  { %v842_v11 = vsub.f32 1.5, %v841_v21  ;;  %vm675_vm2 = vweird.f32 %v11748_v27  ;;  %v11791_v46 = vadd.f32 0.001, %v578_v49  ;;  %v11795_v18 = vmul.f32 %v11781_v22, %v11447_v62  ;;  %vm11806_vm4 = vmor %vm844_vm12, %vm845_vm15  ;;  %v1243_v49 = vld [vmem:[%s13881_s2 + $0x48] sm:$0xff] }
 0x17b   :  { %v11788_v29 = vpop.eup %9617  ;;  %v672_v24 = vsub.f32 1.5, %v671_v40  ;;  %vm674_vm3 = vweird.f32 %v11647_v4  ;;  %v852_v36 = vsub.f32 1.5, %v851_v20  ;;  %vm855_vm5 = vweird.f32 %v11754_v59  ;;  %v1157_v20 = vld [vmem:[%s13880_s1 + $0x98] sm:$0xff] }
 0x17c   :  { %v843_v15 = vmul.f32 %v11738_v31, %v842_v11  ;;  %v989_v52 = vmul.f32 %v11788_v29, %v11740_v26  ;;  %v11802_v42 = vpop.eup %9619  ;;  %9621 = vrsqrt.f32 %v11791_v46  ;;  %v579_v4 = vsub.f32 %v483_v14, %v531_v13  ;;  %vm11823_vm14 = vmor %vm674_vm3, %vm675_vm2 }
 0x17d   :  { %1580 = vperm.xlu1 %9527, %v11744_v51   ;;  %v673_v62 = vmul.f32 %v11748_v27, %v672_v24  ;;  %v720_v21 = vmul.f32 %v11731_v5, %v719_v0  ;;  %v853_v33 = vmul.f32 %v11754_v59, %v852_v36  ;;  %v979_v40 = vmul.f32 %v11802_v42, %v11742_v10 }
 0x17e   :  { %v990_v50 = vmul.f32 %v11788_v29, %v989_v52  ;;  %vm854_vm1 = vweird.f32 %v11678_v12  ;;  %v11835_v0 = vadd.f32 0.001, %v579_v4  ;;  %1873 = vperm.xlu0 %9526, %v1371_v35   ;;  %v847_v14 = vsel %vm11806_vm4, %v11738_v31, %v843_v15  ;;  %v11852_v16 = vpop.permute.xlu2 %1610 }
 0x17f   :  { %1515 = vperm.xlu2 %9528, %v11733_v61   ;;  %v677_v11 = vsel %vm11823_vm14, %v11748_v27, %v673_v62  ;;  %vm856_vm6 = vmor %vm854_vm1, %vm855_vm5  ;;  %v980_v13 = vmul.f32 %v11802_v42, %v979_v40  ;;  %v11854_v2 = vmul.f32 %v1156_v43, %v847_v14  ;;  %vm995_vm7 = vweird.f32 %v11788_v29  ;;  %v1170_v40 = vld [vmem:[%s13880_s1 + $0x100] sm:$0xff] }
 0x180   :  { %v991_v12 = vmul.f32 0.5, %v990_v50  ;;  %v11856_v35 = vmul.f32 %v1139_v60, %v677_v11  ;;  %9623 = vrsqrt.f32 %v11835_v0  ;;  %v1339_v31 = vsub.f32 %v1243_v49, %v11736_v41  ;;  %v1171_v60 = vld [vmem:[%s13880_s1 + $0x108] sm:$0xff] }
 0x181   :  { %v857_v27 = vsel %vm856_vm6, %v11754_v59, %v853_v33  ;;  %v981_v15 = vmul.f32 0.5, %v980_v13  ;;  %v11864_v36 = vmul.f32 %v11854_v2, %v11535_v57  ;;  %v721_v62 = vmul.f32 0.5, %v720_v21 }
 0x182   :  { %v992_v24 = vsub.f32 1.5, %v991_v12  ;;  %v11866_v52 = vmul.f32 %v1157_v20, %v857_v27  ;;  %v9622_v34 = vpop.eup %9621  ;;  %v909_v4 = vmul.f32 %v11783_v56, %v11713_v32  ;;  %vm994_vm8 = vweird.f32 %v11740_v26  ;;  %v1261_v12 = vld [vmem:[%s13881_s2 + $0xd8] sm:$0xff] }
 0x183   :  { %v11873_v41 = vmul.f32 %v11856_v35, %v11522_v54  ;;  %v982_v43 = vsub.f32 1.5, %v981_v15  ;;  %vm985_vm9 = vweird.f32 %v11802_v42  ;;  %v819_v57 = vmul.f32 %v9622_v34, %v11791_v46  ;;  %vm996_vm10 = vmor %vm994_vm8, %vm995_vm7  ;;  %v14105_v54 = vld [vmem:[#allocation7_spill] sm:$0xff] }
 0x184   :  { %v993_v59 = vmul.f32 %v11788_v29, %v992_v24  ;;  %v1322_v26 = vmul.f32 %v11744_v51, %v14105_v54  ;;  %v11890_v21 = vmul.f32 %v11866_v52, %v11538_v8  ;;  %vm984_vm11 = vweird.f32 %v11742_v10  ;;  %v1274_v8 = vld [vmem:[%s13881_s2 + $0x140] sm:$0xff] }
 0x185   :  { %1713 = vperm.xlu1 %9527, %v1339_v31   ;;  %v983_v63 = vmul.f32 %v11802_v42, %v982_v43  ;;  %v820_v33 = vmul.f32 %v9622_v34, %v819_v57  ;;  %v722_v48 = vsub.f32 1.5, %v721_v62  ;;  %vm986_vm13 = vmor %vm984_vm11, %vm985_vm9  ;;  %v14107_v51 = vld [vmem:[#allocation5_spill] sm:$0xff]  ;;  %vm825_vm12 = vweird.f32 %v9622_v34 }
 0x186   :  { %v997_v50 = vsel %vm996_vm10, %v11788_v29, %v993_v59  ;;  %v9624_v37 = vpop.eup %9623  ;;  %v1309_v10 = vmul.f32 %v11733_v61, %v14107_v51  ;;  %v910_v29 = vmul.f32 %v11783_v56, %v909_v4  ;;  %v11910_v20 = vpop.permute.xlu2 %1615  ;;  %v1370_v62 = vsub.f32 %v1274_v8, %v1322_v26  ;;  %v1258_v8 = vld [vmem:[%s13881_s2 + $0xc0] sm:$0xff] }
 0x187   :  { %1708 = vperm.xlu2 %9528, %v1338_v55   ;;  %v14106_v55 = vld [vmem:[#allocation8_spill] sm:$0xff]  ;;  %v11906_v49 = vmul.f32 %v1171_v60, %v997_v50  ;;  %v821_v14 = vmul.f32 0.5, %v820_v33  ;;  %v829_v11 = vmul.f32 %v9624_v37, %v11835_v0  ;;  %v987_v13 = vsel %vm986_vm13, %v11802_v42, %v983_v63  ;;  %v1451_v31 = vpop.permute.xlu0 %1450  ;;  %v14108_v63 = vld [vmem:[#allocation9_spill] sm:$0xff] }
 0x188   :  { %1500 = vperm.xlu0 %9526, %v14106_v55   ;;  %v11916_v27 = vmul.f32 %v1170_v40, %v987_v13  ;;  %v1357_v4 = vsub.f32 %v1261_v12, %v1309_v10  ;;  %v723_v59 = vmul.f32 %v11731_v5, %v722_v48  ;;  %vm725_vm15 = vweird.f32 %v11731_v5 }
 0x189   :  { %v11920_v61 = vmul.f32 %v11906_v49, %v11632_v47  ;;  %v822_v24 = vsub.f32 1.5, %v821_v14  ;;  %v830_v15 = vmul.f32 %v9624_v37, %v829_v11  ;;  %v911_v42 = vmul.f32 0.5, %v910_v29  ;;  %v1154_v47 = vld [vmem:[%s13880_s1 + $0x80] sm:$0xff]  ;;  %v14109_v11 = vld [vmem:[#allocation11_spill] sm:$0xff] }
 0x18a   :  { %v11926_v43 = vmul.f32 %v11916_v27, %v11614_v17  ;;  %vm824_vm2 = vweird.f32 %v11791_v46  ;;  %vm724_vm3 = vweird.f32 %v11565_v45  ;;  %vm834_vm5 = vweird.f32 %v11835_v0  ;;  %v1456_v17 = vpop.permute.xlu1 %1455  ;;  %v1155_v0 = vld [vmem:[%s13880_s1 + $0x88] sm:$0xff] }
 0x18b   :  { %v823_v57 = vmul.f32 %v9622_v34, %v822_v24  ;;  %v831_v60 = vmul.f32 0.5, %v830_v15  ;;  %vm826_vm4 = vmor %vm824_vm2, %vm825_vm12  ;;  %vm835_vm14 = vweird.f32 %v9624_v37  ;;  %v912_v33 = vsub.f32 1.5, %v911_v42 }
 0x18c   :  { %vm726_vm1 = vmor %vm724_vm3, %vm725_vm15  ;;  %vm915_vm7 = vweird.f32 %v11783_v56  ;;  %vm914_vm8 = vweird.f32 %v11713_v32 }
 0x18d   :  { %1868 = vperm.xlu1 %9527, %v1370_v62   ;;  %v827_v54 = vsel %vm826_vm4, %v9622_v34, %v823_v57  ;;  %v832_v26 = vsub.f32 1.5, %v831_v60  ;;  %v727_v45 = vsel %vm726_vm1, %v11731_v5, %v723_v59  ;;  %v1144_v34 = vld [vmem:[%s13880_s1 + $0x30] sm:$0xff]  ;;  %vm836_vm6 = vmor %vm834_vm5, %vm835_vm14  ;;  %v9625_v5 = vld [vmem:[%s13879_s0 + $0x78] sm:$0xff]  ;;  %v913_v12 = vmul.f32 %v11783_v56, %v912_v33 }
 0x18e   :  { %v11937_v46 = vmul.f32 %v1154_v47, %v827_v54  ;;  %v1744_v40 = vpop.permute.xlu2 %1743  ;;  %v1633_v10 = vmul.f32 %v9625_v5, %v1456_v17  ;;  %v1192_v29 = vmul.f32 %v1144_v34, %v727_v45  ;;  %vm916_vm9 = vmor %vm914_vm8, %vm915_vm7  ;;  %v14111_v54 = vld [vmem:[#allocation14_spill] sm:$0xff]  ;;  %v9628_v17 = vld [vmem:[%s13879_s0 + $0x178] sm:$0xff] }
 0x18f   :  { %1803 = vperm.xlu2 %9528, %v1357_v4   ;;  %v833_v50 = vmul.f32 %v9624_v37, %v832_v26  ;;  %v1904_v48 = vpop.permute.xlu0 %1903  ;;  %v917_v57 = vsel %vm916_vm9, %v11783_v56, %v913_v12  ;;  %v9627_v26 = vld [vmem:[%s13879_s0 + $0x170] sm:$0xff]  ;;  %v14112_v33 = vld [vmem:[#allocation38_spill] sm:$0xff] }
 0x190   :  { %1575 = vperm.xlu0 %9526, %v14108_v63   ;;  %v11948_v55 = vmul.f32 %v11937_v46, %v11727_v19  ;;  %v9626_v19 = vld [vmem:[%s13879_s0 + $0x70] sm:$0xff]  ;;  %v1921_v4 = vadd.f32 %v1744_v40, %v1633_v10  ;;  %v1664_v56 = vmul.f32 %v9627_v26, %v11852_v16  ;;  %v1665_v63 = vmul.f32 %v9628_v17, %v11910_v20  ;;  %v14113_v10 = vld [vmem:[#allocation13_spill] sm:$0xff]  ;;  %v14117_v26 = vld [vmem:[#allocation20_spill] sm:$0xff] }
 0x191   :  { %v837_v51 = vsel %vm836_vm6, %v9624_v37, %v833_v50  ;;  %v1632_v13 = vmul.f32 %v9626_v19, %v1451_v31  ;;  %v14110_v37 = vld [vmem:[#allocation12_spill] sm:$0xff]  ;;  %v1163_v31 = vld [vmem:[%s13880_s1 + $0xc8] sm:$0xff]  ;;  %v1288_v34 = vmul.f32 %v1192_v29, %v11060_v6  ;;  %v14115_v19 = vld [vmem:[#allocation19_spill] sm:$0xff] }
 0x192   :  { %v11956_v14 = vmul.f32 %v1155_v0, %v837_v51  ;;  %v1354_v24 = vsub.f32 %v1258_v8, %v14110_v37  ;;  %v1739_v62 = vpop.permute.xlu1 %1738  ;;  %v1211_v32 = vmul.f32 %v1163_v31, %v917_v57  ;;  %v1953_v45 = vadd.f32 %v1904_v48, %v1665_v63  ;;  %v1241_v8 = vld [vmem:[%s13881_s2 + $0x38] sm:$0xff]  ;;  %v1240_v51 = vld [vmem:[%s13881_s2 + $0x30] sm:$0xff] }
 0x193   :  { %v1920_v59 = vadd.f32 %v1739_v62, %v1632_v13  ;;  %v1336_v48 = vsub.f32 %v1240_v51, %v1288_v34  ;;  %v1272_v13 = vld [vmem:[%s13881_s2 + $0x130] sm:$0xff]  ;;  %v14120_v51 = vld [vmem:[#allocation17_spill] sm:$0xff] }
 0x194   :  { %v11967_v15 = vmul.f32 %v11956_v14, %v11778_v30  ;;  %v1273_v30 = vld [vmem:[%s13881_s2 + $0x138] sm:$0xff] }
 0x195   :  { %1415 = vperm.xlu1 %9527, %v14109_v11   ;;  %v1961_v47 = vpack.c.bf16 %v1921_v4, %v1920_v59  ;;  %v1369_v50 = vsub.f32 %v1273_v30, %v14112_v33  ;;  %v1337_v11 = vsub.f32 %v1241_v8, %v14113_v10  ;;  %v14116_v4 = vld [vmem:[#allocation39_spill] sm:$0xff] }
 0x196   :  { %v1441_v42 = vpop.permute.xlu2 %1440  ;;  %v1368_v59 = vsub.f32 %v1272_v13, %v14116_v4 }
 0x197   :  { %1410 = vperm.xlu2 %9528, %v1192_v29   ;;  %v1531_v60 = vpop.permute.xlu0 %1530  ;;  %4858 = vmatpush.bf16.msra.mxu0 %v1961_v47  ;;  %v14114_v29 = vld [vmem:[#allocation16_spill] sm:$0xff] }
 0x198   :  { %1788 = vperm.xlu0 %9526, %v1354_v24   ;;  %9498 = vmatpush.bf16.msra.mxu3 %v1961_v47  ;;  %v1307_v12 = vmul.f32 %v1211_v32, %v14114_v29  ;;  %v1259_v24 = vld [vmem:[%s13881_s2 + $0xc8] sm:$0xff]  ;;  %v9629_v47 = vld [vmem:[%s13879_s0 + $0xf0] sm:$0xff] }
 0x199   :  { %v1648_v30 = vmul.f32 %v9629_v47, %v1531_v60  ;;  %v9631_v60 = vld [vmem:[%s13879_s0 + $0x60] sm:$0xff] }
 0x19a   :  { %v1899_v40 = vpop.permute.xlu1 %1898  ;;  %v1355_v57 = vsub.f32 %v1259_v24, %v1307_v12  ;;  %v1630_v34 = vmul.f32 %v9631_v60, %v1441_v42  ;;  %v1271_v42 = vld [vmem:[%s13881_s2 + $0x128] sm:$0xff] }
 0x19b   :  { %v1952_v0 = vadd.f32 %v1899_v40, %v1664_v56  ;;  %v9633_v24 = vld [vmem:[%s13879_s0 + $0x168] sm:$0xff] }
 0x19d   :  { %1570 = vperm.xlu1 %9527, %v14111_v54   ;;  %v11994_v20 = vpack.c.bf16 %v1953_v45, %v1952_v0  ;;  %v14118_v45 = vld [vmem:[#allocation18_spill] sm:$0xff] }
 0x19e   :  { %v1536_v16 = vpop.permute.xlu2 %1535  ;;  %v9632_v0 = vld [vmem:[%s13879_s0 + $0x68] sm:$0xff] }
 0x19f   :  { %1505 = vperm.xlu2 %9528, %v1211_v32   ;;  %v1606_v5 = vpop.permute.xlu0 %1605  ;;  %6316 = vmatpush.bf16.msra.mxu2 %v11994_v20  ;;  %v9630_v32 = vld [vmem:[%s13879_s0 + $0xf8] sm:$0xff] }
 0x1a0   :  { %1863 = vperm.xlu0 %9526, %v1369_v50   ;;  %v1649_v54 = vmul.f32 %v9630_v32, %v1536_v16  ;;  %v1256_v50 = vld [vmem:[%s13881_s2 + $0xb0] sm:$0xff] }
 0x1a1   :  { %v14119_v16 = vld [vmem:[#allocation15_spill] sm:$0xff]  ;;  %v1352_v10 = vsub.f32 %v1256_v50, %v14120_v51  ;;  %v14126_v51 = vld [vmem:[#allocation42_spill] sm:$0xff] }
 0x1a2   :  { %v1446_v6 = vpop.permute.xlu1 %1445 }
 0x1a3   :  { %v1631_v8 = vmul.f32 %v9632_v0, %v1446_v6  ;;  %v14121_v6 = vld [vmem:[#allocation25_spill] sm:$0xff] }
 0x1a5   :  { %1703 = vperm.xlu1 %9527, %v1337_v11  }
 0x1a6   :  { %v1729_v37 = vpop.permute.xlu2 %1728 }
 0x1a7   :  { %1698 = vperm.xlu2 %9528, %v1336_v48   ;;  %v1918_v48 = vadd.f32 %v1729_v37, %v1630_v34  ;;  %v9634_v37 = vld [vmem:[%s13879_s0 + $0x160] sm:$0xff] }
 0x1a8   :  { %1490 = vperm.xlu0 %9526, %v14115_v19   ;;  %v1819_v62 = vpop.permute.xlu0 %1818  ;;  %v1270_v34 = vld [vmem:[%s13881_s2 + $0x120] sm:$0xff] }
 0x1a9   :  { %v1936_v17 = vadd.f32 %v1819_v62, %v1648_v30  ;;  %v1663_v62 = vmul.f32 %v9633_v24, %v1606_v5  ;;  %v1238_v5 = vld [vmem:[%s13881_s2 + $0x20] sm:$0xff] }
 0x1aa   :  { %v1601_v31 = vpop.permute.xlu1 %1600 }
 0x1ab   :  { %v1662_v4 = vmul.f32 %v9634_v37, %v1601_v31  ;;  %v14124_v31 = vld [vmem:[#allocation26_spill] sm:$0xff] }
 0x1ad   :  { %1858 = vperm.xlu1 %9527, %v1368_v59   ;;  %v14122_v59 = vld [vmem:[#allocation28_spill] sm:$0xff] }
 0x1ae   :  { %v1824_v56 = vpop.permute.xlu2 %1823 }
 0x1af   :  { %1793 = vperm.xlu2 %9528, %v1355_v57   ;;  %v1937_v63 = vadd.f32 %v1824_v56, %v1649_v54  ;;  %v14123_v57 = vld [vmem:[#allocation21_spill] sm:$0xff] }
 0x1b0   :  { %1565 = vperm.xlu0 %9526, %v14117_v26   ;;  %v1894_v33 = vpop.permute.xlu0 %1893  ;;  %v1367_v47 = vsub.f32 %v1271_v42, %v14123_v57  ;;  %v1239_v26 = vld [vmem:[%s13881_s2 + $0x28] sm:$0xff] }
 0x1b1   :  { %v12017_v40 = vpack.c.bf16 %v1937_v63, %v1936_v17  ;;  %v1951_v32 = vadd.f32 %v1894_v33, %v1663_v62  ;;  %v1335_v50 = vsub.f32 %v1239_v26, %v14124_v31  ;;  %v9636_v42 = vld [vmem:[%s13879_s0 + $0xe8] sm:$0xff] }
 0x1b3   :  { %5587 = vmatpush.bf16.msra.mxu1 %v12017_v40  ;;  %v1734_v11 = vpop.permute.xlu1 %1733 }
 0x1b4   :  { %v1919_v29 = vadd.f32 %v1734_v11, %v1631_v8  ;;  %v1257_v8 = vld [vmem:[%s13881_s2 + $0xb8] sm:$0xff] }
 0x1b5   :  { %1405 = vperm.xlu1 %9527, %v14118_v45   ;;  %v14125_v45 = vld [vmem:[#allocation23_spill] sm:$0xff]  ;;  %v14127_v11 = vld [vmem:[#allocation24_spill] sm:$0xff] }
 0x1b6   :  { %v1431_v12 = vpop.permute.xlu2 %1430  ;;  %v1960_v13 = vpack.c.bf16 %v1919_v29, %v1918_v48  ;;  %v1334_v33 = vsub.f32 %v1238_v5, %v14125_v45  ;;  %v1353_v48 = vsub.f32 %v1257_v8, %v14127_v11  ;;  %v1268_v11 = vld [vmem:[%s13881_s2 + $0x110] sm:$0xff] }
 0x1b7   :  { %1400 = vperm.xlu2 %9528, %v14119_v16  }
 0x1b8   :  { %1778 = vperm.xlu0 %9526, %v1352_v10   ;;  %v1521_v19 = vpop.permute.xlu0 %1520  ;;  %4859 = vmatpush.bf16.msra.mxu0 %v1960_v13  ;;  %v1366_v10 = vsub.f32 %v1270_v34, %v14126_v51 }
 0x1b9   :  { %9499 = vmatpush.bf16.msra.mxu3 %v1960_v13 }
 0x1bd   :  { %1560 = vperm.xlu1 %9527, %v14121_v6   ;;  %v1889_v30 = vpop.permute.xlu1 %1888 }
 0x1be   :  { %v1950_v54 = vadd.f32 %v1889_v30, %v1662_v4  ;;  %v1526_v56 = vpop.permute.xlu2 %1525 }
 0x1bf   :  { %1495 = vperm.xlu2 %9528, %v14122_v59   ;;  %v1647_v6 = vmul.f32 %v9636_v42, %v1526_v56  ;;  %v1254_v59 = vld [vmem:[%s13881_s2 + $0xa0] sm:$0xff] }
 0x1c0   :  { %1853 = vperm.xlu0 %9526, %v1367_v47   ;;  %v1596_v17 = vpop.permute.xlu0 %1595  ;;  %v12047_v63 = vpack.c.bf16 %v1951_v32, %v1950_v54  ;;  %v1350_v32 = vsub.f32 %v1254_v59, %v11530_v25 }
 0x1c2   :  { %6317 = vmatpush.bf16.msra.mxu2 %v12047_v63 }
 0x1c5   :  { %1693 = vperm.xlu1 %9527, %v1335_v50   ;;  %v1436_v60 = vpop.permute.xlu1 %1435  ;;  %v9640_v50 = vld [vmem:[%s13879_s0 + $0x150] sm:$0xff] }
 0x1c6   :  { %v1719_v0 = vpop.permute.xlu2 %1718 }
 0x1c7   :  { %1688 = vperm.xlu2 %9528, %v1334_v33  }
 0x1c8   :  { %1480 = vperm.xlu0 %9526, %v11516_v53   ;;  %v1809_v16 = vpop.permute.xlu0 %1808  ;;  %v9635_v53 = vld [vmem:[%s13879_s0 + $0xe0] sm:$0xff] }
 0x1c9   :  { %v1646_v13 = vmul.f32 %v9635_v53, %v1521_v19  ;;  %v9637_v19 = vld [vmem:[%s13879_s0 + $0x50] sm:$0xff] }
 0x1ca   :  { %v1628_v47 = vmul.f32 %v9637_v19, %v1431_v12  ;;  %v1269_v12 = vld [vmem:[%s13881_s2 + $0x118] sm:$0xff]  ;;  %v9643_v19 = vld [vmem:[%s13879_s0 + $0x40] sm:$0xff] }
 0x1cb   :  { %v1934_v62 = vadd.f32 %v1809_v16, %v1646_v13  ;;  %v1365_v33 = vsub.f32 %v1269_v12, %v11643_v28 }
 0x1cc   :  { %v1916_v26 = vadd.f32 %v1719_v0, %v1628_v47 }
 0x1cd   :  { %1848 = vperm.xlu1 %9527, %v1366_v10   ;;  %v1591_v29 = vpop.permute.xlu1 %1590 }
 0x1ce   :  { %v1814_v24 = vpop.permute.xlu2 %1813  ;;  %v1660_v45 = vmul.f32 %v9640_v50, %v1591_v29  ;;  %v1255_v29 = vld [vmem:[%s13881_s2 + $0xa8] sm:$0xff] }
 0x1cf   :  { %1783 = vperm.xlu2 %9528, %v1353_v48   ;;  %v1935_v37 = vadd.f32 %v1814_v24, %v1647_v6  ;;  %v1351_v13 = vsub.f32 %v1255_v29, %v11560_v9  ;;  %v9642_v6 = vld [vmem:[%s13879_s0 + $0xd8] sm:$0xff]  ;;  %v1252_v9 = vld [vmem:[%s13881_s2 + $0x90] sm:$0xff]  ;;  %v9648_v29 = vld [vmem:[%s13879_s0 + $0xc8] sm:$0xff] }
 0x1d0   :  { %1555 = vperm.xlu0 %9526, %v11616_v1   ;;  %v1884_v4 = vpop.permute.xlu0 %1883  ;;  %v9638_v1 = vld [vmem:[%s13879_s0 + $0x58] sm:$0xff] }
 0x1d1   :  { %v12071_v57 = vpack.c.bf16 %v1935_v37, %v1934_v62  ;;  %v1629_v30 = vmul.f32 %v9638_v1, %v1436_v60 }
 0x1d3   :  { %5588 = vmatpush.bf16.msra.mxu1 %v12071_v57 }
 0x1d5   :  { %1395 = vperm.xlu1 %9527, %v11518_v38  }
 0x1d6   :  { %v1724_v54 = vpop.permute.xlu1 %1723  ;;  %v1421_v38 = vpop.permute.xlu2 %1420 }
 0x1d7   :  { %1390 = vperm.xlu2 %9528, %v11439_v3   ;;  %v1917_v56 = vadd.f32 %v1724_v54, %v1629_v30  ;;  %v9639_v3 = vld [vmem:[%s13879_s0 + $0x158] sm:$0xff]  ;;  %v1626_v47 = vmul.f32 %v9643_v19, %v1421_v38  ;;  %v1348_v30 = vsub.f32 %v1252_v9, %v11864_v36  ;;  %v1267_v38 = vld [vmem:[%s13881_s2 + $0x108] sm:$0xff] }
 0x1d8   :  { %1768 = vperm.xlu0 %9526, %v1350_v32   ;;  %v1511_v5 = vpop.permute.xlu0 %1510  ;;  %v1661_v25 = vmul.f32 %v9639_v3, %v1596_v17  ;;  %v1236_v17 = vld [vmem:[%s13881_s2 + $0x10] sm:$0xff]  ;;  %v1363_v3 = vsub.f32 %v1267_v38, %v11920_v61  ;;  %v1250_v61 = vld [vmem:[%s13881_s2 + $0x80] sm:$0xff] }
 0x1d9   :  { %v1959_v31 = vpack.c.bf16 %v1917_v56, %v1916_v26  ;;  %v1332_v28 = vsub.f32 %v1236_v17, %v11452_v39 }
 0x1da   :  { %v1949_v34 = vadd.f32 %v1884_v4, %v1661_v25 }
 0x1db   :  { %4860 = vmatpush.bf16.msra.mxu0 %v1959_v31  ;;  %9500 = vmatpush.bf16.msra.mxu3 %v1959_v31  ;;  %v9646_v31 = vld [vmem:[%s13879_s0 + $0x140] sm:$0xff] }
 0x1dd   :  { %1550 = vperm.xlu1 %9527, %v11629_v58   ;;  %v1237_v58 = vld [vmem:[%s13881_s2 + $0x18] sm:$0xff] }
 0x1de   :  { %v1516_v8 = vpop.permute.xlu2 %1515 }
 0x1df   :  { %1485 = vperm.xlu2 %9528, %v11532_v23   ;;  %v1879_v60 = vpop.permute.xlu1 %1878  ;;  %v1333_v23 = vsub.f32 %v1237_v58, %v11542_v7  ;;  %v1364_v7 = vsub.f32 %v1268_v11, %v11659_v44  ;;  %v1645_v24 = vmul.f32 %v9642_v6, %v1516_v8  ;;  %v1346_v8 = vsub.f32 %v1250_v61, %v11948_v55  ;;  %v9647_v55 = vld [vmem:[%s13879_s0 + $0xc0] sm:$0xff]  ;;  %v9650_v6 = vld [vmem:[%s13879_s0 + $0x38] sm:$0xff]  ;;  %v9656_v61 = vld [vmem:[%s13879_s0 + $0x28] sm:$0xff] }
 0x1e0   :  { %v1948_v0 = vadd.f32 %v1879_v60, %v1660_v45  ;;  %1843 = vperm.xlu0 %9526, %v1365_v33   ;;  %v1586_v16 = vpop.permute.xlu0 %1585  ;;  %v1234_v60 = vld [vmem:[%s13881_s2] sm:$0xff] }
 0x1e1   :  { %v1330_v58 = vsub.f32 %v1234_v60, %v11795_v18 }
 0x1e2   :  { %v12101_v51 = vpack.c.bf16 %v1949_v34, %v1948_v0 }
 0x1e4   :  { %6318 = vmatpush.bf16.msra.mxu2 %v12101_v51 }
 0x1e5   :  { %1683 = vperm.xlu1 %9527, %v1333_v23  }
 0x1e6   :  { %v1709_v48 = vpop.permute.xlu2 %1708 }
 0x1e7   :  { %1678 = vperm.xlu2 %9528, %v1332_v28   ;;  %v1426_v10 = vpop.permute.xlu1 %1425  ;;  %v1914_v54 = vadd.f32 %v1709_v48, %v1626_v47 }
 0x1e8   :  { %1470 = vperm.xlu0 %9526, %v11854_v2   ;;  %v1799_v53 = vpop.permute.xlu0 %1798  ;;  %v9641_v2 = vld [vmem:[%s13879_s0 + $0xd0] sm:$0xff] }
 0x1e9   :  { %v1644_v42 = vmul.f32 %v9641_v2, %v1511_v5 }
 0x1eb   :  { %v1932_v37 = vadd.f32 %v1799_v53, %v1644_v42 }
 0x1ed   :  { %1838 = vperm.xlu1 %9527, %v1364_v7  }
 0x1ee   :  { %v1804_v62 = vpop.permute.xlu2 %1803 }
 0x1ef   :  { %1773 = vperm.xlu2 %9528, %v1351_v13   ;;  %v1581_v39 = vpop.permute.xlu1 %1580  ;;  %v1933_v44 = vadd.f32 %v1804_v62, %v1645_v24 }
 0x1f0   :  { %1545 = vperm.xlu0 %9526, %v11906_v49   ;;  %v1874_v4 = vpop.permute.xlu0 %1873  ;;  %v9644_v49 = vld [vmem:[%s13879_s0 + $0x48] sm:$0xff]  ;;  %v1658_v12 = vmul.f32 %v9646_v31, %v1581_v39  ;;  %v9653_v31 = vld [vmem:[%s13879_s0 + $0xb0] sm:$0xff] }
 0x1f1   :  { %v12125_v59 = vpack.c.bf16 %v1933_v44, %v1932_v37  ;;  %v1627_v1 = vmul.f32 %v9644_v49, %v1426_v10 }
 0x1f3   :  { %5589 = vmatpush.bf16.msra.mxu1 %v12125_v59 }
 0x1f5   :  { %1385 = vperm.xlu1 %9527, %v11856_v35  }
 0x1f6   :  { %v1411_v35 = vpop.permute.xlu2 %1410 }
 0x1f7   :  { %1380 = vperm.xlu2 %9528, %v11781_v22   ;;  %v1714_v32 = vpop.permute.xlu1 %1713  ;;  %v9645_v22 = vld [vmem:[%s13879_s0 + $0x148] sm:$0xff] }
 0x1f8   :  { %v1915_v26 = vadd.f32 %v1714_v32, %v1627_v1  ;;  %1758 = vperm.xlu0 %9526, %v1348_v30   ;;  %v1659_v36 = vmul.f32 %v9645_v22, %v1586_v16  ;;  %v1266_v16 = vld [vmem:[%s13881_s2 + $0x100] sm:$0xff]  ;;  %v9652_v1 = vld [vmem:[%s13879_s0 + $0x130] sm:$0xff] }
 0x1f9   :  { %v1362_v10 = vsub.f32 %v1266_v16, %v11926_v43 }
 0x1fa   :  { %v1501_v56 = vpop.permute.xlu0 %1500  ;;  %v1958_v5 = vpack.c.bf16 %v1915_v26, %v1914_v54  ;;  %v1947_v50 = vadd.f32 %v1874_v4, %v1659_v36 }
 0x1fb   :  { %v1642_v48 = vmul.f32 %v9647_v55, %v1501_v56 }
 0x1fc   :  { %4861 = vmatpush.bf16.msra.mxu0 %v1958_v5  ;;  %9501 = vmatpush.bf16.msra.mxu3 %v1958_v5 }
 0x1fd   :  { %1540 = vperm.xlu1 %9527, %v11916_v27   ;;  %v1235_v27 = vld [vmem:[%s13881_s2 + $0x8] sm:$0xff] }
 0x1fe   :  { %v1506_v33 = vpop.permute.xlu2 %1505 }
 0x1ff   :  { %1475 = vperm.xlu2 %9528, %v11866_v52   ;;  %v1869_v25 = vpop.permute.xlu1 %1868  ;;  %v1331_v52 = vsub.f32 %v1235_v27, %v11873_v41  ;;  %v1253_v41 = vld [vmem:[%s13881_s2 + $0x98] sm:$0xff]  ;;  %v1643_v53 = vmul.f32 %v9648_v29, %v1506_v33 }
 0x200   :  { %v1946_v45 = vadd.f32 %v1869_v25, %v1658_v12  ;;  %1833 = vperm.xlu0 %9526, %v1363_v3   ;;  %v1349_v18 = vsub.f32 %v1253_v41, %v11890_v21  ;;  %v9649_v21 = vld [vmem:[%s13879_s0 + $0x30] sm:$0xff]  ;;  %v9654_v3 = vld [vmem:[%s13879_s0 + $0xb8] sm:$0xff] }
 0x201   :  { %v1624_v42 = vmul.f32 %v9649_v21, %v1411_v35 }
 0x202   :  { %v1576_v34 = vpop.permute.xlu0 %1575  ;;  %v12155_v0 = vpack.c.bf16 %v1947_v50, %v1946_v45 }
 0x204   :  { %6319 = vmatpush.bf16.msra.mxu2 %v12155_v0 }
 0x205   :  { %1673 = vperm.xlu1 %9527, %v1331_v52  }
 0x206   :  { %v1699_v23 = vpop.permute.xlu2 %1698 }
 0x207   :  { %1668 = vperm.xlu2 %9528, %v1330_v58   ;;  %v1416_v17 = vpop.permute.xlu1 %1415  ;;  %v1912_v37 = vadd.f32 %v1699_v23, %v1624_v42 }
 0x208   :  { %1748 = vperm.xlu0 %9526, %v1346_v8   ;;  %v1625_v24 = vmul.f32 %v9650_v6, %v1416_v17 }
 0x20a   :  { %v1789_v28 = vpop.permute.xlu0 %1788 }
 0x20b   :  { %v1930_v13 = vadd.f32 %v1789_v28, %v1642_v48 }
 0x20d   :  { %1828 = vperm.xlu1 %9527, %v1362_v10   ;;  %v9657_v10 = vld [vmem:[%s13879_s0 + $0x128] sm:$0xff] }
 0x20e   :  { %v1794_v7 = vpop.permute.xlu2 %1793 }
 0x20f   :  { %1763 = vperm.xlu2 %9528, %v1349_v18   ;;  %v1571_v11 = vpop.permute.xlu1 %1570  ;;  %v1931_v39 = vadd.f32 %v1794_v7, %v1643_v53 }
 0x210   :  { %v1656_v30 = vmul.f32 %v9652_v1, %v1571_v11  ;;  %v9658_v11 = vld [vmem:[%s13879_s0 + $0x120] sm:$0xff]  ;;  %v9662_v1 = vld [vmem:[%s13879_s0 + $0x18] sm:$0xff] }
 0x211   :  { %v12178_v43 = vpack.c.bf16 %v1931_v39, %v1930_v13 }
 0x212   :  { %v1864_v2 = vpop.permute.xlu0 %1863 }
 0x213   :  { %5590 = vmatpush.bf16.msra.mxu1 %v12178_v43 }
 0x215   :  { %1465 = vperm.xlu1 %9527, %v11956_v14   ;;  %v1251_v14 = vld [vmem:[%s13881_s2 + $0x88] sm:$0xff] }
 0x216   :  { %v1401_v4 = vpop.permute.xlu2 %1400  ;;  %v1347_v47 = vsub.f32 %v1251_v14, %v11967_v15 }
 0x217   :  { %1460 = vperm.xlu2 %9528, %v11937_v46   ;;  %v1704_v62 = vpop.permute.xlu1 %1703  ;;  %v9651_v46 = vld [vmem:[%s13879_s0 + $0x138] sm:$0xff] }
 0x218   :  { %v1913_v44 = vadd.f32 %v1704_v62, %v1625_v24  ;;  %v1657_v49 = vmul.f32 %v9651_v46, %v1576_v34  ;;  %v9655_v34 = vld [vmem:[%s13879_s0 + $0x20] sm:$0xff]  ;;  %v9661_v46 = vld [vmem:[%s13879_s0 + $0x10] sm:$0xff] }
 0x219   :  { %v1622_v52 = vmul.f32 %v9655_v34, %v1401_v4  ;;  %v9659_v24 = vld [vmem:[%s13879_s0 + $0xa0] sm:$0xff] }
 0x21a   :  { %v1491_v9 = vpop.permute.xlu0 %1490  ;;  %v1957_v19 = vpack.c.bf16 %v1913_v44, %v1912_v37  ;;  %v1945_v54 = vadd.f32 %v1864_v2, %v1657_v49  ;;  %v9660_v37 = vld [vmem:[%s13879_s0 + $0xa8] sm:$0xff] }
 0x21b   :  { %v1640_v12 = vmul.f32 %v9653_v31, %v1491_v9 }
 0x21c   :  { %4862 = vmatpush.bf16.msra.mxu0 %v1957_v19  ;;  %9502 = vmatpush.bf16.msra.mxu3 %v1957_v19 }
 0x21e   :  { %v1496_v35 = vpop.permute.xlu2 %1495 }
 0x21f   :  { %1753 = vperm.xlu2 %9528, %v1347_v47   ;;  %v1859_v32 = vpop.permute.xlu1 %1858  ;;  %v1641_v25 = vmul.f32 %v9654_v3, %v1496_v35 }
 0x220   :  { %v1944_v26 = vadd.f32 %v1859_v32, %v1656_v30 }
 0x222   :  { %v1566_v56 = vpop.permute.xlu0 %1565  ;;  %v12199_v5 = vpack.c.bf16 %v1945_v54, %v1944_v26 }
 0x223   :  { %v1655_v18 = vmul.f32 %v9657_v10, %v1566_v56 }
 0x224   :  { %6320 = vmatpush.bf16.msra.mxu2 %v12199_v5 }
 0x226   :  { %v1689_v38 = vpop.permute.xlu2 %1688 }
 0x227   :  { %v1406_v15 = vpop.permute.xlu1 %1405  ;;  %v1910_v17 = vadd.f32 %v1689_v38, %v1622_v52  ;;  %v9663_v38 = vld [vmem:[%s13879_s0 + $0x118] sm:$0xff] }
 0x228   :  { %v1623_v58 = vmul.f32 %v9656_v61, %v1406_v15 }
 0x22a   :  { %v1779_v22 = vpop.permute.xlu0 %1778 }
 0x22b   :  { %v1928_v45 = vadd.f32 %v1779_v22, %v1640_v12 }
 0x22e   :  { %v1784_v50 = vpop.permute.xlu2 %1783 }
 0x22f   :  { %v1561_v36 = vpop.permute.xlu1 %1560  ;;  %v1929_v27 = vadd.f32 %v1784_v50, %v1641_v25 }
 0x230   :  { %v1654_v55 = vmul.f32 %v9658_v11, %v1561_v36  ;;  %v9664_v36 = vld [vmem:[%s13879_s0 + $0x110] sm:$0xff] }
 0x231   :  { %v12208_v60 = vpack.c.bf16 %v1929_v27, %v1928_v45 }
 0x232   :  { %v1854_v33 = vpop.permute.xlu0 %1853 }
 0x233   :  { %5591 = vmatpush.bf16.msra.mxu1 %v12208_v60  ;;  %v1943_v29 = vadd.f32 %v1854_v33, %v1655_v18  ;;  %v9667_v18 = vld [vmem:[%s13879_s0] sm:$0xff] }
 0x236   :  { %v1391_v23 = vpop.permute.xlu2 %1390 }
 0x237   :  { %v1694_v8 = vpop.permute.xlu1 %1693  ;;  %v1620_v49 = vmul.f32 %v9661_v46, %v1391_v23 }
 0x238   :  { %v1911_v16 = vadd.f32 %v1694_v8, %v1623_v58  ;;  %v9665_v58 = vld [vmem:[%s13879_s0 + $0x90] sm:$0xff] }
 0x23a   :  { %v1481_v41 = vpop.permute.xlu0 %1480  ;;  %v1956_v28 = vpack.c.bf16 %v1911_v16, %v1910_v17  ;;  %v9666_v17 = vld [vmem:[%s13879_s0 + $0x98] sm:$0xff] }
 0x23b   :  { %v1638_v62 = vmul.f32 %v9659_v24, %v1481_v41 }
 0x23c   :  { %4863 = vmatpush.bf16.msra.mxu0 %v1956_v28  ;;  %9503 = vmatpush.bf16.msra.mxu3 %v1956_v28 }
 0x23e   :  { %v1486_v7 = vpop.permute.xlu2 %1485 }
 0x23f   :  { %v1849_v48 = vpop.permute.xlu1 %1848  ;;  %v1639_v44 = vmul.f32 %v9660_v37, %v1486_v7 }
 0x240   :  { %v1942_v53 = vadd.f32 %v1849_v48, %v1654_v55  ;;  %v9668_v55 = vld [vmem:[%s13879_s0 + $0x8] sm:$0xff] }
 0x242   :  { %v1556_v13 = vpop.permute.xlu0 %1555  ;;  %v12223_v39 = vpack.c.bf16 %v1943_v29, %v1942_v53  ;;  %v8636_v53 = vld [vmem:[#allocation2 + $0xa20] sm:$0xf] }
 0x243   :  { %v1653_v22 = vmul.f32 %v9663_v38, %v1556_v13  ;;  %v8648_v38 = vld [vmem:[#allocation2 + $0xa38] sm:$0xf] }
 0x244   :  { %6321 = vmatpush.bf16.msra.mxu2 %v12223_v39 }
 0x246   :  { %v1679_v21 = vpop.permute.xlu2 %1678 }
 0x247   :  { %v1396_v2 = vpop.permute.xlu1 %1395  ;;  %v1908_v54 = vadd.f32 %v1679_v21, %v1620_v49  ;;  %v7340_v21 = vld [vmem:[#allocation2] sm:$0xf] }
 0x248   :  { %v1621_v30 = vmul.f32 %v9662_v1, %v1396_v2  ;;  %v9391_v2 = vld [vmem:[#allocation2 + $0xa28] sm:$0xf0] }
 0x249   :  { %v8637_v24 = vor.u32 %v9391_v2, %v8636_v53  ;;  %v7376_v53 = vld [vmem:[#allocation2 + $0x48] sm:$0xf]  ;;  %v7366_v2 = vld [vmem:[#allocation2 + $0x3c] sm:$0xf0] }
 0x24a   :  { %v1769_v42 = vpop.permute.xlu0 %1768 }
 0x24b   :  { %v1926_v14 = vadd.f32 %v1769_v42, %v1638_v62  ;;  %v9067_v42 = vld [vmem:[#allocation2 + $0x8] sm:$0xf0] }
 0x24c   :  { %v7341_v62 = vor.u32 %v9067_v42, %v7340_v21 }
 0x24e   :  { %v1774_v4 = vpop.permute.xlu2 %1773 }
 0x24f   :  { %v1551_v6 = vpop.permute.xlu1 %1550  ;;  %v1927_v9 = vadd.f32 %v1774_v4, %v1639_v44  ;;  %v9669_v44 = vld [vmem:[%s13879_s0 + $0x108] sm:$0xff] }
 0x250   :  { %v1652_v31 = vmul.f32 %v9664_v36, %v1551_v6  ;;  %v9394_v36 = vld [vmem:[#allocation2 + $0xa40] sm:$0xf0] }
 0x251   :  { %v12232_v47 = vpack.c.bf16 %v1927_v9, %v1926_v14  ;;  %v9670_v14 = vld [vmem:[%s13879_s0 + $0x100] sm:$0xff] }
 0x252   :  { %v1844_v19 = vpop.permute.xlu0 %1843 }
 0x253   :  { %5592 = vmatpush.bf16.msra.mxu1 %v12232_v47  ;;  %v1941_v3 = vadd.f32 %v1844_v19, %v1653_v22 }
 0x256   :  { %v1381_v35 = vpop.permute.xlu2 %1380 }
 0x257   :  { %v1684_v32 = vpop.permute.xlu1 %1683  ;;  %v1618_v11 = vmul.f32 %v9667_v18, %v1381_v35 }
 0x258   :  { %v1909_v26 = vadd.f32 %v1684_v32, %v1621_v30  ;;  %v7348_v30 = vld [vmem:[#allocation2 + $0x8] sm:$0xf]  ;;  %v9068_v32 = vld [vmem:[#allocation2 + $0x10] sm:$0xf0] }
 0x25a   :  { %v1955_v56 = vpack.c.bf16 %v1909_v26, %v1908_v54  ;;  %v1471_v15 = vpop.permute.xlu0 %1470  ;;  %v7349_v54 = vor.u32 %v9068_v32, %v7348_v30  ;;  %v9671_v26 = vld [vmem:[%s13879_s0 + $0x80] sm:$0xff]  ;;  %v7400_v30 = vld [vmem:[#allocation2 + $0x78] sm:$0xf] }
 0x25b   :  { %v1636_v8 = vmul.f32 %v9665_v58, %v1471_v15  ;;  %v7360_v58 = vld [vmem:[#allocation2 + $0x20] sm:$0xf]  ;;  %v9082_v32 = vld [vmem:[#allocation2 + $0x80] sm:$0xf0] }
 0x25c   :  { %4864 = vmatpush.bf16.msra.mxu0 %v1955_v56  ;;  %9504 = vmatpush.bf16.msra.mxu3 %v1955_v56 }
 0x25e   :  { %v1476_v50 = vpop.permute.xlu2 %1475 }
 0x25f   :  { %v1839_v12 = vpop.permute.xlu1 %1838  ;;  %v1637_v16 = vmul.f32 %v9666_v17, %v1476_v50  ;;  %v9066_v50 = vld [vmem:[#allocation2 + $0x4] sm:$0xf] }
 0x260   :  { %v1940_v25 = vadd.f32 %v1839_v12, %v1652_v31  ;;  %v7352_v31 = vld [vmem:[#allocation2 + $0x18] sm:$0xf]  ;;  %v9070_v12 = vld [vmem:[#allocation2 + $0x20] sm:$0xf0] }
 0x262   :  { %v12247_v45 = vpack.c.bf16 %v1941_v3, %v1940_v25  ;;  %v1546_v27 = vpop.permute.xlu0 %1545 }
 0x263   :  { %v1651_v4 = vmul.f32 %v9669_v44, %v1546_v27  ;;  %v7342_v27 = vld [vmem:[#allocation2 + $0xc] sm:$0xf0]  ;;  %v9075_v44 = vld [vmem:[#allocation2 + $0x4c] sm:$0xf] }
 0x264   :  { %6322 = vmatpush.bf16.msra.mxu2 %v12247_v45 }
 0x266   :  { %v1669_v34 = vpop.permute.xlu2 %1668 }
 0x267   :  { %v1386_v33 = vpop.permute.xlu1 %1385  ;;  %v1906_v7 = vadd.f32 %v1669_v34, %v1618_v11  ;;  %v7353_v34 = vor.u32 %v9070_v12, %v7352_v31  ;;  %v7412_v31 = vld [vmem:[#allocation2 + $0x90] sm:$0xf]  ;;  %v9085_v12 = vld [vmem:[#allocation2 + $0x98] sm:$0xf0] }
 0x268   :  { %v1619_v48 = vmul.f32 %v9668_v55, %v1386_v33  ;;  %v8649_v33 = vor.u32 %v9394_v36, %v8648_v38  ;;  %v9083_v38 = vld [vmem:[#allocation2 + $0x88] sm:$0xf0]  ;;  %v9409_v36 = vld [vmem:[#allocation2 + $0xab8] sm:$0xf0] }
 0x26a   :  { %v1759_v52 = vpop.permute.xlu0 %1758 }
 0x26b   :  { %v1924_v41 = vadd.f32 %v1759_v52, %v1636_v8  ;;  %v9071_v8 = vld [vmem:[#allocation2 + $0x28] sm:$0xf0] }
 0x26c   :  { %v7361_v17 = vor.u32 %v9071_v8, %v7360_v58  ;;  %v9412_v58 = vld [vmem:[#allocation2 + $0xad0] sm:$0xf0]  ;;  %v7424_v8 = vld [vmem:[#allocation2 + $0xa8] sm:$0xf] }
 0x26e   :  { %v1764_v23 = vpop.permute.xlu2 %1763 }
 0x26f   :  { %v1541_v61 = vpop.permute.xlu1 %1540  ;;  %v1925_v28 = vadd.f32 %v1764_v23, %v1637_v16  ;;  %v9397_v16 = vld [vmem:[#allocation2 + $0xa58] sm:$0xf0]  ;;  %v7364_v23 = vld [vmem:[#allocation2 + $0x30] sm:$0xf] }
 0x270   :  { %v1650_v9 = vmul.f32 %v9670_v14, %v1541_v61  ;;  %v7345_v61 = vor.u32 %v9066_v50, %v7342_v27  ;;  %v7413_v50 = vor.u32 %v9085_v12, %v7412_v31 }
 0x271   :  { %v12256_v10 = vpack.c.bf16 %v1925_v28, %v1924_v41  ;;  %v9073_v41 = vld [vmem:[#allocation2 + $0x38] sm:$0xf0]  ;;  %v7354_v28 = vld [vmem:[#allocation2 + $0x24] sm:$0xf0] }
 0x272   :  { %v1834_v37 = vpop.permute.xlu0 %1833  ;;  %v7365_v11 = vor.u32 %v9073_v41, %v7364_v23 }
 0x273   :  { %5593 = vmatpush.bf16.msra.mxu1 %v12256_v10  ;;  %v1939_v49 = vadd.f32 %v1834_v37, %v1651_v4  ;;  %v9079_v37 = vld [vmem:[#allocation2 + $0x68] sm:$0xf0]  ;;  %v7378_v4 = vld [vmem:[#allocation2 + $0x54] sm:$0xf0] }
 0x276   :  { %v1461_v19 = vpop.permute.xlu2 %1460 }
 0x277   :  { %v1674_v29 = vpop.permute.xlu1 %1673  ;;  %v1634_v35 = vmul.f32 %v9671_v26, %v1461_v19  ;;  %v7396_v19 = vld [vmem:[#allocation2 + $0x68] sm:$0xf] }
 0x278   :  { %v1907_v13 = vadd.f32 %v1674_v29, %v1619_v48  ;;  %v9074_v48 = vld [vmem:[#allocation2 + $0x40] sm:$0xf0]  ;;  %v8672_v29 = vld [vmem:[#allocation2 + $0xa68] sm:$0xf] }
 0x27a   :  { %v1954_v6 = vpack.c.bf16 %v1907_v13, %v1906_v7  ;;  %v1749_v56 = vpop.permute.xlu0 %1748  ;;  %v9076_v7 = vld [vmem:[#allocation2 + $0x50] sm:$0xf0] }
 0x27b   :  { %v9072_v13 = vld [vmem:[#allocation2 + $0x34] sm:$0xf]  ;;  %v7377_v21 = vor.u32 %v9076_v7, %v7376_v53 }
 0x27c   :  { %4865 = vmatpush.bf16.msra.mxu0 %v1954_v6  ;;  %9505 = vmatpush.bf16.msra.mxu3 %v1954_v6  ;;  %v7369_v42 = vor.u32 %v9072_v13, %v7366_v2  ;;  %v9077_v6 = vld [vmem:[#allocation2 + $0x58] sm:$0xf0] }
 0x27e   :  { %v1754_v3 = vpop.permute.xlu2 %1753 }
 0x27f   :  { %v1829_v46 = vpop.permute.xlu1 %1828  ;;  %5406 = vmatmul.bf16.vlgmr.msra.gmra.mxu3 %v8637_v24  ;;  %4866 = vmatmul.bf16.vlgmr.msra.gmra.mxu0 %v7341_v62  ;;  %v8684_v24 = vld [vmem:[#allocation2 + $0xa80] sm:$0xf] }
 0x280   :  { %9506 = vmatpush.bf16.msrb.mxu3 %v12017_v40  ;;  %v1938_v1 = vadd.f32 %v1829_v46, %v1650_v9  ;;  %v7388_v62 = vld [vmem:[#allocation2 + $0x60] sm:$0xf]  ;;  %v9080_v46 = vld [vmem:[#allocation2 + $0x70] sm:$0xf0] }
 0x281   :  { %v7389_v9 = vor.u32 %v9079_v37, %v7388_v62  ;;  %v9094_v62 = vld [vmem:[#allocation2 + $0xe0] sm:$0xf0] }
 0x282   :  { %v12273_v40 = vpack.c.bf16 %v1939_v49, %v1938_v1  ;;  %v7397_v49 = vor.u32 %v9080_v46, %v7396_v19  ;;  %v9406_v1 = vld [vmem:[#allocation2 + $0xaa0] sm:$0xf0] }
 0x284   :  { %9507 = vmatpush.bf16.msrb.mxu3 %v12071_v57  ;;  %6323 = vmatpush.bf16.msra.mxu2 %v12273_v40  ;;  %v9672_v57 = vld [vmem:[%s13879_s0 + $0x88] sm:$0xff] }
 0x287   :  { %v1466_v15 = vpop.permute.xlu1 %1465  ;;  %6324 = vmatmul.bf16.vlgmr.msra.gmra.mxu2 %v7349_v54  ;;  %v7390_v54 = vld [vmem:[#allocation2 + $0x6c] sm:$0xf0] }
 0x288   :  { %9508 = vmatpush.bf16.msrb.mxu3 %v12125_v59  ;;  %v1635_v22 = vmul.f32 %v9672_v57, %v1466_v15  ;;  %v1922_v59 = vadd.f32 %v1749_v56, %v1634_v35  ;;  %v7401_v35 = vor.u32 %v9082_v32, %v7400_v30  ;;  %v7408_v15 = vld [vmem:[#allocation2 + $0x80] sm:$0xf]  ;;  %v9095_v30 = vld [vmem:[#allocation2 + $0xe8] sm:$0xf0] }
 0x289   :  { %v7409_v57 = vor.u32 %v9083_v38, %v7408_v15  ;;  %v8756_v38 = vld [vmem:[#allocation2 + $0xb10] sm:$0xf] }
 0x28a   :  { %v1923_v25 = vadd.f32 %v1754_v3, %v1635_v22  ;;  %v8708_v22 = vld [vmem:[#allocation2 + $0xab0] sm:$0xf]  ;;  %v9081_v3 = vld [vmem:[#allocation2 + $0x7c] sm:$0xf] }
 0x28c   :  { %9509 = vmatpush.bf16.msrb.mxu3 %v12178_v43  ;;  %v1962_v52 = vpack.c.bf16 %v1923_v25, %v1922_v59  ;;  %v8660_v43 = vld [vmem:[#allocation2 + $0xa50] sm:$0xf]  ;;  %v7402_v59 = vld [vmem:[#allocation2 + $0x84] sm:$0xf0]  ;;  %v8709_v25 = vor.u32 %v9409_v36, %v8708_v22  ;;  %v9097_v36 = vld [vmem:[#allocation2 + $0xf8] sm:$0xf0] }
 0x28d   :  { %v8661_v18 = vor.u32 %v9397_v16, %v8660_v43  ;;  %v7405_v27 = vor.u32 %v9081_v3, %v7402_v59  ;;  %v9084_v43 = vld [vmem:[#allocation2 + $0x94] sm:$0xf]  ;;  %v7414_v16 = vld [vmem:[#allocation2 + $0x9c] sm:$0xf0]  ;;  %v7460_v22 = vld [vmem:[#allocation2 + $0xf0] sm:$0xf] }
 0x28e   :  { %5594 = vmatpush.bf16.msra.mxu1 %v1962_v52  ;;  %v9093_v59 = vld [vmem:[#allocation2 + $0xdc] sm:$0xf] }
 0x28f   :  { %5411 = vmatmul.bf16.gmra.mxu3 %v8649_v33  ;;  %4871 = vmatmul.bf16.gmra.mxu0 %v7353_v34  ;;  %v7420_v33 = vld [vmem:[#allocation2 + $0x98] sm:$0xf]  ;;  %v9086_v34 = vld [vmem:[#allocation2 + $0xa0] sm:$0xf0] }
 0x290   :  { %9510 = vmatpush.bf16.msrb.mxu3 %v12208_v60  ;;  %v9069_v60 = vld [vmem:[#allocation2 + $0x1c] sm:$0xf] }
 0x291   :  { %5595 = vmatmul.bf16.vlgmr.msra.gmra.mxu1 %v7345_v61  ;;  %v7357_v55 = vor.u32 %v9069_v60, %v7354_v28  ;;  %v8720_v61 = vld [vmem:[#allocation2 + $0xac8] sm:$0xf]  ;;  %v7417_v60 = vor.u32 %v9084_v43, %v7414_v16  ;;  %v7432_v28 = vld [vmem:[#allocation2 + $0xb0] sm:$0xf] }
 0x292   :  { %v8721_v23 = vor.u32 %v9412_v58, %v8720_v61  ;;  %v7468_v58 = vld [vmem:[#allocation2 + $0xf8] sm:$0xf] }
 0x294   :  { %9511 = vmatpush.bf16.msrb.mxu3 %v12232_v47  ;;  %v7372_v47 = vld [vmem:[#allocation2 + $0x38] sm:$0xf] }
 0x297   :  { %6329 = vmatmul.bf16.gmra.mxu2 %v7361_v17  ;;  %v9088_v17 = vld [vmem:[#allocation2 + $0xb0] sm:$0xf0] }
 0x298   :  { %9512 = vmatpush.bf16.msrb.mxu3 %v12256_v10  ;;  %v7373_v10 = vor.u32 %v9074_v48, %v7372_v47  ;;  %v7425_v41 = vor.u32 %v9088_v17, %v7424_v8  ;;  %v9415_v47 = vld [vmem:[#allocation2 + $0xae8] sm:$0xf0]  ;;  %v7436_v48 = vld [vmem:[#allocation2 + $0xc0] sm:$0xf]  ;;  %v9098_v8 = vld [vmem:[#allocation2 + $0x100] sm:$0xf0] }
 0x29c   :  { %9513 = vmatpush.bf16.msrb.mxu3 %v1962_v52  ;;  %v7421_v52 = vor.u32 %v9086_v34, %v7420_v33 }
 0x29f   :  { %5416 = vmatmul.bf16.gmra.mxu3 %v8661_v18  ;;  %4876 = vmatmul.bf16.gmra.mxu0 %v7365_v11  ;;  %v9089_v18 = vld [vmem:[#allocation2 + $0xb8] sm:$0xf0] }
 0x2a0   :  { %9514 = vmatpush.bf16.msra.mxu3 %v11994_v20  ;;  %v9400_v20 = vld [vmem:[#allocation2 + $0xa70] sm:$0xf0]  ;;  %v7433_v11 = vor.u32 %v9089_v18, %v7432_v28  ;;  %v8768_v18 = vld [vmem:[#allocation2 + $0xb28] sm:$0xf] }
 0x2a1   :  { %5600 = vmatmul.bf16.gmra.mxu1 %v7357_v55  ;;  %v8732_v55 = vld [vmem:[#allocation2 + $0xae0] sm:$0xf] }
 0x2a2   :  { %v8733_v53 = vor.u32 %v9415_v47, %v8732_v55  ;;  %v7472_v55 = vld [vmem:[#allocation2 + $0x108] sm:$0xf]  ;;  %v9100_v47 = vld [vmem:[#allocation2 + $0x110] sm:$0xf0] }
 0x2a4   :  { %9515 = vmatpush.bf16.msra.mxu3 %v12047_v63  ;;  %v8673_v63 = vor.u32 %v9400_v20, %v8672_v29  ;;  %v9087_v29 = vld [vmem:[#allocation2 + $0xac] sm:$0xf]  ;;  %v7426_v20 = vld [vmem:[#allocation2 + $0xb4] sm:$0xf0] }
 0x2a5   :  { %v7429_v2 = vor.u32 %v9087_v29, %v7426_v20  ;;  %v9096_v20 = vld [vmem:[#allocation2 + $0xf4] sm:$0xf] }
 0x2a7   :  { %6334 = vmatmul.bf16.gmra.mxu2 %v7373_v10  ;;  %v9091_v10 = vld [vmem:[#allocation2 + $0xc8] sm:$0xf0] }
 0x2a8   :  { %9516 = vmatpush.bf16.msra.mxu3 %v12101_v51  ;;  %v7384_v51 = vld [vmem:[#allocation2 + $0x50] sm:$0xf]  ;;  %v7437_v7 = vor.u32 %v9091_v10, %v7436_v48 }
 0x2ac   :  { %9517 = vmatpush.bf16.msra.mxu3 %v12155_v0  ;;  %v7385_v0 = vor.u32 %v9077_v6, %v7384_v51 }
 0x2af   :  { %5421 = vmatmul.bf16.gmra.mxu3 %v8673_v63  ;;  %4881 = vmatmul.bf16.gmra.mxu0 %v7377_v21  ;;  %v7444_v63 = vld [vmem:[#allocation2 + $0xc8] sm:$0xf]  ;;  %v9092_v21 = vld [vmem:[#allocation2 + $0xd0] sm:$0xf0] }
 0x2b0   :  { %9518 = vmatpush.bf16.msra.mxu3 %v12199_v5  ;;  %v9403_v5 = vld [vmem:[#allocation2 + $0xa88] sm:$0xf0]  ;;  %v7445_v51 = vor.u32 %v9092_v21, %v7444_v63 }
 0x2b1   :  { %5605 = vmatmul.bf16.gmra.mxu1 %v7369_v42  ;;  %v8685_v14 = vor.u32 %v9403_v5, %v8684_v24  ;;  %v9418_v24 = vld [vmem:[#allocation2 + $0xb00] sm:$0xf0]  ;;  %v7448_v5 = vld [vmem:[#allocation2 + $0xd8] sm:$0xf] }
 0x2b4   :  { %9519 = vmatpush.bf16.msra.mxu3 %v12223_v39  ;;  %v7381_v39 = vor.u32 %v9075_v44, %v7378_v4  ;;  %v9090_v4 = vld [vmem:[#allocation2 + $0xc4] sm:$0xf] }
 0x2b7   :  { %6339 = vmatmul.bf16.gmra.mxu2 %v7385_v0  ;;  %v8744_v0 = vld [vmem:[#allocation2 + $0xaf8] sm:$0xf] }
 0x2b8   :  { %9520 = vmatpush.bf16.msra.mxu3 %v12247_v45  ;;  %v8696_v45 = vld [vmem:[#allocation2 + $0xa98] sm:$0xf] }
 0x2b9   :  { %v8697_v26 = vor.u32 %v9406_v1, %v8696_v45  ;;  %v7456_v1 = vld [vmem:[#allocation2 + $0xe0] sm:$0xf] }
 0x2bc   :  { %9521 = vmatpush.bf16.msra.mxu3 %v12273_v40  ;;  %v9078_v40 = vld [vmem:[#allocation2 + $0x64] sm:$0xf] }
 0x2bd   :  { %v7393_v56 = vor.u32 %v9078_v40, %v7390_v54 }
 0x2bf   :  { %5426 = vmatmul.bf16.gmra.mxu3 %v8685_v14  ;;  %4886 = vmatmul.bf16.gmra.mxu0 %v7389_v9  ;;  %v7438_v14 = vld [vmem:[#allocation2 + $0xcc] sm:$0xf0]  ;;  %v8745_v9 = vor.u32 %v9418_v24, %v8744_v0  ;;  %v9101_v0 = vld [vmem:[#allocation2 + $0x118] sm:$0xf0] }
 0x2c0   :  { %v7441_v46 = vor.u32 %v9090_v4, %v7438_v14 }
 0x2c1   :  { %5610 = vmatmul.bf16.gmra.mxu1 %v7381_v39  ;;  %v7449_v39 = vor.u32 %v9094_v62, %v7448_v5 }
 0x2c7   :  { %6344 = vmatmul.bf16.gmra.mxu2 %v7397_v49 }
 0x2cf   :  { %5431 = vmatmul.bf16.gmra.mxu3 %v8697_v26  ;;  %4891 = vmatmul.bf16.gmra.mxu0 %v7401_v35  ;;  %v7457_v26 = vor.u32 %v9095_v30, %v7456_v1 }
 0x2d1   :  { %5615 = vmatmul.bf16.gmra.mxu1 %v7393_v56 }
 0x2d7   :  { %6349 = vmatmul.bf16.gmra.mxu2 %v7409_v57  ;;  %v9421_v57 = vld [vmem:[#allocation2 + $0xb18] sm:$0xf0] }
 0x2df   :  { %5436 = vmatmul.bf16.gmra.mxu3 %v8709_v25  ;;  %4896 = vmatmul.bf16.gmra.mxu0 %v7413_v50  ;;  %v7450_v25 = vld [vmem:[#allocation2 + $0xe4] sm:$0xf0]  ;;  %v8757_v50 = vor.u32 %v9421_v57, %v8756_v38 }
 0x2e0   :  { %v7453_v34 = vor.u32 %v9093_v59, %v7450_v25 }
 0x2e1   :  { %5620 = vmatmul.bf16.gmra.mxu1 %v7405_v27  ;;  %v7461_v27 = vor.u32 %v9097_v36, %v7460_v22  ;;  %v7492_v22 = vld [vmem:[#allocation2 + $0x128] sm:$0xf]  ;;  %v9104_v36 = vld [vmem:[#allocation2 + $0x130] sm:$0xf0] }
 0x2e2   :  { %v7493_v25 = vor.u32 %v9104_v36, %v7492_v22  ;;  %v8816_v36 = vld [vmem:[#allocation2 + $0xb88] sm:$0xf] }
 0x2e7   :  { %6354 = vmatmul.bf16.gmra.mxu2 %v7421_v52 }
 0x2ef   :  { %5441 = vmatmul.bf16.gmra.mxu3 %v8721_v23  ;;  %4901 = vmatmul.bf16.gmra.mxu0 %v7425_v41  ;;  %v7469_v23 = vor.u32 %v9098_v8, %v7468_v58  ;;  %v9106_v58 = vld [vmem:[#allocation2 + $0x140] sm:$0xf0] }
 0x2f1   :  { %5625 = vmatmul.bf16.gmra.mxu1 %v7417_v60 }
 0x2f7   :  { %6359 = vmatmul.bf16.gmra.mxu2 %v7433_v11  ;;  %v9424_v11 = vld [vmem:[#allocation2 + $0xb30] sm:$0xf0] }
 0x2fc   :  { %v4867_v13 = vpop.f32.mrf.mxu0 }
 0x2ff   :  { %5446 = vmatmul.bf16.gmra.mxu3 %v8733_v53  ;;  %4906 = vmatmul.bf16.gmra.mxu0 %v7437_v7  ;;  %v7462_v53 = vld [vmem:[#allocation2 + $0xfc] sm:$0xf0]  ;;  %v8769_v7 = vor.u32 %v9424_v11, %v8768_v18 }
 0x300   :  { %v7465_v63 = vor.u32 %v9096_v20, %v7462_v53 }
 0x301   :  { %5630 = vmatmul.bf16.gmra.mxu1 %v7429_v2 }
 0x302   :  { %v12295_v42 = vpop.f32.mrf.mxu3 }
 0x304   :  { %v4869_v6 = vpop.f32.mrf.mxu0 }
 0x307   :  { %6364 = vmatmul.bf16.gmra.mxu2 %v7445_v51 }
 0x30a   :  { %v12297_v37 = vpop.f32.mrf.mxu3  ;;  %v6325_v44 = vpop.f32.mrf.mxu2 }
 0x30c   :  { %v4872_v19 = vpop.f32.mrf.mxu0 }
 0x30e   :  { %v5596_v49 = vpop.f32.mrf.mxu1 }
 0x30f   :  { %v5597_v45 = vadd.f32 %v5596_v49, %v4867_v13  ;;  %5451 = vmatmul.bf16.gmra.mxu3 %v8745_v9  ;;  %4911 = vmatmul.bf16.gmra.mxu0 %v7449_v39  ;;  %v7473_v13 = vor.u32 %v9100_v47, %v7472_v55  ;;  %v8780_v39 = vld [vmem:[#allocation2 + $0xb40] sm:$0xf]  ;;  %v9103_v49 = vld [vmem:[#allocation2 + $0x128] sm:$0xf0] }
 0x311   :  { %v6326_v32 = vadd.f32 %v6325_v44, %v5597_v45  ;;  %5635 = vmatmul.bf16.gmra.mxu1 %v7441_v46  ;;  %v7484_v46 = vld [vmem:[#allocation2 + $0x120] sm:$0xf] }
 0x312   :  { %v12299_v40 = vpop.f32.mrf.mxu3  ;;  %v6327_v54 = vpop.f32.mrf.mxu2 }
 0x313   :  { %7045 = vst.msk [vmem:[%s13883_s4] sm:$0xff] %vm81_vm0, %v6326_v32  ;;  %v9099_v32 = vld [vmem:[#allocation2 + $0x10c] sm:$0xf] }
 0x314   :  { %v4874_v35 = vpop.f32.mrf.mxu0 }
 0x316   :  { %v5598_v56 = vpop.f32.mrf.mxu1 }
 0x317   :  { %v5599_v15 = vadd.f32 %v5598_v56, %v4869_v6  ;;  %6369 = vmatmul.bf16.gmra.mxu2 %v7457_v26  ;;  %v7480_v6 = vld [vmem:[#allocation2 + $0x110] sm:$0xf] }
 0x318   :  { %v7481_v44 = vor.u32 %v9101_v0, %v7480_v6  ;;  %v9433_v6 = vld [vmem:[#allocation2 + $0xb78] sm:$0xf0]  ;;  %v7508_v0 = vld [vmem:[#allocation2 + $0x150] sm:$0xf] }
 0x319   :  { %v6328_v31 = vadd.f32 %v6327_v54, %v5599_v15  ;;  %v7474_v54 = vld [vmem:[#allocation2 + $0x114] sm:$0xf0] }
 0x31a   :  { %v12305_v12 = vpop.f32.mrf.mxu3  ;;  %v6330_v3 = vpop.f32.mrf.mxu2  ;;  %v7477_v15 = vor.u32 %v9099_v32, %v7474_v54  ;;  %v7516_v32 = vld [vmem:[#allocation2 + $0x158] sm:$0xf]  ;;  %v9110_v54 = vld [vmem:[#allocation2 + $0x160] sm:$0xf0] }
 0x31b   :  { %7046 = vst.msk [vmem:[%s13883_s4 + $0x8] sm:$0xff] %vm81_vm0, %v6328_v31 }
 0x31c   :  { %v4877_v33 = vpop.f32.mrf.mxu0 }
 0x31e   :  { %v5601_v52 = vpop.f32.mrf.mxu1 }
 0x31f   :  { %v5602_v61 = vadd.f32 %v5601_v52, %v4872_v19  ;;  %5456 = vmatmul.bf16.gmra.mxu3 %v8757_v50  ;;  %4916 = vmatmul.bf16.gmra.mxu0 %v7461_v27  ;;  %v9427_v19 = vld [vmem:[#allocation2 + $0xb48] sm:$0xf0]  ;;  %v9430_v52 = vld [vmem:[#allocation2 + $0xb60] sm:$0xf0] }
 0x320   :  { %v8781_v26 = vor.u32 %v9427_v19, %v8780_v39 }
 0x321   :  { %v6331_v17 = vadd.f32 %v6330_v3, %v5602_v61  ;;  %5640 = vmatmul.bf16.gmra.mxu1 %v7453_v34  ;;  %v8792_v34 = vld [vmem:[#allocation2 + $0xb58] sm:$0xf] }
 0x322   :  { %v12311_v43 = vpop.f32.mrf.mxu3  ;;  %v6332_v16 = vpop.f32.mrf.mxu2  ;;  %v7496_v61 = vld [vmem:[#allocation2 + $0x138] sm:$0xf] }
 0x323   :  { %7047 = vst.msk [vmem:[%s13883_s4 + $0x10] sm:$0xff] %vm81_vm0, %v6331_v17 }
 0x324   :  { %v4879_v41 = vpop.f32.mrf.mxu0 }
 0x326   :  { %v5603_v60 = vpop.f32.mrf.mxu1 }
 0x327   :  { %v5604_v28 = vadd.f32 %v5603_v60, %v4874_v35  ;;  %6374 = vmatmul.bf16.gmra.mxu2 %v7469_v23  ;;  %v7485_v35 = vor.u32 %v9103_v49, %v7484_v46  ;;  %v9102_v23 = vld [vmem:[#allocation2 + $0x124] sm:$0xf]  ;;  %v8793_v60 = vor.u32 %v9430_v52, %v8792_v34  ;;  %v9108_v34 = vld [vmem:[#allocation2 + $0x154] sm:$0xf]  ;;  %v7510_v52 = vld [vmem:[#allocation2 + $0x15c] sm:$0xf0] }
 0x329   :  { %v6333_v48 = vadd.f32 %v6332_v16, %v5604_v28  ;;  %v7497_v28 = vor.u32 %v9106_v58, %v7496_v61 }
 0x32a   :  { %v12317_v10 = vpop.f32.mrf.mxu3  ;;  %v6335_v29 = vpop.f32.mrf.mxu2 }
 0x32b   :  { %7048 = vst.msk [vmem:[%s13883_s4 + $0x18] sm:$0xff] %vm81_vm0, %v6333_v48  ;;  %v7504_v48 = vld [vmem:[#allocation2 + $0x140] sm:$0xf] }
 0x32c   :  { %v4882_v2 = vpop.f32.mrf.mxu0 }
 0x32e   :  { %v5606_v21 = vpop.f32.mrf.mxu1 }
 0x32f   :  { %v5607_v51 = vadd.f32 %v5606_v21, %v4877_v33  ;;  %5461 = vmatmul.bf16.gmra.mxu3 %v8769_v7  ;;  %4921 = vmatmul.bf16.gmra.mxu0 %v7473_v13 }
 0x331   :  { %v6336_v24 = vadd.f32 %v6335_v29, %v5607_v51  ;;  %5645 = vmatmul.bf16.gmra.mxu1 %v7465_v63  ;;  %v9107_v29 = vld [vmem:[#allocation2 + $0x148] sm:$0xf0]  ;;  %v8804_v51 = vld [vmem:[#allocation2 + $0xb70] sm:$0xf] }
 0x332   :  { %v12323_v5 = vpop.f32.mrf.mxu3  ;;  %v6337_v62 = vpop.f32.mrf.mxu2  ;;  %v7505_v13 = vor.u32 %v9107_v29, %v7504_v48  ;;  %v8805_v39 = vor.u32 %v9433_v6, %v8804_v51 }
 0x333   :  { %7049 = vst.msk [vmem:[%s13883_s4 + $0x20] sm:$0xff] %vm81_vm0, %v6336_v24  ;;  %v9109_v24 = vld [vmem:[#allocation2 + $0x158] sm:$0xf0] }
 0x334   :  { %v4884_v4 = vpop.f32.mrf.mxu0  ;;  %v7509_v19 = vor.u32 %v9109_v24, %v7508_v0  ;;  %v9111_v0 = vld [vmem:[#allocation2 + $0x16c] sm:$0xf]  ;;  %v7522_v24 = vld [vmem:[#allocation2 + $0x174] sm:$0xf0] }
 0x336   :  { %v5608_v14 = vpop.f32.mrf.mxu1 }
 0x337   :  { %v5609_v9 = vadd.f32 %v5608_v14, %v4879_v41  ;;  %6379 = vmatmul.bf16.gmra.mxu2 %v7481_v44  ;;  %v7486_v41 = vld [vmem:[#allocation2 + $0x12c] sm:$0xf0]  ;;  %v9105_v14 = vld [vmem:[#allocation2 + $0x13c] sm:$0xf] }
 0x338   :  { %v7489_v11 = vor.u32 %v9102_v23, %v7486_v41 }
 0x339   :  { %v6338_v45 = vadd.f32 %v6337_v62, %v5609_v9  ;;  %v7498_v9 = vld [vmem:[#allocation2 + $0x144] sm:$0xf0] }
 0x33a   :  { %v12329_v1 = vpop.f32.mrf.mxu3  ;;  %v6340_v30 = vpop.f32.mrf.mxu2  ;;  %v7501_v49 = vor.u32 %v9105_v14, %v7498_v9  ;;  %v7525_v9 = vor.u32 %v9111_v0, %v7522_v24  ;;  %v9117_v0 = vld [vmem:[#allocation2 + $0x19c] sm:$0xf]  ;;  %v7546_v24 = vld [vmem:[#allocation2 + $0x1a4] sm:$0xf0] }
 0x33b   :  { %7050 = vst.msk [vmem:[%s13883_s4 + $0x28] sm:$0xff] %vm81_vm0, %v6338_v45 }
 0x33c   :  { %v4887_v56 = vpop.f32.mrf.mxu0 }
 0x33e   :  { %v5611_v38 = vpop.f32.mrf.mxu1 }
 0x33f   :  { %v5612_v57 = vadd.f32 %v5611_v38, %v4882_v2  ;;  %5466 = vmatmul.bf16.gmra.mxu3 %v8781_v26  ;;  %4926 = vmatmul.bf16.gmra.mxu0 %v7485_v35 }
 0x341   :  { %v6341_v31 = vadd.f32 %v6340_v30, %v5612_v57  ;;  %5650 = vmatmul.bf16.gmra.mxu1 %v7477_v15  ;;  %v7517_v15 = vor.u32 %v9110_v54, %v7516_v32 }
 0x342   :  { %v12335_v3 = vpop.f32.mrf.mxu3  ;;  %v6342_v59 = vpop.f32.mrf.mxu2 }
 0x343   :  { %7051 = vst.msk [vmem:[%s13883_s4 + $0x30] sm:$0xff] %vm81_vm0, %v6341_v31  ;;  %v9436_v31 = vld [vmem:[#allocation2 + $0xb90] sm:$0xf0] }
 0x344   :  { %v4889_v50 = vpop.f32.mrf.mxu0  ;;  %v8817_v61 = vor.u32 %v9436_v31, %v8816_v36  ;;  %v9118_v36 = vld [vmem:[#allocation2 + $0x1a0] sm:$0xf0] }
 0x346   :  { %v5613_v27 = vpop.f32.mrf.mxu1 }
 0x347   :  { %v5614_v33 = vadd.f32 %v5613_v27, %v4884_v4  ;;  %6384 = vmatmul.bf16.gmra.mxu2 %v7493_v25  ;;  %v9112_v25 = vld [vmem:[#allocation2 + $0x170] sm:$0xf0] }
 0x349   :  { %v6343_v8 = vadd.f32 %v6342_v59, %v5614_v33  ;;  %v7520_v59 = vld [vmem:[#allocation2 + $0x168] sm:$0xf] }
 0x34a   :  { %v12341_v17 = vpop.f32.mrf.mxu3  ;;  %v6345_v16 = vpop.f32.mrf.mxu2  ;;  %v7521_v58 = vor.u32 %v9112_v25, %v7520_v59 }
 0x34b   :  { %7052 = vst.msk [vmem:[%s13883_s4 + $0x38] sm:$0xff] %vm81_vm0, %v6343_v8 }
 0x34c   :  { %v4892_v18 = vpop.f32.mrf.mxu0 }
 0x34e   :  { %v5616_v55 = vpop.f32.mrf.mxu1 }
 0x34f   :  { %v5617_v47 = vadd.f32 %v5616_v55, %v4887_v56  ;;  %5471 = vmatmul.bf16.gmra.mxu3 %v8793_v60  ;;  %4931 = vmatmul.bf16.gmra.mxu0 %v7497_v28  ;;  %v7528_v60 = vld [vmem:[#allocation2 + $0x170] sm:$0xf]  ;;  %v9113_v28 = vld [vmem:[#allocation2 + $0x178] sm:$0xf0] }
 0x351   :  { %v6346_v20 = vadd.f32 %v6345_v16, %v5617_v47  ;;  %5655 = vmatmul.bf16.gmra.mxu1 %v7489_v11  ;;  %v7513_v16 = vor.u32 %v9108_v34, %v7510_v52  ;;  %v7529_v47 = vor.u32 %v9113_v28, %v7528_v60 }
 0x352   :  { %v12347_v53 = vpop.f32.mrf.mxu3  ;;  %v6347_v7 = vpop.f32.mrf.mxu2 }
 0x353   :  { %7053 = vst.msk [vmem:[%s13883_s4 + $0x40] sm:$0xff] %vm81_vm0, %v6346_v20 }
 0x354   :  { %v4894_v2 = vpop.f32.mrf.mxu0 }
 0x356   :  { %v5618_v63 = vpop.f32.mrf.mxu1 }
 0x357   :  { %v5619_v21 = vadd.f32 %v5618_v63, %v4889_v50  ;;  %6389 = vmatmul.bf16.gmra.mxu2 %v7505_v13  ;;  %v9439_v13 = vld [vmem:[#allocation2 + $0xba8] sm:$0xf0] }
 0x358   :  { %v9115_v63 = vld [vmem:[#allocation2 + $0x188] sm:$0xf0] }
 0x359   :  { %v6348_v62 = vadd.f32 %v6347_v7, %v5619_v21  ;;  %v8828_v7 = vld [vmem:[#allocation2 + $0xba0] sm:$0xf] }
 0x35a   :  { %v12353_v44 = vpop.f32.mrf.mxu3  ;;  %v6350_v4 = vpop.f32.mrf.mxu2 }
 0x35b   :  { %7054 = vst.msk [vmem:[%s13883_s4 + $0x48] sm:$0xff] %vm81_vm0, %v6348_v62  ;;  %v8829_v62 = vor.u32 %v9439_v13, %v8828_v7  ;;  %v9445_v7 = vld [vmem:[#allocation2 + $0xbd8] sm:$0xf0]  ;;  %v7556_v13 = vld [vmem:[#allocation2 + $0x1b0] sm:$0xf] }
 0x35c   :  { %v4897_v46 = vpop.f32.mrf.mxu0 }
 0x35e   :  { %v5621_v45 = vpop.f32.mrf.mxu1 }
 0x35f   :  { %v5622_v30 = vadd.f32 %v5621_v45, %v4892_v18  ;;  %5476 = vmatmul.bf16.gmra.mxu3 %v8805_v39  ;;  %4936 = vmatmul.bf16.gmra.mxu0 %v7509_v19 }
 0x361   :  { %v6351_v26 = vadd.f32 %v6350_v4, %v5622_v30  ;;  %5660 = vmatmul.bf16.gmra.mxu1 %v7501_v49  ;;  %v9116_v49 = vld [vmem:[#allocation2 + $0x190] sm:$0xf0] }
 0x362   :  { %v12359_v35 = vpop.f32.mrf.mxu3  ;;  %v6352_v56 = vpop.f32.mrf.mxu2 }
 0x363   :  { %7055 = vst.msk [vmem:[%s13883_s4 + $0x50] sm:$0xff] %vm81_vm0, %v6351_v26 }
 0x364   :  { %v4899_v38 = vpop.f32.mrf.mxu0 }
 0x366   :  { %v5623_v57 = vpop.f32.mrf.mxu1 }
 0x367   :  { %v5624_v22 = vadd.f32 %v5623_v57, %v4894_v2  ;;  %6394 = vmatmul.bf16.gmra.mxu2 %v7517_v15  ;;  %v7532_v2 = vld [vmem:[#allocation2 + $0x180] sm:$0xf]  ;;  %v9442_v57 = vld [vmem:[#allocation2 + $0xbc0] sm:$0xf0] }
 0x368   :  { %v7533_v4 = vor.u32 %v9115_v63, %v7532_v2  ;;  %v9121_v2 = vld [vmem:[#allocation2 + $0x1b8] sm:$0xf0] }
 0x369   :  { %v6353_v50 = vadd.f32 %v6352_v56, %v5624_v22  ;;  %v7544_v22 = vld [vmem:[#allocation2 + $0x198] sm:$0xf] }
 0x36a   :  { %v12365_v27 = vpop.f32.mrf.mxu3  ;;  %v6355_v33 = vpop.f32.mrf.mxu2  ;;  %v7545_v52 = vor.u32 %v9118_v36, %v7544_v22  ;;  %v9448_v22 = vld [vmem:[#allocation2 + $0xbf0] sm:$0xf0]  ;;  %v7568_v36 = vld [vmem:[#allocation2 + $0x1c8] sm:$0xf] }
 0x36b   :  { %7056 = vst.msk [vmem:[%s13883_s4 + $0x58] sm:$0xff] %vm81_vm0, %v6353_v50  ;;  %v9114_v50 = vld [vmem:[#allocation2 + $0x184] sm:$0xf] }
 0x36c   :  { %v4902_v8 = vpop.f32.mrf.mxu0 }
 0x36e   :  { %v5626_v23 = vpop.f32.mrf.mxu1 }
 0x36f   :  { %v5627_v41 = vadd.f32 %v5626_v23, %v4897_v46  ;;  %5481 = vmatmul.bf16.gmra.mxu3 %v8817_v61  ;;  %4941 = vmatmul.bf16.gmra.mxu0 %v7521_v58  ;;  %v7540_v46 = vld [vmem:[#allocation2 + $0x188] sm:$0xf]  ;;  %v7552_v23 = vld [vmem:[#allocation2 + $0x1a0] sm:$0xf] }
 0x370   :  { %v7541_v54 = vor.u32 %v9116_v49, %v7540_v46  ;;  %v7564_v46 = vld [vmem:[#allocation2 + $0x1b8] sm:$0xf]  ;;  %v9122_v49 = vld [vmem:[#allocation2 + $0x1c0] sm:$0xf0] }
 0x371   :  { %v6356_v18 = vadd.f32 %v6355_v33, %v5627_v41  ;;  %5665 = vmatmul.bf16.gmra.mxu1 %v7513_v16  ;;  %v7534_v33 = vld [vmem:[#allocation2 + $0x18c] sm:$0xf0]  ;;  %v9119_v41 = vld [vmem:[#allocation2 + $0x1a8] sm:$0xf0] }
 0x372   :  { %v12371_v11 = vpop.f32.mrf.mxu3  ;;  %v6357_v55 = vpop.f32.mrf.mxu2  ;;  %v7537_v58 = vor.u32 %v9114_v50, %v7534_v33 }
 0x373   :  { %7057 = vst.msk [vmem:[%s13883_s4 + $0x60] sm:$0xff] %vm81_vm0, %v6356_v18 }
 0x374   :  { %v4904_v48 = vpop.f32.mrf.mxu0 }
 0x376   :  { %v5628_v29 = vpop.f32.mrf.mxu1 }
 0x377   :  { %v5629_v20 = vadd.f32 %v5628_v29, %v4899_v38  ;;  %6399 = vmatmul.bf16.gmra.mxu2 %v7529_v47  ;;  %v8840_v38 = vld [vmem:[#allocation2 + $0xbb8] sm:$0xf] }
 0x378   :  { %v8841_v34 = vor.u32 %v9442_v57, %v8840_v38  ;;  %v8864_v57 = vld [vmem:[#allocation2 + $0xbe8] sm:$0xf] }
 0x379   :  { %v6358_v21 = vadd.f32 %v6357_v55, %v5629_v20  ;;  %v7553_v55 = vor.u32 %v9119_v41, %v7552_v23  ;;  %v8852_v20 = vld [vmem:[#allocation2 + $0xbd0] sm:$0xf] }
 0x37a   :  { %v12377_v51 = vpop.f32.mrf.mxu3  ;;  %v6360_v6 = vpop.f32.mrf.mxu2 }
 0x37b   :  { %7058 = vst.msk [vmem:[%s13883_s4 + $0x68] sm:$0xff] %vm81_vm0, %v6358_v21 }
 0x37c   :  { %v4907_v14 = vpop.f32.mrf.mxu0 }
 0x37e   :  { %v5631_v39 = vpop.f32.mrf.mxu1 }
 0x37f   :  { %v5632_v19 = vadd.f32 %v5631_v39, %v4902_v8  ;;  %5486 = vmatmul.bf16.gmra.mxu3 %v8829_v62  ;;  %4946 = vmatmul.bf16.gmra.mxu0 %v7533_v4  ;;  %v8853_v62 = vor.u32 %v9445_v7, %v8852_v20  ;;  %v7557_v4 = vor.u32 %v9121_v2, %v7556_v13  ;;  %v8876_v2 = vld [vmem:[#allocation2 + $0xc00] sm:$0xf] }
 0x381   :  { %v6361_v45 = vadd.f32 %v6360_v6, %v5632_v19  ;;  %5670 = vmatmul.bf16.gmra.mxu1 %v7525_v9  ;;  %v7549_v9 = vor.u32 %v9117_v0, %v7546_v24  ;;  %v9127_v0 = vld [vmem:[#allocation2 + $0x1e8] sm:$0xf0] }
 0x382   :  { %v12383_v30 = vpop.f32.mrf.mxu3  ;;  %v6362_v32 = vpop.f32.mrf.mxu2 }
 0x383   :  { %7059 = vst.msk [vmem:[%s13883_s4 + $0x70] sm:$0xff] %vm81_vm0, %v6361_v45 }
 0x384   :  { %v4909_v26 = vpop.f32.mrf.mxu0 }
 0x386   :  { %v5633_v56 = vpop.f32.mrf.mxu1 }
 0x387   :  { %v5634_v15 = vadd.f32 %v5633_v56, %v4904_v48  ;;  %6404 = vmatmul.bf16.gmra.mxu2 %v7541_v54 }
 0x389   :  { %v6363_v31 = vadd.f32 %v6362_v32, %v5634_v15 }
 0x38a   :  { %v12389_v59 = vpop.f32.mrf.mxu3  ;;  %v6365_v25 = vpop.f32.mrf.mxu2 }
 0x38b   :  { %7060 = vst.msk [vmem:[%s13883_s4 + $0x78] sm:$0xff] %vm81_vm0, %v6363_v31  ;;  %v9124_v31 = vld [vmem:[#allocation2 + $0x1d0] sm:$0xf0] }
 0x38c   :  { %v4912_v61 = vpop.f32.mrf.mxu0 }
 0x38e   :  { %v5636_v8 = vpop.f32.mrf.mxu1 }
 0x38f   :  { %v5637_v16 = vadd.f32 %v5636_v8, %v4907_v14  ;;  %5491 = vmatmul.bf16.gmra.mxu3 %v8841_v34  ;;  %4951 = vmatmul.bf16.gmra.mxu0 %v7545_v52  ;;  %v9120_v34 = vld [vmem:[#allocation2 + $0x1b4] sm:$0xf]  ;;  %v7558_v52 = vld [vmem:[#allocation2 + $0x1bc] sm:$0xf0] }
 0x391   :  { %v6366_v60 = vadd.f32 %v6365_v25, %v5637_v16  ;;  %5675 = vmatmul.bf16.gmra.mxu1 %v7537_v58  ;;  %v7569_v58 = vor.u32 %v9124_v31, %v7568_v36  ;;  %v7561_v16 = vor.u32 %v9120_v34, %v7558_v52  ;;  %v9454_v34 = vld [vmem:[#allocation2 + $0xc20] sm:$0xf0]  ;;  %v7592_v52 = vld [vmem:[#allocation2 + $0x1f8] sm:$0xf] }
 0x392   :  { %v12395_v28 = vpop.f32.mrf.mxu3  ;;  %v6367_v18 = vpop.f32.mrf.mxu2 }
 0x393   :  { %7061 = vst.msk [vmem:[%s13883_s4 + $0x80] sm:$0xff] %vm81_vm0, %v6366_v60  ;;  %v7576_v60 = vld [vmem:[#allocation2 + $0x1d0] sm:$0xf] }
 0x394   :  { %v4914_v47 = vpop.f32.mrf.mxu0 }
 0x396   :  { %v5638_v48 = vpop.f32.mrf.mxu1 }
 0x397   :  { %v5639_v29 = vadd.f32 %v5638_v48, %v4909_v26  ;;  %6409 = vmatmul.bf16.gmra.mxu2 %v7553_v55  ;;  %v7565_v26 = vor.u32 %v9122_v49, %v7564_v46 }
 0x399   :  { %v6368_v63 = vadd.f32 %v6367_v18, %v5639_v29  ;;  %v9125_v18 = vld [vmem:[#allocation2 + $0x1d8] sm:$0xf0] }
 0x39a   :  { %v12401_v21 = vpop.f32.mrf.mxu3  ;;  %v6370_v6 = vpop.f32.mrf.mxu2  ;;  %v7577_v29 = vor.u32 %v9125_v18, %v7576_v60 }
 0x39b   :  { %7062 = vst.msk [vmem:[%s13883_s4 + $0x88] sm:$0xff] %vm81_vm0, %v6368_v63  ;;  %v9451_v63 = vld [vmem:[#allocation2 + $0xc08] sm:$0xf0] }
 0x39c   :  { %v4917_v14 = vpop.f32.mrf.mxu0 }
 0x39e   :  { %v5641_v39 = vpop.f32.mrf.mxu1 }
 0x39f   :  { %v5642_v19 = vadd.f32 %v5641_v39, %v4912_v61  ;;  %5496 = vmatmul.bf16.gmra.mxu3 %v8853_v62  ;;  %4956 = vmatmul.bf16.gmra.mxu0 %v7557_v4  ;;  %v8865_v61 = vor.u32 %v9448_v22, %v8864_v57  ;;  %v8877_v39 = vor.u32 %v9451_v63, %v8876_v2 }
 0x3a1   :  { %v6371_v45 = vadd.f32 %v6370_v6, %v5642_v19  ;;  %5680 = vmatmul.bf16.gmra.mxu1 %v7549_v9  ;;  %v7580_v6 = vld [vmem:[#allocation2 + $0x1e0] sm:$0xf]  ;;  %v7570_v9 = vld [vmem:[#allocation2 + $0x1d4] sm:$0xf0] }
 0x3a2   :  { %v12407_v32 = vpop.f32.mrf.mxu3  ;;  %v6372_v54 = vpop.f32.mrf.mxu2  ;;  %v7581_v19 = vor.u32 %v9127_v0, %v7580_v6 }
 0x3a3   :  { %7063 = vst.msk [vmem:[%s13883_s4 + $0x90] sm:$0xff] %vm81_vm0, %v6371_v45 }
 0x3a4   :  { %v4919_v56 = vpop.f32.mrf.mxu0 }
 0x3a6   :  { %v5643_v15 = vpop.f32.mrf.mxu1 }
 0x3a7   :  { %v5644_v38 = vadd.f32 %v5643_v15, %v4914_v47  ;;  %6414 = vmatmul.bf16.gmra.mxu2 %v7565_v26  ;;  %v7588_v26 = vld [vmem:[#allocation2 + $0x1e8] sm:$0xf] }
 0x3a9   :  { %v6373_v25 = vadd.f32 %v6372_v54, %v5644_v38 }
 0x3aa   :  { %v12413_v50 = vpop.f32.mrf.mxu3  ;;  %v6375_v33 = vpop.f32.mrf.mxu2 }
 0x3ab   :  { %14128 = vst [vmem:[#allocation31_spill] sm:$0xff] %v12413_v50 }
 0x3ac   :  { %7064 = vst.msk [vmem:[%s13883_s4 + $0x98] sm:$0xff] %vm81_vm0, %v6373_v25  ;;  %v4922_v8 = vpop.f32.mrf.mxu0 }
 0x3ae   :  { %v5646_v23 = vpop.f32.mrf.mxu1 }
 0x3af   :  { %v5647_v41 = vadd.f32 %v5646_v23, %v4917_v14  ;;  %5501 = vmatmul.bf16.gmra.mxu3 %v8865_v61  ;;  %4961 = vmatmul.bf16.gmra.mxu0 %v7569_v58  ;;  %v9123_v14 = vld [vmem:[#allocation2 + $0x1cc] sm:$0xf]  ;;  %v9130_v61 = vld [vmem:[#allocation2 + $0x200] sm:$0xf0] }
 0x3b0   :  { %v7573_v49 = vor.u32 %v9123_v14, %v7570_v9  ;;  %v9126_v23 = vld [vmem:[#allocation2 + $0x1e4] sm:$0xf]  ;;  %v7593_v18 = vor.u32 %v9130_v61, %v7592_v52  ;;  %v8900_v9 = vld [vmem:[#allocation2 + $0xc30] sm:$0xf] }
 0x3b1   :  { %v6376_v55 = vadd.f32 %v6375_v33, %v5647_v41  ;;  %5685 = vmatmul.bf16.gmra.mxu1 %v7561_v16  ;;  %v8888_v33 = vld [vmem:[#allocation2 + $0xc18] sm:$0xf]  ;;  %v7582_v41 = vld [vmem:[#allocation2 + $0x1ec] sm:$0xf0] }
 0x3b2   :  { %v12419_v47 = vpop.f32.mrf.mxu3  ;;  %v6377_v48 = vpop.f32.mrf.mxu2  ;;  %v8889_v60 = vor.u32 %v9454_v34, %v8888_v33  ;;  %v7612_v33 = vld [vmem:[#allocation2 + $0x218] sm:$0xf]  ;;  %v9134_v34 = vld [vmem:[#allocation2 + $0x220] sm:$0xf0] }
 0x3b3   :  { %14129 = vst [vmem:[#allocation29_spill] sm:$0xff] %v12419_v47 }
 0x3b4   :  { %7065 = vst.msk [vmem:[%s13883_s4 + $0xa0] sm:$0xff] %vm81_vm0, %v6376_v55  ;;  %v4924_v20 = vpop.f32.mrf.mxu0 }
 0x3b6   :  { %v5648_v7 = vpop.f32.mrf.mxu1 }
 0x3b7   :  { %v5649_v13 = vadd.f32 %v5648_v7, %v4919_v56  ;;  %6419 = vmatmul.bf16.gmra.mxu2 %v7577_v29  ;;  %v9128_v56 = vld [vmem:[#allocation2 + $0x1f0] sm:$0xf0]  ;;  %v7600_v7 = vld [vmem:[#allocation2 + $0x200] sm:$0xf] }
 0x3b8   :  { %v7589_v22 = vor.u32 %v9128_v56, %v7588_v26  ;;  %v9129_v26 = vld [vmem:[#allocation2 + $0x1fc] sm:$0xf]  ;;  %v7594_v56 = vld [vmem:[#allocation2 + $0x204] sm:$0xf0] }
 0x3b9   :  { %v6378_v24 = vadd.f32 %v6377_v48, %v5649_v13  ;;  %v7585_v48 = vor.u32 %v9126_v23, %v7582_v41  ;;  %v9131_v13 = vld [vmem:[#allocation2 + $0x208] sm:$0xf0] }
 0x3ba   :  { %v12425_v62 = vpop.f32.mrf.mxu3  ;;  %v6380_v4 = vpop.f32.mrf.mxu2  ;;  %v7601_v0 = vor.u32 %v9131_v13, %v7600_v7 }
 0x3bb   :  { %14130 = vst [vmem:[#allocation30_spill] sm:$0xff] %v12425_v62 }
 0x3bc   :  { %7066 = vst.msk [vmem:[%s13883_s4 + $0xa8] sm:$0xff] %vm81_vm0, %v6378_v24  ;;  %v4927_v46 = vpop.f32.mrf.mxu0 }
 0x3be   :  { %v5651_v45 = vpop.f32.mrf.mxu1 }
 0x3bf   :  { %v5652_v54 = vadd.f32 %v5651_v45, %v4922_v8  ;;  %5506 = vmatmul.bf16.gmra.mxu3 %v8877_v39  ;;  %4966 = vmatmul.bf16.gmra.mxu0 %v7581_v19  ;;  %v9457_v39 = vld [vmem:[#allocation2 + $0xc38] sm:$0xf0]  ;;  %v7604_v19 = vld [vmem:[#allocation2 + $0x210] sm:$0xf] }
 0x3c1   :  { %v6381_v15 = vadd.f32 %v6380_v4, %v5652_v54  ;;  %5690 = vmatmul.bf16.gmra.mxu1 %v7573_v49 }
 0x3c2   :  { %v12431_v38 = vpop.f32.mrf.mxu3  ;;  %v6382_v57 = vpop.f32.mrf.mxu2 }
 0x3c3   :  { %14131 = vst [vmem:[#allocation27_spill] sm:$0xff] %v12431_v38 }
 0x3c4   :  { %7067 = vst.msk [vmem:[%s13883_s4 + $0xb0] sm:$0xff] %vm81_vm0, %v6381_v15  ;;  %v4929_v36 = vpop.f32.mrf.mxu0  ;;  %v8901_v15 = vor.u32 %v9457_v39, %v8900_v9 }
 0x3c6   :  { %v5653_v31 = vpop.f32.mrf.mxu1 }
 0x3c7   :  { %v5654_v25 = vadd.f32 %v5653_v31, %v4924_v20  ;;  %6424 = vmatmul.bf16.gmra.mxu2 %v7589_v22 }
 0x3c9   :  { %v6383_v58 = vadd.f32 %v6382_v57, %v5654_v25 }
 0x3ca   :  { %v12437_v8 = vpop.f32.mrf.mxu3  ;;  %v6385_v16 = vpop.f32.mrf.mxu2 }
 0x3cb   :  { %14132 = vst [vmem:[#allocation22_spill] sm:$0xff] %v12437_v8 }
 0x3cc   :  { %7068 = vst.msk [vmem:[%s13883_s4 + $0xb8] sm:$0xff] %vm81_vm0, %v6383_v58  ;;  %v4932_v55 = vpop.f32.mrf.mxu0 }
 0x3ce   :  { %v5656_v29 = vpop.f32.mrf.mxu1 }
 0x3cf   :  { %v5657_v20 = vadd.f32 %v5656_v29, %v4927_v46  ;;  %5511 = vmatmul.bf16.gmra.mxu3 %v8889_v60  ;;  %4971 = vmatmul.bf16.gmra.mxu0 %v7593_v18  ;;  %v9133_v46 = vld [vmem:[#allocation2 + $0x218] sm:$0xf0]  ;;  %v8912_v18 = vld [vmem:[#allocation2 + $0xc48] sm:$0xf]  ;;  %v9136_v29 = vld [vmem:[#allocation2 + $0x230] sm:$0xf0] }
 0x3d0   :  { %v7605_v57 = vor.u32 %v9133_v46, %v7604_v19  ;;  %v7624_v19 = vld [vmem:[#allocation2 + $0x230] sm:$0xf]  ;;  %v9137_v46 = vld [vmem:[#allocation2 + $0x238] sm:$0xf0] }
 0x3d1   :  { %v6386_v2 = vadd.f32 %v6385_v16, %v5657_v20  ;;  %5695 = vmatmul.bf16.gmra.mxu1 %v7585_v48  ;;  %v7613_v16 = vor.u32 %v9134_v34, %v7612_v33  ;;  %v7616_v48 = vld [vmem:[#allocation2 + $0x228] sm:$0xf]  ;;  %v9139_v33 = vld [vmem:[#allocation2 + $0x248] sm:$0xf0] }
 0x3d2   :  { %v12443_v63 = vpop.f32.mrf.mxu3  ;;  %v6387_v6 = vpop.f32.mrf.mxu2 }
 0x3d3   :  { %14133 = vst [vmem:[#allocation37_spill] sm:$0xff] %v12443_v63 }
 0x3d4   :  { %7069 = vst.msk [vmem:[%s13883_s4 + $0xc0] sm:$0xff] %vm81_vm0, %v6386_v2  ;;  %v4934_v24 = vpop.f32.mrf.mxu0  ;;  %v9132_v2 = vld [vmem:[#allocation2 + $0x214] sm:$0xf] }
 0x3d6   :  { %v5658_v4 = vpop.f32.mrf.mxu1 }
 0x3d7   :  { %v5659_v14 = vadd.f32 %v5658_v4, %v4929_v36  ;;  %6429 = vmatmul.bf16.gmra.mxu2 %v7601_v0  ;;  %v7597_v36 = vor.u32 %v9129_v26, %v7594_v56  ;;  %v7617_v4 = vor.u32 %v9136_v29, %v7616_v48  ;;  %v7625_v56 = vor.u32 %v9137_v46, %v7624_v19  ;;  %v9466_v19 = vld [vmem:[#allocation2 + $0xc80] sm:$0xf0]  ;;  %v7640_v46 = vld [vmem:[#allocation2 + $0x258] sm:$0xf] }
 0x3d9   :  { %v6388_v49 = vadd.f32 %v6387_v6, %v5659_v14  ;;  %v7606_v6 = vld [vmem:[#allocation2 + $0x21c] sm:$0xf0] }
 0x3da   :  { %v12449_v45 = vpop.f32.mrf.mxu3  ;;  %v6390_v54 = vpop.f32.mrf.mxu2 }
 0x3db   :  { %14134 = vst [vmem:[#allocation36_spill] sm:$0xff] %v12449_v45 }
 0x3dc   :  { %7070 = vst.msk [vmem:[%s13883_s4 + $0xc8] sm:$0xff] %vm81_vm0, %v6388_v49  ;;  %v4937_v22 = vpop.f32.mrf.mxu0 }
 0x3de   :  { %v5661_v31 = vpop.f32.mrf.mxu1 }
 0x3df   :  { %v5662_v25 = vadd.f32 %v5661_v31, %v4932_v55  ;;  %5516 = vmatmul.bf16.gmra.mxu3 %v8901_v15  ;;  %4976 = vmatmul.bf16.gmra.mxu0 %v7605_v57  ;;  %v9460_v55 = vld [vmem:[#allocation2 + $0xc50] sm:$0xf0]  ;;  %v9463_v31 = vld [vmem:[#allocation2 + $0xc68] sm:$0xf0] }
 0x3e0   :  { %v8913_v0 = vor.u32 %v9460_v55, %v8912_v18 }
 0x3e1   :  { %v6391_v52 = vadd.f32 %v6390_v54, %v5662_v25  ;;  %5700 = vmatmul.bf16.gmra.mxu1 %v7597_v36  ;;  %v7628_v25 = vld [vmem:[#allocation2 + $0x240] sm:$0xf] }
 0x3e2   :  { %v12455_v61 = vpop.f32.mrf.mxu3  ;;  %v6392_v58 = vpop.f32.mrf.mxu2  ;;  %v7629_v18 = vor.u32 %v9139_v33, %v7628_v25 }
 0x3e3   :  { %14135 = vst [vmem:[#allocation10_spill] sm:$0xff] %v12455_v61 }
 0x3e4   :  { %7071 = vst.msk [vmem:[%s13883_s4 + $0xd0] sm:$0xff] %vm81_vm0, %v6391_v52  ;;  %v4939_v23 = vpop.f32.mrf.mxu0 }
 0x3e6   :  { %v5663_v41 = vpop.f32.mrf.mxu1 }
 0x3e7   :  { %v5664_v60 = vadd.f32 %v5663_v41, %v4934_v24  ;;  %6434 = vmatmul.bf16.gmra.mxu2 %v7613_v16  ;;  %v7609_v24 = vor.u32 %v9132_v2, %v7606_v6  ;;  %v9135_v16 = vld [vmem:[#allocation2 + $0x22c] sm:$0xf]  ;;  %v7618_v41 = vld [vmem:[#allocation2 + $0x234] sm:$0xf0] }
 0x3e9   :  { %v6393_v20 = vadd.f32 %v6392_v58, %v5664_v60 }
 0x3ea   :  { %v12461_v7 = vpop.f32.mrf.mxu3  ;;  %v6395_v13 = vpop.f32.mrf.mxu2 }
 0x3eb   :  { %14136 = vst [vmem:[#allocation32_spill] sm:$0xff] %v12461_v7 }
 0x3ec   :  { %7072 = vst.msk [vmem:[%s13883_s4 + $0xd8] sm:$0xff] %vm81_vm0, %v6393_v20  ;;  %v4942_v14 = vpop.f32.mrf.mxu0  ;;  %v7636_v20 = vld [vmem:[#allocation2 + $0x248] sm:$0xf] }
 0x3ee   :  { %v5666_v9 = vpop.f32.mrf.mxu1 }
 0x3ef   :  { %v5667_v39 = vadd.f32 %v5666_v9, %v4937_v22  ;;  %5521 = vmatmul.bf16.gmra.mxu3 %v8913_v0  ;;  %4981 = vmatmul.bf16.gmra.mxu0 %v7617_v4  ;;  %v8924_v22 = vld [vmem:[#allocation2 + $0xc60] sm:$0xf] }
 0x3f0   :  { %v8925_v60 = vor.u32 %v9463_v31, %v8924_v22  ;;  %v7630_v22 = vld [vmem:[#allocation2 + $0x24c] sm:$0xf0] }
 0x3f1   :  { %v6396_v49 = vadd.f32 %v6395_v13, %v5667_v39  ;;  %5705 = vmatmul.bf16.gmra.mxu1 %v7609_v24  ;;  %v9140_v13 = vld [vmem:[#allocation2 + $0x250] sm:$0xf0] }
 0x3f2   :  { %v12467_v54 = vpop.f32.mrf.mxu3  ;;  %v6397_v26 = vpop.f32.mrf.mxu2  ;;  %v7637_v4 = vor.u32 %v9140_v13, %v7636_v20 }
 0x3f3   :  { %14137 = vst [vmem:[#allocation33_spill] sm:$0xff] %v12467_v54 }
 0x3f4   :  { %7073 = vst.msk [vmem:[%s13883_s4 + $0xe0] sm:$0xff] %vm81_vm0, %v6396_v49  ;;  %v4944_v15 = vpop.f32.mrf.mxu0  ;;  %v9142_v49 = vld [vmem:[#allocation2 + $0x260] sm:$0xf0] }
 0x3f5   :  { %v7641_v25 = vor.u32 %v9142_v49, %v7640_v46  ;;  %v7642_v46 = vld [vmem:[#allocation2 + $0x264] sm:$0xf0] }
 0x3f6   :  { %v5668_v57 = vpop.f32.mrf.mxu1 }
 0x3f7   :  { %v5669_v36 = vadd.f32 %v5668_v57, %v4939_v23  ;;  %6439 = vmatmul.bf16.gmra.mxu2 %v7625_v56  ;;  %v7621_v23 = vor.u32 %v9135_v16, %v7618_v41  ;;  %v7648_v16 = vld [vmem:[#allocation2 + $0x260] sm:$0xf]  ;;  %v9143_v41 = vld [vmem:[#allocation2 + $0x268] sm:$0xf0] }
 0x3f9   :  { %v6398_v34 = vadd.f32 %v6397_v26, %v5669_v36  ;;  %v9138_v36 = vld [vmem:[#allocation2 + $0x244] sm:$0xf] }
 0x3fa   :  { %v12473_v52 = vpop.f32.mrf.mxu3  ;;  %v6400_v58 = vpop.f32.mrf.mxu2 }
 0x3fb   :  { %14138 = vst [vmem:[#allocation41_spill] sm:$0xff] %v12473_v52 }
 0x3fc   :  { %7074 = vst.msk [vmem:[%s13883_s4 + $0xe8] sm:$0xff] %vm81_vm0, %v6398_v34  ;;  %v4947_v55 = vpop.f32.mrf.mxu0 }
 0x3fe   :  { %v5671_v48 = vpop.f32.mrf.mxu1 }
 0x3ff   :  { %v5672_v29 = vadd.f32 %v5671_v48, %v4942_v14  ;;  %5526 = vmatmul.bf16.gmra.mxu3 %v8925_v60  ;;  %4986 = vmatmul.bf16.gmra.mxu0 %v7629_v18  ;;  %v8936_v14 = vld [vmem:[#allocation2 + $0xc78] sm:$0xf]  ;;  %v7649_v48 = vor.u32 %v9143_v41, %v7648_v16 }
 0x400   :  { %v8937_v31 = vor.u32 %v9466_v19, %v8936_v14  ;;  %v9141_v19 = vld [vmem:[#allocation2 + $0x25c] sm:$0xf] }
 0x401   :  { %v6401_v2 = vadd.f32 %v6400_v58, %v5672_v29  ;;  %5710 = vmatmul.bf16.gmra.mxu1 %v7621_v23 }
 0x402   :  { %v12479_v6 = vpop.f32.mrf.mxu3  ;;  %v6402_v0 = vpop.f32.mrf.mxu2 }
 0x403   :  { %14139 = vst [vmem:[#allocation40_spill] sm:$0xff] %v12479_v6 }
 0x404   :  { %7075 = vst.msk [vmem:[%s13883_s4 + $0xf0] sm:$0xff] %vm81_vm0, %v6401_v2  ;;  %v4949_v24 = vpop.f32.mrf.mxu0  ;;  %v9469_v2 = vld [vmem:[#allocation2 + $0xc98] sm:$0xf0] }
 0x406   :  { %v5673_v9 = vpop.f32.mrf.mxu1 }
 0x407   :  { %v5674_v39 = vadd.f32 %v5673_v9, %v4944_v15  ;;  %6444 = vmatmul.bf16.gmra.mxu2 %v7637_v4  ;;  %v7633_v15 = vor.u32 %v9138_v36, %v7630_v22  ;;  %v9145_v4 = vld [vmem:[#allocation2 + $0x278] sm:$0xf0] }
 0x409   :  { %v6403_v26 = vadd.f32 %v6402_v0, %v5674_v39  ;;  %v7652_v0 = vld [vmem:[#allocation2 + $0x270] sm:$0xf] }
 0x40a   :  { %v12485_v56 = vpop.f32.mrf.mxu3  ;;  %v6405_v57 = vpop.f32.mrf.mxu2 }
 0x40b   :  { %14140 = vst [vmem:[#allocation34_spill] sm:$0xff] %v12485_v56 }
 0x40c   :  { %7076 = vst.msk [vmem:[%s13883_s4 + $0xf8] sm:$0xff] %vm81_vm0, %v6403_v26  ;;  %v4952_v33 = vpop.f32.mrf.mxu0  ;;  %v7653_v26 = vor.u32 %v9145_v4, %v7652_v0  ;;  %v9144_v4 = vld [vmem:[#allocation2 + $0x274] sm:$0xf] }
 0x40e   :  { %v5676_v34 = vpop.f32.mrf.mxu1 }
 0x40f   :  { %v5677_v58 = vadd.f32 %v5676_v34, %v4947_v55  ;;  %5531 = vmatmul.bf16.gmra.mxu3 %v8937_v31  ;;  %4991 = vmatmul.bf16.gmra.mxu0 %v7641_v25  ;;  %v8948_v55 = vld [vmem:[#allocation2 + $0xc90] sm:$0xf]  ;;  %v7660_v31 = vld [vmem:[#allocation2 + $0x278] sm:$0xf]  ;;  %v9146_v25 = vld [vmem:[#allocation2 + $0x280] sm:$0xf0] }
 0x410   :  { %v8949_v49 = vor.u32 %v9469_v2, %v8948_v55  ;;  %v7661_v16 = vor.u32 %v9146_v25, %v7660_v31 }
 0x411   :  { %v6406_v60 = vadd.f32 %v6405_v57, %v5677_v58  ;;  %5715 = vmatmul.bf16.gmra.mxu1 %v7633_v15 }
 0x412   :  { %v12491_v18 = vpop.f32.mrf.mxu3  ;;  %v6407_v23 = vpop.f32.mrf.mxu2 }
 0x413   :  { %14141 = vst [vmem:[#allocation6_spill] sm:$0xff] %v12491_v18 }
 0x414   :  { %7077 = vst.msk [vmem:[%s13883_s4 + $0x100] sm:$0xff] %vm81_vm0, %v6406_v60  ;;  %v4954_v29 = vpop.f32.mrf.mxu0 }
 0x416   :  { %v5678_v20 = vpop.f32.mrf.mxu1 }
 0x417   :  { %v5679_v13 = vadd.f32 %v5678_v20, %v4949_v24  ;;  %6449 = vmatmul.bf16.gmra.mxu2 %v7649_v48  ;;  %v7645_v24 = vor.u32 %v9141_v19, %v7642_v46  ;;  %v9472_v48 = vld [vmem:[#allocation2 + $0xcb0] sm:$0xf0]  ;;  %v7664_v20 = vld [vmem:[#allocation2 + $0x288] sm:$0xf] }
 0x419   :  { %v6408_v9 = vadd.f32 %v6407_v23, %v5679_v13  ;;  %v9148_v13 = vld [vmem:[#allocation2 + $0x290] sm:$0xf0] }
 0x41a   :  { %v12497_v39 = vpop.f32.mrf.mxu3  ;;  %v6410_v14 = vpop.f32.mrf.mxu2  ;;  %v7665_v19 = vor.u32 %v9148_v13, %v7664_v20 }
 0x41b   :  { %14142 = vst [vmem:[#allocation35_spill] sm:$0xff] %v12497_v39 }
 0x41c   :  { %7078 = vst.msk [vmem:[%s13883_s4 + $0x108] sm:$0xff] %vm81_vm0, %v6408_v9  ;;  %v4957_v57 = vpop.f32.mrf.mxu0  ;;  %v7654_v9 = vld [vmem:[#allocation2 + $0x27c] sm:$0xf0] }
 0x41e   :  { %v5681_v36 = vpop.f32.mrf.mxu1 }
 0x41f   :  { %v5682_v22 = vadd.f32 %v5681_v36, %v4952_v33  ;;  %5536 = vmatmul.bf16.gmra.mxu3 %v8949_v49  ;;  %4996 = vmatmul.bf16.gmra.mxu0 %v7653_v26  ;;  %v8960_v33 = vld [vmem:[#allocation2 + $0xca8] sm:$0xf]  ;;  %v9149_v36 = vld [vmem:[#allocation2 + $0x298] sm:$0xf0] }
 0x421   :  { %v6411_v15 = vadd.f32 %v6410_v14, %v5682_v22  ;;  %5720 = vmatmul.bf16.gmra.mxu1 %v7645_v24  ;;  %v8961_v14 = vor.u32 %v9472_v48, %v8960_v33  ;;  %v7672_v24 = vld [vmem:[#allocation2 + $0x290] sm:$0xf]  ;;  %v7676_v33 = vld [vmem:[#allocation2 + $0x2a0] sm:$0xf]  ;;  %v9151_v48 = vld [vmem:[#allocation2 + $0x2a8] sm:$0xf0] }
 0x422   :  { %v12503_v34 = vpop.f32.mrf.mxu3  ;;  %v6412_v58 = vpop.f32.mrf.mxu2 }
 0x423   :  { %14143 = vst [vmem:[#allocation7_spill] sm:$0xff] %v12503_v34 }
 0x424   :  { %7079 = vst.msk [vmem:[%s13883_s4 + $0x110] sm:$0xff] %vm81_vm0, %v6411_v15  ;;  %v4959_v41 = vpop.f32.mrf.mxu0  ;;  %v7673_v15 = vor.u32 %v9149_v36, %v7672_v24  ;;  %v9152_v24 = vld [vmem:[#allocation2 + $0x2b0] sm:$0xf0] }
 0x426   :  { %v5683_v60 = vpop.f32.mrf.mxu1 }
 0x427   :  { %v5684_v23 = vadd.f32 %v5683_v60, %v4954_v29  ;;  %6454 = vmatmul.bf16.gmra.mxu2 %v7661_v16  ;;  %v7657_v29 = vor.u32 %v9144_v4, %v7654_v9  ;;  %v7666_v4 = vld [vmem:[#allocation2 + $0x294] sm:$0xf0] }
 0x429   :  { %v6413_v55 = vadd.f32 %v6412_v58, %v5684_v23  ;;  %v9475_v23 = vld [vmem:[#allocation2 + $0xcc8] sm:$0xf0] }
 0x42a   :  { %v12509_v2 = vpop.f32.mrf.mxu3  ;;  %v6415_v0 = vpop.f32.mrf.mxu2 }
 0x42b   :  { %14144 = vst [vmem:[#allocation8_spill] sm:$0xff] %v12509_v2 }
 0x42c   :  { %7080 = vst.msk [vmem:[%s13883_s4 + $0x118] sm:$0xff] %vm81_vm0, %v6413_v55  ;;  %v4962_v46 = vpop.f32.mrf.mxu0 }
 0x42e   :  { %v5686_v49 = vpop.f32.mrf.mxu1 }
 0x42f   :  { %v5687_v26 = vadd.f32 %v5686_v49, %v4957_v57  ;;  %5541 = vmatmul.bf16.gmra.mxu3 %v8961_v14  ;;  %5001 = vmatmul.bf16.gmra.mxu0 %v7665_v19  ;;  %v8972_v57 = vld [vmem:[#allocation2 + $0xcc0] sm:$0xf]  ;;  %v7677_v14 = vor.u32 %v9151_v48, %v7676_v33  ;;  %v7688_v33 = vld [vmem:[#allocation2 + $0x2b8] sm:$0xf]  ;;  %v9154_v48 = vld [vmem:[#allocation2 + $0x2c0] sm:$0xf0] }
 0x430   :  { %v8973_v9 = vor.u32 %v9475_v23, %v8972_v57  ;;  %v9478_v23 = vld [vmem:[#allocation2 + $0xce0] sm:$0xf0] }
 0x431   :  { %v6416_v22 = vadd.f32 %v6415_v0, %v5687_v26  ;;  %5725 = vmatmul.bf16.gmra.mxu1 %v7657_v29  ;;  %v9147_v0 = vld [vmem:[#allocation2 + $0x28c] sm:$0xf]  ;;  %v7684_v26 = vld [vmem:[#allocation2 + $0x2a8] sm:$0xf] }
 0x432   :  { %v12515_v31 = vpop.f32.mrf.mxu3  ;;  %v6417_v25 = vpop.f32.mrf.mxu2 }
 0x433   :  { %14145 = vst [vmem:[#allocation5_spill] sm:$0xff] %v12515_v31 }
 0x434   :  { %7081 = vst.msk [vmem:[%s13883_s4 + $0x120] sm:$0xff] %vm81_vm0, %v6416_v22  ;;  %v4964_v58 = vpop.f32.mrf.mxu0 }
 0x436   :  { %v5688_v16 = vpop.f32.mrf.mxu1 }
 0x437   :  { %v5689_v60 = vadd.f32 %v5688_v16, %v4959_v41  ;;  %6459 = vmatmul.bf16.gmra.mxu2 %v7673_v15  ;;  %v7669_v41 = vor.u32 %v9147_v0, %v7666_v4  ;;  %v7685_v15 = vor.u32 %v9152_v24, %v7684_v26  ;;  %v9150_v4 = vld [vmem:[#allocation2 + $0x2a4] sm:$0xf]  ;;  %v7696_v24 = vld [vmem:[#allocation2 + $0x2c0] sm:$0xf] }
 0x439   :  { %v6418_v20 = vadd.f32 %v6417_v25, %v5689_v60 }
 0x43a   :  { %v12521_v13 = vpop.f32.mrf.mxu3  ;;  %v6420_v55 = vpop.f32.mrf.mxu2 }
 0x43b   :  { %14146 = vst [vmem:[#allocation9_spill] sm:$0xff] %v12521_v13 }
 0x43c   :  { %7082 = vst.msk [vmem:[%s13883_s4 + $0x128] sm:$0xff] %vm81_vm0, %v6418_v20  ;;  %v4967_v19 = vpop.f32.mrf.mxu0 }
 0x43e   :  { %v5691_v29 = vpop.f32.mrf.mxu1 }
 0x43f   :  { %v5692_v49 = vadd.f32 %v5691_v29, %v4962_v46  ;;  %5546 = vmatmul.bf16.gmra.mxu3 %v8973_v9  ;;  %5006 = vmatmul.bf16.gmra.mxu0 %v7677_v14  ;;  %v8984_v46 = vld [vmem:[#allocation2 + $0xcd8] sm:$0xf]  ;;  %v7678_v9 = vld [vmem:[#allocation2 + $0x2ac] sm:$0xf0] }
 0x440   :  { %v8985_v14 = vor.u32 %v9478_v23, %v8984_v46 }
 0x441   :  { %v6421_v36 = vadd.f32 %v6420_v55, %v5692_v49  ;;  %5730 = vmatmul.bf16.gmra.mxu1 %v7669_v41  ;;  %v7689_v41 = vor.u32 %v9154_v48, %v7688_v33  ;;  %v9481_v48 = vld [vmem:[#allocation2 + $0xcf8] sm:$0xf0] }
 0x442   :  { %v12527_v22 = vpop.f32.mrf.mxu3  ;;  %v6422_v25 = vpop.f32.mrf.mxu2 }
 0x443   :  { %14147 = vst [vmem:[#allocation11_spill] sm:$0xff] %v12527_v22 }
 0x444   :  { %7083 = vst.msk [vmem:[%s13883_s4 + $0x130] sm:$0xff] %vm81_vm0, %v6421_v36  ;;  %v4969_v16 = vpop.f32.mrf.mxu0  ;;  %v9155_v36 = vld [vmem:[#allocation2 + $0x2c8] sm:$0xf0] }
 0x446   :  { %v5693_v60 = vpop.f32.mrf.mxu1 }
 0x447   :  { %v5694_v57 = vadd.f32 %v5693_v60, %v4964_v58  ;;  %6464 = vmatmul.bf16.gmra.mxu2 %v7685_v15  ;;  %v7681_v58 = vor.u32 %v9150_v4, %v7678_v9  ;;  %v9157_v4 = vld [vmem:[#allocation2 + $0x2d8] sm:$0xf0] }
 0x449   :  { %v6423_v20 = vadd.f32 %v6422_v25, %v5694_v57  ;;  %v7697_v57 = vor.u32 %v9155_v36, %v7696_v24 }
 0x44a   :  { %v12533_v55 = vpop.f32.mrf.mxu3  ;;  %v6425_v0 = vpop.f32.mrf.mxu2 }
 0x44b   :  { %14148 = vst [vmem:[#allocation12_spill] sm:$0xff] %v12533_v55 }
 0x44c   :  { %7084 = vst.msk [vmem:[%s13883_s4 + $0x138] sm:$0xff] %vm81_vm0, %v6423_v20  ;;  %v4972_v29 = vpop.f32.mrf.mxu0  ;;  %v7700_v20 = vld [vmem:[#allocation2 + $0x2d0] sm:$0xf] }
 0x44e   :  { %v5696_v49 = vpop.f32.mrf.mxu1 }
 0x44f   :  { %v5697_v26 = vadd.f32 %v5696_v49, %v4967_v19  ;;  %5551 = vmatmul.bf16.gmra.mxu3 %v8985_v14  ;;  %5011 = vmatmul.bf16.gmra.mxu0 %v7689_v41  ;;  %v8996_v19 = vld [vmem:[#allocation2 + $0xcf0] sm:$0xf]  ;;  %v9153_v41 = vld [vmem:[#allocation2 + $0x2bc] sm:$0xf] }
 0x450   :  { %v8997_v49 = vor.u32 %v9481_v48, %v8996_v19 }
 0x451   :  { %v6426_v25 = vadd.f32 %v6425_v0, %v5697_v26  ;;  %5735 = vmatmul.bf16.gmra.mxu1 %v7681_v58  ;;  %v7690_v58 = vld [vmem:[#allocation2 + $0x2c4] sm:$0xf0]  ;;  %v7701_v26 = vor.u32 %v9157_v4, %v7700_v20 }
 0x452   :  { %v12539_v15 = vpop.f32.mrf.mxu3  ;;  %v6427_v60 = vpop.f32.mrf.mxu2 }
 0x453   :  { %14149 = vst [vmem:[#allocation14_spill] sm:$0xff] %v12539_v15 }
 0x454   :  { %7085 = vst.msk [vmem:[%s13883_s4 + $0x140] sm:$0xff] %vm81_vm0, %v6426_v25  ;;  %v4974_v46 = vpop.f32.mrf.mxu0 }
 0x456   :  { %v5698_v23 = vpop.f32.mrf.mxu1 }
 0x457   :  { %v5699_v33 = vadd.f32 %v5698_v23, %v4969_v16  ;;  %6469 = vmatmul.bf16.gmra.mxu2 %v7697_v57  ;;  %v7693_v16 = vor.u32 %v9153_v41, %v7690_v58  ;;  %v7708_v57 = vld [vmem:[#allocation2 + $0x2d8] sm:$0xf]  ;;  %v7712_v41 = vld [vmem:[#allocation2 + $0x2e8] sm:$0xf]  ;;  %v9160_v58 = vld [vmem:[#allocation2 + $0x2f0] sm:$0xf0] }
 0x459   :  { %v6428_v9 = vadd.f32 %v6427_v60, %v5699_v33  ;;  %v9158_v60 = vld [vmem:[#allocation2 + $0x2e0] sm:$0xf0] }
 0x45a   :  { %v12545_v0 = vpop.f32.mrf.mxu3  ;;  %v6430_v14 = vpop.f32.mrf.mxu2  ;;  %v7709_v19 = vor.u32 %v9158_v60, %v7708_v57  ;;  %v7713_v57 = vor.u32 %v9160_v58, %v7712_v41 }
 0x45b   :  { %14150 = vst [vmem:[#allocation38_spill] sm:$0xff] %v12545_v0 }
 0x45c   :  { %7086 = vst.msk [vmem:[%s13883_s4 + $0x148] sm:$0xff] %vm81_vm0, %v6428_v9  ;;  %v4977_v24 = vpop.f32.mrf.mxu0  ;;  %v9484_v9 = vld [vmem:[#allocation2 + $0xd10] sm:$0xf0] }
 0x45e   :  { %v5701_v36 = vpop.f32.mrf.mxu1 }
 0x45f   :  { %v5702_v25 = vadd.f32 %v5701_v36, %v4972_v29  ;;  %5556 = vmatmul.bf16.gmra.mxu3 %v8997_v49  ;;  %5016 = vmatmul.bf16.gmra.mxu0 %v7701_v26  ;;  %v9008_v29 = vld [vmem:[#allocation2 + $0xd08] sm:$0xf]  ;;  %v7702_v36 = vld [vmem:[#allocation2 + $0x2dc] sm:$0xf0] }
 0x461   :  { %v6431_v23 = vadd.f32 %v6430_v14, %v5702_v25  ;;  %5740 = vmatmul.bf16.gmra.mxu1 %v7693_v16  ;;  %v9156_v16 = vld [vmem:[#allocation2 + $0x2d4] sm:$0xf]  ;;  %v9009_v25 = vor.u32 %v9484_v9, %v9008_v29 }
 0x462   :  { %v12551_v33 = vpop.f32.mrf.mxu3  ;;  %v6432_v0 = vpop.f32.mrf.mxu2 }
 0x463   :  { %14151 = vst [vmem:[#allocation13_spill] sm:$0xff] %v12551_v33 }
 0x464   :  { %7087 = vst.msk [vmem:[%s13883_s4 + $0x150] sm:$0xff] %vm81_vm0, %v6431_v23  ;;  %v4979_v48 = vpop.f32.mrf.mxu0 }
 0x466   :  { %v5703_v20 = vpop.f32.mrf.mxu1 }
 0x467   :  { %v5704_v4 = vadd.f32 %v5703_v20, %v4974_v46  ;;  %6474 = vmatmul.bf16.gmra.mxu2 %v7709_v19  ;;  %v7705_v46 = vor.u32 %v9156_v16, %v7702_v36  ;;  %v7720_v20 = vld [vmem:[#allocation2 + $0x2f0] sm:$0xf]  ;;  %v7724_v16 = vld [vmem:[#allocation2 + $0x300] sm:$0xf]  ;;  %v9163_v36 = vld [vmem:[#allocation2 + $0x308] sm:$0xf0] }
 0x469   :  { %v6433_v49 = vadd.f32 %v6432_v0, %v5704_v4  ;;  %v9161_v0 = vld [vmem:[#allocation2 + $0x2f8] sm:$0xf0] }
 0x46a   :  { %v12557_v14 = vpop.f32.mrf.mxu3  ;;  %v6435_v26 = vpop.f32.mrf.mxu2  ;;  %v7721_v29 = vor.u32 %v9161_v0, %v7720_v20  ;;  %v7725_v20 = vor.u32 %v9163_v36, %v7724_v16 }
 0x46b   :  { %14152 = vst [vmem:[#allocation16_spill] sm:$0xff] %v12557_v14 }
 0x46c   :  { %7088 = vst.msk [vmem:[%s13883_s4 + $0x158] sm:$0xff] %vm81_vm0, %v6433_v49  ;;  %v4982_v60 = vpop.f32.mrf.mxu0  ;;  %v9487_v49 = vld [vmem:[#allocation2 + $0xd28] sm:$0xf0] }
 0x46e   :  { %v5706_v23 = vpop.f32.mrf.mxu1 }
 0x46f   :  { %v5707_v19 = vadd.f32 %v5706_v23, %v4977_v24  ;;  %5561 = vmatmul.bf16.gmra.mxu3 %v9009_v25  ;;  %5021 = vmatmul.bf16.gmra.mxu0 %v7713_v57  ;;  %v9020_v24 = vld [vmem:[#allocation2 + $0xd20] sm:$0xf]  ;;  %v7714_v23 = vld [vmem:[#allocation2 + $0x2f4] sm:$0xf0] }
 0x471   :  { %v6436_v4 = vadd.f32 %v6435_v26, %v5707_v19  ;;  %5745 = vmatmul.bf16.gmra.mxu1 %v7705_v46  ;;  %v9159_v46 = vld [vmem:[#allocation2 + $0x2ec] sm:$0xf]  ;;  %v9021_v19 = vor.u32 %v9487_v49, %v9020_v24 }
 0x472   :  { %v12563_v14 = vpop.f32.mrf.mxu3  ;;  %v6437_v33 = vpop.f32.mrf.mxu2 }
 0x473   :  { %14153 = vst [vmem:[#allocation19_spill] sm:$0xff] %v12563_v14 }
 0x474   :  { %7089 = vst.msk [vmem:[%s13883_s4 + $0x160] sm:$0xff] %vm81_vm0, %v6436_v4  ;;  %v4984_v9 = vpop.f32.mrf.mxu0 }
 0x476   :  { %v5708_v41 = vpop.f32.mrf.mxu1 }
 0x477   :  { %v5709_v58 = vadd.f32 %v5708_v41, %v4979_v48  ;;  %6479 = vmatmul.bf16.gmra.mxu2 %v7721_v29  ;;  %v7717_v48 = vor.u32 %v9159_v46, %v7714_v23  ;;  %v7732_v41 = vld [vmem:[#allocation2 + $0x308] sm:$0xf]  ;;  %v7736_v46 = vld [vmem:[#allocation2 + $0x318] sm:$0xf]  ;;  %v9166_v23 = vld [vmem:[#allocation2 + $0x320] sm:$0xf0] }
 0x479   :  { %v6438_v25 = vadd.f32 %v6437_v33, %v5709_v58  ;;  %v9164_v33 = vld [vmem:[#allocation2 + $0x310] sm:$0xf0] }
 0x47a   :  { %v12569_v26 = vpop.f32.mrf.mxu3  ;;  %v6440_v57 = vpop.f32.mrf.mxu2  ;;  %v7733_v24 = vor.u32 %v9164_v33, %v7732_v41  ;;  %v7737_v41 = vor.u32 %v9166_v23, %v7736_v46 }
 0x47b   :  { %14154 = vst [vmem:[#allocation39_spill] sm:$0xff] %v12569_v26 }
 0x47c   :  { %7090 = vst.msk [vmem:[%s13883_s4 + $0x168] sm:$0xff] %vm81_vm0, %v6438_v25  ;;  %v4987_v0 = vpop.f32.mrf.mxu0  ;;  %v9490_v25 = vld [vmem:[#allocation2 + $0xd40] sm:$0xf0] }
 0x47e   :  { %v5711_v4 = vpop.f32.mrf.mxu1 }
 0x47f   :  { %v5712_v29 = vadd.f32 %v5711_v4, %v4982_v60  ;;  %5566 = vmatmul.bf16.gmra.mxu3 %v9021_v19  ;;  %5026 = vmatmul.bf16.gmra.mxu0 %v7725_v20  ;;  %v9032_v60 = vld [vmem:[#allocation2 + $0xd38] sm:$0xf]  ;;  %v7726_v4 = vld [vmem:[#allocation2 + $0x30c] sm:$0xf0] }
 0x481   :  { %v6441_v58 = vadd.f32 %v6440_v57, %v5712_v29  ;;  %5750 = vmatmul.bf16.gmra.mxu1 %v7717_v48  ;;  %v9162_v48 = vld [vmem:[#allocation2 + $0x304] sm:$0xf]  ;;  %v9033_v29 = vor.u32 %v9490_v25, %v9032_v60 }
 0x482   :  { %v12575_v26 = vpop.f32.mrf.mxu3  ;;  %v6442_v14 = vpop.f32.mrf.mxu2 }
 0x483   :  { %14155 = vst [vmem:[#allocation20_spill] sm:$0xff] %v12575_v26 }
 0x484   :  { %7091 = vst.msk [vmem:[%s13883_s4 + $0x170] sm:$0xff] %vm81_vm0, %v6441_v58  ;;  %v4989_v49 = vpop.f32.mrf.mxu0 }
 0x486   :  { %v5713_v16 = vpop.f32.mrf.mxu1 }
 0x487   :  { %v5714_v36 = vadd.f32 %v5713_v16, %v4984_v9  ;;  %6484 = vmatmul.bf16.gmra.mxu2 %v7733_v24  ;;  %v7729_v9 = vor.u32 %v9162_v48, %v7726_v4  ;;  %v7744_v16 = vld [vmem:[#allocation2 + $0x320] sm:$0xf]  ;;  %v7748_v48 = vld [vmem:[#allocation2 + $0x330] sm:$0xf]  ;;  %v9169_v4 = vld [vmem:[#allocation2 + $0x338] sm:$0xf0] }
 0x489   :  { %v6443_v19 = vadd.f32 %v6442_v14, %v5714_v36  ;;  %v9167_v14 = vld [vmem:[#allocation2 + $0x328] sm:$0xf0] }
 0x48a   :  { %v12581_v57 = vpop.f32.mrf.mxu3  ;;  %v6445_v20 = vpop.f32.mrf.mxu2  ;;  %v7745_v60 = vor.u32 %v9167_v14, %v7744_v16  ;;  %v7749_v16 = vor.u32 %v9169_v4, %v7748_v48 }
 0x48b   :  { %14156 = vst [vmem:[#allocation18_spill] sm:$0xff] %v12581_v57 }
 0x48c   :  { %7092 = vst.msk [vmem:[%s13883_s4 + $0x178] sm:$0xff] %vm81_vm0, %v6443_v19  ;;  %v4992_v33 = vpop.f32.mrf.mxu0  ;;  %v9493_v19 = vld [vmem:[#allocation2 + $0xd58] sm:$0xf0] }
 0x48e   :  { %v5716_v58 = vpop.f32.mrf.mxu1 }
 0x48f   :  { %v5717_v24 = vadd.f32 %v5716_v58, %v4987_v0  ;;  %5571 = vmatmul.bf16.gmra.mxu3 %v9033_v29  ;;  %5031 = vmatmul.bf16.gmra.mxu0 %v7737_v41  ;;  %v9044_v0 = vld [vmem:[#allocation2 + $0xd50] sm:$0xf]  ;;  %v7738_v58 = vld [vmem:[#allocation2 + $0x324] sm:$0xf0] }
 0x491   :  { %v6446_v36 = vadd.f32 %v6445_v20, %v5717_v24  ;;  %5755 = vmatmul.bf16.gmra.mxu1 %v7729_v9  ;;  %v9165_v9 = vld [vmem:[#allocation2 + $0x31c] sm:$0xf]  ;;  %v9045_v24 = vor.u32 %v9493_v19, %v9044_v0 }
 0x492   :  { %v12587_v57 = vpop.f32.mrf.mxu3  ;;  %v6447_v26 = vpop.f32.mrf.mxu2 }
 0x493   :  { %14157 = vst [vmem:[#allocation15_spill] sm:$0xff] %v12587_v57 }
 0x494   :  { %7093 = vst.msk [vmem:[%s13883_s4 + $0x180] sm:$0xff] %vm81_vm0, %v6446_v36  ;;  %v4994_v25 = vpop.f32.mrf.mxu0 }
 0x496   :  { %v5718_v46 = vpop.f32.mrf.mxu1 }
 0x497   :  { %v5719_v23 = vadd.f32 %v5718_v46, %v4989_v49  ;;  %6489 = vmatmul.bf16.gmra.mxu2 %v7745_v60  ;;  %v7741_v49 = vor.u32 %v9165_v9, %v7738_v58  ;;  %v7756_v46 = vld [vmem:[#allocation2 + $0x338] sm:$0xf]  ;;  %v7760_v9 = vld [vmem:[#allocation2 + $0x348] sm:$0xf]  ;;  %v9172_v58 = vld [vmem:[#allocation2 + $0x350] sm:$0xf0] }
 0x499   :  { %v6448_v29 = vadd.f32 %v6447_v26, %v5719_v23  ;;  %v9170_v26 = vld [vmem:[#allocation2 + $0x340] sm:$0xf0] }
 0x49a   :  { %v12593_v20 = vpop.f32.mrf.mxu3  ;;  %v6450_v41 = vpop.f32.mrf.mxu2  ;;  %v7757_v0 = vor.u32 %v9170_v26, %v7756_v46  ;;  %v7761_v46 = vor.u32 %v9172_v58, %v7760_v9 }
 0x49b   :  { %14158 = vst [vmem:[#allocation17_spill] sm:$0xff] %v12593_v20 }
 0x49c   :  { %7094 = vst.msk [vmem:[%s13883_s4 + $0x188] sm:$0xff] %vm81_vm0, %v6448_v29  ;;  %v4997_v14 = vpop.f32.mrf.mxu0  ;;  %v9496_v29 = vld [vmem:[#allocation2 + $0xd70] sm:$0xf0] }
 0x49e   :  { %v5721_v36 = vpop.f32.mrf.mxu1 }
 0x49f   :  { %v5722_v60 = vadd.f32 %v5721_v36, %v4992_v33  ;;  %5576 = vmatmul.bf16.gmra.mxu3 %v9045_v24  ;;  %5036 = vmatmul.bf16.gmra.mxu0 %v7749_v16  ;;  %v9056_v33 = vld [vmem:[#allocation2 + $0xd68] sm:$0xf]  ;;  %v7750_v36 = vld [vmem:[#allocation2 + $0x33c] sm:$0xf0] }
 0x4a1   :  { %v6451_v23 = vadd.f32 %v6450_v41, %v5722_v60  ;;  %5760 = vmatmul.bf16.gmra.mxu1 %v7741_v49  ;;  %v9168_v49 = vld [vmem:[#allocation2 + $0x334] sm:$0xf]  ;;  %v9057_v60 = vor.u32 %v9496_v29, %v9056_v33 }
 0x4a2   :  { %v12599_v20 = vpop.f32.mrf.mxu3  ;;  %v6452_v57 = vpop.f32.mrf.mxu2 }
 0x4a3   :  { %14159 = vst [vmem:[#allocation25_spill] sm:$0xff] %v12599_v20 }
 0x4a4   :  { %7095 = vst.msk [vmem:[%s13883_s4 + $0x190] sm:$0xff] %vm81_vm0, %v6451_v23  ;;  %v4999_v19 = vpop.f32.mrf.mxu0 }
 0x4a6   :  { %v5723_v48 = vpop.f32.mrf.mxu1 }
 0x4a7   :  { %v5724_v4 = vadd.f32 %v5723_v48, %v4994_v25  ;;  %6494 = vmatmul.bf16.gmra.mxu2 %v7757_v0  ;;  %v7753_v25 = vor.u32 %v9168_v49, %v7750_v36  ;;  %v7768_v48 = vld [vmem:[#allocation2 + $0x350] sm:$0xf]  ;;  %v7772_v49 = vld [vmem:[#allocation2 + $0x360] sm:$0xf]  ;;  %v9175_v36 = vld [vmem:[#allocation2 + $0x368] sm:$0xf0] }
 0x4a9   :  { %v6453_v24 = vadd.f32 %v6452_v57, %v5724_v4  ;;  %v9173_v57 = vld [vmem:[#allocation2 + $0x358] sm:$0xf0] }
 0x4aa   :  { %v12605_v41 = vpop.f32.mrf.mxu3  ;;  %v6455_v16 = vpop.f32.mrf.mxu2  ;;  %v7769_v33 = vor.u32 %v9173_v57, %v7768_v48  ;;  %v7773_v48 = vor.u32 %v9175_v36, %v7772_v49 }
 0x4ab   :  { %14160 = vst [vmem:[#allocation28_spill] sm:$0xff] %v12605_v41 }
 0x4ac   :  { %7096 = vst.msk [vmem:[%s13883_s4 + $0x198] sm:$0xff] %vm81_vm0, %v6453_v24  ;;  %v5002_v26 = vpop.f32.mrf.mxu0  ;;  %v8638_v24 = vld [vmem:[#allocation2 + $0xa2c] sm:$0xf0] }
 0x4ae   :  { %v5726_v23 = vpop.f32.mrf.mxu1 }
 0x4af   :  { %v5727_v0 = vadd.f32 %v5726_v23, %v4997_v14  ;;  %5581 = vmatmul.bf16.gmra.mxu3 %v9057_v60  ;;  %5041 = vmatmul.bf16.gmra.mxu0 %v7761_v46  ;;  %v9390_v14 = vld [vmem:[#allocation2 + $0xa24] sm:$0xf]  ;;  %v7762_v23 = vld [vmem:[#allocation2 + $0x354] sm:$0xf0] }
 0x4b1   :  { %v6456_v4 = vadd.f32 %v6455_v16, %v5727_v0  ;;  %5765 = vmatmul.bf16.gmra.mxu1 %v7753_v25  ;;  %v9171_v25 = vld [vmem:[#allocation2 + $0x34c] sm:$0xf]  ;;  %v8641_v0 = vor.u32 %v9390_v14, %v8638_v24 }
 0x4b2   :  { %v12611_v41 = vpop.f32.mrf.mxu3  ;;  %v6457_v20 = vpop.f32.mrf.mxu2 }
 0x4b3   :  { %14161 = vst [vmem:[#allocation21_spill] sm:$0xff] %v12611_v41 }
 0x4b4   :  { %7097 = vst.msk [vmem:[%s13883_s4 + $0x1a0] sm:$0xff] %vm81_vm0, %v6456_v4  ;;  %v5004_v29 = vpop.f32.mrf.mxu0 }
 0x4b6   :  { %v5728_v9 = vpop.f32.mrf.mxu1 }
 0x4b7   :  { %v5729_v58 = vadd.f32 %v5728_v9, %v4999_v19  ;;  %6499 = vmatmul.bf16.gmra.mxu2 %v7769_v33  ;;  %v7765_v19 = vor.u32 %v9171_v25, %v7762_v23  ;;  %v7780_v9 = vld [vmem:[#allocation2 + $0x368] sm:$0xf]  ;;  %v7784_v25 = vld [vmem:[#allocation2 + $0x378] sm:$0xf]  ;;  %v9178_v23 = vld [vmem:[#allocation2 + $0x380] sm:$0xf0] }
 0x4b9   :  { %v6458_v60 = vadd.f32 %v6457_v20, %v5729_v58  ;;  %v9176_v20 = vld [vmem:[#allocation2 + $0x370] sm:$0xf0] }
 0x4ba   :  { %v12617_v16 = vpop.f32.mrf.mxu3  ;;  %v6460_v46 = vpop.f32.mrf.mxu2  ;;  %v7781_v14 = vor.u32 %v9176_v20, %v7780_v9  ;;  %v7785_v9 = vor.u32 %v9178_v23, %v7784_v25 }
 0x4bb   :  { %14162 = vst [vmem:[#allocation26_spill] sm:$0xff] %v12617_v16 }
 0x4bc   :  { %7098 = vst.msk [vmem:[%s13883_s4 + $0x1a8] sm:$0xff] %vm81_vm0, %v6458_v60  ;;  %v5007_v57 = vpop.f32.mrf.mxu0  ;;  %v8650_v60 = vld [vmem:[#allocation2 + $0xa44] sm:$0xf0] }
 0x4be   :  { %v5731_v4 = vpop.f32.mrf.mxu1 }
 0x4bf   :  { %v5732_v33 = vadd.f32 %v5731_v4, %v5002_v26  ;;  %6135 = vmatmul.bf16.vlgmr.msrb.gmra.mxu3 %v8641_v0  ;;  %5046 = vmatmul.bf16.gmra.mxu0 %v7773_v48  ;;  %v9393_v26 = vld [vmem:[#allocation2 + $0xa3c] sm:$0xf]  ;;  %v7774_v4 = vld [vmem:[#allocation2 + $0x36c] sm:$0xf0] }
 0x4c1   :  { %v6461_v58 = vadd.f32 %v6460_v46, %v5732_v33  ;;  %5770 = vmatmul.bf16.gmra.mxu1 %v7765_v19  ;;  %v9174_v19 = vld [vmem:[#allocation2 + $0x364] sm:$0xf]  ;;  %v8653_v33 = vor.u32 %v9393_v26, %v8650_v60 }
 0x4c2   :  { %v12623_v16 = vpop.f32.mrf.mxu3  ;;  %v6462_v41 = vpop.f32.mrf.mxu2 }
 0x4c3   :  { %14163 = vst [vmem:[#allocation23_spill] sm:$0xff] %v12623_v16 }
 0x4c4   :  { %7099 = vst.msk [vmem:[%s13883_s4 + $0x1b0] sm:$0xff] %vm81_vm0, %v6461_v58  ;;  %v5009_v24 = vpop.f32.mrf.mxu0 }
 0x4c6   :  { %v5733_v49 = vpop.f32.mrf.mxu1 }
 0x4c7   :  { %v5734_v36 = vadd.f32 %v5733_v49, %v5004_v29  ;;  %6504 = vmatmul.bf16.gmra.mxu2 %v7781_v14  ;;  %v7777_v29 = vor.u32 %v9174_v19, %v7774_v4  ;;  %v7792_v49 = vld [vmem:[#allocation2 + $0x380] sm:$0xf]  ;;  %v7796_v19 = vld [vmem:[#allocation2 + $0x390] sm:$0xf]  ;;  %v9181_v4 = vld [vmem:[#allocation2 + $0x398] sm:$0xf0] }
 0x4c9   :  { %v6463_v0 = vadd.f32 %v6462_v41, %v5734_v36  ;;  %v9179_v41 = vld [vmem:[#allocation2 + $0x388] sm:$0xf0] }
 0x4ca   :  { %v12629_v46 = vpop.f32.mrf.mxu3  ;;  %v6465_v48 = vpop.f32.mrf.mxu2  ;;  %v7793_v26 = vor.u32 %v9179_v41, %v7792_v49  ;;  %v7797_v49 = vor.u32 %v9181_v4, %v7796_v19 }
 0x4cb   :  { %14164 = vst [vmem:[#allocation42_spill] sm:$0xff] %v12629_v46 }
 0x4cc   :  { %7100 = vst.msk [vmem:[%s13883_s4 + $0x1b8] sm:$0xff] %vm81_vm0, %v6463_v0  ;;  %v5012_v20 = vpop.f32.mrf.mxu0  ;;  %v8662_v0 = vld [vmem:[#allocation2 + $0xa5c] sm:$0xf0] }
 0x4ce   :  { %v5736_v58 = vpop.f32.mrf.mxu1 }
 0x4cf   :  { %v5737_v14 = vadd.f32 %v5736_v58, %v5007_v57  ;;  %6140 = vmatmul.bf16.gmra.mxu3 %v8653_v33  ;;  %5051 = vmatmul.bf16.gmra.mxu0 %v7785_v9  ;;  %v9396_v57 = vld [vmem:[#allocation2 + $0xa54] sm:$0xf]  ;;  %v7786_v58 = vld [vmem:[#allocation2 + $0x384] sm:$0xf0] }
 0x4d1   :  { %v6466_v36 = vadd.f32 %v6465_v48, %v5737_v14  ;;  %5775 = vmatmul.bf16.gmra.mxu1 %v7777_v29  ;;  %v9177_v29 = vld [vmem:[#allocation2 + $0x37c] sm:$0xf]  ;;  %v8665_v14 = vor.u32 %v9396_v57, %v8662_v0 }
 0x4d2   :  { %v12635_v46 = vpop.f32.mrf.mxu3  ;;  %v6467_v16 = vpop.f32.mrf.mxu2 }
 0x4d3   :  { %14165 = vst [vmem:[#allocation24_spill] sm:$0xff] %v12635_v46 }
 0x4d4   :  { %7101 = vst.msk [vmem:[%s13883_s4 + $0x1c0] sm:$0xff] %vm81_vm0, %v6466_v36  ;;  %v5014_v60 = vpop.f32.mrf.mxu0 }
 0x4d6   :  { %v5738_v25 = vpop.f32.mrf.mxu1 }
 0x4d7   :  { %v5739_v23 = vadd.f32 %v5738_v25, %v5009_v24  ;;  %6509 = vmatmul.bf16.gmra.mxu2 %v7793_v26  ;;  %v7789_v24 = vor.u32 %v9177_v29, %v7786_v58  ;;  %v7804_v25 = vld [vmem:[#allocation2 + $0x398] sm:$0xf]  ;;  %v7808_v29 = vld [vmem:[#allocation2 + $0x3a8] sm:$0xf]  ;;  %v9184_v58 = vld [vmem:[#allocation2 + $0x3b0] sm:$0xf0] }
 0x4d9   :  { %v6468_v33 = vadd.f32 %v6467_v16, %v5739_v23  ;;  %v9182_v16 = vld [vmem:[#allocation2 + $0x3a0] sm:$0xf0] }
 0x4da   :  { %v12641_v48 = vpop.f32.mrf.mxu3  ;;  %v6470_v9 = vpop.f32.mrf.mxu2  ;;  %v7805_v57 = vor.u32 %v9182_v16, %v7804_v25  ;;  %v7809_v25 = vor.u32 %v9184_v58, %v7808_v29 }
 0x4db   :  { %14166 = vst [vmem:[#allocation43_spill] sm:$0xff] %v12641_v48 }
 0x4dc   :  { %7102 = vst.msk [vmem:[%s13883_s4 + $0x1c8] sm:$0xff] %vm81_vm0, %v6468_v33  ;;  %v5017_v41 = vpop.f32.mrf.mxu0  ;;  %v8674_v33 = vld [vmem:[#allocation2 + $0xa74] sm:$0xf0] }
 0x4de   :  { %v5741_v36 = vpop.f32.mrf.mxu1 }
 0x4df   :  { %v5742_v26 = vadd.f32 %v5741_v36, %v5012_v20  ;;  %6145 = vmatmul.bf16.gmra.mxu3 %v8665_v14  ;;  %5056 = vmatmul.bf16.gmra.mxu0 %v7797_v49  ;;  %v9399_v20 = vld [vmem:[#allocation2 + $0xa6c] sm:$0xf]  ;;  %v7798_v36 = vld [vmem:[#allocation2 + $0x39c] sm:$0xf0] }
 0x4e1   :  { %v6471_v23 = vadd.f32 %v6470_v9, %v5742_v26  ;;  %5780 = vmatmul.bf16.gmra.mxu1 %v7789_v24  ;;  %v9180_v24 = vld [vmem:[#allocation2 + $0x394] sm:$0xf]  ;;  %v8677_v26 = vor.u32 %v9399_v20, %v8674_v33 }
 0x4e2   :  { %v12647_v48 = vpop.f32.mrf.mxu3  ;;  %v6472_v46 = vpop.f32.mrf.mxu2 }
 0x4e3   :  { %14167 = vst [vmem:[#allocation44_spill] sm:$0xff] %v12647_v48 }
 0x4e4   :  { %7103 = vst.msk [vmem:[%s13883_s4 + $0x1d0] sm:$0xff] %vm81_vm0, %v6471_v23  ;;  %v5019_v0 = vpop.f32.mrf.mxu0 }
 0x4e6   :  { %v5743_v19 = vpop.f32.mrf.mxu1 }
 0x4e7   :  { %v5744_v4 = vadd.f32 %v5743_v19, %v5014_v60  ;;  %6514 = vmatmul.bf16.gmra.mxu2 %v7805_v57  ;;  %v7801_v60 = vor.u32 %v9180_v24, %v7798_v36  ;;  %v7816_v19 = vld [vmem:[#allocation2 + $0x3b0] sm:$0xf]  ;;  %v7820_v24 = vld [vmem:[#allocation2 + $0x3c0] sm:$0xf]  ;;  %v9187_v36 = vld [vmem:[#allocation2 + $0x3c8] sm:$0xf0] }
 0x4e9   :  { %v6473_v14 = vadd.f32 %v6472_v46, %v5744_v4  ;;  %v9185_v46 = vld [vmem:[#allocation2 + $0x3b8] sm:$0xf0] }
 0x4ea   :  { %v12653_v9 = vpop.f32.mrf.mxu3  ;;  %v6475_v49 = vpop.f32.mrf.mxu2  ;;  %v7817_v20 = vor.u32 %v9185_v46, %v7816_v19  ;;  %v7821_v19 = vor.u32 %v9187_v36, %v7820_v24 }
 0x4eb   :  { %14168 = vst [vmem:[#allocation45_spill] sm:$0xff] %v12653_v9 }
 0x4ec   :  { %7104 = vst.msk [vmem:[%s13883_s4 + $0x1d8] sm:$0xff] %vm81_vm0, %v6473_v14  ;;  %v5022_v16 = vpop.f32.mrf.mxu0  ;;  %v8686_v14 = vld [vmem:[#allocation2 + $0xa8c] sm:$0xf0] }
 0x4ee   :  { %v5746_v23 = vpop.f32.mrf.mxu1 }
 0x4ef   :  { %v5747_v57 = vadd.f32 %v5746_v23, %v5017_v41  ;;  %6150 = vmatmul.bf16.gmra.mxu3 %v8677_v26  ;;  %5061 = vmatmul.bf16.gmra.mxu0 %v7809_v25  ;;  %v9402_v41 = vld [vmem:[#allocation2 + $0xa84] sm:$0xf]  ;;  %v7810_v23 = vld [vmem:[#allocation2 + $0x3b4] sm:$0xf0] }
 0x4f1   :  { %v6476_v4 = vadd.f32 %v6475_v49, %v5747_v57  ;;  %5785 = vmatmul.bf16.gmra.mxu1 %v7801_v60  ;;  %v9183_v60 = vld [vmem:[#allocation2 + $0x3ac] sm:$0xf]  ;;  %v8689_v57 = vor.u32 %v9402_v41, %v8686_v14 }
 0x4f2   :  { %v12659_v9 = vpop.f32.mrf.mxu3  ;;  %v6477_v48 = vpop.f32.mrf.mxu2 }
 0x4f3   :  { %14169 = vst [vmem:[#allocation46_spill] sm:$0xff] %v12659_v9 }
 0x4f4   :  { %7105 = vst.msk [vmem:[%s13883_s4 + $0x1e0] sm:$0xff] %vm81_vm0, %v6476_v4  ;;  %v5024_v33 = vpop.f32.mrf.mxu0 }
 0x4f6   :  { %v5748_v29 = vpop.f32.mrf.mxu1 }
 0x4f7   :  { %v5749_v58 = vadd.f32 %v5748_v29, %v5019_v0  ;;  %6519 = vmatmul.bf16.gmra.mxu2 %v7817_v20  ;;  %v7813_v0 = vor.u32 %v9183_v60, %v7810_v23  ;;  %v7828_v29 = vld [vmem:[#allocation2 + $0x3c8] sm:$0xf]  ;;  %v7832_v60 = vld [vmem:[#allocation2 + $0x3d8] sm:$0xf]  ;;  %v9190_v23 = vld [vmem:[#allocation2 + $0x3e0] sm:$0xf0] }
 0x4f9   :  { %v6478_v26 = vadd.f32 %v6477_v48, %v5749_v58  ;;  %v9188_v48 = vld [vmem:[#allocation2 + $0x3d0] sm:$0xf0] }
 0x4fa   :  { %v12665_v49 = vpop.f32.mrf.mxu3  ;;  %v6480_v25 = vpop.f32.mrf.mxu2  ;;  %v7829_v41 = vor.u32 %v9188_v48, %v7828_v29  ;;  %v7833_v29 = vor.u32 %v9190_v23, %v7832_v60 }
 0x4fb   :  { %14170 = vst [vmem:[#allocation47_spill] sm:$0xff] %v12665_v49 }
 0x4fc   :  { %7106 = vst.msk [vmem:[%s13883_s4 + $0x1e8] sm:$0xff] %vm81_vm0, %v6478_v26  ;;  %v5027_v46 = vpop.f32.mrf.mxu0  ;;  %v8698_v26 = vld [vmem:[#allocation2 + $0xaa4] sm:$0xf0] }
 0x4fe   :  { %v5751_v4 = vpop.f32.mrf.mxu1 }
 0x4ff   :  { %v5752_v20 = vadd.f32 %v5751_v4, %v5022_v16  ;;  %6155 = vmatmul.bf16.gmra.mxu3 %v8689_v57  ;;  %5066 = vmatmul.bf16.gmra.mxu0 %v7821_v19  ;;  %v9405_v16 = vld [vmem:[#allocation2 + $0xa9c] sm:$0xf]  ;;  %v7822_v4 = vld [vmem:[#allocation2 + $0x3cc] sm:$0xf0] }
 0x501   :  { %v6481_v58 = vadd.f32 %v6480_v25, %v5752_v20  ;;  %5790 = vmatmul.bf16.gmra.mxu1 %v7813_v0  ;;  %v9186_v0 = vld [vmem:[#allocation2 + $0x3c4] sm:$0xf]  ;;  %v8701_v20 = vor.u32 %v9405_v16, %v8698_v26 }
 0x502   :  { %v12671_v49 = vpop.f32.mrf.mxu3  ;;  %v6482_v9 = vpop.f32.mrf.mxu2 }
 0x503   :  { %14171 = vst [vmem:[#allocation48_spill] sm:$0xff] %v12671_v49 }
 0x504   :  { %7107 = vst.msk [vmem:[%s13883_s4 + $0x1f0] sm:$0xff] %vm81_vm0, %v6481_v58  ;;  %v5029_v14 = vpop.f32.mrf.mxu0 }
 0x506   :  { %v5753_v24 = vpop.f32.mrf.mxu1 }
 0x507   :  { %v5754_v36 = vadd.f32 %v5753_v24, %v5024_v33  ;;  %6524 = vmatmul.bf16.gmra.mxu2 %v7829_v41  ;;  %v7825_v33 = vor.u32 %v9186_v0, %v7822_v4  ;;  %v7840_v24 = vld [vmem:[#allocation2 + $0x3e0] sm:$0xf]  ;;  %v7844_v0 = vld [vmem:[#allocation2 + $0x3f0] sm:$0xf]  ;;  %v9193_v4 = vld [vmem:[#allocation2 + $0x3f8] sm:$0xf0] }
 0x509   :  { %v6483_v57 = vadd.f32 %v6482_v9, %v5754_v36  ;;  %v9191_v9 = vld [vmem:[#allocation2 + $0x3e8] sm:$0xf0] }
 0x50a   :  { %v12677_v25 = vpop.f32.mrf.mxu3  ;;  %v6485_v19 = vpop.f32.mrf.mxu2  ;;  %v7841_v16 = vor.u32 %v9191_v9, %v7840_v24  ;;  %v7845_v24 = vor.u32 %v9193_v4, %v7844_v0 }
 0x50b   :  { %14172 = vst [vmem:[#allocation49_spill] sm:$0xff] %v12677_v25 }
 0x50c   :  { %7108 = vst.msk [vmem:[%s13883_s4 + $0x1f8] sm:$0xff] %vm81_vm0, %v6483_v57  ;;  %v5032_v48 = vpop.f32.mrf.mxu0  ;;  %v8710_v57 = vld [vmem:[#allocation2 + $0xabc] sm:$0xf0] }
 0x50e   :  { %v5756_v58 = vpop.f32.mrf.mxu1 }
 0x50f   :  { %v5757_v41 = vadd.f32 %v5756_v58, %v5027_v46  ;;  %6160 = vmatmul.bf16.gmra.mxu3 %v8701_v20  ;;  %5071 = vmatmul.bf16.gmra.mxu0 %v7833_v29  ;;  %v9408_v46 = vld [vmem:[#allocation2 + $0xab4] sm:$0xf]  ;;  %v7834_v58 = vld [vmem:[#allocation2 + $0x3e4] sm:$0xf0] }
 0x511   :  { %v6486_v36 = vadd.f32 %v6485_v19, %v5757_v41  ;;  %5795 = vmatmul.bf16.gmra.mxu1 %v7825_v33  ;;  %v9189_v33 = vld [vmem:[#allocation2 + $0x3dc] sm:$0xf]  ;;  %v8713_v41 = vor.u32 %v9408_v46, %v8710_v57 }
 0x512   :  { %v12683_v25 = vpop.f32.mrf.mxu3  ;;  %v6487_v49 = vpop.f32.mrf.mxu2 }
 0x513   :  { %14173 = vst [vmem:[#allocation50_spill] sm:$0xff] %v12683_v25 }
 0x514   :  { %7109 = vst.msk [vmem:[%s13883_s4 + $0x200] sm:$0xff] %vm81_vm0, %v6486_v36  ;;  %v5034_v26 = vpop.f32.mrf.mxu0 }
 0x516   :  { %v5758_v60 = vpop.f32.mrf.mxu1 }
 0x517   :  { %v5759_v23 = vadd.f32 %v5758_v60, %v5029_v14  ;;  %6529 = vmatmul.bf16.gmra.mxu2 %v7841_v16  ;;  %v7837_v14 = vor.u32 %v9189_v33, %v7834_v58  ;;  %v7852_v60 = vld [vmem:[#allocation2 + $0x3f8] sm:$0xf]  ;;  %v7856_v33 = vld [vmem:[#allocation2 + $0x408] sm:$0xf]  ;;  %v9196_v58 = vld [vmem:[#allocation2 + $0x410] sm:$0xf0] }
 0x519   :  { %v6488_v20 = vadd.f32 %v6487_v49, %v5759_v23  ;;  %v9194_v49 = vld [vmem:[#allocation2 + $0x400] sm:$0xf0] }
 0x51a   :  { %v12689_v19 = vpop.f32.mrf.mxu3  ;;  %v6490_v29 = vpop.f32.mrf.mxu2  ;;  %v7853_v46 = vor.u32 %v9194_v49, %v7852_v60  ;;  %v7857_v60 = vor.u32 %v9196_v58, %v7856_v33 }
 0x51b   :  { %14174 = vst [vmem:[#allocation51_spill] sm:$0xff] %v12689_v19 }
 0x51c   :  { %7110 = vst.msk [vmem:[%s13883_s4 + $0x208] sm:$0xff] %vm81_vm0, %v6488_v20  ;;  %v5037_v9 = vpop.f32.mrf.mxu0  ;;  %v8722_v20 = vld [vmem:[#allocation2 + $0xad4] sm:$0xf0] }
 0x51e   :  { %v5761_v36 = vpop.f32.mrf.mxu1 }
 0x51f   :  { %v5762_v16 = vadd.f32 %v5761_v36, %v5032_v48  ;;  %6165 = vmatmul.bf16.gmra.mxu3 %v8713_v41  ;;  %5076 = vmatmul.bf16.gmra.mxu0 %v7845_v24  ;;  %v9411_v48 = vld [vmem:[#allocation2 + $0xacc] sm:$0xf]  ;;  %v7846_v36 = vld [vmem:[#allocation2 + $0x3fc] sm:$0xf0] }
 0x521   :  { %v6491_v23 = vadd.f32 %v6490_v29, %v5762_v16  ;;  %5800 = vmatmul.bf16.gmra.mxu1 %v7837_v14  ;;  %v9192_v14 = vld [vmem:[#allocation2 + $0x3f4] sm:$0xf]  ;;  %v8725_v16 = vor.u32 %v9411_v48, %v8722_v20 }
 0x522   :  { %v12695_v19 = vpop.f32.mrf.mxu3  ;;  %v6492_v25 = vpop.f32.mrf.mxu2 }
 0x523   :  { %14175 = vst [vmem:[#allocation52_spill] sm:$0xff] %v12695_v19 }
 0x524   :  { %7111 = vst.msk [vmem:[%s13883_s4 + $0x210] sm:$0xff] %vm81_vm0, %v6491_v23  ;;  %v5039_v57 = vpop.f32.mrf.mxu0 }
 0x526   :  { %v5763_v0 = vpop.f32.mrf.mxu1 }
 0x527   :  { %v5764_v4 = vadd.f32 %v5763_v0, %v5034_v26  ;;  %6534 = vmatmul.bf16.gmra.mxu2 %v7853_v46  ;;  %v7849_v26 = vor.u32 %v9192_v14, %v7846_v36  ;;  %v7864_v0 = vld [vmem:[#allocation2 + $0x410] sm:$0xf]  ;;  %v7868_v14 = vld [vmem:[#allocation2 + $0x420] sm:$0xf]  ;;  %v9199_v36 = vld [vmem:[#allocation2 + $0x428] sm:$0xf0] }
 0x529   :  { %v6493_v41 = vadd.f32 %v6492_v25, %v5764_v4  ;;  %v9197_v25 = vld [vmem:[#allocation2 + $0x418] sm:$0xf0] }
 0x52a   :  { %v12701_v29 = vpop.f32.mrf.mxu3  ;;  %v6495_v24 = vpop.f32.mrf.mxu2  ;;  %v7865_v48 = vor.u32 %v9197_v25, %v7864_v0  ;;  %v7869_v0 = vor.u32 %v9199_v36, %v7868_v14 }
 0x52b   :  { %14176 = vst [vmem:[#allocation53_spill] sm:$0xff] %v12701_v29 }
 0x52c   :  { %7112 = vst.msk [vmem:[%s13883_s4 + $0x218] sm:$0xff] %vm81_vm0, %v6493_v41  ;;  %v5042_v49 = vpop.f32.mrf.mxu0  ;;  %v8734_v41 = vld [vmem:[#allocation2 + $0xaec] sm:$0xf0] }
 0x52e   :  { %v5766_v23 = vpop.f32.mrf.mxu1 }
 0x52f   :  { %v5767_v46 = vadd.f32 %v5766_v23, %v5037_v9  ;;  %6170 = vmatmul.bf16.gmra.mxu3 %v8725_v16  ;;  %5081 = vmatmul.bf16.gmra.mxu0 %v7857_v60  ;;  %v9414_v9 = vld [vmem:[#allocation2 + $0xae4] sm:$0xf]  ;;  %v7858_v23 = vld [vmem:[#allocation2 + $0x414] sm:$0xf0] }
 0x531   :  { %v6496_v4 = vadd.f32 %v6495_v24, %v5767_v46  ;;  %5805 = vmatmul.bf16.gmra.mxu1 %v7849_v26  ;;  %v9195_v26 = vld [vmem:[#allocation2 + $0x40c] sm:$0xf]  ;;  %v8737_v46 = vor.u32 %v9414_v9, %v8734_v41 }
 0x532   :  { %v12707_v29 = vpop.f32.mrf.mxu3  ;;  %v6497_v19 = vpop.f32.mrf.mxu2 }
 0x533   :  { %14177 = vst [vmem:[#allocation54_spill] sm:$0xff] %v12707_v29 }
 0x534   :  { %7113 = vst.msk [vmem:[%s13883_s4 + $0x220] sm:$0xff] %vm81_vm0, %v6496_v4  ;;  %v5044_v20 = vpop.f32.mrf.mxu0 }
 0x536   :  { %v5768_v33 = vpop.f32.mrf.mxu1 }
 0x537   :  { %v5769_v58 = vadd.f32 %v5768_v33, %v5039_v57  ;;  %6539 = vmatmul.bf16.gmra.mxu2 %v7865_v48  ;;  %v7861_v57 = vor.u32 %v9195_v26, %v7858_v23  ;;  %v7876_v33 = vld [vmem:[#allocation2 + $0x428] sm:$0xf]  ;;  %v7880_v26 = vld [vmem:[#allocation2 + $0x438] sm:$0xf]  ;;  %v9202_v23 = vld [vmem:[#allocation2 + $0x440] sm:$0xf0] }
 0x539   :  { %v6498_v16 = vadd.f32 %v6497_v19, %v5769_v58  ;;  %v9200_v19 = vld [vmem:[#allocation2 + $0x430] sm:$0xf0] }
 0x53a   :  { %v12713_v24 = vpop.f32.mrf.mxu3  ;;  %v6500_v60 = vpop.f32.mrf.mxu2  ;;  %v7877_v9 = vor.u32 %v9200_v19, %v7876_v33  ;;  %v7881_v33 = vor.u32 %v9202_v23, %v7880_v26 }
 0x53b   :  { %14178 = vst [vmem:[#allocation55_spill] sm:$0xff] %v12713_v24 }
 0x53c   :  { %7114 = vst.msk [vmem:[%s13883_s4 + $0x228] sm:$0xff] %vm81_vm0, %v6498_v16  ;;  %v5047_v25 = vpop.f32.mrf.mxu0  ;;  %v8746_v16 = vld [vmem:[#allocation2 + $0xb04] sm:$0xf0] }
 0x53e   :  { %v5771_v4 = vpop.f32.mrf.mxu1 }
 0x53f   :  { %v5772_v48 = vadd.f32 %v5771_v4, %v5042_v49  ;;  %6175 = vmatmul.bf16.gmra.mxu3 %v8737_v46  ;;  %5086 = vmatmul.bf16.gmra.mxu0 %v7869_v0  ;;  %v9417_v49 = vld [vmem:[#allocation2 + $0xafc] sm:$0xf]  ;;  %v7870_v4 = vld [vmem:[#allocation2 + $0x42c] sm:$0xf0] }
 0x541   :  { %v6501_v58 = vadd.f32 %v6500_v60, %v5772_v48  ;;  %5810 = vmatmul.bf16.gmra.mxu1 %v7861_v57  ;;  %v9198_v57 = vld [vmem:[#allocation2 + $0x424] sm:$0xf]  ;;  %v8749_v48 = vor.u32 %v9417_v49, %v8746_v16 }
 0x542   :  { %v12719_v24 = vpop.f32.mrf.mxu3  ;;  %v6502_v29 = vpop.f32.mrf.mxu2 }
 0x543   :  { %7115 = vst.msk [vmem:[%s13883_s4 + $0x230] sm:$0xff] %vm81_vm0, %v6501_v58 }
 0x544   :  { %v5049_v41 = vpop.f32.mrf.mxu0 }
 0x546   :  { %v5773_v14 = vpop.f32.mrf.mxu1 }
 0x547   :  { %v5774_v36 = vadd.f32 %v5773_v14, %v5044_v20  ;;  %6544 = vmatmul.bf16.gmra.mxu2 %v7877_v9  ;;  %v7873_v20 = vor.u32 %v9198_v57, %v7870_v4  ;;  %v7888_v14 = vld [vmem:[#allocation2 + $0x440] sm:$0xf]  ;;  %v7892_v57 = vld [vmem:[#allocation2 + $0x450] sm:$0xf]  ;;  %v9205_v4 = vld [vmem:[#allocation2 + $0x458] sm:$0xf0] }
 0x549   :  { %v6503_v46 = vadd.f32 %v6502_v29, %v5774_v36  ;;  %v9203_v29 = vld [vmem:[#allocation2 + $0x448] sm:$0xf0] }
 0x54a   :  { %v12725_v60 = vpop.f32.mrf.mxu3  ;;  %v6505_v0 = vpop.f32.mrf.mxu2  ;;  %v7889_v49 = vor.u32 %v9203_v29, %v7888_v14  ;;  %v7893_v14 = vor.u32 %v9205_v4, %v7892_v57 }
 0x54b   :  { %7116 = vst.msk [vmem:[%s13883_s4 + $0x238] sm:$0xff] %vm81_vm0, %v6503_v46  ;;  %v8758_v46 = vld [vmem:[#allocation2 + $0xb1c] sm:$0xf0] }
 0x54c   :  { %v5052_v19 = vpop.f32.mrf.mxu0 }
 0x54e   :  { %v5776_v58 = vpop.f32.mrf.mxu1 }
 0x54f   :  { %v5777_v9 = vadd.f32 %v5776_v58, %v5047_v25  ;;  %6180 = vmatmul.bf16.gmra.mxu3 %v8749_v48  ;;  %5091 = vmatmul.bf16.gmra.mxu0 %v7881_v33  ;;  %v9420_v25 = vld [vmem:[#allocation2 + $0xb14] sm:$0xf]  ;;  %v7882_v58 = vld [vmem:[#allocation2 + $0x444] sm:$0xf0] }
 0x551   :  { %v6506_v36 = vadd.f32 %v6505_v0, %v5777_v9  ;;  %5815 = vmatmul.bf16.gmra.mxu1 %v7873_v20  ;;  %v9201_v20 = vld [vmem:[#allocation2 + $0x43c] sm:$0xf]  ;;  %v8761_v9 = vor.u32 %v9420_v25, %v8758_v46 }
 0x552   :  { %v12731_v15 = vpop.f32.mrf.mxu3  ;;  %v6507_v55 = vpop.f32.mrf.mxu2 }
 0x553   :  { %7117 = vst.msk [vmem:[%s13883_s4 + $0x240] sm:$0xff] %vm81_vm0, %v6506_v36 }
 0x554   :  { %v5054_v16 = vpop.f32.mrf.mxu0 }
 0x556   :  { %v5778_v26 = vpop.f32.mrf.mxu1 }
 0x557   :  { %v5779_v23 = vadd.f32 %v5778_v26, %v5049_v41  ;;  %6549 = vmatmul.bf16.gmra.mxu2 %v7889_v49  ;;  %v7885_v41 = vor.u32 %v9201_v20, %v7882_v58  ;;  %v7900_v26 = vld [vmem:[#allocation2 + $0x458] sm:$0xf]  ;;  %v7904_v20 = vld [vmem:[#allocation2 + $0x468] sm:$0xf]  ;;  %v9208_v58 = vld [vmem:[#allocation2 + $0x470] sm:$0xf0] }
 0x559   :  { %v6508_v48 = vadd.f32 %v6507_v55, %v5779_v23  ;;  %v9206_v55 = vld [vmem:[#allocation2 + $0x460] sm:$0xf0] }
 0x55a   :  { %v12737_v0 = vpop.f32.mrf.mxu3  ;;  %v6510_v33 = vpop.f32.mrf.mxu2  ;;  %v7901_v25 = vor.u32 %v9206_v55, %v7900_v26  ;;  %v7905_v26 = vor.u32 %v9208_v58, %v7904_v20 }
 0x55b   :  { %7118 = vst.msk [vmem:[%s13883_s4 + $0x248] sm:$0xff] %vm81_vm0, %v6508_v48  ;;  %v8770_v48 = vld [vmem:[#allocation2 + $0xb34] sm:$0xf0] }
 0x55c   :  { %v5057_v29 = vpop.f32.mrf.mxu0 }
 0x55e   :  { %v5781_v36 = vpop.f32.mrf.mxu1 }
 0x55f   :  { %v5782_v49 = vadd.f32 %v5781_v36, %v5052_v19  ;;  %6185 = vmatmul.bf16.gmra.mxu3 %v8761_v9  ;;  %5096 = vmatmul.bf16.gmra.mxu0 %v7893_v14  ;;  %v9423_v19 = vld [vmem:[#allocation2 + $0xb2c] sm:$0xf]  ;;  %v7894_v36 = vld [vmem:[#allocation2 + $0x45c] sm:$0xf0] }
 0x561   :  { %v6511_v23 = vadd.f32 %v6510_v33, %v5782_v49  ;;  %5820 = vmatmul.bf16.gmra.mxu1 %v7885_v41  ;;  %v9204_v41 = vld [vmem:[#allocation2 + $0x454] sm:$0xf]  ;;  %v8773_v49 = vor.u32 %v9423_v19, %v8770_v48 }
 0x562   :  { %v12743_v22 = vpop.f32.mrf.mxu3  ;;  %v6512_v13 = vpop.f32.mrf.mxu2 }
 0x563   :  { %7119 = vst.msk [vmem:[%s13883_s4 + $0x250] sm:$0xff] %vm81_vm0, %v6511_v23 }
 0x564   :  { %v5059_v46 = vpop.f32.mrf.mxu0 }
 0x566   :  { %v5783_v57 = vpop.f32.mrf.mxu1 }
 0x567   :  { %v5784_v4 = vadd.f32 %v5783_v57, %v5054_v16  ;;  %6554 = vmatmul.bf16.gmra.mxu2 %v7901_v25  ;;  %v7897_v16 = vor.u32 %v9204_v41, %v7894_v36  ;;  %v7912_v57 = vld [vmem:[#allocation2 + $0x470] sm:$0xf]  ;;  %v7916_v41 = vld [vmem:[#allocation2 + $0x480] sm:$0xf]  ;;  %v9211_v36 = vld [vmem:[#allocation2 + $0x488] sm:$0xf0] }
 0x569   :  { %v6513_v9 = vadd.f32 %v6512_v13, %v5784_v4  ;;  %v9209_v13 = vld [vmem:[#allocation2 + $0x478] sm:$0xf0] }
 0x56a   :  { %v12749_v33 = vpop.f32.mrf.mxu3  ;;  %v6515_v14 = vpop.f32.mrf.mxu2  ;;  %v7913_v19 = vor.u32 %v9209_v13, %v7912_v57  ;;  %v7917_v57 = vor.u32 %v9211_v36, %v7916_v41 }
 0x56b   :  { %7120 = vst.msk [vmem:[%s13883_s4 + $0x258] sm:$0xff] %vm81_vm0, %v6513_v9  ;;  %v8782_v9 = vld [vmem:[#allocation2 + $0xb4c] sm:$0xf0] }
 0x56c   :  { %v5062_v55 = vpop.f32.mrf.mxu0 }
 0x56e   :  { %v5786_v23 = vpop.f32.mrf.mxu1 }
 0x56f   :  { %v5787_v25 = vadd.f32 %v5786_v23, %v5057_v29  ;;  %6190 = vmatmul.bf16.gmra.mxu3 %v8773_v49  ;;  %5101 = vmatmul.bf16.gmra.mxu0 %v7905_v26  ;;  %v9426_v29 = vld [vmem:[#allocation2 + $0xb44] sm:$0xf]  ;;  %v7906_v23 = vld [vmem:[#allocation2 + $0x474] sm:$0xf0] }
 0x571   :  { %v6516_v4 = vadd.f32 %v6515_v14, %v5787_v25  ;;  %5825 = vmatmul.bf16.gmra.mxu1 %v7897_v16  ;;  %v9207_v16 = vld [vmem:[#allocation2 + $0x46c] sm:$0xf]  ;;  %v8785_v25 = vor.u32 %v9426_v29, %v8782_v9 }
 0x572   :  { %v12755_v31 = vpop.f32.mrf.mxu3  ;;  %v6517_v2 = vpop.f32.mrf.mxu2 }
 0x573   :  { %7121 = vst.msk [vmem:[%s13883_s4 + $0x260] sm:$0xff] %vm81_vm0, %v6516_v4 }
 0x574   :  { %v5064_v48 = vpop.f32.mrf.mxu0 }
 0x576   :  { %v5788_v20 = vpop.f32.mrf.mxu1 }
 0x577   :  { %v5789_v58 = vadd.f32 %v5788_v20, %v5059_v46  ;;  %6559 = vmatmul.bf16.gmra.mxu2 %v7913_v19  ;;  %v7909_v46 = vor.u32 %v9207_v16, %v7906_v23  ;;  %v7924_v20 = vld [vmem:[#allocation2 + $0x488] sm:$0xf]  ;;  %v7928_v16 = vld [vmem:[#allocation2 + $0x498] sm:$0xf]  ;;  %v9214_v23 = vld [vmem:[#allocation2 + $0x4a0] sm:$0xf0] }
 0x579   :  { %v6518_v49 = vadd.f32 %v6517_v2, %v5789_v58  ;;  %v9212_v2 = vld [vmem:[#allocation2 + $0x490] sm:$0xf0] }
 0x57a   :  { %v12761_v14 = vpop.f32.mrf.mxu3  ;;  %v6520_v26 = vpop.f32.mrf.mxu2  ;;  %v7925_v29 = vor.u32 %v9212_v2, %v7924_v20  ;;  %v7929_v20 = vor.u32 %v9214_v23, %v7928_v16 }
 0x57b   :  { %7122 = vst.msk [vmem:[%s13883_s4 + $0x268] sm:$0xff] %vm81_vm0, %v6518_v49  ;;  %v8794_v49 = vld [vmem:[#allocation2 + $0xb64] sm:$0xf0] }
 0x57c   :  { %v5067_v13 = vpop.f32.mrf.mxu0 }
 0x57e   :  { %v5791_v4 = vpop.f32.mrf.mxu1 }
 0x57f   :  { %v5792_v19 = vadd.f32 %v5791_v4, %v5062_v55  ;;  %6195 = vmatmul.bf16.gmra.mxu3 %v8785_v25  ;;  %5106 = vmatmul.bf16.gmra.mxu0 %v7917_v57  ;;  %v9429_v55 = vld [vmem:[#allocation2 + $0xb5c] sm:$0xf]  ;;  %v7918_v4 = vld [vmem:[#allocation2 + $0x48c] sm:$0xf0] }
 0x581   :  { %v6521_v58 = vadd.f32 %v6520_v26, %v5792_v19  ;;  %5830 = vmatmul.bf16.gmra.mxu1 %v7909_v46  ;;  %v9210_v46 = vld [vmem:[#allocation2 + $0x484] sm:$0xf]  ;;  %v8797_v19 = vor.u32 %v9429_v55, %v8794_v49 }
 0x582   :  { %v12767_v34 = vpop.f32.mrf.mxu3  ;;  %v6522_v39 = vpop.f32.mrf.mxu2 }
 0x583   :  { %7123 = vst.msk [vmem:[%s13883_s4 + $0x270] sm:$0xff] %vm81_vm0, %v6521_v58 }
 0x584   :  { %v5069_v9 = vpop.f32.mrf.mxu0 }
 0x586   :  { %v5793_v41 = vpop.f32.mrf.mxu1 }
 0x587   :  { %v5794_v36 = vadd.f32 %v5793_v41, %v5064_v48  ;;  %6564 = vmatmul.bf16.gmra.mxu2 %v7925_v29  ;;  %v7921_v48 = vor.u32 %v9210_v46, %v7918_v4  ;;  %v7936_v41 = vld [vmem:[#allocation2 + $0x4a0] sm:$0xf]  ;;  %v7940_v46 = vld [vmem:[#allocation2 + $0x4b0] sm:$0xf]  ;;  %v9217_v4 = vld [vmem:[#allocation2 + $0x4b8] sm:$0xf0] }
 0x589   :  { %v6523_v25 = vadd.f32 %v6522_v39, %v5794_v36  ;;  %v9215_v39 = vld [vmem:[#allocation2 + $0x4a8] sm:$0xf0] }
 0x58a   :  { %v12773_v26 = vpop.f32.mrf.mxu3  ;;  %v6525_v57 = vpop.f32.mrf.mxu2  ;;  %v7937_v55 = vor.u32 %v9215_v39, %v7936_v41  ;;  %v7941_v41 = vor.u32 %v9217_v4, %v7940_v46 }
 0x58b   :  { %7124 = vst.msk [vmem:[%s13883_s4 + $0x278] sm:$0xff] %vm81_vm0, %v6523_v25  ;;  %v8806_v25 = vld [vmem:[#allocation2 + $0xb7c] sm:$0xf0] }
 0x58c   :  { %v5072_v2 = vpop.f32.mrf.mxu0 }
 0x58e   :  { %v5796_v58 = vpop.f32.mrf.mxu1 }
 0x58f   :  { %v5797_v29 = vadd.f32 %v5796_v58, %v5067_v13  ;;  %6200 = vmatmul.bf16.gmra.mxu3 %v8797_v19  ;;  %5111 = vmatmul.bf16.gmra.mxu0 %v7929_v20  ;;  %v9432_v13 = vld [vmem:[#allocation2 + $0xb74] sm:$0xf]  ;;  %v7930_v58 = vld [vmem:[#allocation2 + $0x4a4] sm:$0xf0] }
 0x591   :  { %v6526_v36 = vadd.f32 %v6525_v57, %v5797_v29  ;;  %5835 = vmatmul.bf16.gmra.mxu1 %v7921_v48  ;;  %v9213_v48 = vld [vmem:[#allocation2 + $0x49c] sm:$0xf]  ;;  %v8809_v29 = vor.u32 %v9432_v13, %v8806_v25 }
 0x592   :  { %v12779_v18 = vpop.f32.mrf.mxu3  ;;  %v6527_v56 = vpop.f32.mrf.mxu2 }
 0x593   :  { %7125 = vst.msk [vmem:[%s13883_s4 + $0x280] sm:$0xff] %vm81_vm0, %v6526_v36 }
 0x594   :  { %v5074_v49 = vpop.f32.mrf.mxu0 }
 0x596   :  { %v5798_v16 = vpop.f32.mrf.mxu1 }
 0x597   :  { %v5799_v23 = vadd.f32 %v5798_v16, %v5069_v9  ;;  %6569 = vmatmul.bf16.gmra.mxu2 %v7937_v55  ;;  %v7933_v9 = vor.u32 %v9213_v48, %v7930_v58  ;;  %v7948_v16 = vld [vmem:[#allocation2 + $0x4b8] sm:$0xf]  ;;  %v7952_v48 = vld [vmem:[#allocation2 + $0x4c8] sm:$0xf]  ;;  %v9220_v58 = vld [vmem:[#allocation2 + $0x4d0] sm:$0xf0] }
 0x599   :  { %v6528_v19 = vadd.f32 %v6527_v56, %v5799_v23  ;;  %v9218_v56 = vld [vmem:[#allocation2 + $0x4c0] sm:$0xf0] }
 0x59a   :  { %v12785_v57 = vpop.f32.mrf.mxu3  ;;  %v6530_v20 = vpop.f32.mrf.mxu2  ;;  %v7949_v13 = vor.u32 %v9218_v56, %v7948_v16  ;;  %v7953_v16 = vor.u32 %v9220_v58, %v7952_v48 }
 0x59b   :  { %7126 = vst.msk [vmem:[%s13883_s4 + $0x288] sm:$0xff] %vm81_vm0, %v6528_v19  ;;  %v8818_v19 = vld [vmem:[#allocation2 + $0xb94] sm:$0xf0] }
 0x59c   :  { %v5077_v39 = vpop.f32.mrf.mxu0 }
 0x59e   :  { %v5801_v36 = vpop.f32.mrf.mxu1 }
 0x59f   :  { %v5802_v55 = vadd.f32 %v5801_v36, %v5072_v2  ;;  %6205 = vmatmul.bf16.gmra.mxu3 %v8809_v29  ;;  %5116 = vmatmul.bf16.gmra.mxu0 %v7941_v41  ;;  %v9435_v2 = vld [vmem:[#allocation2 + $0xb8c] sm:$0xf]  ;;  %v7942_v36 = vld [vmem:[#allocation2 + $0x4bc] sm:$0xf0] }
 0x5a1   :  { %v6531_v23 = vadd.f32 %v6530_v20, %v5802_v55  ;;  %5840 = vmatmul.bf16.gmra.mxu1 %v7933_v9  ;;  %v9216_v9 = vld [vmem:[#allocation2 + $0x4b4] sm:$0xf]  ;;  %v8821_v55 = vor.u32 %v9435_v2, %v8818_v19 }
 0x5a2   :  { %v12791_v6 = vpop.f32.mrf.mxu3  ;;  %v6532_v52 = vpop.f32.mrf.mxu2 }
 0x5a3   :  { %7127 = vst.msk [vmem:[%s13883_s4 + $0x290] sm:$0xff] %vm81_vm0, %v6531_v23 }
 0x5a4   :  { %v5079_v25 = vpop.f32.mrf.mxu0 }
 0x5a6   :  { %v5803_v46 = vpop.f32.mrf.mxu1 }
 0x5a7   :  { %v5804_v4 = vadd.f32 %v5803_v46, %v5074_v49  ;;  %6574 = vmatmul.bf16.gmra.mxu2 %v7949_v13  ;;  %v7945_v49 = vor.u32 %v9216_v9, %v7942_v36  ;;  %v7960_v46 = vld [vmem:[#allocation2 + $0x4d0] sm:$0xf]  ;;  %v7964_v9 = vld [vmem:[#allocation2 + $0x4e0] sm:$0xf]  ;;  %v9223_v36 = vld [vmem:[#allocation2 + $0x4e8] sm:$0xf0] }
 0x5a9   :  { %v6533_v29 = vadd.f32 %v6532_v52, %v5804_v4  ;;  %v9221_v52 = vld [vmem:[#allocation2 + $0x4d8] sm:$0xf0] }
 0x5aa   :  { %v12797_v20 = vpop.f32.mrf.mxu3  ;;  %v6535_v41 = vpop.f32.mrf.mxu2  ;;  %v7961_v2 = vor.u32 %v9221_v52, %v7960_v46  ;;  %v7965_v46 = vor.u32 %v9223_v36, %v7964_v9 }
 0x5ab   :  { %7128 = vst.msk [vmem:[%s13883_s4 + $0x298] sm:$0xff] %vm81_vm0, %v6533_v29  ;;  %v8830_v29 = vld [vmem:[#allocation2 + $0xbac] sm:$0xf0] }
 0x5ac   :  { %v5082_v56 = vpop.f32.mrf.mxu0 }
 0x5ae   :  { %v5806_v23 = vpop.f32.mrf.mxu1 }
 0x5af   :  { %v5807_v13 = vadd.f32 %v5806_v23, %v5077_v39  ;;  %6210 = vmatmul.bf16.gmra.mxu3 %v8821_v55  ;;  %5121 = vmatmul.bf16.gmra.mxu0 %v7953_v16  ;;  %v9438_v39 = vld [vmem:[#allocation2 + $0xba4] sm:$0xf]  ;;  %v7954_v23 = vld [vmem:[#allocation2 + $0x4d4] sm:$0xf0] }
 0x5b1   :  { %v6536_v4 = vadd.f32 %v6535_v41, %v5807_v13  ;;  %5845 = vmatmul.bf16.gmra.mxu1 %v7945_v49  ;;  %v9219_v49 = vld [vmem:[#allocation2 + $0x4cc] sm:$0xf]  ;;  %v8833_v13 = vor.u32 %v9438_v39, %v8830_v29 }
 0x5b2   :  { %v12803_v54 = vpop.f32.mrf.mxu3  ;;  %v6537_v7 = vpop.f32.mrf.mxu2 }
 0x5b3   :  { %7129 = vst.msk [vmem:[%s13883_s4 + $0x2a0] sm:$0xff] %vm81_vm0, %v6536_v4 }
 0x5b4   :  { %v5084_v19 = vpop.f32.mrf.mxu0 }
 0x5b6   :  { %v5808_v48 = vpop.f32.mrf.mxu1 }
 0x5b7   :  { %v5809_v58 = vadd.f32 %v5808_v48, %v5079_v25  ;;  %6579 = vmatmul.bf16.gmra.mxu2 %v7961_v2  ;;  %v7957_v25 = vor.u32 %v9219_v49, %v7954_v23  ;;  %v7972_v48 = vld [vmem:[#allocation2 + $0x4e8] sm:$0xf]  ;;  %v7976_v49 = vld [vmem:[#allocation2 + $0x4f8] sm:$0xf]  ;;  %v9226_v23 = vld [vmem:[#allocation2 + $0x500] sm:$0xf0] }
 0x5b9   :  { %v6538_v55 = vadd.f32 %v6537_v7, %v5809_v58  ;;  %v9224_v7 = vld [vmem:[#allocation2 + $0x4f0] sm:$0xf0] }
 0x5ba   :  { %v12809_v41 = vpop.f32.mrf.mxu3  ;;  %v6540_v16 = vpop.f32.mrf.mxu2  ;;  %v7973_v39 = vor.u32 %v9224_v7, %v7972_v48  ;;  %v7977_v48 = vor.u32 %v9226_v23, %v7976_v49 }
 0x5bb   :  { %7130 = vst.msk [vmem:[%s13883_s4 + $0x2a8] sm:$0xff] %vm81_vm0, %v6538_v55  ;;  %v8842_v55 = vld [vmem:[#allocation2 + $0xbc4] sm:$0xf0] }
 0x5bc   :  { %v5087_v52 = vpop.f32.mrf.mxu0 }
 0x5be   :  { %v5811_v4 = vpop.f32.mrf.mxu1 }
 0x5bf   :  { %v5812_v2 = vadd.f32 %v5811_v4, %v5082_v56  ;;  %6215 = vmatmul.bf16.gmra.mxu3 %v8833_v13  ;;  %5126 = vmatmul.bf16.gmra.mxu0 %v7965_v46  ;;  %v9441_v56 = vld [vmem:[#allocation2 + $0xbbc] sm:$0xf]  ;;  %v7966_v4 = vld [vmem:[#allocation2 + $0x4ec] sm:$0xf0] }
 0x5c1   :  { %v6541_v58 = vadd.f32 %v6540_v16, %v5812_v2  ;;  %5850 = vmatmul.bf16.gmra.mxu1 %v7957_v25  ;;  %v9222_v25 = vld [vmem:[#allocation2 + $0x4e4] sm:$0xf]  ;;  %v8845_v2 = vor.u32 %v9441_v56, %v8842_v55 }
 0x5c2   :  { %v12815_v61 = vpop.f32.mrf.mxu3  ;;  %v6542_v45 = vpop.f32.mrf.mxu2 }
 0x5c3   :  { %7131 = vst.msk [vmem:[%s13883_s4 + $0x2b0] sm:$0xff] %vm81_vm0, %v6541_v58 }
 0x5c4   :  { %v5089_v29 = vpop.f32.mrf.mxu0 }
 0x5c6   :  { %v5813_v9 = vpop.f32.mrf.mxu1 }
 0x5c7   :  { %v5814_v36 = vadd.f32 %v5813_v9, %v5084_v19  ;;  %6584 = vmatmul.bf16.gmra.mxu2 %v7973_v39  ;;  %v7969_v19 = vor.u32 %v9222_v25, %v7966_v4  ;;  %v7984_v9 = vld [vmem:[#allocation2 + $0x500] sm:$0xf]  ;;  %v7988_v25 = vld [vmem:[#allocation2 + $0x510] sm:$0xf]  ;;  %v9229_v4 = vld [vmem:[#allocation2 + $0x518] sm:$0xf0] }
 0x5c9   :  { %v6543_v13 = vadd.f32 %v6542_v45, %v5814_v36  ;;  %v9227_v45 = vld [vmem:[#allocation2 + $0x508] sm:$0xf0] }
 0x5ca   :  { %v12821_v16 = vpop.f32.mrf.mxu3  ;;  %v6545_v46 = vpop.f32.mrf.mxu2  ;;  %v7985_v56 = vor.u32 %v9227_v45, %v7984_v9  ;;  %v7989_v9 = vor.u32 %v9229_v4, %v7988_v25 }
 0x5cb   :  { %7132 = vst.msk [vmem:[%s13883_s4 + $0x2b8] sm:$0xff] %vm81_vm0, %v6543_v13  ;;  %v8854_v13 = vld [vmem:[#allocation2 + $0xbdc] sm:$0xf0] }
 0x5cc   :  { %v5092_v7 = vpop.f32.mrf.mxu0 }
 0x5ce   :  { %v5816_v58 = vpop.f32.mrf.mxu1 }
 0x5cf   :  { %v5817_v39 = vadd.f32 %v5816_v58, %v5087_v52  ;;  %6220 = vmatmul.bf16.gmra.mxu3 %v8845_v2  ;;  %5131 = vmatmul.bf16.gmra.mxu0 %v7977_v48  ;;  %v9444_v52 = vld [vmem:[#allocation2 + $0xbd4] sm:$0xf]  ;;  %v7978_v58 = vld [vmem:[#allocation2 + $0x504] sm:$0xf0] }
 0x5d1   :  { %v6546_v36 = vadd.f32 %v6545_v46, %v5817_v39  ;;  %5855 = vmatmul.bf16.gmra.mxu1 %v7969_v19  ;;  %v9225_v19 = vld [vmem:[#allocation2 + $0x4fc] sm:$0xf]  ;;  %v8857_v39 = vor.u32 %v9444_v52, %v8854_v13 }
 0x5d2   :  { %v12827_v63 = vpop.f32.mrf.mxu3  ;;  %v6547_v8 = vpop.f32.mrf.mxu2 }
 0x5d3   :  { %7133 = vst.msk [vmem:[%s13883_s4 + $0x2c0] sm:$0xff] %vm81_vm0, %v6546_v36 }
 0x5d4   :  { %v5094_v55 = vpop.f32.mrf.mxu0 }
 0x5d6   :  { %v5818_v49 = vpop.f32.mrf.mxu1 }
 0x5d7   :  { %v5819_v23 = vadd.f32 %v5818_v49, %v5089_v29  ;;  %6589 = vmatmul.bf16.gmra.mxu2 %v7985_v56  ;;  %v7981_v29 = vor.u32 %v9225_v19, %v7978_v58  ;;  %v7996_v49 = vld [vmem:[#allocation2 + $0x518] sm:$0xf]  ;;  %v8000_v19 = vld [vmem:[#allocation2 + $0x528] sm:$0xf]  ;;  %v9232_v58 = vld [vmem:[#allocation2 + $0x530] sm:$0xf0] }
 0x5d9   :  { %v6548_v2 = vadd.f32 %v6547_v8, %v5819_v23  ;;  %v9230_v8 = vld [vmem:[#allocation2 + $0x520] sm:$0xf0] }
 0x5da   :  { %v12833_v46 = vpop.f32.mrf.mxu3  ;;  %v6550_v48 = vpop.f32.mrf.mxu2  ;;  %v7997_v52 = vor.u32 %v9230_v8, %v7996_v49  ;;  %v8001_v49 = vor.u32 %v9232_v58, %v8000_v19 }
 0x5db   :  { %7134 = vst.msk [vmem:[%s13883_s4 + $0x2c8] sm:$0xff] %vm81_vm0, %v6548_v2  ;;  %v8866_v2 = vld [vmem:[#allocation2 + $0xbf4] sm:$0xf0] }
 0x5dc   :  { %v5097_v45 = vpop.f32.mrf.mxu0 }
 0x5de   :  { %v5821_v36 = vpop.f32.mrf.mxu1 }
 0x5df   :  { %v5822_v56 = vadd.f32 %v5821_v36, %v5092_v7  ;;  %6225 = vmatmul.bf16.gmra.mxu3 %v8857_v39  ;;  %5136 = vmatmul.bf16.gmra.mxu0 %v7989_v9  ;;  %v9447_v7 = vld [vmem:[#allocation2 + $0xbec] sm:$0xf]  ;;  %v7990_v36 = vld [vmem:[#allocation2 + $0x51c] sm:$0xf0] }
 0x5e1   :  { %v6551_v23 = vadd.f32 %v6550_v48, %v5822_v56  ;;  %5860 = vmatmul.bf16.gmra.mxu1 %v7981_v29  ;;  %v9228_v29 = vld [vmem:[#allocation2 + $0x514] sm:$0xf]  ;;  %v8869_v56 = vor.u32 %v9447_v7, %v8866_v2 }
 0x5e2   :  { %v12839_v38 = vpop.f32.mrf.mxu3  ;;  %v6552_v62 = vpop.f32.mrf.mxu2 }
 0x5e3   :  { %7135 = vst.msk [vmem:[%s13883_s4 + $0x2d0] sm:$0xff] %vm81_vm0, %v6551_v23 }
 0x5e4   :  { %v5099_v13 = vpop.f32.mrf.mxu0 }
 0x5e6   :  { %v5823_v25 = vpop.f32.mrf.mxu1 }
 0x5e7   :  { %v5824_v4 = vadd.f32 %v5823_v25, %v5094_v55  ;;  %6594 = vmatmul.bf16.gmra.mxu2 %v7997_v52  ;;  %v7993_v55 = vor.u32 %v9228_v29, %v7990_v36  ;;  %v8008_v25 = vld [vmem:[#allocation2 + $0x530] sm:$0xf]  ;;  %v8012_v29 = vld [vmem:[#allocation2 + $0x540] sm:$0xf]  ;;  %v9235_v36 = vld [vmem:[#allocation2 + $0x548] sm:$0xf0] }
 0x5e9   :  { %v6553_v39 = vadd.f32 %v6552_v62, %v5824_v4  ;;  %v9233_v62 = vld [vmem:[#allocation2 + $0x538] sm:$0xf0] }
 0x5ea   :  { %v12845_v48 = vpop.f32.mrf.mxu3  ;;  %v6555_v9 = vpop.f32.mrf.mxu2  ;;  %v8009_v7 = vor.u32 %v9233_v62, %v8008_v25  ;;  %v8013_v25 = vor.u32 %v9235_v36, %v8012_v29 }
 0x5eb   :  { %14179 = vst [vmem:[#allocation56_spill] sm:$0xff] %v12845_v48 }
 0x5ec   :  { %7136 = vst.msk [vmem:[%s13883_s4 + $0x2d8] sm:$0xff] %vm81_vm0, %v6553_v39  ;;  %v5102_v8 = vpop.f32.mrf.mxu0  ;;  %v8878_v39 = vld [vmem:[#allocation2 + $0xc0c] sm:$0xf0] }
 0x5ee   :  { %v5826_v23 = vpop.f32.mrf.mxu1 }
 0x5ef   :  { %v5827_v52 = vadd.f32 %v5826_v23, %v5097_v45  ;;  %6230 = vmatmul.bf16.gmra.mxu3 %v8869_v56  ;;  %5141 = vmatmul.bf16.gmra.mxu0 %v8001_v49  ;;  %v9450_v45 = vld [vmem:[#allocation2 + $0xc04] sm:$0xf]  ;;  %v8002_v23 = vld [vmem:[#allocation2 + $0x534] sm:$0xf0] }
 0x5f1   :  { %v6556_v4 = vadd.f32 %v6555_v9, %v5827_v52  ;;  %5865 = vmatmul.bf16.gmra.mxu1 %v7993_v55  ;;  %v9231_v55 = vld [vmem:[#allocation2 + $0x52c] sm:$0xf]  ;;  %v8881_v52 = vor.u32 %v9450_v45, %v8878_v39 }
 0x5f2   :  { %v12851_v47 = vpop.f32.mrf.mxu3  ;;  %v6557_v48 = vpop.f32.mrf.mxu2 }
 0x5f3   :  { %14180 = vst [vmem:[#allocation57_spill] sm:$0xff] %v12851_v47 }
 0x5f4   :  { %7137 = vst.msk [vmem:[%s13883_s4 + $0x2e0] sm:$0xff] %vm81_vm0, %v6556_v4  ;;  %v5104_v2 = vpop.f32.mrf.mxu0 }
 0x5f6   :  { %v5828_v19 = vpop.f32.mrf.mxu1 }
 0x5f7   :  { %v5829_v58 = vadd.f32 %v5828_v19, %v5099_v13  ;;  %6599 = vmatmul.bf16.gmra.mxu2 %v8009_v7  ;;  %v8005_v13 = vor.u32 %v9231_v55, %v8002_v23  ;;  %v8020_v19 = vld [vmem:[#allocation2 + $0x548] sm:$0xf]  ;;  %v8024_v55 = vld [vmem:[#allocation2 + $0x558] sm:$0xf]  ;;  %v9238_v23 = vld [vmem:[#allocation2 + $0x560] sm:$0xf0] }
 0x5f9   :  { %v6558_v56 = vadd.f32 %v6557_v48, %v5829_v58  ;;  %v9236_v48 = vld [vmem:[#allocation2 + $0x550] sm:$0xf0] }
 0x5fa   :  { %v12857_v9 = vpop.f32.mrf.mxu3  ;;  %v6560_v49 = vpop.f32.mrf.mxu2  ;;  %v8021_v45 = vor.u32 %v9236_v48, %v8020_v19  ;;  %v8025_v19 = vor.u32 %v9238_v23, %v8024_v55 }
 0x5fb   :  { %14181 = vst [vmem:[#allocation58_spill] sm:$0xff] %v12857_v9 }
 0x5fc   :  { %7138 = vst.msk [vmem:[%s13883_s4 + $0x2e8] sm:$0xff] %vm81_vm0, %v6558_v56  ;;  %v5107_v62 = vpop.f32.mrf.mxu0  ;;  %v8890_v56 = vld [vmem:[#allocation2 + $0xc24] sm:$0xf0] }
 0x5fe   :  { %v5831_v4 = vpop.f32.mrf.mxu1 }
 0x5ff   :  { %v5832_v7 = vadd.f32 %v5831_v4, %v5102_v8  ;;  %6235 = vmatmul.bf16.gmra.mxu3 %v8881_v52  ;;  %5146 = vmatmul.bf16.gmra.mxu0 %v8013_v25  ;;  %v9453_v8 = vld [vmem:[#allocation2 + $0xc1c] sm:$0xf]  ;;  %v8014_v4 = vld [vmem:[#allocation2 + $0x54c] sm:$0xf0] }
 0x601   :  { %v6561_v58 = vadd.f32 %v6560_v49, %v5832_v7  ;;  %5870 = vmatmul.bf16.gmra.mxu1 %v8005_v13  ;;  %v9234_v13 = vld [vmem:[#allocation2 + $0x544] sm:$0xf]  ;;  %v8893_v7 = vor.u32 %v9453_v8, %v8890_v56 }
 0x602   :  { %v12863_v9 = vpop.f32.mrf.mxu3  ;;  %v6562_v47 = vpop.f32.mrf.mxu2 }
 0x603   :  { %14182 = vst [vmem:[#allocation59_spill] sm:$0xff] %v12863_v9 }
 0x604   :  { %7139 = vst.msk [vmem:[%s13883_s4 + $0x2f0] sm:$0xff] %vm81_vm0, %v6561_v58  ;;  %v5109_v39 = vpop.f32.mrf.mxu0 }
 0x606   :  { %v5833_v29 = vpop.f32.mrf.mxu1 }
 0x607   :  { %v5834_v36 = vadd.f32 %v5833_v29, %v5104_v2  ;;  %6604 = vmatmul.bf16.gmra.mxu2 %v8021_v45  ;;  %v8017_v2 = vor.u32 %v9234_v13, %v8014_v4  ;;  %v8032_v29 = vld [vmem:[#allocation2 + $0x560] sm:$0xf]  ;;  %v8036_v13 = vld [vmem:[#allocation2 + $0x570] sm:$0xf]  ;;  %v9241_v4 = vld [vmem:[#allocation2 + $0x578] sm:$0xf0] }
 0x609   :  { %v6563_v52 = vadd.f32 %v6562_v47, %v5834_v36  ;;  %v9239_v47 = vld [vmem:[#allocation2 + $0x568] sm:$0xf0] }
 0x60a   :  { %v12869_v49 = vpop.f32.mrf.mxu3  ;;  %v6565_v25 = vpop.f32.mrf.mxu2  ;;  %v8033_v8 = vor.u32 %v9239_v47, %v8032_v29  ;;  %v8037_v29 = vor.u32 %v9241_v4, %v8036_v13 }
 0x60b   :  { %14183 = vst [vmem:[#allocation60_spill] sm:$0xff] %v12869_v49 }
 0x60c   :  { %7140 = vst.msk [vmem:[%s13883_s4 + $0x2f8] sm:$0xff] %vm81_vm0, %v6563_v52  ;;  %v5112_v48 = vpop.f32.mrf.mxu0  ;;  %v8902_v52 = vld [vmem:[#allocation2 + $0xc3c] sm:$0xf0] }
 0x60e   :  { %v5836_v58 = vpop.f32.mrf.mxu1 }
 0x60f   :  { %v5837_v45 = vadd.f32 %v5836_v58, %v5107_v62  ;;  %6240 = vmatmul.bf16.gmra.mxu3 %v8893_v7  ;;  %5151 = vmatmul.bf16.gmra.mxu0 %v8025_v19  ;;  %v9456_v62 = vld [vmem:[#allocation2 + $0xc34] sm:$0xf]  ;;  %v8026_v58 = vld [vmem:[#allocation2 + $0x564] sm:$0xf0] }
 0x611   :  { %v6566_v36 = vadd.f32 %v6565_v25, %v5837_v45  ;;  %5875 = vmatmul.bf16.gmra.mxu1 %v8017_v2  ;;  %v9237_v2 = vld [vmem:[#allocation2 + $0x55c] sm:$0xf]  ;;  %v8905_v45 = vor.u32 %v9456_v62, %v8902_v52 }
 0x612   :  { %v12875_v49 = vpop.f32.mrf.mxu3  ;;  %v6567_v9 = vpop.f32.mrf.mxu2 }
 0x613   :  { %14184 = vst [vmem:[#allocation61_spill] sm:$0xff] %v12875_v49 }
 0x614   :  { %7141 = vst.msk [vmem:[%s13883_s4 + $0x300] sm:$0xff] %vm81_vm0, %v6566_v36  ;;  %v5114_v56 = vpop.f32.mrf.mxu0 }
 0x616   :  { %v5838_v55 = vpop.f32.mrf.mxu1 }
 0x617   :  { %v5839_v23 = vadd.f32 %v5838_v55, %v5109_v39  ;;  %6609 = vmatmul.bf16.gmra.mxu2 %v8033_v8  ;;  %v8029_v39 = vor.u32 %v9237_v2, %v8026_v58  ;;  %v8044_v55 = vld [vmem:[#allocation2 + $0x578] sm:$0xf]  ;;  %v8048_v2 = vld [vmem:[#allocation2 + $0x588] sm:$0xf]  ;;  %v9244_v58 = vld [vmem:[#allocation2 + $0x590] sm:$0xf0] }
 0x619   :  { %v6568_v7 = vadd.f32 %v6567_v9, %v5839_v23  ;;  %v9242_v9 = vld [vmem:[#allocation2 + $0x580] sm:$0xf0] }
 0x61a   :  { %v12881_v25 = vpop.f32.mrf.mxu3  ;;  %v6570_v19 = vpop.f32.mrf.mxu2  ;;  %v8045_v62 = vor.u32 %v9242_v9, %v8044_v55  ;;  %v8049_v55 = vor.u32 %v9244_v58, %v8048_v2 }
 0x61b   :  { %14185 = vst [vmem:[#allocation62_spill] sm:$0xff] %v12881_v25 }
 0x61c   :  { %7142 = vst.msk [vmem:[%s13883_s4 + $0x308] sm:$0xff] %vm81_vm0, %v6568_v7  ;;  %v5117_v47 = vpop.f32.mrf.mxu0  ;;  %v8914_v7 = vld [vmem:[#allocation2 + $0xc54] sm:$0xf0] }
 0x61e   :  { %v5841_v36 = vpop.f32.mrf.mxu1 }
 0x61f   :  { %v5842_v8 = vadd.f32 %v5841_v36, %v5112_v48  ;;  %6245 = vmatmul.bf16.gmra.mxu3 %v8905_v45  ;;  %5156 = vmatmul.bf16.gmra.mxu0 %v8037_v29  ;;  %v9459_v48 = vld [vmem:[#allocation2 + $0xc4c] sm:$0xf]  ;;  %v8038_v36 = vld [vmem:[#allocation2 + $0x57c] sm:$0xf0] }
 0x621   :  { %v6571_v23 = vadd.f32 %v6570_v19, %v5842_v8  ;;  %5880 = vmatmul.bf16.gmra.mxu1 %v8029_v39  ;;  %v9240_v39 = vld [vmem:[#allocation2 + $0x574] sm:$0xf]  ;;  %v8917_v8 = vor.u32 %v9459_v48, %v8914_v7 }
 0x622   :  { %v12887_v25 = vpop.f32.mrf.mxu3  ;;  %v6572_v49 = vpop.f32.mrf.mxu2 }
 0x623   :  { %14186 = vst [vmem:[#allocation63_spill] sm:$0xff] %v12887_v25 }
 0x624   :  { %7143 = vst.msk [vmem:[%s13883_s4 + $0x310] sm:$0xff] %vm81_vm0, %v6571_v23  ;;  %v5119_v52 = vpop.f32.mrf.mxu0 }
 0x626   :  { %v5843_v13 = vpop.f32.mrf.mxu1 }
 0x627   :  { %v5844_v4 = vadd.f32 %v5843_v13, %v5114_v56  ;;  %6614 = vmatmul.bf16.gmra.mxu2 %v8045_v62  ;;  %v8041_v56 = vor.u32 %v9240_v39, %v8038_v36  ;;  %v8056_v13 = vld [vmem:[#allocation2 + $0x590] sm:$0xf]  ;;  %v8060_v39 = vld [vmem:[#allocation2 + $0x5a0] sm:$0xf]  ;;  %v9247_v36 = vld [vmem:[#allocation2 + $0x5a8] sm:$0xf0] }
 0x629   :  { %v6573_v45 = vadd.f32 %v6572_v49, %v5844_v4  ;;  %v9245_v49 = vld [vmem:[#allocation2 + $0x598] sm:$0xf0] }
 0x62a   :  { %v12893_v19 = vpop.f32.mrf.mxu3  ;;  %v6575_v29 = vpop.f32.mrf.mxu2  ;;  %v8057_v48 = vor.u32 %v9245_v49, %v8056_v13  ;;  %v8061_v13 = vor.u32 %v9247_v36, %v8060_v39 }
 0x62b   :  { %14187 = vst [vmem:[#allocation64_spill] sm:$0xff] %v12893_v19 }
 0x62c   :  { %7144 = vst.msk [vmem:[%s13883_s4 + $0x318] sm:$0xff] %vm81_vm0, %v6573_v45  ;;  %v5122_v9 = vpop.f32.mrf.mxu0  ;;  %v8926_v45 = vld [vmem:[#allocation2 + $0xc6c] sm:$0xf0] }
 0x62e   :  { %v5846_v23 = vpop.f32.mrf.mxu1 }
 0x62f   :  { %v5847_v62 = vadd.f32 %v5846_v23, %v5117_v47  ;;  %6250 = vmatmul.bf16.gmra.mxu3 %v8917_v8  ;;  %5161 = vmatmul.bf16.gmra.mxu0 %v8049_v55  ;;  %v9462_v47 = vld [vmem:[#allocation2 + $0xc64] sm:$0xf]  ;;  %v8050_v23 = vld [vmem:[#allocation2 + $0x594] sm:$0xf0] }
 0x631   :  { %v6576_v4 = vadd.f32 %v6575_v29, %v5847_v62  ;;  %5885 = vmatmul.bf16.gmra.mxu1 %v8041_v56  ;;  %v9243_v56 = vld [vmem:[#allocation2 + $0x58c] sm:$0xf]  ;;  %v8929_v62 = vor.u32 %v9462_v47, %v8926_v45 }
 0x632   :  { %v12899_v19 = vpop.f32.mrf.mxu3  ;;  %v6577_v25 = vpop.f32.mrf.mxu2 }
 0x633   :  { %14188 = vst [vmem:[#allocation65_spill] sm:$0xff] %v12899_v19 }
 0x634   :  { %7145 = vst.msk [vmem:[%s13883_s4 + $0x320] sm:$0xff] %vm81_vm0, %v6576_v4  ;;  %v5124_v7 = vpop.f32.mrf.mxu0 }
 0x636   :  { %v5848_v2 = vpop.f32.mrf.mxu1 }
 0x637   :  { %v5849_v58 = vadd.f32 %v5848_v2, %v5119_v52  ;;  %6619 = vmatmul.bf16.gmra.mxu2 %v8057_v48  ;;  %v8053_v52 = vor.u32 %v9243_v56, %v8050_v23  ;;  %v8068_v2 = vld [vmem:[#allocation2 + $0x5a8] sm:$0xf]  ;;  %v8072_v56 = vld [vmem:[#allocation2 + $0x5b8] sm:$0xf]  ;;  %v9250_v23 = vld [vmem:[#allocation2 + $0x5c0] sm:$0xf0] }
 0x639   :  { %v6578_v8 = vadd.f32 %v6577_v25, %v5849_v58  ;;  %v9248_v25 = vld [vmem:[#allocation2 + $0x5b0] sm:$0xf0] }
 0x63a   :  { %v12905_v29 = vpop.f32.mrf.mxu3  ;;  %v6580_v55 = vpop.f32.mrf.mxu2  ;;  %v8069_v47 = vor.u32 %v9248_v25, %v8068_v2  ;;  %v8073_v2 = vor.u32 %v9250_v23, %v8072_v56 }
 0x63b   :  { %14189 = vst [vmem:[#allocation66_spill] sm:$0xff] %v12905_v29 }
 0x63c   :  { %7146 = vst.msk [vmem:[%s13883_s4 + $0x328] sm:$0xff] %vm81_vm0, %v6578_v8  ;;  %v5127_v49 = vpop.f32.mrf.mxu0  ;;  %v8938_v8 = vld [vmem:[#allocation2 + $0xc84] sm:$0xf0] }
 0x63e   :  { %v5851_v4 = vpop.f32.mrf.mxu1 }
 0x63f   :  { %v5852_v48 = vadd.f32 %v5851_v4, %v5122_v9  ;;  %6255 = vmatmul.bf16.gmra.mxu3 %v8929_v62  ;;  %5166 = vmatmul.bf16.gmra.mxu0 %v8061_v13  ;;  %v9465_v9 = vld [vmem:[#allocation2 + $0xc7c] sm:$0xf]  ;;  %v8062_v4 = vld [vmem:[#allocation2 + $0x5ac] sm:$0xf0] }
 0x641   :  { %v6581_v58 = vadd.f32 %v6580_v55, %v5852_v48  ;;  %5890 = vmatmul.bf16.gmra.mxu1 %v8053_v52  ;;  %v9246_v52 = vld [vmem:[#allocation2 + $0x5a4] sm:$0xf]  ;;  %v8941_v48 = vor.u32 %v9465_v9, %v8938_v8 }
 0x642   :  { %v12911_v29 = vpop.f32.mrf.mxu3  ;;  %v6582_v19 = vpop.f32.mrf.mxu2 }
 0x643   :  { %14190 = vst [vmem:[#allocation67_spill] sm:$0xff] %v12911_v29 }
 0x644   :  { %7147 = vst.msk [vmem:[%s13883_s4 + $0x330] sm:$0xff] %vm81_vm0, %v6581_v58  ;;  %v5129_v45 = vpop.f32.mrf.mxu0 }
 0x646   :  { %v5853_v39 = vpop.f32.mrf.mxu1 }
 0x647   :  { %v5854_v36 = vadd.f32 %v5853_v39, %v5124_v7  ;;  %6624 = vmatmul.bf16.gmra.mxu2 %v8069_v47  ;;  %v8065_v7 = vor.u32 %v9246_v52, %v8062_v4  ;;  %v8080_v39 = vld [vmem:[#allocation2 + $0x5c0] sm:$0xf]  ;;  %v8084_v52 = vld [vmem:[#allocation2 + $0x5d0] sm:$0xf]  ;;  %v9253_v4 = vld [vmem:[#allocation2 + $0x5d8] sm:$0xf0] }
 0x649   :  { %v6583_v62 = vadd.f32 %v6582_v19, %v5854_v36  ;;  %v9251_v19 = vld [vmem:[#allocation2 + $0x5c8] sm:$0xf0] }
 0x64a   :  { %v12917_v55 = vpop.f32.mrf.mxu3  ;;  %v6585_v13 = vpop.f32.mrf.mxu2  ;;  %v8081_v9 = vor.u32 %v9251_v19, %v8080_v39  ;;  %v8085_v39 = vor.u32 %v9253_v4, %v8084_v52 }
 0x64b   :  { %14191 = vst [vmem:[#allocation68_spill] sm:$0xff] %v12917_v55 }
 0x64c   :  { %7148 = vst.msk [vmem:[%s13883_s4 + $0x338] sm:$0xff] %vm81_vm0, %v6583_v62  ;;  %v5132_v25 = vpop.f32.mrf.mxu0  ;;  %v8950_v62 = vld [vmem:[#allocation2 + $0xc9c] sm:$0xf0] }
 0x64e   :  { %v5856_v58 = vpop.f32.mrf.mxu1 }
 0x64f   :  { %v5857_v47 = vadd.f32 %v5856_v58, %v5127_v49  ;;  %6260 = vmatmul.bf16.gmra.mxu3 %v8941_v48  ;;  %5171 = vmatmul.bf16.gmra.mxu0 %v8073_v2  ;;  %v9468_v49 = vld [vmem:[#allocation2 + $0xc94] sm:$0xf]  ;;  %v8074_v58 = vld [vmem:[#allocation2 + $0x5c4] sm:$0xf0] }
 0x651   :  { %v6586_v36 = vadd.f32 %v6585_v13, %v5857_v47  ;;  %5895 = vmatmul.bf16.gmra.mxu1 %v8065_v7  ;;  %v9249_v7 = vld [vmem:[#allocation2 + $0x5bc] sm:$0xf]  ;;  %v8953_v47 = vor.u32 %v9468_v49, %v8950_v62 }
 0x652   :  { %v12923_v55 = vpop.f32.mrf.mxu3  ;;  %v6587_v29 = vpop.f32.mrf.mxu2 }
 0x653   :  { %14192 = vst [vmem:[#allocation69_spill] sm:$0xff] %v12923_v55 }
 0x654   :  { %7149 = vst.msk [vmem:[%s13883_s4 + $0x340] sm:$0xff] %vm81_vm0, %v6586_v36  ;;  %v5134_v8 = vpop.f32.mrf.mxu0 }
 0x656   :  { %v5858_v56 = vpop.f32.mrf.mxu1 }
 0x657   :  { %v5859_v23 = vadd.f32 %v5858_v56, %v5129_v45  ;;  %6629 = vmatmul.bf16.gmra.mxu2 %v8081_v9  ;;  %v8077_v45 = vor.u32 %v9249_v7, %v8074_v58  ;;  %v8092_v56 = vld [vmem:[#allocation2 + $0x5d8] sm:$0xf]  ;;  %v8096_v7 = vld [vmem:[#allocation2 + $0x5e8] sm:$0xf]  ;;  %v9256_v58 = vld [vmem:[#allocation2 + $0x5f0] sm:$0xf0] }
 0x659   :  { %v6588_v48 = vadd.f32 %v6587_v29, %v5859_v23  ;;  %v9254_v29 = vld [vmem:[#allocation2 + $0x5e0] sm:$0xf0] }
 0x65a   :  { %v12929_v13 = vpop.f32.mrf.mxu3  ;;  %v6590_v2 = vpop.f32.mrf.mxu2  ;;  %v8093_v49 = vor.u32 %v9254_v29, %v8092_v56  ;;  %v8097_v56 = vor.u32 %v9256_v58, %v8096_v7 }
 0x65b   :  { %14193 = vst [vmem:[#allocation70_spill] sm:$0xff] %v12929_v13 }
 0x65c   :  { %7150 = vst.msk [vmem:[%s13883_s4 + $0x348] sm:$0xff] %vm81_vm0, %v6588_v48  ;;  %v5137_v19 = vpop.f32.mrf.mxu0  ;;  %v8962_v48 = vld [vmem:[#allocation2 + $0xcb4] sm:$0xf0] }
 0x65e   :  { %v5861_v36 = vpop.f32.mrf.mxu1 }
 0x65f   :  { %v5862_v9 = vadd.f32 %v5861_v36, %v5132_v25  ;;  %6265 = vmatmul.bf16.gmra.mxu3 %v8953_v47  ;;  %5176 = vmatmul.bf16.gmra.mxu0 %v8085_v39  ;;  %v9471_v25 = vld [vmem:[#allocation2 + $0xcac] sm:$0xf]  ;;  %v8086_v36 = vld [vmem:[#allocation2 + $0x5dc] sm:$0xf0] }
 0x661   :  { %v6591_v23 = vadd.f32 %v6590_v2, %v5862_v9  ;;  %5900 = vmatmul.bf16.gmra.mxu1 %v8077_v45  ;;  %v9252_v45 = vld [vmem:[#allocation2 + $0x5d4] sm:$0xf]  ;;  %v8965_v9 = vor.u32 %v9471_v25, %v8962_v48 }
 0x662   :  { %v12935_v13 = vpop.f32.mrf.mxu3  ;;  %v6592_v55 = vpop.f32.mrf.mxu2 }
 0x663   :  { %14194 = vst [vmem:[#allocation71_spill] sm:$0xff] %v12935_v13 }
 0x664   :  { %7151 = vst.msk [vmem:[%s13883_s4 + $0x350] sm:$0xff] %vm81_vm0, %v6591_v23  ;;  %v5139_v62 = vpop.f32.mrf.mxu0 }
 0x666   :  { %v5863_v52 = vpop.f32.mrf.mxu1 }
 0x667   :  { %v5864_v4 = vadd.f32 %v5863_v52, %v5134_v8  ;;  %6634 = vmatmul.bf16.gmra.mxu2 %v8093_v49  ;;  %v8089_v8 = vor.u32 %v9252_v45, %v8086_v36  ;;  %v8104_v52 = vld [vmem:[#allocation2 + $0x5f0] sm:$0xf]  ;;  %v8108_v45 = vld [vmem:[#allocation2 + $0x600] sm:$0xf]  ;;  %v9259_v36 = vld [vmem:[#allocation2 + $0x608] sm:$0xf0] }
 0x669   :  { %v6593_v47 = vadd.f32 %v6592_v55, %v5864_v4  ;;  %v9257_v55 = vld [vmem:[#allocation2 + $0x5f8] sm:$0xf0] }
 0x66a   :  { %v12941_v2 = vpop.f32.mrf.mxu3  ;;  %v6595_v39 = vpop.f32.mrf.mxu2  ;;  %v8105_v25 = vor.u32 %v9257_v55, %v8104_v52  ;;  %v8109_v52 = vor.u32 %v9259_v36, %v8108_v45 }
 0x66b   :  { %14195 = vst [vmem:[#allocation72_spill] sm:$0xff] %v12941_v2 }
 0x66c   :  { %7152 = vst.msk [vmem:[%s13883_s4 + $0x358] sm:$0xff] %vm81_vm0, %v6593_v47  ;;  %v5142_v29 = vpop.f32.mrf.mxu0  ;;  %v8974_v47 = vld [vmem:[#allocation2 + $0xccc] sm:$0xf0] }
 0x66e   :  { %v5866_v23 = vpop.f32.mrf.mxu1 }
 0x66f   :  { %v5867_v49 = vadd.f32 %v5866_v23, %v5137_v19  ;;  %6270 = vmatmul.bf16.gmra.mxu3 %v8965_v9  ;;  %5181 = vmatmul.bf16.gmra.mxu0 %v8097_v56  ;;  %v9474_v19 = vld [vmem:[#allocation2 + $0xcc4] sm:$0xf]  ;;  %v8098_v23 = vld [vmem:[#allocation2 + $0x5f4] sm:$0xf0] }
 0x671   :  { %v6596_v4 = vadd.f32 %v6595_v39, %v5867_v49  ;;  %5905 = vmatmul.bf16.gmra.mxu1 %v8089_v8  ;;  %v9255_v8 = vld [vmem:[#allocation2 + $0x5ec] sm:$0xf]  ;;  %v8977_v49 = vor.u32 %v9474_v19, %v8974_v47 }
 0x672   :  { %v12947_v2 = vpop.f32.mrf.mxu3  ;;  %v6597_v13 = vpop.f32.mrf.mxu2 }
 0x673   :  { %14196 = vst [vmem:[#allocation73_spill] sm:$0xff] %v12947_v2 }
 0x674   :  { %7153 = vst.msk [vmem:[%s13883_s4 + $0x360] sm:$0xff] %vm81_vm0, %v6596_v4  ;;  %v5144_v48 = vpop.f32.mrf.mxu0 }
 0x676   :  { %v5868_v7 = vpop.f32.mrf.mxu1 }
 0x677   :  { %v5869_v58 = vadd.f32 %v5868_v7, %v5139_v62  ;;  %6639 = vmatmul.bf16.gmra.mxu2 %v8105_v25  ;;  %v8101_v62 = vor.u32 %v9255_v8, %v8098_v23  ;;  %v8116_v7 = vld [vmem:[#allocation2 + $0x608] sm:$0xf]  ;;  %v8120_v8 = vld [vmem:[#allocation2 + $0x618] sm:$0xf]  ;;  %v9262_v23 = vld [vmem:[#allocation2 + $0x620] sm:$0xf0] }
 0x679   :  { %v6598_v9 = vadd.f32 %v6597_v13, %v5869_v58  ;;  %v9260_v13 = vld [vmem:[#allocation2 + $0x610] sm:$0xf0] }
 0x67a   :  { %v12953_v39 = vpop.f32.mrf.mxu3  ;;  %v6600_v56 = vpop.f32.mrf.mxu2  ;;  %v8117_v19 = vor.u32 %v9260_v13, %v8116_v7  ;;  %v8121_v7 = vor.u32 %v9262_v23, %v8120_v8 }
 0x67b   :  { %14197 = vst [vmem:[#allocation74_spill] sm:$0xff] %v12953_v39 }
 0x67c   :  { %7154 = vst.msk [vmem:[%s13883_s4 + $0x368] sm:$0xff] %vm81_vm0, %v6598_v9  ;;  %v5147_v55 = vpop.f32.mrf.mxu0  ;;  %v8986_v9 = vld [vmem:[#allocation2 + $0xce4] sm:$0xf0] }
 0x67e   :  { %v5871_v4 = vpop.f32.mrf.mxu1 }
 0x67f   :  { %v5872_v25 = vadd.f32 %v5871_v4, %v5142_v29  ;;  %6275 = vmatmul.bf16.gmra.mxu3 %v8977_v49  ;;  %5186 = vmatmul.bf16.gmra.mxu0 %v8109_v52  ;;  %v9477_v29 = vld [vmem:[#allocation2 + $0xcdc] sm:$0xf]  ;;  %v8110_v4 = vld [vmem:[#allocation2 + $0x60c] sm:$0xf0] }
 0x681   :  { %v6601_v58 = vadd.f32 %v6600_v56, %v5872_v25  ;;  %5910 = vmatmul.bf16.gmra.mxu1 %v8101_v62  ;;  %v9258_v62 = vld [vmem:[#allocation2 + $0x604] sm:$0xf]  ;;  %v8989_v25 = vor.u32 %v9477_v29, %v8986_v9 }
 0x682   :  { %v12959_v39 = vpop.f32.mrf.mxu3  ;;  %v6602_v2 = vpop.f32.mrf.mxu2 }
 0x683   :  { %14198 = vst [vmem:[#allocation75_spill] sm:$0xff] %v12959_v39 }
 0x684   :  { %7155 = vst.msk [vmem:[%s13883_s4 + $0x370] sm:$0xff] %vm81_vm0, %v6601_v58  ;;  %v5149_v47 = vpop.f32.mrf.mxu0 }
 0x686   :  { %v5873_v45 = vpop.f32.mrf.mxu1 }
 0x687   :  { %v5874_v36 = vadd.f32 %v5873_v45, %v5144_v48  ;;  %6644 = vmatmul.bf16.gmra.mxu2 %v8117_v19  ;;  %v8113_v48 = vor.u32 %v9258_v62, %v8110_v4  ;;  %v8128_v45 = vld [vmem:[#allocation2 + $0x620] sm:$0xf]  ;;  %v8132_v62 = vld [vmem:[#allocation2 + $0x630] sm:$0xf]  ;;  %v9265_v4 = vld [vmem:[#allocation2 + $0x638] sm:$0xf0] }
 0x689   :  { %v6603_v49 = vadd.f32 %v6602_v2, %v5874_v36  ;;  %v9263_v2 = vld [vmem:[#allocation2 + $0x628] sm:$0xf0] }
 0x68a   :  { %v12965_v56 = vpop.f32.mrf.mxu3  ;;  %v6605_v52 = vpop.f32.mrf.mxu2  ;;  %v8129_v29 = vor.u32 %v9263_v2, %v8128_v45  ;;  %v8133_v45 = vor.u32 %v9265_v4, %v8132_v62 }
 0x68b   :  { %14199 = vst [vmem:[#allocation76_spill] sm:$0xff] %v12965_v56 }
 0x68c   :  { %7156 = vst.msk [vmem:[%s13883_s4 + $0x378] sm:$0xff] %vm81_vm0, %v6603_v49  ;;  %v5152_v13 = vpop.f32.mrf.mxu0  ;;  %v8998_v49 = vld [vmem:[#allocation2 + $0xcfc] sm:$0xf0] }
 0x68e   :  { %v5876_v58 = vpop.f32.mrf.mxu1 }
 0x68f   :  { %v5877_v19 = vadd.f32 %v5876_v58, %v5147_v55  ;;  %6280 = vmatmul.bf16.gmra.mxu3 %v8989_v25  ;;  %5191 = vmatmul.bf16.gmra.mxu0 %v8121_v7  ;;  %v9480_v55 = vld [vmem:[#allocation2 + $0xcf4] sm:$0xf]  ;;  %v8122_v58 = vld [vmem:[#allocation2 + $0x624] sm:$0xf0] }
 0x691   :  { %v6606_v36 = vadd.f32 %v6605_v52, %v5877_v19  ;;  %5915 = vmatmul.bf16.gmra.mxu1 %v8113_v48  ;;  %v9261_v48 = vld [vmem:[#allocation2 + $0x61c] sm:$0xf]  ;;  %v9001_v19 = vor.u32 %v9480_v55, %v8998_v49 }
 0x692   :  { %v12971_v56 = vpop.f32.mrf.mxu3  ;;  %v6607_v39 = vpop.f32.mrf.mxu2 }
 0x693   :  { %14200 = vst [vmem:[#allocation77_spill] sm:$0xff] %v12971_v56 }
 0x694   :  { %7157 = vst.msk [vmem:[%s13883_s4 + $0x380] sm:$0xff] %vm81_vm0, %v6606_v36  ;;  %v5154_v9 = vpop.f32.mrf.mxu0 }
 0x696   :  { %v5878_v8 = vpop.f32.mrf.mxu1 }
 0x697   :  { %v5879_v23 = vadd.f32 %v5878_v8, %v5149_v47  ;;  %6649 = vmatmul.bf16.gmra.mxu2 %v8129_v29  ;;  %v8125_v47 = vor.u32 %v9261_v48, %v8122_v58  ;;  %v8140_v8 = vld [vmem:[#allocation2 + $0x638] sm:$0xf]  ;;  %v8144_v48 = vld [vmem:[#allocation2 + $0x648] sm:$0xf]  ;;  %v9268_v58 = vld [vmem:[#allocation2 + $0x650] sm:$0xf0] }
 0x699   :  { %v6608_v25 = vadd.f32 %v6607_v39, %v5879_v23  ;;  %v9266_v39 = vld [vmem:[#allocation2 + $0x640] sm:$0xf0] }
 0x69a   :  { %v12977_v52 = vpop.f32.mrf.mxu3  ;;  %v6610_v7 = vpop.f32.mrf.mxu2  ;;  %v8141_v55 = vor.u32 %v9266_v39, %v8140_v8  ;;  %v8145_v8 = vor.u32 %v9268_v58, %v8144_v48 }
 0x69b   :  { %14201 = vst [vmem:[#allocation78_spill] sm:$0xff] %v12977_v52 }
 0x69c   :  { %7158 = vst.msk [vmem:[%s13883_s4 + $0x388] sm:$0xff] %vm81_vm0, %v6608_v25  ;;  %v5157_v2 = vpop.f32.mrf.mxu0  ;;  %v9010_v25 = vld [vmem:[#allocation2 + $0xd14] sm:$0xf0] }
 0x69e   :  { %v5881_v36 = vpop.f32.mrf.mxu1 }
 0x69f   :  { %v5882_v29 = vadd.f32 %v5881_v36, %v5152_v13  ;;  %6285 = vmatmul.bf16.gmra.mxu3 %v9001_v19  ;;  %5196 = vmatmul.bf16.gmra.mxu0 %v8133_v45  ;;  %v9483_v13 = vld [vmem:[#allocation2 + $0xd0c] sm:$0xf]  ;;  %v8134_v36 = vld [vmem:[#allocation2 + $0x63c] sm:$0xf0] }
 0x6a1   :  { %v6611_v23 = vadd.f32 %v6610_v7, %v5882_v29  ;;  %5920 = vmatmul.bf16.gmra.mxu1 %v8125_v47  ;;  %v9264_v47 = vld [vmem:[#allocation2 + $0x634] sm:$0xf]  ;;  %v9013_v29 = vor.u32 %v9483_v13, %v9010_v25 }
 0x6a2   :  { %v12983_v52 = vpop.f32.mrf.mxu3  ;;  %v6612_v56 = vpop.f32.mrf.mxu2 }
 0x6a3   :  { %14202 = vst [vmem:[#allocation79_spill] sm:$0xff] %v12983_v52 }
 0x6a4   :  { %7159 = vst.msk [vmem:[%s13883_s4 + $0x390] sm:$0xff] %vm81_vm0, %v6611_v23  ;;  %v5159_v49 = vpop.f32.mrf.mxu0 }
 0x6a6   :  { %v5883_v62 = vpop.f32.mrf.mxu1 }
 0x6a7   :  { %v5884_v4 = vadd.f32 %v5883_v62, %v5154_v9  ;;  %6654 = vmatmul.bf16.gmra.mxu2 %v8141_v55  ;;  %v8137_v9 = vor.u32 %v9264_v47, %v8134_v36  ;;  %v8152_v62 = vld [vmem:[#allocation2 + $0x650] sm:$0xf]  ;;  %v8156_v47 = vld [vmem:[#allocation2 + $0x660] sm:$0xf]  ;;  %v9271_v36 = vld [vmem:[#allocation2 + $0x668] sm:$0xf0] }
 0x6a9   :  { %v6613_v19 = vadd.f32 %v6612_v56, %v5884_v4  ;;  %v9269_v56 = vld [vmem:[#allocation2 + $0x658] sm:$0xf0] }
 0x6aa   :  { %v12989_v7 = vpop.f32.mrf.mxu3  ;;  %v6615_v45 = vpop.f32.mrf.mxu2  ;;  %v8153_v13 = vor.u32 %v9269_v56, %v8152_v62  ;;  %v8157_v62 = vor.u32 %v9271_v36, %v8156_v47 }
 0x6ab   :  { %14203 = vst [vmem:[#allocation80_spill] sm:$0xff] %v12989_v7 }
 0x6ac   :  { %7160 = vst.msk [vmem:[%s13883_s4 + $0x398] sm:$0xff] %vm81_vm0, %v6613_v19  ;;  %v5162_v39 = vpop.f32.mrf.mxu0  ;;  %v9022_v19 = vld [vmem:[#allocation2 + $0xd2c] sm:$0xf0] }
 0x6ae   :  { %v5886_v23 = vpop.f32.mrf.mxu1 }
 0x6af   :  { %v5887_v55 = vadd.f32 %v5886_v23, %v5157_v2  ;;  %6290 = vmatmul.bf16.gmra.mxu3 %v9013_v29  ;;  %5201 = vmatmul.bf16.gmra.mxu0 %v8145_v8  ;;  %v9486_v2 = vld [vmem:[#allocation2 + $0xd24] sm:$0xf]  ;;  %v8146_v23 = vld [vmem:[#allocation2 + $0x654] sm:$0xf0] }
 0x6b1   :  { %v6616_v4 = vadd.f32 %v6615_v45, %v5887_v55  ;;  %5925 = vmatmul.bf16.gmra.mxu1 %v8137_v9  ;;  %v9267_v9 = vld [vmem:[#allocation2 + $0x64c] sm:$0xf]  ;;  %v9025_v55 = vor.u32 %v9486_v2, %v9022_v19 }
 0x6b2   :  { %v12995_v7 = vpop.f32.mrf.mxu3  ;;  %v6617_v52 = vpop.f32.mrf.mxu2 }
 0x6b3   :  { %14204 = vst [vmem:[#allocation81_spill] sm:$0xff] %v12995_v7 }
 0x6b4   :  { %7161 = vst.msk [vmem:[%s13883_s4 + $0x3a0] sm:$0xff] %vm81_vm0, %v6616_v4  ;;  %v5164_v25 = vpop.f32.mrf.mxu0 }
 0x6b6   :  { %v5888_v48 = vpop.f32.mrf.mxu1 }
 0x6b7   :  { %v5889_v58 = vadd.f32 %v5888_v48, %v5159_v49  ;;  %6659 = vmatmul.bf16.gmra.mxu2 %v8153_v13  ;;  %v8149_v49 = vor.u32 %v9267_v9, %v8146_v23  ;;  %v8164_v48 = vld [vmem:[#allocation2 + $0x668] sm:$0xf]  ;;  %v8168_v9 = vld [vmem:[#allocation2 + $0x678] sm:$0xf]  ;;  %v9274_v23 = vld [vmem:[#allocation2 + $0x680] sm:$0xf0] }
 0x6b9   :  { %v6618_v29 = vadd.f32 %v6617_v52, %v5889_v58  ;;  %v9272_v52 = vld [vmem:[#allocation2 + $0x670] sm:$0xf0] }
 0x6ba   :  { %v13001_v45 = vpop.f32.mrf.mxu3  ;;  %v6620_v8 = vpop.f32.mrf.mxu2  ;;  %v8165_v2 = vor.u32 %v9272_v52, %v8164_v48  ;;  %v8169_v48 = vor.u32 %v9274_v23, %v8168_v9 }
 0x6bb   :  { %14205 = vst [vmem:[#allocation82_spill] sm:$0xff] %v13001_v45 }
 0x6bc   :  { %7162 = vst.msk [vmem:[%s13883_s4 + $0x3a8] sm:$0xff] %vm81_vm0, %v6618_v29  ;;  %v5167_v56 = vpop.f32.mrf.mxu0  ;;  %v9034_v29 = vld [vmem:[#allocation2 + $0xd44] sm:$0xf0] }
 0x6be   :  { %v5891_v4 = vpop.f32.mrf.mxu1 }
 0x6bf   :  { %v5892_v13 = vadd.f32 %v5891_v4, %v5162_v39  ;;  %6295 = vmatmul.bf16.gmra.mxu3 %v9025_v55  ;;  %5206 = vmatmul.bf16.gmra.mxu0 %v8157_v62  ;;  %v9489_v39 = vld [vmem:[#allocation2 + $0xd3c] sm:$0xf]  ;;  %v8158_v4 = vld [vmem:[#allocation2 + $0x66c] sm:$0xf0] }
 0x6c1   :  { %v6621_v58 = vadd.f32 %v6620_v8, %v5892_v13  ;;  %5930 = vmatmul.bf16.gmra.mxu1 %v8149_v49  ;;  %v9270_v49 = vld [vmem:[#allocation2 + $0x664] sm:$0xf]  ;;  %v9037_v13 = vor.u32 %v9489_v39, %v9034_v29 }
 0x6c2   :  { %v13007_v45 = vpop.f32.mrf.mxu3  ;;  %v6622_v7 = vpop.f32.mrf.mxu2 }
 0x6c3   :  { %14206 = vst [vmem:[#allocation83_spill] sm:$0xff] %v13007_v45 }
 0x6c4   :  { %7163 = vst.msk [vmem:[%s13883_s4 + $0x3b0] sm:$0xff] %vm81_vm0, %v6621_v58  ;;  %v5169_v19 = vpop.f32.mrf.mxu0 }
 0x6c6   :  { %v5893_v47 = vpop.f32.mrf.mxu1 }
 0x6c7   :  { %v5894_v36 = vadd.f32 %v5893_v47, %v5164_v25  ;;  %6664 = vmatmul.bf16.gmra.mxu2 %v8165_v2  ;;  %v8161_v25 = vor.u32 %v9270_v49, %v8158_v4  ;;  %v8176_v47 = vld [vmem:[#allocation2 + $0x680] sm:$0xf]  ;;  %v8180_v49 = vld [vmem:[#allocation2 + $0x690] sm:$0xf]  ;;  %v9277_v4 = vld [vmem:[#allocation2 + $0x698] sm:$0xf0] }
 0x6c9   :  { %v6623_v55 = vadd.f32 %v6622_v7, %v5894_v36  ;;  %v9275_v7 = vld [vmem:[#allocation2 + $0x688] sm:$0xf0] }
 0x6ca   :  { %v13013_v8 = vpop.f32.mrf.mxu3  ;;  %v6625_v62 = vpop.f32.mrf.mxu2  ;;  %v8177_v39 = vor.u32 %v9275_v7, %v8176_v47  ;;  %v8181_v47 = vor.u32 %v9277_v4, %v8180_v49 }
 0x6cb   :  { %14207 = vst [vmem:[#allocation84_spill] sm:$0xff] %v13013_v8 }
 0x6cc   :  { %7164 = vst.msk [vmem:[%s13883_s4 + $0x3b8] sm:$0xff] %vm81_vm0, %v6623_v55  ;;  %v5172_v52 = vpop.f32.mrf.mxu0  ;;  %v9046_v55 = vld [vmem:[#allocation2 + $0xd5c] sm:$0xf0] }
 0x6ce   :  { %v5896_v58 = vpop.f32.mrf.mxu1 }
 0x6cf   :  { %v5897_v2 = vadd.f32 %v5896_v58, %v5167_v56  ;;  %6300 = vmatmul.bf16.gmra.mxu3 %v9037_v13  ;;  %5211 = vmatmul.bf16.gmra.mxu0 %v8169_v48  ;;  %v9492_v56 = vld [vmem:[#allocation2 + $0xd54] sm:$0xf]  ;;  %v8170_v58 = vld [vmem:[#allocation2 + $0x684] sm:$0xf0] }
 0x6d1   :  { %v6626_v36 = vadd.f32 %v6625_v62, %v5897_v2  ;;  %5935 = vmatmul.bf16.gmra.mxu1 %v8161_v25  ;;  %v9273_v25 = vld [vmem:[#allocation2 + $0x67c] sm:$0xf]  ;;  %v9049_v2 = vor.u32 %v9492_v56, %v9046_v55 }
 0x6d2   :  { %v13019_v8 = vpop.f32.mrf.mxu3  ;;  %v6627_v45 = vpop.f32.mrf.mxu2 }
 0x6d3   :  { %14208 = vst [vmem:[#allocation85_spill] sm:$0xff] %v13019_v8 }
 0x6d4   :  { %7165 = vst.msk [vmem:[%s13883_s4 + $0x3c0] sm:$0xff] %vm81_vm0, %v6626_v36  ;;  %v5174_v29 = vpop.f32.mrf.mxu0 }
 0x6d6   :  { %v5898_v9 = vpop.f32.mrf.mxu1 }
 0x6d7   :  { %v5899_v23 = vadd.f32 %v5898_v9, %v5169_v19  ;;  %6669 = vmatmul.bf16.gmra.mxu2 %v8177_v39  ;;  %v8173_v19 = vor.u32 %v9273_v25, %v8170_v58  ;;  %v8188_v9 = vld [vmem:[#allocation2 + $0x698] sm:$0xf]  ;;  %v8192_v25 = vld [vmem:[#allocation2 + $0x6a8] sm:$0xf]  ;;  %v9280_v58 = vld [vmem:[#allocation2 + $0x6b0] sm:$0xf0] }
 0x6d9   :  { %v6628_v13 = vadd.f32 %v6627_v45, %v5899_v23  ;;  %v9278_v45 = vld [vmem:[#allocation2 + $0x6a0] sm:$0xf0] }
 0x6da   :  { %v13025_v62 = vpop.f32.mrf.mxu3  ;;  %v6630_v48 = vpop.f32.mrf.mxu2  ;;  %v8189_v56 = vor.u32 %v9278_v45, %v8188_v9  ;;  %v8193_v9 = vor.u32 %v9280_v58, %v8192_v25 }
 0x6db   :  { %14209 = vst [vmem:[#allocation86_spill] sm:$0xff] %v13025_v62 }
 0x6dc   :  { %7166 = vst.msk [vmem:[%s13883_s4 + $0x3c8] sm:$0xff] %vm81_vm0, %v6628_v13  ;;  %v5177_v7 = vpop.f32.mrf.mxu0  ;;  %v9058_v13 = vld [vmem:[#allocation2 + $0xd74] sm:$0xf0] }
 0x6de   :  { %v5901_v36 = vpop.f32.mrf.mxu1 }
 0x6df   :  { %v5902_v39 = vadd.f32 %v5901_v36, %v5172_v52  ;;  %6305 = vmatmul.bf16.gmra.mxu3 %v9049_v2  ;;  %5216 = vmatmul.bf16.gmra.mxu0 %v8181_v47  ;;  %v9495_v52 = vld [vmem:[#allocation2 + $0xd6c] sm:$0xf]  ;;  %v8182_v36 = vld [vmem:[#allocation2 + $0x69c] sm:$0xf0] }
 0x6e1   :  { %v6631_v23 = vadd.f32 %v6630_v48, %v5902_v39  ;;  %5940 = vmatmul.bf16.gmra.mxu1 %v8173_v19  ;;  %v9276_v19 = vld [vmem:[#allocation2 + $0x694] sm:$0xf]  ;;  %v9061_v39 = vor.u32 %v9495_v52, %v9058_v13 }
 0x6e2   :  { %v13031_v62 = vpop.f32.mrf.mxu3  ;;  %v6632_v8 = vpop.f32.mrf.mxu2 }
 0x6e3   :  { %14210 = vst [vmem:[#allocation87_spill] sm:$0xff] %v13031_v62 }
 0x6e4   :  { %7167 = vst.msk [vmem:[%s13883_s4 + $0x3d0] sm:$0xff] %vm81_vm0, %v6631_v23  ;;  %v5179_v55 = vpop.f32.mrf.mxu0 }
 0x6e6   :  { %v5903_v49 = vpop.f32.mrf.mxu1 }
 0x6e7   :  { %v5904_v4 = vadd.f32 %v5903_v49, %v5174_v29  ;;  %6674 = vmatmul.bf16.gmra.mxu2 %v8189_v56  ;;  %v8185_v29 = vor.u32 %v9276_v19, %v8182_v36  ;;  %v8200_v49 = vld [vmem:[#allocation2 + $0x6b0] sm:$0xf]  ;;  %v8204_v19 = vld [vmem:[#allocation2 + $0x6c0] sm:$0xf]  ;;  %v9283_v36 = vld [vmem:[#allocation2 + $0x6c8] sm:$0xf0] }
 0x6e9   :  { %v6633_v2 = vadd.f32 %v6632_v8, %v5904_v4  ;;  %v9281_v8 = vld [vmem:[#allocation2 + $0x6b8] sm:$0xf0] }
 0x6ea   :  { %v13037_v48 = vpop.f32.mrf.mxu3  ;;  %v6635_v47 = vpop.f32.mrf.mxu2  ;;  %v8201_v52 = vor.u32 %v9281_v8, %v8200_v49  ;;  %v8205_v49 = vor.u32 %v9283_v36, %v8204_v19 }
 0x6eb   :  { %14211 = vst [vmem:[#allocation88_spill] sm:$0xff] %v13037_v48 }
 0x6ec   :  { %7168 = vst.msk [vmem:[%s13883_s4 + $0x3d8] sm:$0xff] %vm81_vm0, %v6633_v2  ;;  %v5182_v45 = vpop.f32.mrf.mxu0  ;;  %v9392_v2 = vld [vmem:[#allocation2 + $0xa30] sm:$0xf0] }
 0x6ee   :  { %v5906_v23 = vpop.f32.mrf.mxu1 }
 0x6ef   :  { %v5907_v56 = vadd.f32 %v5906_v23, %v5177_v7  ;;  %6310 = vmatmul.bf16.gmra.mxu3 %v9061_v39  ;;  %5221 = vmatmul.bf16.gmra.mxu0 %v8193_v9  ;;  %v8644_v7 = vld [vmem:[#allocation2 + $0xa28] sm:$0xf]  ;;  %v8194_v23 = vld [vmem:[#allocation2 + $0x6b4] sm:$0xf0] }
 0x6f1   :  { %v6636_v4 = vadd.f32 %v6635_v47, %v5907_v56  ;;  %5945 = vmatmul.bf16.gmra.mxu1 %v8185_v29  ;;  %v9279_v29 = vld [vmem:[#allocation2 + $0x6ac] sm:$0xf]  ;;  %v8645_v56 = vor.u32 %v9392_v2, %v8644_v7 }
 0x6f2   :  { %v13043_v48 = vpop.f32.mrf.mxu3  ;;  %v6637_v62 = vpop.f32.mrf.mxu2 }
 0x6f3   :  { %14212 = vst [vmem:[#allocation89_spill] sm:$0xff] %v13043_v48 }
 0x6f4   :  { %7169 = vst.msk [vmem:[%s13883_s4 + $0x3e0] sm:$0xff] %vm81_vm0, %v6636_v4  ;;  %v5184_v13 = vpop.f32.mrf.mxu0 }
 0x6f6   :  { %v5908_v25 = vpop.f32.mrf.mxu1 }
 0x6f7   :  { %v5909_v58 = vadd.f32 %v5908_v25, %v5179_v55  ;;  %6679 = vmatmul.bf16.gmra.mxu2 %v8201_v52  ;;  %v8197_v55 = vor.u32 %v9279_v29, %v8194_v23  ;;  %v8212_v25 = vld [vmem:[#allocation2 + $0x6c8] sm:$0xf]  ;;  %v8216_v29 = vld [vmem:[#allocation2 + $0x6d8] sm:$0xf]  ;;  %v9286_v23 = vld [vmem:[#allocation2 + $0x6e0] sm:$0xf0] }
 0x6f9   :  { %v6638_v39 = vadd.f32 %v6637_v62, %v5909_v58  ;;  %v9284_v62 = vld [vmem:[#allocation2 + $0x6d0] sm:$0xf0] }
 0x6fa   :  { %v13049_v47 = vpop.f32.mrf.mxu3  ;;  %v6640_v9 = vpop.f32.mrf.mxu2  ;;  %v8213_v7 = vor.u32 %v9284_v62, %v8212_v25  ;;  %v8217_v25 = vor.u32 %v9286_v23, %v8216_v29 }
 0x6fb   :  { %14213 = vst [vmem:[#allocation90_spill] sm:$0xff] %v13049_v47 }
 0x6fc   :  { %7170 = vst.msk [vmem:[%s13883_s4 + $0x3e8] sm:$0xff] %vm81_vm0, %v6638_v39  ;;  %v5187_v8 = vpop.f32.mrf.mxu0  ;;  %v9395_v39 = vld [vmem:[#allocation2 + $0xa48] sm:$0xf0] }
 0x6fe   :  { %v5911_v4 = vpop.f32.mrf.mxu1 }
 0x6ff   :  { %v5912_v52 = vadd.f32 %v5911_v4, %v5182_v45  ;;  %6864 = vmatmul.bf16.vlgmr.msra.gmra.mxu3 %v8645_v56  ;;  %5226 = vmatmul.bf16.gmra.mxu0 %v8205_v49  ;;  %v8656_v45 = vld [vmem:[#allocation2 + $0xa40] sm:$0xf]  ;;  %v8206_v4 = vld [vmem:[#allocation2 + $0x6cc] sm:$0xf0] }
 0x701   :  { %v6641_v58 = vadd.f32 %v6640_v9, %v5912_v52  ;;  %5950 = vmatmul.bf16.gmra.mxu1 %v8197_v55  ;;  %v9282_v55 = vld [vmem:[#allocation2 + $0x6c4] sm:$0xf]  ;;  %v8657_v52 = vor.u32 %v9395_v39, %v8656_v45 }
 0x702   :  { %v13055_v47 = vpop.f32.mrf.mxu3  ;;  %v6642_v48 = vpop.f32.mrf.mxu2 }
 0x703   :  { %14214 = vst [vmem:[#allocation91_spill] sm:$0xff] %v13055_v47 }
 0x704   :  { %7171 = vst.msk [vmem:[%s13883_s4 + $0x3f0] sm:$0xff] %vm81_vm0, %v6641_v58  ;;  %v5189_v2 = vpop.f32.mrf.mxu0 }
 0x706   :  { %v5913_v19 = vpop.f32.mrf.mxu1 }
 0x707   :  { %v5914_v36 = vadd.f32 %v5913_v19, %v5184_v13  ;;  %6684 = vmatmul.bf16.gmra.mxu2 %v8213_v7  ;;  %v8209_v13 = vor.u32 %v9282_v55, %v8206_v4  ;;  %v8224_v19 = vld [vmem:[#allocation2 + $0x6e0] sm:$0xf]  ;;  %v8228_v55 = vld [vmem:[#allocation2 + $0x6f0] sm:$0xf]  ;;  %v9289_v4 = vld [vmem:[#allocation2 + $0x6f8] sm:$0xf0] }
 0x709   :  { %v6643_v56 = vadd.f32 %v6642_v48, %v5914_v36  ;;  %v9287_v48 = vld [vmem:[#allocation2 + $0x6e8] sm:$0xf0] }
 0x70a   :  { %v13061_v9 = vpop.f32.mrf.mxu3  ;;  %v6645_v49 = vpop.f32.mrf.mxu2  ;;  %v8225_v45 = vor.u32 %v9287_v48, %v8224_v19  ;;  %v8229_v19 = vor.u32 %v9289_v4, %v8228_v55 }
 0x70b   :  { %14215 = vst [vmem:[#allocation92_spill] sm:$0xff] %v13061_v9 }
 0x70c   :  { %7172 = vst.msk [vmem:[%s13883_s4 + $0x3f8] sm:$0xff] %vm81_vm0, %v6643_v56  ;;  %v5192_v62 = vpop.f32.mrf.mxu0  ;;  %v9398_v56 = vld [vmem:[#allocation2 + $0xa60] sm:$0xf0] }
 0x70e   :  { %v5916_v58 = vpop.f32.mrf.mxu1 }
 0x70f   :  { %v5917_v7 = vadd.f32 %v5916_v58, %v5187_v8  ;;  %6869 = vmatmul.bf16.gmra.mxu3 %v8657_v52  ;;  %5231 = vmatmul.bf16.gmra.mxu0 %v8217_v25  ;;  %v8668_v8 = vld [vmem:[#allocation2 + $0xa58] sm:$0xf]  ;;  %v8218_v58 = vld [vmem:[#allocation2 + $0x6e4] sm:$0xf0] }
 0x711   :  { %v6646_v36 = vadd.f32 %v6645_v49, %v5917_v7  ;;  %5955 = vmatmul.bf16.gmra.mxu1 %v8209_v13  ;;  %v9285_v13 = vld [vmem:[#allocation2 + $0x6dc] sm:$0xf]  ;;  %v8669_v7 = vor.u32 %v9398_v56, %v8668_v8 }
 0x712   :  { %v13067_v9 = vpop.f32.mrf.mxu3  ;;  %v6647_v47 = vpop.f32.mrf.mxu2 }
 0x713   :  { %14216 = vst [vmem:[#allocation93_spill] sm:$0xff] %v13067_v9 }
 0x714   :  { %7173 = vst.msk [vmem:[%s13883_s4 + $0x400] sm:$0xff] %vm81_vm0, %v6646_v36  ;;  %v5194_v39 = vpop.f32.mrf.mxu0 }
 0x716   :  { %v5918_v29 = vpop.f32.mrf.mxu1 }
 0x717   :  { %v5919_v23 = vadd.f32 %v5918_v29, %v5189_v2  ;;  %6689 = vmatmul.bf16.gmra.mxu2 %v8225_v45  ;;  %v8221_v2 = vor.u32 %v9285_v13, %v8218_v58  ;;  %v8236_v29 = vld [vmem:[#allocation2 + $0x6f8] sm:$0xf]  ;;  %v8240_v13 = vld [vmem:[#allocation2 + $0x708] sm:$0xf]  ;;  %v9292_v58 = vld [vmem:[#allocation2 + $0x710] sm:$0xf0] }
 0x719   :  { %v6648_v52 = vadd.f32 %v6647_v47, %v5919_v23  ;;  %v9290_v47 = vld [vmem:[#allocation2 + $0x700] sm:$0xf0] }
 0x71a   :  { %v13073_v49 = vpop.f32.mrf.mxu3  ;;  %v6650_v25 = vpop.f32.mrf.mxu2  ;;  %v8237_v8 = vor.u32 %v9290_v47, %v8236_v29  ;;  %v8241_v29 = vor.u32 %v9292_v58, %v8240_v13 }
 0x71b   :  { %14217 = vst [vmem:[#allocation94_spill] sm:$0xff] %v13073_v49 }
 0x71c   :  { %7174 = vst.msk [vmem:[%s13883_s4 + $0x408] sm:$0xff] %vm81_vm0, %v6648_v52  ;;  %v5197_v48 = vpop.f32.mrf.mxu0  ;;  %v9401_v52 = vld [vmem:[#allocation2 + $0xa78] sm:$0xf0] }
 0x71e   :  { %v5921_v36 = vpop.f32.mrf.mxu1 }
 0x71f   :  { %v5922_v45 = vadd.f32 %v5921_v36, %v5192_v62  ;;  %6874 = vmatmul.bf16.gmra.mxu3 %v8669_v7  ;;  %5236 = vmatmul.bf16.gmra.mxu0 %v8229_v19  ;;  %v8680_v62 = vld [vmem:[#allocation2 + $0xa70] sm:$0xf]  ;;  %v8230_v36 = vld [vmem:[#allocation2 + $0x6fc] sm:$0xf0] }
 0x721   :  { %v6651_v23 = vadd.f32 %v6650_v25, %v5922_v45  ;;  %5960 = vmatmul.bf16.gmra.mxu1 %v8221_v2  ;;  %v9288_v2 = vld [vmem:[#allocation2 + $0x6f4] sm:$0xf]  ;;  %v8681_v45 = vor.u32 %v9401_v52, %v8680_v62 }
 0x722   :  { %v13079_v49 = vpop.f32.mrf.mxu3  ;;  %v6652_v9 = vpop.f32.mrf.mxu2 }
 0x723   :  { %14218 = vst [vmem:[#allocation95_spill] sm:$0xff] %v13079_v49 }
 0x724   :  { %7175 = vst.msk [vmem:[%s13883_s4 + $0x410] sm:$0xff] %vm81_vm0, %v6651_v23  ;;  %v5199_v56 = vpop.f32.mrf.mxu0 }
 0x726   :  { %v5923_v55 = vpop.f32.mrf.mxu1 }
 0x727   :  { %v5924_v4 = vadd.f32 %v5923_v55, %v5194_v39  ;;  %6694 = vmatmul.bf16.gmra.mxu2 %v8237_v8  ;;  %v8233_v39 = vor.u32 %v9288_v2, %v8230_v36  ;;  %v8248_v55 = vld [vmem:[#allocation2 + $0x710] sm:$0xf]  ;;  %v8252_v2 = vld [vmem:[#allocation2 + $0x720] sm:$0xf]  ;;  %v9295_v36 = vld [vmem:[#allocation2 + $0x728] sm:$0xf0] }
 0x729   :  { %v6653_v7 = vadd.f32 %v6652_v9, %v5924_v4  ;;  %v9293_v9 = vld [vmem:[#allocation2 + $0x718] sm:$0xf0] }
 0x72a   :  { %v13085_v25 = vpop.f32.mrf.mxu3  ;;  %v6655_v19 = vpop.f32.mrf.mxu2  ;;  %v8249_v62 = vor.u32 %v9293_v9, %v8248_v55  ;;  %v8253_v55 = vor.u32 %v9295_v36, %v8252_v2 }
 0x72b   :  { %14219 = vst [vmem:[#allocation96_spill] sm:$0xff] %v13085_v25 }
 0x72c   :  { %7176 = vst.msk [vmem:[%s13883_s4 + $0x418] sm:$0xff] %vm81_vm0, %v6653_v7  ;;  %v5202_v47 = vpop.f32.mrf.mxu0  ;;  %v9404_v7 = vld [vmem:[#allocation2 + $0xa90] sm:$0xf0] }
 0x72e   :  { %v5926_v23 = vpop.f32.mrf.mxu1 }
 0x72f   :  { %v5927_v8 = vadd.f32 %v5926_v23, %v5197_v48  ;;  %6879 = vmatmul.bf16.gmra.mxu3 %v8681_v45  ;;  %5241 = vmatmul.bf16.gmra.mxu0 %v8241_v29  ;;  %v8692_v48 = vld [vmem:[#allocation2 + $0xa88] sm:$0xf]  ;;  %v8242_v23 = vld [vmem:[#allocation2 + $0x714] sm:$0xf0] }
 0x731   :  { %v6656_v4 = vadd.f32 %v6655_v19, %v5927_v8  ;;  %5965 = vmatmul.bf16.gmra.mxu1 %v8233_v39  ;;  %v9291_v39 = vld [vmem:[#allocation2 + $0x70c] sm:$0xf]  ;;  %v8693_v8 = vor.u32 %v9404_v7, %v8692_v48 }
 0x732   :  { %v13091_v25 = vpop.f32.mrf.mxu3  ;;  %v6657_v49 = vpop.f32.mrf.mxu2 }
 0x733   :  { %14220 = vst [vmem:[#allocation97_spill] sm:$0xff] %v13091_v25 }
 0x734   :  { %7177 = vst.msk [vmem:[%s13883_s4 + $0x420] sm:$0xff] %vm81_vm0, %v6656_v4  ;;  %v5204_v52 = vpop.f32.mrf.mxu0 }
 0x736   :  { %v5928_v13 = vpop.f32.mrf.mxu1 }
 0x737   :  { %v5929_v58 = vadd.f32 %v5928_v13, %v5199_v56  ;;  %6699 = vmatmul.bf16.gmra.mxu2 %v8249_v62  ;;  %v8245_v56 = vor.u32 %v9291_v39, %v8242_v23  ;;  %v8260_v13 = vld [vmem:[#allocation2 + $0x728] sm:$0xf]  ;;  %v8264_v39 = vld [vmem:[#allocation2 + $0x738] sm:$0xf]  ;;  %v9298_v23 = vld [vmem:[#allocation2 + $0x740] sm:$0xf0] }
 0x739   :  { %v6658_v45 = vadd.f32 %v6657_v49, %v5929_v58  ;;  %v9296_v49 = vld [vmem:[#allocation2 + $0x730] sm:$0xf0] }
 0x73a   :  { %v13097_v19 = vpop.f32.mrf.mxu3  ;;  %v6660_v29 = vpop.f32.mrf.mxu2  ;;  %v8261_v48 = vor.u32 %v9296_v49, %v8260_v13  ;;  %v8265_v13 = vor.u32 %v9298_v23, %v8264_v39 }
 0x73b   :  { %14221 = vst [vmem:[#allocation98_spill] sm:$0xff] %v13097_v19 }
 0x73c   :  { %7178 = vst.msk [vmem:[%s13883_s4 + $0x428] sm:$0xff] %vm81_vm0, %v6658_v45  ;;  %v5207_v9 = vpop.f32.mrf.mxu0  ;;  %v9407_v45 = vld [vmem:[#allocation2 + $0xaa8] sm:$0xf0] }
 0x73e   :  { %v5931_v4 = vpop.f32.mrf.mxu1 }
 0x73f   :  { %v5932_v62 = vadd.f32 %v5931_v4, %v5202_v47  ;;  %6884 = vmatmul.bf16.gmra.mxu3 %v8693_v8  ;;  %5246 = vmatmul.bf16.gmra.mxu0 %v8253_v55  ;;  %v8704_v47 = vld [vmem:[#allocation2 + $0xaa0] sm:$0xf]  ;;  %v8254_v4 = vld [vmem:[#allocation2 + $0x72c] sm:$0xf0] }
 0x741   :  { %v6661_v58 = vadd.f32 %v6660_v29, %v5932_v62  ;;  %5970 = vmatmul.bf16.gmra.mxu1 %v8245_v56  ;;  %v9294_v56 = vld [vmem:[#allocation2 + $0x724] sm:$0xf]  ;;  %v8705_v62 = vor.u32 %v9407_v45, %v8704_v47 }
 0x742   :  { %v13103_v19 = vpop.f32.mrf.mxu3  ;;  %v6662_v25 = vpop.f32.mrf.mxu2 }
 0x743   :  { %14222 = vst [vmem:[#allocation99_spill] sm:$0xff] %v13103_v19 }
 0x744   :  { %7179 = vst.msk [vmem:[%s13883_s4 + $0x430] sm:$0xff] %vm81_vm0, %v6661_v58  ;;  %v5209_v7 = vpop.f32.mrf.mxu0 }
 0x746   :  { %v5933_v2 = vpop.f32.mrf.mxu1 }
 0x747   :  { %v5934_v36 = vadd.f32 %v5933_v2, %v5204_v52  ;;  %6704 = vmatmul.bf16.gmra.mxu2 %v8261_v48  ;;  %v8257_v52 = vor.u32 %v9294_v56, %v8254_v4  ;;  %v8272_v2 = vld [vmem:[#allocation2 + $0x740] sm:$0xf]  ;;  %v8276_v56 = vld [vmem:[#allocation2 + $0x750] sm:$0xf]  ;;  %v9301_v4 = vld [vmem:[#allocation2 + $0x758] sm:$0xf0] }
 0x749   :  { %v6663_v8 = vadd.f32 %v6662_v25, %v5934_v36  ;;  %v9299_v25 = vld [vmem:[#allocation2 + $0x748] sm:$0xf0] }
 0x74a   :  { %v13109_v29 = vpop.f32.mrf.mxu3  ;;  %v6665_v55 = vpop.f32.mrf.mxu2  ;;  %v8273_v47 = vor.u32 %v9299_v25, %v8272_v2  ;;  %v8277_v2 = vor.u32 %v9301_v4, %v8276_v56 }
 0x74b   :  { %14223 = vst [vmem:[#allocation100_spill] sm:$0xff] %v13109_v29 }
 0x74c   :  { %7180 = vst.msk [vmem:[%s13883_s4 + $0x438] sm:$0xff] %vm81_vm0, %v6663_v8  ;;  %v5212_v49 = vpop.f32.mrf.mxu0  ;;  %v9410_v8 = vld [vmem:[#allocation2 + $0xac0] sm:$0xf0] }
 0x74e   :  { %v5936_v58 = vpop.f32.mrf.mxu1 }
 0x74f   :  { %v5937_v48 = vadd.f32 %v5936_v58, %v5207_v9  ;;  %6889 = vmatmul.bf16.gmra.mxu3 %v8705_v62  ;;  %5251 = vmatmul.bf16.gmra.mxu0 %v8265_v13  ;;  %v8716_v9 = vld [vmem:[#allocation2 + $0xab8] sm:$0xf]  ;;  %v8266_v58 = vld [vmem:[#allocation2 + $0x744] sm:$0xf0] }
 0x751   :  { %v6666_v36 = vadd.f32 %v6665_v55, %v5937_v48  ;;  %5975 = vmatmul.bf16.gmra.mxu1 %v8257_v52  ;;  %v9297_v52 = vld [vmem:[#allocation2 + $0x73c] sm:$0xf]  ;;  %v8717_v48 = vor.u32 %v9410_v8, %v8716_v9 }
 0x752   :  { %v13115_v29 = vpop.f32.mrf.mxu3  ;;  %v6667_v19 = vpop.f32.mrf.mxu2 }
 0x753   :  { %14224 = vst [vmem:[#allocation101_spill] sm:$0xff] %v13115_v29 }
 0x754   :  { %7181 = vst.msk [vmem:[%s13883_s4 + $0x440] sm:$0xff] %vm81_vm0, %v6666_v36  ;;  %v5214_v45 = vpop.f32.mrf.mxu0 }
 0x756   :  { %v5938_v39 = vpop.f32.mrf.mxu1 }
 0x757   :  { %v5939_v23 = vadd.f32 %v5938_v39, %v5209_v7  ;;  %6709 = vmatmul.bf16.gmra.mxu2 %v8273_v47  ;;  %v8269_v7 = vor.u32 %v9297_v52, %v8266_v58  ;;  %v8284_v39 = vld [vmem:[#allocation2 + $0x758] sm:$0xf]  ;;  %v8288_v52 = vld [vmem:[#allocation2 + $0x768] sm:$0xf]  ;;  %v9304_v58 = vld [vmem:[#allocation2 + $0x770] sm:$0xf0] }
 0x759   :  { %v6668_v62 = vadd.f32 %v6667_v19, %v5939_v23  ;;  %v9302_v19 = vld [vmem:[#allocation2 + $0x760] sm:$0xf0] }
 0x75a   :  { %v13121_v55 = vpop.f32.mrf.mxu3  ;;  %v6670_v13 = vpop.f32.mrf.mxu2  ;;  %v8285_v9 = vor.u32 %v9302_v19, %v8284_v39  ;;  %v8289_v39 = vor.u32 %v9304_v58, %v8288_v52 }
 0x75b   :  { %14225 = vst [vmem:[#allocation102_spill] sm:$0xff] %v13121_v55 }
 0x75c   :  { %7182 = vst.msk [vmem:[%s13883_s4 + $0x448] sm:$0xff] %vm81_vm0, %v6668_v62  ;;  %v5217_v25 = vpop.f32.mrf.mxu0  ;;  %v9413_v62 = vld [vmem:[#allocation2 + $0xad8] sm:$0xf0] }
 0x75e   :  { %v5941_v36 = vpop.f32.mrf.mxu1 }
 0x75f   :  { %v5942_v47 = vadd.f32 %v5941_v36, %v5212_v49  ;;  %6894 = vmatmul.bf16.gmra.mxu3 %v8717_v48  ;;  %5256 = vmatmul.bf16.gmra.mxu0 %v8277_v2  ;;  %v8728_v49 = vld [vmem:[#allocation2 + $0xad0] sm:$0xf]  ;;  %v8278_v36 = vld [vmem:[#allocation2 + $0x75c] sm:$0xf0] }
 0x761   :  { %v6671_v23 = vadd.f32 %v6670_v13, %v5942_v47  ;;  %5980 = vmatmul.bf16.gmra.mxu1 %v8269_v7  ;;  %v9300_v7 = vld [vmem:[#allocation2 + $0x754] sm:$0xf]  ;;  %v8729_v47 = vor.u32 %v9413_v62, %v8728_v49 }
 0x762   :  { %v13127_v55 = vpop.f32.mrf.mxu3  ;;  %v6672_v29 = vpop.f32.mrf.mxu2 }
 0x763   :  { %14226 = vst [vmem:[#allocation103_spill] sm:$0xff] %v13127_v55 }
 0x764   :  { %7183 = vst.msk [vmem:[%s13883_s4 + $0x450] sm:$0xff] %vm81_vm0, %v6671_v23  ;;  %v5219_v8 = vpop.f32.mrf.mxu0 }
 0x766   :  { %v5943_v56 = vpop.f32.mrf.mxu1 }
 0x767   :  { %v5944_v4 = vadd.f32 %v5943_v56, %v5214_v45  ;;  %6714 = vmatmul.bf16.gmra.mxu2 %v8285_v9  ;;  %v8281_v45 = vor.u32 %v9300_v7, %v8278_v36  ;;  %v8296_v56 = vld [vmem:[#allocation2 + $0x770] sm:$0xf]  ;;  %v8300_v7 = vld [vmem:[#allocation2 + $0x780] sm:$0xf]  ;;  %v9307_v36 = vld [vmem:[#allocation2 + $0x788] sm:$0xf0] }
 0x769   :  { %v6673_v48 = vadd.f32 %v6672_v29, %v5944_v4  ;;  %v9305_v29 = vld [vmem:[#allocation2 + $0x778] sm:$0xf0] }
 0x76a   :  { %v13133_v13 = vpop.f32.mrf.mxu3  ;;  %v6675_v2 = vpop.f32.mrf.mxu2  ;;  %v8297_v49 = vor.u32 %v9305_v29, %v8296_v56  ;;  %v8301_v56 = vor.u32 %v9307_v36, %v8300_v7 }
 0x76b   :  { %14227 = vst [vmem:[#allocation104_spill] sm:$0xff] %v13133_v13 }
 0x76c   :  { %7184 = vst.msk [vmem:[%s13883_s4 + $0x458] sm:$0xff] %vm81_vm0, %v6673_v48  ;;  %v5222_v19 = vpop.f32.mrf.mxu0  ;;  %v9416_v48 = vld [vmem:[#allocation2 + $0xaf0] sm:$0xf0] }
 0x76e   :  { %v5946_v23 = vpop.f32.mrf.mxu1 }
 0x76f   :  { %v5947_v9 = vadd.f32 %v5946_v23, %v5217_v25  ;;  %6899 = vmatmul.bf16.gmra.mxu3 %v8729_v47  ;;  %5261 = vmatmul.bf16.gmra.mxu0 %v8289_v39  ;;  %v8740_v25 = vld [vmem:[#allocation2 + $0xae8] sm:$0xf]  ;;  %v8290_v23 = vld [vmem:[#allocation2 + $0x774] sm:$0xf0] }
 0x771   :  { %v6676_v4 = vadd.f32 %v6675_v2, %v5947_v9  ;;  %5985 = vmatmul.bf16.gmra.mxu1 %v8281_v45  ;;  %v9303_v45 = vld [vmem:[#allocation2 + $0x76c] sm:$0xf]  ;;  %v8741_v9 = vor.u32 %v9416_v48, %v8740_v25 }
 0x772   :  { %v13139_v13 = vpop.f32.mrf.mxu3  ;;  %v6677_v55 = vpop.f32.mrf.mxu2 }
 0x773   :  { %14228 = vst [vmem:[#allocation105_spill] sm:$0xff] %v13139_v13 }
 0x774   :  { %7185 = vst.msk [vmem:[%s13883_s4 + $0x460] sm:$0xff] %vm81_vm0, %v6676_v4  ;;  %v5224_v62 = vpop.f32.mrf.mxu0 }
 0x776   :  { %v5948_v52 = vpop.f32.mrf.mxu1 }
 0x777   :  { %v5949_v58 = vadd.f32 %v5948_v52, %v5219_v8  ;;  %6719 = vmatmul.bf16.gmra.mxu2 %v8297_v49  ;;  %v8293_v8 = vor.u32 %v9303_v45, %v8290_v23  ;;  %v8308_v52 = vld [vmem:[#allocation2 + $0x788] sm:$0xf]  ;;  %v6139_v45 = vadd.f32 %v12725_v60, %v12297_v37 }
 0x779   :  { %v6678_v47 = vadd.f32 %v6677_v55, %v5949_v58  ;;  %v9308_v55 = vld [vmem:[#allocation2 + $0x790] sm:$0xf0]  ;;  %v6137_v58 = vadd.f32 %v12719_v24, %v12295_v42  ;;  %v8752_v42 = vld [vmem:[#allocation2 + $0xb00] sm:$0xf]  ;;  %v9419_v24 = vld [vmem:[#allocation2 + $0xb08] sm:$0xf0] }
 0x77a   :  { %v13145_v2 = vpop.f32.mrf.mxu3  ;;  %v6680_v39 = vpop.f32.mrf.mxu2  ;;  %v8309_v48 = vor.u32 %v9308_v55, %v8308_v52  ;;  %v8320_v52 = vld [vmem:[#allocation2 + $0x7a0] sm:$0xf]  ;;  %v9311_v55 = vld [vmem:[#allocation2 + $0x7a8] sm:$0xf0] }
 0x77b   :  { %14229 = vst [vmem:[#allocation106_spill] sm:$0xff] %v13145_v2 }
 0x77c   :  { %7186 = vst.msk [vmem:[%s13883_s4 + $0x468] sm:$0xff] %vm81_vm0, %v6678_v47  ;;  %v5227_v29 = vpop.f32.mrf.mxu0  ;;  %v8312_v47 = vld [vmem:[#allocation2 + $0x798] sm:$0xf] }
 0x77e   :  { %v5951_v4 = vpop.f32.mrf.mxu1 }
 0x77f   :  { %v5952_v49 = vadd.f32 %v5951_v4, %v5222_v19  ;;  %6904 = vmatmul.bf16.gmra.mxu3 %v8741_v9  ;;  %5266 = vmatmul.bf16.gmra.mxu0 %v8301_v56  ;;  %v9306_v9 = vld [vmem:[#allocation2 + $0x784] sm:$0xf]  ;;  %v8302_v56 = vld [vmem:[#allocation2 + $0x78c] sm:$0xf0] }
 0x780   :  { %v8305_v37 = vor.u32 %v9306_v9, %v8302_v56  ;;  %v9309_v56 = vld [vmem:[#allocation2 + $0x79c] sm:$0xf] }
 0x781   :  { %v6681_v2 = vadd.f32 %v6680_v39, %v5952_v49  ;;  %5990 = vmatmul.bf16.gmra.mxu1 %v8293_v8  ;;  %v9310_v39 = vld [vmem:[#allocation2 + $0x7a0] sm:$0xf0] }
 0x782   :  { %v6682_v13 = vpop.f32.mrf.mxu2  ;;  %v6865_v50 = vpop.f32.mrf.mxu3  ;;  %v8313_v4 = vor.u32 %v9310_v39, %v8312_v47  ;;  %v8324_v39 = vld [vmem:[#allocation2 + $0x7b0] sm:$0xf] }
 0x783   :  { %7187 = vst.msk [vmem:[%s13883_s4 + $0x470] sm:$0xff] %vm81_vm0, %v6681_v2  ;;  %v6866_v25 = vadd.f32 %v6865_v50, %v6137_v58  ;;  %v6142_v58 = vadd.f32 %v12731_v15, %v12299_v40  ;;  %v8764_v40 = vld [vmem:[#allocation2 + $0xb18] sm:$0xf]  ;;  %v9422_v15 = vld [vmem:[#allocation2 + $0xb20] sm:$0xf0] }
 0x784   :  { %v5229_v7 = vpop.f32.mrf.mxu0 }
 0x785   :  { %7261 = vst.msk [vmem:[%s13883_s4 + $0x6c0] sm:$0xff] %vm81_vm0, %v6866_v25 }
 0x786   :  { %v5953_v19 = vpop.f32.mrf.mxu1 }
 0x787   :  { %v5954_v36 = vadd.f32 %v5953_v19, %v5224_v62  ;;  %6724 = vmatmul.bf16.gmra.mxu2 %v8309_v48  ;;  %v8753_v62 = vor.u32 %v9419_v24, %v8752_v42  ;;  %v8321_v42 = vor.u32 %v9311_v55, %v8320_v52  ;;  %v9314_v52 = vld [vmem:[#allocation2 + $0x7c0] sm:$0xf0]  ;;  %v6147_v55 = vadd.f32 %v12743_v22, %v12311_v43  ;;  %v8776_v43 = vld [vmem:[#allocation2 + $0xb30] sm:$0xf]  ;;  %v9425_v22 = vld [vmem:[#allocation2 + $0xb38] sm:$0xf0] }
 0x789   :  { %v6683_v23 = vadd.f32 %v6682_v13, %v5954_v36 }
 0x78a   :  { %v6685_v2 = vpop.f32.mrf.mxu2  ;;  %v6867_v50 = vpop.f32.mrf.mxu3 }
 0x78b   :  { %7188 = vst.msk [vmem:[%s13883_s4 + $0x478] sm:$0xff] %vm81_vm0, %v6683_v23  ;;  %v6868_v8 = vadd.f32 %v6867_v50, %v6139_v45  ;;  %v9313_v45 = vld [vmem:[#allocation2 + $0x7b8] sm:$0xf0]  ;;  %v6144_v23 = vadd.f32 %v12737_v0, %v12305_v12 }
 0x78c   :  { %v5232_v49 = vpop.f32.mrf.mxu0 }
 0x78d   :  { %7262 = vst.msk [vmem:[%s13883_s4 + $0x6c8] sm:$0xff] %vm81_vm0, %v6868_v8  ;;  %v8314_v8 = vld [vmem:[#allocation2 + $0x7a4] sm:$0xf0] }
 0x78e   :  { %v5956_v60 = vpop.f32.mrf.mxu1  ;;  %v8317_v12 = vor.u32 %v9309_v56, %v8314_v8 }
 0x78f   :  { %v5957_v13 = vadd.f32 %v5956_v60, %v5227_v29  ;;  %6909 = vmatmul.bf16.gmra.mxu3 %v8753_v62  ;;  %5271 = vmatmul.bf16.gmra.mxu0 %v8313_v4  ;;  %v8325_v4 = vor.u32 %v9313_v45, %v8324_v39 }
 0x791   :  { %v6686_v25 = vadd.f32 %v6685_v2, %v5957_v13  ;;  %5995 = vmatmul.bf16.gmra.mxu1 %v8305_v37  ;;  %v8332_v13 = vld [vmem:[#allocation2 + $0x7b8] sm:$0xf] }
 0x792   :  { %v6687_v48 = vpop.f32.mrf.mxu2  ;;  %v6870_v19 = vpop.f32.mrf.mxu3 }
 0x793   :  { %7189 = vst.msk [vmem:[%s13883_s4 + $0x480] sm:$0xff] %vm81_vm0, %v6686_v25  ;;  %v6871_v36 = vadd.f32 %v6870_v19, %v6142_v58 }
 0x794   :  { %v5234_v24 = vpop.f32.mrf.mxu0 }
 0x795   :  { %7263 = vst.msk [vmem:[%s13883_s4 + $0x6d0] sm:$0xff] %vm81_vm0, %v6871_v36  ;;  %v8333_v36 = vor.u32 %v9314_v52, %v8332_v13 }
 0x796   :  { %v5958_v29 = vpop.f32.mrf.mxu1 }
 0x797   :  { %v5959_v47 = vadd.f32 %v5958_v29, %v5229_v7  ;;  %6729 = vmatmul.bf16.gmra.mxu2 %v8321_v42  ;;  %v8765_v7 = vor.u32 %v9422_v15, %v8764_v40  ;;  %v9316_v40 = vld [vmem:[#allocation2 + $0x7d0] sm:$0xf0]  ;;  %v6149_v15 = vadd.f32 %v12749_v33, %v12317_v10 }
 0x799   :  { %v6688_v2 = vadd.f32 %v6687_v48, %v5959_v47  ;;  %v8336_v47 = vld [vmem:[#allocation2 + $0x7c8] sm:$0xf] }
 0x79a   :  { %v6690_v50 = vpop.f32.mrf.mxu2  ;;  %v6872_v9 = vpop.f32.mrf.mxu3  ;;  %v8337_v56 = vor.u32 %v9316_v40, %v8336_v47  ;;  %v8338_v47 = vld [vmem:[#allocation2 + $0x7d4] sm:$0xf0] }
 0x79b   :  { %7190 = vst.msk [vmem:[%s13883_s4 + $0x488] sm:$0xff] %vm81_vm0, %v6688_v2  ;;  %v6873_v62 = vadd.f32 %v6872_v9, %v6144_v23  ;;  %v9312_v2 = vld [vmem:[#allocation2 + $0x7b4] sm:$0xf] }
 0x79c   :  { %v5237_v37 = vpop.f32.mrf.mxu0 }
 0x79d   :  { %7264 = vst.msk [vmem:[%s13883_s4 + $0x6d8] sm:$0xff] %vm81_vm0, %v6873_v62 }
 0x79e   :  { %v5961_v0 = vpop.f32.mrf.mxu1 }
 0x79f   :  { %v5962_v60 = vadd.f32 %v5961_v0, %v5232_v49  ;;  %6914 = vmatmul.bf16.gmra.mxu3 %v8765_v7  ;;  %5276 = vmatmul.bf16.gmra.mxu0 %v8325_v4  ;;  %v8344_v7 = vld [vmem:[#allocation2 + $0x7d0] sm:$0xf]  ;;  %v9317_v4 = vld [vmem:[#allocation2 + $0x7d8] sm:$0xf0] }
 0x7a1   :  { %v6691_v58 = vadd.f32 %v6690_v50, %v5962_v60  ;;  %6000 = vmatmul.bf16.gmra.mxu1 %v8317_v12  ;;  %v8326_v50 = vld [vmem:[#allocation2 + $0x7bc] sm:$0xf0]  ;;  %v6152_v12 = vadd.f32 %v12755_v31, %v12323_v5  ;;  %v8788_v5 = vld [vmem:[#allocation2 + $0xb48] sm:$0xf]  ;;  %v9428_v31 = vld [vmem:[#allocation2 + $0xb50] sm:$0xf0] }
 0x7a2   :  { %v6692_v25 = vpop.f32.mrf.mxu2  ;;  %v6875_v48 = vpop.f32.mrf.mxu3  ;;  %v8329_v10 = vor.u32 %v9312_v2, %v8326_v50  ;;  %v9320_v2 = vld [vmem:[#allocation2 + $0x7f0] sm:$0xf0]  ;;  %v6157_v50 = vadd.f32 %v12767_v34, %v12335_v3  ;;  %v8800_v3 = vld [vmem:[#allocation2 + $0xb60] sm:$0xf]  ;;  %v9431_v34 = vld [vmem:[#allocation2 + $0xb68] sm:$0xf0] }
 0x7a3   :  { %7191 = vst.msk [vmem:[%s13883_s4 + $0x490] sm:$0xff] %vm81_vm0, %v6691_v58  ;;  %v6876_v19 = vadd.f32 %v6875_v48, %v6147_v55  ;;  %v8345_v55 = vor.u32 %v9317_v4, %v8344_v7  ;;  %v8348_v48 = vld [vmem:[#allocation2 + $0x7e0] sm:$0xf]  ;;  %v8360_v4 = vld [vmem:[#allocation2 + $0x7f8] sm:$0xf] }
 0x7a4   :  { %v5239_v42 = vpop.f32.mrf.mxu0 }
 0x7a5   :  { %7265 = vst.msk [vmem:[%s13883_s4 + $0x6e0] sm:$0xff] %vm81_vm0, %v6876_v19  ;;  %v9319_v19 = vld [vmem:[#allocation2 + $0x7e8] sm:$0xf0] }
 0x7a6   :  { %v5963_v49 = vpop.f32.mrf.mxu1 }
 0x7a7   :  { %v5964_v29 = vadd.f32 %v5963_v49, %v5234_v24  ;;  %6734 = vmatmul.bf16.gmra.mxu2 %v8333_v36  ;;  %v8777_v24 = vor.u32 %v9425_v22, %v8776_v43  ;;  %v6154_v36 = vadd.f32 %v12761_v14, %v12329_v1  ;;  %v9315_v22 = vld [vmem:[#allocation2 + $0x7cc] sm:$0xf] }
 0x7a8   :  { %v8341_v1 = vor.u32 %v9315_v22, %v8338_v47 }
 0x7a9   :  { %v6693_v39 = vadd.f32 %v6692_v25, %v5964_v29 }
 0x7aa   :  { %v6695_v45 = vpop.f32.mrf.mxu2  ;;  %v6877_v23 = vpop.f32.mrf.mxu3 }
 0x7ab   :  { %7192 = vst.msk [vmem:[%s13883_s4 + $0x498] sm:$0xff] %vm81_vm0, %v6693_v39  ;;  %v6878_v9 = vadd.f32 %v6877_v23, %v6149_v15  ;;  %v8349_v15 = vor.u32 %v9319_v19, %v8348_v48  ;;  %v8356_v23 = vld [vmem:[#allocation2 + $0x7e8] sm:$0xf]  ;;  %v8368_v19 = vld [vmem:[#allocation2 + $0x800] sm:$0xf] }
 0x7ac   :  { %v5242_v8 = vpop.f32.mrf.mxu0 }
 0x7ad   :  { %7266 = vst.msk [vmem:[%s13883_s4 + $0x6e8] sm:$0xff] %vm81_vm0, %v6878_v9 }
 0x7ae   :  { %v5966_v33 = vpop.f32.mrf.mxu1 }
 0x7af   :  { %v5967_v62 = vadd.f32 %v5966_v33, %v5237_v37  ;;  %6919 = vmatmul.bf16.gmra.mxu3 %v8777_v24  ;;  %5281 = vmatmul.bf16.gmra.mxu0 %v8337_v56  ;;  %v8357_v33 = vor.u32 %v9320_v2, %v8356_v23 }
 0x7b1   :  { %v6696_v0 = vadd.f32 %v6695_v45, %v5967_v62  ;;  %6005 = vmatmul.bf16.gmra.mxu1 %v8329_v10 }
 0x7b2   :  { %v6697_v60 = vpop.f32.mrf.mxu2  ;;  %v6880_v13 = vpop.f32.mrf.mxu3 }
 0x7b3   :  { %7193 = vst.msk [vmem:[%s13883_s4 + $0x4a0] sm:$0xff] %vm81_vm0, %v6696_v0  ;;  %v6881_v52 = vadd.f32 %v6880_v13, %v6152_v12  ;;  %v9322_v12 = vld [vmem:[#allocation2 + $0x800] sm:$0xf0]  ;;  %v6159_v0 = vadd.f32 %v12773_v26, %v12341_v17 }
 0x7b4   :  { %v5244_v58 = vpop.f32.mrf.mxu0 }
 0x7b5   :  { %7267 = vst.msk [vmem:[%s13883_s4 + $0x6f0] sm:$0xff] %vm81_vm0, %v6881_v52 }
 0x7b6   :  { %v5968_v37 = vpop.f32.mrf.mxu1 }
 0x7b7   :  { %v5969_v25 = vadd.f32 %v5968_v37, %v5239_v42  ;;  %6739 = vmatmul.bf16.gmra.mxu2 %v8345_v55  ;;  %v8789_v42 = vor.u32 %v9428_v31, %v8788_v5  ;;  %v9318_v55 = vld [vmem:[#allocation2 + $0x7e4] sm:$0xf]  ;;  %v8350_v37 = vld [vmem:[#allocation2 + $0x7ec] sm:$0xf0]  ;;  %v8361_v5 = vor.u32 %v9322_v12, %v8360_v4 }
 0x7b8   :  { %v8353_v17 = vor.u32 %v9318_v55, %v8350_v37 }
 0x7b9   :  { %v6698_v49 = vadd.f32 %v6697_v60, %v5969_v25 }
 0x7ba   :  { %v6700_v29 = vpop.f32.mrf.mxu2  ;;  %v6882_v43 = vpop.f32.mrf.mxu3 }
 0x7bb   :  { %7194 = vst.msk [vmem:[%s13883_s4 + $0x4a8] sm:$0xff] %vm81_vm0, %v6698_v49  ;;  %v6883_v40 = vadd.f32 %v6882_v43, %v6154_v36  ;;  %v9323_v36 = vld [vmem:[#allocation2 + $0x808] sm:$0xf0]  ;;  %v6162_v49 = vadd.f32 %v12779_v18, %v12347_v53  ;;  %v8812_v53 = vld [vmem:[#allocation2 + $0xb78] sm:$0xf] }
 0x7bc   :  { %v5247_v39 = vpop.f32.mrf.mxu0  ;;  %v9434_v18 = vld [vmem:[#allocation2 + $0xb80] sm:$0xf0] }
 0x7bd   :  { %7268 = vst.msk [vmem:[%s13883_s4 + $0x6f8] sm:$0xff] %vm81_vm0, %v6883_v40  ;;  %v8369_v40 = vor.u32 %v9323_v36, %v8368_v19  ;;  %v8374_v19 = vld [vmem:[#allocation2 + $0x81c] sm:$0xf0] }
 0x7be   :  { %v5971_v14 = vpop.f32.mrf.mxu1 }
 0x7bf   :  { %v5972_v45 = vadd.f32 %v5971_v14, %v5242_v8  ;;  %6924 = vmatmul.bf16.gmra.mxu3 %v8789_v42  ;;  %5286 = vmatmul.bf16.gmra.mxu0 %v8349_v15  ;;  %v9325_v14 = vld [vmem:[#allocation2 + $0x818] sm:$0xf0] }
 0x7c1   :  { %v6701_v9 = vadd.f32 %v6700_v29, %v5972_v45  ;;  %6010 = vmatmul.bf16.gmra.mxu1 %v8341_v1  ;;  %v8372_v1 = vld [vmem:[#allocation2 + $0x810] sm:$0xf]  ;;  %v6164_v45 = vadd.f32 %v12785_v57, %v12353_v44 }
 0x7c2   :  { %v6702_v24 = vpop.f32.mrf.mxu2  ;;  %v6885_v56 = vpop.f32.mrf.mxu3 }
 0x7c3   :  { %7195 = vst.msk [vmem:[%s13883_s4 + $0x4b0] sm:$0xff] %vm81_vm0, %v6701_v9  ;;  %v6886_v10 = vadd.f32 %v6885_v56, %v6157_v50  ;;  %v9321_v9 = vld [vmem:[#allocation2 + $0x7fc] sm:$0xf] }
 0x7c4   :  { %v5249_v62 = vpop.f32.mrf.mxu0 }
 0x7c5   :  { %7269 = vst.msk [vmem:[%s13883_s4 + $0x700] sm:$0xff] %vm81_vm0, %v6886_v10  ;;  %v8813_v10 = vor.u32 %v9434_v18, %v8812_v53 }
 0x7c6   :  { %v5973_v8 = vpop.f32.mrf.mxu1 }
 0x7c7   :  { %v5974_v7 = vadd.f32 %v5973_v8, %v5244_v58  ;;  %6744 = vmatmul.bf16.gmra.mxu2 %v8357_v33  ;;  %v8801_v58 = vor.u32 %v9431_v34, %v8800_v3  ;;  %v8373_v33 = vor.u32 %v9325_v14, %v8372_v1  ;;  %v9326_v3 = vld [vmem:[#allocation2 + $0x820] sm:$0xf0]  ;;  %v6167_v34 = vadd.f32 %v12791_v6, %v12359_v35  ;;  %v8824_v35 = vld [vmem:[#allocation2 + $0xb90] sm:$0xf]  ;;  %v9437_v6 = vld [vmem:[#allocation2 + $0xb98] sm:$0xf0] }
 0x7c9   :  { %v6703_v60 = vadd.f32 %v6702_v24, %v5974_v7  ;;  %v8362_v24 = vld [vmem:[#allocation2 + $0x804] sm:$0xf0]  ;;  %v8380_v7 = vld [vmem:[#allocation2 + $0x818] sm:$0xf] }
 0x7ca   :  { %v6705_v13 = vpop.f32.mrf.mxu2  ;;  %v6887_v52 = vpop.f32.mrf.mxu3  ;;  %v8365_v44 = vor.u32 %v9321_v9, %v8362_v24  ;;  %v6174_v9 = vadd.f32 %v12809_v41, %v12377_v51 }
 0x7cb   :  { %7196 = vst.msk [vmem:[%s13883_s4 + $0x4b8] sm:$0xff] %vm81_vm0, %v6703_v60  ;;  %v6888_v25 = vadd.f32 %v6887_v52, %v6159_v0 }
 0x7cc   :  { %v5252_v31 = vpop.f32.mrf.mxu0 }
 0x7cd   :  { %7270 = vst.msk [vmem:[%s13883_s4 + $0x708] sm:$0xff] %vm81_vm0, %v6888_v25  ;;  %v8384_v25 = vld [vmem:[#allocation2 + $0x828] sm:$0xf] }
 0x7ce   :  { %v5976_v26 = vpop.f32.mrf.mxu1 }
 0x7cf   :  { %v5977_v48 = vadd.f32 %v5976_v26, %v5247_v39  ;;  %6929 = vmatmul.bf16.gmra.mxu3 %v8801_v58  ;;  %5291 = vmatmul.bf16.gmra.mxu0 %v8361_v5  ;;  %v9328_v58 = vld [vmem:[#allocation2 + $0x830] sm:$0xf0]  ;;  %v6169_v5 = vadd.f32 %v12797_v20, %v12365_v27 }
 0x7d1   :  { %v6706_v29 = vadd.f32 %v6705_v13, %v5977_v48  ;;  %6015 = vmatmul.bf16.gmra.mxu1 %v8353_v17  ;;  %v8381_v13 = vor.u32 %v9326_v3, %v8380_v7  ;;  %v9324_v48 = vld [vmem:[#allocation2 + $0x814] sm:$0xf] }
 0x7d2   :  { %v6707_v43 = vpop.f32.mrf.mxu2  ;;  %v6890_v22 = vpop.f32.mrf.mxu3  ;;  %v8377_v27 = vor.u32 %v9324_v48, %v8374_v19  ;;  %v9330_v48 = vld [vmem:[#allocation2 + $0x844] sm:$0xf]  ;;  %v8398_v19 = vld [vmem:[#allocation2 + $0x84c] sm:$0xf0] }
 0x7d3   :  { %7197 = vst.msk [vmem:[%s13883_s4 + $0x4c0] sm:$0xff] %vm81_vm0, %v6706_v29  ;;  %v6891_v47 = vadd.f32 %v6890_v22, %v6162_v49  ;;  %v8825_v49 = vor.u32 %v9437_v6, %v8824_v35  ;;  %v8385_v29 = vor.u32 %v9328_v58, %v8384_v25  ;;  %v8408_v25 = vld [vmem:[#allocation2 + $0x858] sm:$0xf]  ;;  %v9334_v58 = vld [vmem:[#allocation2 + $0x860] sm:$0xf0] }
 0x7d4   :  { %v5254_v42 = vpop.f32.mrf.mxu0 }
 0x7d5   :  { %7271 = vst.msk [vmem:[%s13883_s4 + $0x710] sm:$0xff] %vm81_vm0, %v6891_v47  ;;  %v8392_v47 = vld [vmem:[#allocation2 + $0x830] sm:$0xf] }
 0x7d6   :  { %v5978_v15 = vpop.f32.mrf.mxu1 }
 0x7d7   :  { %v5979_v39 = vadd.f32 %v5978_v15, %v5249_v62  ;;  %6749 = vmatmul.bf16.gmra.mxu2 %v8369_v40  ;;  %v9329_v40 = vld [vmem:[#allocation2 + $0x838] sm:$0xf0] }
 0x7d8   :  { %v8393_v1 = vor.u32 %v9329_v40, %v8392_v47  ;;  %v6182_v47 = vadd.f32 %v12827_v63, %v12395_v28  ;;  %v8860_v28 = vld [vmem:[#allocation2 + $0xbd8] sm:$0xf]  ;;  %v9446_v63 = vld [vmem:[#allocation2 + $0xbe0] sm:$0xf0] }
 0x7d9   :  { %v6708_v23 = vadd.f32 %v6707_v43, %v5979_v39 }
 0x7da   :  { %v6710_v2 = vpop.f32.mrf.mxu2  ;;  %v6892_v50 = vpop.f32.mrf.mxu3 }
 0x7db   :  { %7198 = vst.msk [vmem:[%s13883_s4 + $0x4c8] sm:$0xff] %vm81_vm0, %v6708_v23  ;;  %v6893_v56 = vadd.f32 %v6892_v50, %v6164_v45  ;;  %v9331_v50 = vld [vmem:[#allocation2 + $0x848] sm:$0xf0] }
 0x7dc   :  { %v5257_v62 = vpop.f32.mrf.mxu0 }
 0x7dd   :  { %7272 = vst.msk [vmem:[%s13883_s4 + $0x718] sm:$0xff] %vm81_vm0, %v6893_v56 }
 0x7de   :  { %v5981_v57 = vpop.f32.mrf.mxu1 }
 0x7df   :  { %v5982_v8 = vadd.f32 %v5981_v57, %v5252_v31  ;;  %6934 = vmatmul.bf16.gmra.mxu3 %v8813_v10  ;;  %5296 = vmatmul.bf16.gmra.mxu0 %v8373_v33  ;;  %v9327_v33 = vld [vmem:[#allocation2 + $0x82c] sm:$0xf] }
 0x7e1   :  { %v6711_v4 = vadd.f32 %v6710_v2, %v5982_v8  ;;  %6020 = vmatmul.bf16.gmra.mxu1 %v8365_v44  ;;  %v8396_v2 = vld [vmem:[#allocation2 + $0x840] sm:$0xf] }
 0x7e2   :  { %v6712_v12 = vpop.f32.mrf.mxu2  ;;  %v6895_v0 = vpop.f32.mrf.mxu3  ;;  %v8397_v8 = vor.u32 %v9331_v50, %v8396_v2 }
 0x7e3   :  { %7199 = vst.msk [vmem:[%s13883_s4 + $0x4d0] sm:$0xff] %vm81_vm0, %v6711_v4  ;;  %v6896_v60 = vadd.f32 %v6895_v0, %v6167_v34  ;;  %v8404_v34 = vld [vmem:[#allocation2 + $0x848] sm:$0xf]  ;;  %v9332_v4 = vld [vmem:[#allocation2 + $0x850] sm:$0xf0] }
 0x7e4   :  { %v5259_v52 = vpop.f32.mrf.mxu0 }
 0x7e5   :  { %7273 = vst.msk [vmem:[%s13883_s4 + $0x720] sm:$0xff] %vm81_vm0, %v6896_v60 }
 0x7e6   :  { %v5983_v55 = vpop.f32.mrf.mxu1 }
 0x7e7   :  { %v5984_v37 = vadd.f32 %v5983_v55, %v5254_v42  ;;  %6754 = vmatmul.bf16.gmra.mxu2 %v8381_v13  ;;  %v6172_v42 = vadd.f32 %v12803_v54, %v12371_v11  ;;  %v8836_v11 = vld [vmem:[#allocation2 + $0xba8] sm:$0xf]  ;;  %v9440_v54 = vld [vmem:[#allocation2 + $0xbb0] sm:$0xf0]  ;;  %v8405_v55 = vor.u32 %v9332_v4, %v8404_v34 }
 0x7e8   :  { %v8837_v57 = vor.u32 %v9440_v54, %v8836_v11  ;;  %v6184_v11 = vadd.f32 %v12833_v46, %v12401_v21 }
 0x7e9   :  { %v6713_v31 = vadd.f32 %v6712_v12, %v5984_v37  ;;  %v6177_v12 = vadd.f32 %v12815_v61, %v12383_v30  ;;  %v8848_v30 = vld [vmem:[#allocation2 + $0xbc0] sm:$0xf]  ;;  %v9443_v61 = vld [vmem:[#allocation2 + $0xbc8] sm:$0xf0] }
 0x7ea   :  { %v6715_v17 = vpop.f32.mrf.mxu2  ;;  %v6897_v26 = vpop.f32.mrf.mxu3 }
 0x7eb   :  { %7200 = vst.msk [vmem:[%s13883_s4 + $0x4d8] sm:$0xff] %vm81_vm0, %v6713_v31  ;;  %v6898_v36 = vadd.f32 %v6897_v26, %v6169_v5  ;;  %v6179_v5 = vadd.f32 %v12821_v16, %v12389_v59  ;;  %v8401_v59 = vor.u32 %v9330_v48, %v8398_v19 }
 0x7ec   :  { %v5262_v43 = vpop.f32.mrf.mxu0 }
 0x7ed   :  { %7274 = vst.msk [vmem:[%s13883_s4 + $0x728] sm:$0xff] %vm81_vm0, %v6898_v36 }
 0x7ee   :  { %v5986_v20 = vpop.f32.mrf.mxu1 }
 0x7ef   :  { %v5987_v22 = vadd.f32 %v5986_v20, %v5257_v62  ;;  %6939 = vmatmul.bf16.gmra.mxu3 %v8825_v49  ;;  %5301 = vmatmul.bf16.gmra.mxu0 %v8385_v29  ;;  %v8386_v62 = vld [vmem:[#allocation2 + $0x834] sm:$0xf0]  ;;  %v8849_v49 = vor.u32 %v9443_v61, %v8848_v30  ;;  %v8409_v29 = vor.u32 %v9334_v58, %v8408_v25  ;;  %v8416_v20 = vld [vmem:[#allocation2 + $0x860] sm:$0xf]  ;;  %v9336_v25 = vld [vmem:[#allocation2 + $0x874] sm:$0xf] }
 0x7f0   :  { %v8389_v51 = vor.u32 %v9327_v33, %v8386_v62  ;;  %v8422_v58 = vld [vmem:[#allocation2 + $0x87c] sm:$0xf0] }
 0x7f1   :  { %v6716_v15 = vadd.f32 %v6715_v17, %v5987_v22  ;;  %6025 = vmatmul.bf16.gmra.mxu1 %v8377_v27  ;;  %v9335_v22 = vld [vmem:[#allocation2 + $0x868] sm:$0xf0]  ;;  %v8425_v48 = vor.u32 %v9336_v25, %v8422_v58  ;;  %v9342_v25 = vld [vmem:[#allocation2 + $0x8a4] sm:$0xf]  ;;  %v8446_v58 = vld [vmem:[#allocation2 + $0x8ac] sm:$0xf0] }
 0x7f2   :  { %v6717_v39 = vpop.f32.mrf.mxu2  ;;  %v6900_v53 = vpop.f32.mrf.mxu3 }
 0x7f3   :  { %7201 = vst.msk [vmem:[%s13883_s4 + $0x4e0] sm:$0xff] %vm81_vm0, %v6716_v15  ;;  %v6901_v18 = vadd.f32 %v6900_v53, %v6172_v42  ;;  %v8417_v53 = vor.u32 %v9335_v22, %v8416_v20 }
 0x7f4   :  { %v5264_v14 = vpop.f32.mrf.mxu0 }
 0x7f5   :  { %7275 = vst.msk [vmem:[%s13883_s4 + $0x730] sm:$0xff] %vm81_vm0, %v6901_v18 }
 0x7f6   :  { %v5988_v45 = vpop.f32.mrf.mxu1 }
 0x7f7   :  { %v5989_v23 = vadd.f32 %v5988_v45, %v5259_v52  ;;  %6759 = vmatmul.bf16.gmra.mxu2 %v8393_v1  ;;  %v8420_v45 = vld [vmem:[#allocation2 + $0x870] sm:$0xf] }
 0x7f9   :  { %v6718_v24 = vadd.f32 %v6717_v39, %v5989_v23  ;;  %v9337_v23 = vld [vmem:[#allocation2 + $0x878] sm:$0xf0] }
 0x7fa   :  { %v6720_v56 = vpop.f32.mrf.mxu2  ;;  %v6902_v10 = vpop.f32.mrf.mxu3  ;;  %v8421_v33 = vor.u32 %v9337_v23, %v8420_v45 }
 0x7fb   :  { %7202 = vst.msk [vmem:[%s13883_s4 + $0x4e8] sm:$0xff] %vm81_vm0, %v6718_v24  ;;  %v6903_v44 = vadd.f32 %v6902_v10, %v6174_v9  ;;  %v9333_v9 = vld [vmem:[#allocation2 + $0x85c] sm:$0xf]  ;;  %v8410_v24 = vld [vmem:[#allocation2 + $0x864] sm:$0xf0]  ;;  %v8861_v10 = vor.u32 %v9446_v63, %v8860_v28 }
 0x7fc   :  { %v5267_v7 = vpop.f32.mrf.mxu0  ;;  %v8413_v21 = vor.u32 %v9333_v9, %v8410_v24  ;;  %v14234_v28 = vld [vmem:[#allocation30_spill] sm:$0xff] }
 0x7fd   :  { %7276 = vst.msk [vmem:[%s13883_s4 + $0x738] sm:$0xff] %vm81_vm0, %v6903_v44  ;;  %v14235_v63 = vld [vmem:[#allocation58_spill] sm:$0xff] }
 0x7fe   :  { %v5991_v41 = vpop.f32.mrf.mxu1  ;;  %v6194_v45 = vadd.f32 %v14235_v63, %v14234_v28  ;;  %v14242_v28 = vld [vmem:[#allocation36_spill] sm:$0xff]  ;;  %v14243_v63 = vld [vmem:[#allocation62_spill] sm:$0xff] }
 0x7ff   :  { %v5992_v3 = vadd.f32 %v5991_v41, %v5262_v43  ;;  %6944 = vmatmul.bf16.gmra.mxu3 %v8837_v57  ;;  %5306 = vmatmul.bf16.gmra.mxu0 %v8397_v8  ;;  %v8428_v57 = vld [vmem:[#allocation2 + $0x878] sm:$0xf]  ;;  %v9338_v8 = vld [vmem:[#allocation2 + $0x880] sm:$0xf0] }
 0x800   :  { %v8429_v4 = vor.u32 %v9338_v8, %v8428_v57  ;;  %v14236_v57 = vld [vmem:[#allocation27_spill] sm:$0xff] }
 0x801   :  { %v6721_v0 = vadd.f32 %v6720_v56, %v5992_v3  ;;  %6030 = vmatmul.bf16.gmra.mxu1 %v8389_v51  ;;  %v14237_v8 = vld [vmem:[#allocation59_spill] sm:$0xff] }
 0x802   :  { %v6722_v60 = vpop.f32.mrf.mxu2  ;;  %v6905_v13 = vpop.f32.mrf.mxu3 }
 0x803   :  { %7203 = vst.msk [vmem:[%s13883_s4 + $0x4f0] sm:$0xff] %vm81_vm0, %v6721_v0  ;;  %v6906_v52 = vadd.f32 %v6905_v13, %v6177_v12  ;;  %v8432_v13 = vld [vmem:[#allocation2 + $0x888] sm:$0xf] }
 0x804   :  { %v5269_v37 = vpop.f32.mrf.mxu0 }
 0x805   :  { %7277 = vst.msk [vmem:[%s13883_s4 + $0x740] sm:$0xff] %vm81_vm0, %v6906_v52  ;;  %v9340_v52 = vld [vmem:[#allocation2 + $0x890] sm:$0xf0] }
 0x806   :  { %v5993_v35 = vpop.f32.mrf.mxu1 }
 0x807   :  { %v5994_v6 = vadd.f32 %v5993_v35, %v5264_v14  ;;  %6764 = vmatmul.bf16.gmra.mxu2 %v8405_v55  ;;  %v14230_v55 = vld [vmem:[#allocation31_spill] sm:$0xff] }
 0x809   :  { %v6723_v31 = vadd.f32 %v6722_v60, %v5994_v6 }
 0x80a   :  { %v6725_v17 = vpop.f32.mrf.mxu2  ;;  %v6907_v26 = vpop.f32.mrf.mxu3 }
 0x80b   :  { %7204 = vst.msk [vmem:[%s13883_s4 + $0x4f8] sm:$0xff] %vm81_vm0, %v6723_v31  ;;  %v6908_v36 = vadd.f32 %v6907_v26, %v6179_v5 }
 0x80c   :  { %v5272_v43 = vpop.f32.mrf.mxu0 }
 0x80d   :  { %7278 = vst.msk [vmem:[%s13883_s4 + $0x748] sm:$0xff] %vm81_vm0, %v6908_v36 }
 0x80e   :  { %v5996_v16 = vpop.f32.mrf.mxu1 }
 0x80f   :  { %v5997_v27 = vadd.f32 %v5996_v16, %v5267_v7  ;;  %6949 = vmatmul.bf16.gmra.mxu3 %v8849_v49  ;;  %5311 = vmatmul.bf16.gmra.mxu0 %v8409_v29  ;;  %v6187_v7 = vadd.f32 %v12839_v38, %v12407_v32  ;;  %v8872_v32 = vld [vmem:[#allocation2 + $0xbf0] sm:$0xf]  ;;  %v9449_v38 = vld [vmem:[#allocation2 + $0xbf8] sm:$0xf0] }
 0x810   :  { %v8873_v31 = vor.u32 %v9449_v38, %v8872_v32  ;;  %v8440_v49 = vld [vmem:[#allocation2 + $0x890] sm:$0xf]  ;;  %v9341_v29 = vld [vmem:[#allocation2 + $0x898] sm:$0xf0]  ;;  %v8896_v32 = vld [vmem:[#allocation2 + $0xc20] sm:$0xf] }
 0x811   :  { %v6726_v40 = vadd.f32 %v6725_v17, %v5997_v27  ;;  %6035 = vmatmul.bf16.gmra.mxu1 %v8401_v59  ;;  %v8433_v17 = vor.u32 %v9340_v52, %v8432_v13  ;;  %v14233_v59 = vld [vmem:[#allocation57_spill] sm:$0xff]  ;;  %v9455_v38 = vld [vmem:[#allocation2 + $0xc28] sm:$0xf0]  ;;  %v8456_v13 = vld [vmem:[#allocation2 + $0x8b8] sm:$0xf] }
 0x812   :  { %v6727_v42 = vpop.f32.mrf.mxu2  ;;  %v6910_v15 = vpop.f32.mrf.mxu3  ;;  %v9346_v52 = vld [vmem:[#allocation2 + $0x8c0] sm:$0xf0] }
 0x813   :  { %7205 = vst.msk [vmem:[%s13883_s4 + $0x500] sm:$0xff] %vm81_vm0, %v6726_v40  ;;  %v6911_v39 = vadd.f32 %v6910_v15, %v6182_v47  ;;  %v8441_v40 = vor.u32 %v9341_v29, %v8440_v49  ;;  %v8464_v49 = vld [vmem:[#allocation2 + $0x8c0] sm:$0xf]  ;;  %v9347_v29 = vld [vmem:[#allocation2 + $0x8c8] sm:$0xf0] }
 0x814   :  { %v5274_v18 = vpop.f32.mrf.mxu0 }
 0x815   :  { %7279 = vst.msk [vmem:[%s13883_s4 + $0x750] sm:$0xff] %vm81_vm0, %v6911_v39 }
 0x816   :  { %v5998_v1 = vpop.f32.mrf.mxu1 }
 0x817   :  { %v5999_v14 = vadd.f32 %v5998_v1, %v5269_v37  ;;  %6769 = vmatmul.bf16.gmra.mxu2 %v8417_v53  ;;  %v14231_v37 = vld [vmem:[#allocation56_spill] sm:$0xff]  ;;  %v8884_v53 = vld [vmem:[#allocation2 + $0xc08] sm:$0xf]  ;;  %v8444_v1 = vld [vmem:[#allocation2 + $0x8a0] sm:$0xf] }
 0x818   :  { %v6189_v35 = vadd.f32 %v14231_v37, %v14230_v55  ;;  %v14238_v55 = vld [vmem:[#allocation22_spill] sm:$0xff]  ;;  %v14239_v37 = vld [vmem:[#allocation60_spill] sm:$0xff] }
 0x819   :  { %v6728_v54 = vadd.f32 %v6727_v42, %v5999_v14  ;;  %v9343_v14 = vld [vmem:[#allocation2 + $0x8a8] sm:$0xf0] }
 0x81a   :  { %v6730_v2 = vpop.f32.mrf.mxu2  ;;  %v6912_v50 = vpop.f32.mrf.mxu3 }
 0x81b   :  { %7206 = vst.msk [vmem:[%s13883_s4 + $0x508] sm:$0xff] %vm81_vm0, %v6728_v54  ;;  %v6913_v56 = vadd.f32 %v6912_v50, %v6184_v11  ;;  %v8434_v50 = vld [vmem:[#allocation2 + $0x894] sm:$0xf0] }
 0x81c   :  { %v5277_v62 = vpop.f32.mrf.mxu0 }
 0x81d   :  { %7280 = vst.msk [vmem:[%s13883_s4 + $0x758] sm:$0xff] %vm81_vm0, %v6913_v56  ;;  %v8445_v56 = vor.u32 %v9343_v14, %v8444_v1  ;;  %v8468_v1 = vld [vmem:[#allocation2 + $0x8d0] sm:$0xf]  ;;  %v9349_v14 = vld [vmem:[#allocation2 + $0x8d8] sm:$0xf0] }
 0x81e   :  { %v6001_v46 = vpop.f32.mrf.mxu1 }
 0x81f   :  { %v6002_v44 = vadd.f32 %v6001_v46, %v5272_v43  ;;  %6954 = vmatmul.bf16.gmra.mxu3 %v8861_v10  ;;  %5316 = vmatmul.bf16.gmra.mxu0 %v8421_v33  ;;  %v14232_v43 = vld [vmem:[#allocation29_spill] sm:$0xff]  ;;  %v8452_v46 = vld [vmem:[#allocation2 + $0x8a8] sm:$0xf] }
 0x820   :  { %v6192_v16 = vadd.f32 %v14233_v59, %v14232_v43  ;;  %v14240_v43 = vld [vmem:[#allocation37_spill] sm:$0xff] }
 0x821   :  { %v6731_v51 = vadd.f32 %v6730_v2, %v6002_v44  ;;  %6040 = vmatmul.bf16.gmra.mxu1 %v8413_v21  ;;  %v9339_v2 = vld [vmem:[#allocation2 + $0x88c] sm:$0xf]  ;;  %v9344_v44 = vld [vmem:[#allocation2 + $0x8b0] sm:$0xf0]  ;;  %v14241_v59 = vld [vmem:[#allocation61_spill] sm:$0xff] }
 0x822   :  { %v6732_v41 = vpop.f32.mrf.mxu2  ;;  %v6915_v3 = vpop.f32.mrf.mxu3  ;;  %v8437_v33 = vor.u32 %v9339_v2, %v8434_v50  ;;  %v9345_v2 = vld [vmem:[#allocation2 + $0x8bc] sm:$0xf]  ;;  %v8458_v50 = vld [vmem:[#allocation2 + $0x8c4] sm:$0xf0] }
 0x823   :  { %7207 = vst.msk [vmem:[%s13883_s4 + $0x510] sm:$0xff] %vm81_vm0, %v6731_v51  ;;  %v6916_v34 = vadd.f32 %v6915_v3, %v6187_v7  ;;  %v6197_v7 = vadd.f32 %v14237_v8, %v14236_v57  ;;  %v14244_v57 = vld [vmem:[#allocation10_spill] sm:$0xff]  ;;  %v14245_v8 = vld [vmem:[#allocation63_spill] sm:$0xff] }
 0x824   :  { %v5279_v12 = vpop.f32.mrf.mxu0 }
 0x825   :  { %7281 = vst.msk [vmem:[%s13883_s4 + $0x760] sm:$0xff] %vm81_vm0, %v6916_v34 }
 0x826   :  { %v6003_v0 = vpop.f32.mrf.mxu1 }
 0x827   :  { %v6004_v60 = vadd.f32 %v6003_v0, %v5274_v18  ;;  %6774 = vmatmul.bf16.gmra.mxu2 %v8429_v4  ;;  %v9452_v18 = vld [vmem:[#allocation2 + $0xc10] sm:$0xf0]  ;;  %v8453_v4 = vor.u32 %v9344_v44, %v8452_v46  ;;  %v8476_v46 = vld [vmem:[#allocation2 + $0x8d8] sm:$0xf]  ;;  %v9350_v44 = vld [vmem:[#allocation2 + $0x8e0] sm:$0xf0] }
 0x828   :  { %v8885_v24 = vor.u32 %v9452_v18, %v8884_v53  ;;  %v8908_v53 = vld [vmem:[#allocation2 + $0xc38] sm:$0xf]  ;;  %v9458_v18 = vld [vmem:[#allocation2 + $0xc40] sm:$0xf0] }
 0x829   :  { %v6733_v6 = vadd.f32 %v6732_v41, %v6004_v60 }
 0x82a   :  { %v6735_v30 = vpop.f32.mrf.mxu2  ;;  %v6917_v61 = vpop.f32.mrf.mxu3 }
 0x82b   :  { %7208 = vst.msk [vmem:[%s13883_s4 + $0x518] sm:$0xff] %vm81_vm0, %v6733_v6  ;;  %v6918_v5 = vadd.f32 %v6917_v61, %v6189_v35  ;;  %v6199_v35 = vadd.f32 %v14239_v37, %v14238_v55  ;;  %v14246_v55 = vld [vmem:[#allocation32_spill] sm:$0xff] }
 0x82c   :  { %v5282_v26 = vpop.f32.mrf.mxu0  ;;  %v14247_v37 = vld [vmem:[#allocation64_spill] sm:$0xff] }
 0x82d   :  { %7282 = vst.msk [vmem:[%s13883_s4 + $0x768] sm:$0xff] %vm81_vm0, %v6918_v5 }
 0x82e   :  { %v6006_v19 = vpop.f32.mrf.mxu1 }
 0x82f   :  { %v6007_v36 = vadd.f32 %v6006_v19, %v5277_v62  ;;  %6959 = vmatmul.bf16.gmra.mxu3 %v8873_v31  ;;  %5321 = vmatmul.bf16.gmra.mxu0 %v8433_v17  ;;  %v8897_v31 = vor.u32 %v9455_v38, %v8896_v32  ;;  %v8457_v17 = vor.u32 %v9346_v52, %v8456_v13  ;;  %v8920_v32 = vld [vmem:[#allocation2 + $0xc50] sm:$0xf]  ;;  %v9461_v38 = vld [vmem:[#allocation2 + $0xc58] sm:$0xf0]  ;;  %v8480_v13 = vld [vmem:[#allocation2 + $0x8e8] sm:$0xf] }
 0x830   :  { %v9352_v52 = vld [vmem:[#allocation2 + $0x8f0] sm:$0xf0] }
 0x831   :  { %v6736_v27 = vadd.f32 %v6735_v30, %v6007_v36  ;;  %6045 = vmatmul.bf16.gmra.mxu1 %v8425_v48  ;;  %v8449_v48 = vor.u32 %v9342_v25, %v8446_v58  ;;  %v9348_v25 = vld [vmem:[#allocation2 + $0x8d4] sm:$0xf]  ;;  %v8470_v58 = vld [vmem:[#allocation2 + $0x8dc] sm:$0xf0] }
 0x832   :  { %v6737_v20 = vpop.f32.mrf.mxu2  ;;  %v6920_v22 = vpop.f32.mrf.mxu3 }
 0x833   :  { %7209 = vst.msk [vmem:[%s13883_s4 + $0x520] sm:$0xff] %vm81_vm0, %v6736_v27  ;;  %v6921_v47 = vadd.f32 %v6920_v22, %v6192_v16  ;;  %v6202_v16 = vadd.f32 %v14241_v59, %v14240_v43  ;;  %v14248_v43 = vld [vmem:[#allocation33_spill] sm:$0xff] }
 0x834   :  { %v5284_v42 = vpop.f32.mrf.mxu0  ;;  %v14249_v59 = vld [vmem:[#allocation65_spill] sm:$0xff] }
 0x835   :  { %7283 = vst.msk [vmem:[%s13883_s4 + $0x770] sm:$0xff] %vm81_vm0, %v6921_v47 }
 0x836   :  { %v6008_v15 = vpop.f32.mrf.mxu1 }
 0x837   :  { %v6009_v39 = vadd.f32 %v6008_v15, %v5279_v12  ;;  %6779 = vmatmul.bf16.gmra.mxu2 %v8441_v40  ;;  %v8465_v40 = vor.u32 %v9347_v29, %v8464_v49  ;;  %v8488_v49 = vld [vmem:[#allocation2 + $0x8f0] sm:$0xf]  ;;  %v9353_v29 = vld [vmem:[#allocation2 + $0x8f8] sm:$0xf0] }
 0x839   :  { %v6738_v23 = vadd.f32 %v6737_v20, %v6009_v39 }
 0x83a   :  { %v6740_v11 = vpop.f32.mrf.mxu2  ;;  %v6922_v54 = vpop.f32.mrf.mxu3 }
 0x83b   :  { %7210 = vst.msk [vmem:[%s13883_s4 + $0x528] sm:$0xff] %vm81_vm0, %v6738_v23  ;;  %v6923_v9 = vadd.f32 %v6922_v54, %v6194_v45  ;;  %v6204_v45 = vadd.f32 %v14243_v63, %v14242_v28  ;;  %v14250_v28 = vld [vmem:[#allocation41_spill] sm:$0xff]  ;;  %v14251_v63 = vld [vmem:[#allocation66_spill] sm:$0xff] }
 0x83c   :  { %v5287_v10 = vpop.f32.mrf.mxu0 }
 0x83d   :  { %7284 = vst.msk [vmem:[%s13883_s4 + $0x778] sm:$0xff] %vm81_vm0, %v6923_v9 }
 0x83e   :  { %v6011_v62 = vpop.f32.mrf.mxu1 }
 0x83f   :  { %v6012_v21 = vadd.f32 %v6011_v62, %v5282_v26  ;;  %6964 = vmatmul.bf16.gmra.mxu3 %v8885_v24  ;;  %5326 = vmatmul.bf16.gmra.mxu0 %v8445_v56  ;;  %v8909_v24 = vor.u32 %v9458_v18, %v8908_v53  ;;  %v8469_v56 = vor.u32 %v9349_v14, %v8468_v1  ;;  %v8932_v53 = vld [vmem:[#allocation2 + $0xc68] sm:$0xf]  ;;  %v9464_v18 = vld [vmem:[#allocation2 + $0xc70] sm:$0xf0]  ;;  %v8492_v1 = vld [vmem:[#allocation2 + $0x900] sm:$0xf] }
 0x840   :  { %v9355_v14 = vld [vmem:[#allocation2 + $0x908] sm:$0xf0] }
 0x841   :  { %v6741_v51 = vadd.f32 %v6740_v11, %v6012_v21  ;;  %6050 = vmatmul.bf16.gmra.mxu1 %v8437_v33  ;;  %v8461_v33 = vor.u32 %v9345_v2, %v8458_v50  ;;  %v9351_v2 = vld [vmem:[#allocation2 + $0x8ec] sm:$0xf]  ;;  %v8482_v50 = vld [vmem:[#allocation2 + $0x8f4] sm:$0xf0] }
 0x842   :  { %v6742_v41 = vpop.f32.mrf.mxu2  ;;  %v6925_v3 = vpop.f32.mrf.mxu3 }
 0x843   :  { %7211 = vst.msk [vmem:[%s13883_s4 + $0x530] sm:$0xff] %vm81_vm0, %v6741_v51  ;;  %v6926_v34 = vadd.f32 %v6925_v3, %v6197_v7  ;;  %v6207_v7 = vadd.f32 %v14245_v8, %v14244_v57  ;;  %v14252_v57 = vld [vmem:[#allocation40_spill] sm:$0xff]  ;;  %v14253_v8 = vld [vmem:[#allocation67_spill] sm:$0xff] }
 0x844   :  { %v5289_v12 = vpop.f32.mrf.mxu0 }
 0x845   :  { %7285 = vst.msk [vmem:[%s13883_s4 + $0x780] sm:$0xff] %vm81_vm0, %v6926_v34 }
 0x846   :  { %v6013_v0 = vpop.f32.mrf.mxu1 }
 0x847   :  { %v6014_v60 = vadd.f32 %v6013_v0, %v5284_v42  ;;  %6784 = vmatmul.bf16.gmra.mxu2 %v8453_v4  ;;  %v8477_v4 = vor.u32 %v9350_v44, %v8476_v46  ;;  %v8500_v46 = vld [vmem:[#allocation2 + $0x908] sm:$0xf]  ;;  %v9356_v44 = vld [vmem:[#allocation2 + $0x910] sm:$0xf0] }
 0x849   :  { %v6743_v6 = vadd.f32 %v6742_v41, %v6014_v60 }
 0x84a   :  { %v6745_v30 = vpop.f32.mrf.mxu2  ;;  %v6927_v61 = vpop.f32.mrf.mxu3 }
 0x84b   :  { %7212 = vst.msk [vmem:[%s13883_s4 + $0x538] sm:$0xff] %vm81_vm0, %v6743_v6  ;;  %v6928_v5 = vadd.f32 %v6927_v61, %v6199_v35  ;;  %v6209_v35 = vadd.f32 %v14247_v37, %v14246_v55  ;;  %v14254_v55 = vld [vmem:[#allocation34_spill] sm:$0xff]  ;;  %v14255_v37 = vld [vmem:[#allocation68_spill] sm:$0xff] }
 0x84c   :  { %v5292_v26 = vpop.f32.mrf.mxu0 }
 0x84d   :  { %7286 = vst.msk [vmem:[%s13883_s4 + $0x788] sm:$0xff] %vm81_vm0, %v6928_v5 }
 0x84e   :  { %v6016_v19 = vpop.f32.mrf.mxu1 }
 0x84f   :  { %v6017_v36 = vadd.f32 %v6016_v19, %v5287_v10  ;;  %6969 = vmatmul.bf16.gmra.mxu3 %v8897_v31  ;;  %5331 = vmatmul.bf16.gmra.mxu0 %v8457_v17  ;;  %v8921_v31 = vor.u32 %v9461_v38, %v8920_v32  ;;  %v8481_v17 = vor.u32 %v9352_v52, %v8480_v13  ;;  %v8944_v32 = vld [vmem:[#allocation2 + $0xc80] sm:$0xf]  ;;  %v9467_v38 = vld [vmem:[#allocation2 + $0xc88] sm:$0xf0]  ;;  %v8504_v13 = vld [vmem:[#allocation2 + $0x918] sm:$0xf] }
 0x850   :  { %v9358_v52 = vld [vmem:[#allocation2 + $0x920] sm:$0xf0] }
 0x851   :  { %v6746_v27 = vadd.f32 %v6745_v30, %v6017_v36  ;;  %6055 = vmatmul.bf16.gmra.mxu1 %v8449_v48  ;;  %v8473_v48 = vor.u32 %v9348_v25, %v8470_v58  ;;  %v9354_v25 = vld [vmem:[#allocation2 + $0x904] sm:$0xf]  ;;  %v8494_v58 = vld [vmem:[#allocation2 + $0x90c] sm:$0xf0] }
 0x852   :  { %v6747_v20 = vpop.f32.mrf.mxu2  ;;  %v6930_v22 = vpop.f32.mrf.mxu3 }
 0x853   :  { %7213 = vst.msk [vmem:[%s13883_s4 + $0x540] sm:$0xff] %vm81_vm0, %v6746_v27  ;;  %v6931_v47 = vadd.f32 %v6930_v22, %v6202_v16  ;;  %v6212_v16 = vadd.f32 %v14249_v59, %v14248_v43  ;;  %v14256_v43 = vld [vmem:[#allocation6_spill] sm:$0xff]  ;;  %v14257_v59 = vld [vmem:[#allocation69_spill] sm:$0xff] }
 0x854   :  { %v5294_v42 = vpop.f32.mrf.mxu0 }
 0x855   :  { %7287 = vst.msk [vmem:[%s13883_s4 + $0x790] sm:$0xff] %vm81_vm0, %v6931_v47 }
 0x856   :  { %v6018_v15 = vpop.f32.mrf.mxu1 }
 0x857   :  { %v6019_v39 = vadd.f32 %v6018_v15, %v5289_v12  ;;  %6789 = vmatmul.bf16.gmra.mxu2 %v8465_v40  ;;  %v8489_v40 = vor.u32 %v9353_v29, %v8488_v49  ;;  %v8512_v49 = vld [vmem:[#allocation2 + $0x920] sm:$0xf]  ;;  %v9359_v29 = vld [vmem:[#allocation2 + $0x928] sm:$0xf0] }
 0x859   :  { %v6748_v23 = vadd.f32 %v6747_v20, %v6019_v39 }
 0x85a   :  { %v6750_v11 = vpop.f32.mrf.mxu2  ;;  %v6932_v54 = vpop.f32.mrf.mxu3 }
 0x85b   :  { %7214 = vst.msk [vmem:[%s13883_s4 + $0x548] sm:$0xff] %vm81_vm0, %v6748_v23  ;;  %v6933_v9 = vadd.f32 %v6932_v54, %v6204_v45  ;;  %v6214_v45 = vadd.f32 %v14251_v63, %v14250_v28  ;;  %v14258_v28 = vld [vmem:[#allocation35_spill] sm:$0xff]  ;;  %v14259_v63 = vld [vmem:[#allocation70_spill] sm:$0xff] }
 0x85c   :  { %v5297_v10 = vpop.f32.mrf.mxu0 }
 0x85d   :  { %7288 = vst.msk [vmem:[%s13883_s4 + $0x798] sm:$0xff] %vm81_vm0, %v6933_v9 }
 0x85e   :  { %v6021_v62 = vpop.f32.mrf.mxu1 }
 0x85f   :  { %v6022_v21 = vadd.f32 %v6021_v62, %v5292_v26  ;;  %6974 = vmatmul.bf16.gmra.mxu3 %v8909_v24  ;;  %5336 = vmatmul.bf16.gmra.mxu0 %v8469_v56  ;;  %v8933_v24 = vor.u32 %v9464_v18, %v8932_v53  ;;  %v8493_v56 = vor.u32 %v9355_v14, %v8492_v1  ;;  %v8956_v53 = vld [vmem:[#allocation2 + $0xc98] sm:$0xf]  ;;  %v9470_v18 = vld [vmem:[#allocation2 + $0xca0] sm:$0xf0]  ;;  %v8516_v1 = vld [vmem:[#allocation2 + $0x930] sm:$0xf] }
 0x860   :  { %v9361_v14 = vld [vmem:[#allocation2 + $0x938] sm:$0xf0] }
 0x861   :  { %v6751_v51 = vadd.f32 %v6750_v11, %v6022_v21  ;;  %6060 = vmatmul.bf16.gmra.mxu1 %v8461_v33  ;;  %v8485_v33 = vor.u32 %v9351_v2, %v8482_v50  ;;  %v9357_v2 = vld [vmem:[#allocation2 + $0x91c] sm:$0xf]  ;;  %v8506_v50 = vld [vmem:[#allocation2 + $0x924] sm:$0xf0] }
 0x862   :  { %v6752_v41 = vpop.f32.mrf.mxu2  ;;  %v6935_v3 = vpop.f32.mrf.mxu3 }
 0x863   :  { %7215 = vst.msk [vmem:[%s13883_s4 + $0x550] sm:$0xff] %vm81_vm0, %v6751_v51  ;;  %v6936_v34 = vadd.f32 %v6935_v3, %v6207_v7  ;;  %v6217_v7 = vadd.f32 %v14253_v8, %v14252_v57  ;;  %v14260_v57 = vld [vmem:[#allocation7_spill] sm:$0xff] }
 0x864   :  { %v5299_v12 = vpop.f32.mrf.mxu0  ;;  %v14261_v8 = vld [vmem:[#allocation71_spill] sm:$0xff] }
 0x865   :  { %7289 = vst.msk [vmem:[%s13883_s4 + $0x7a0] sm:$0xff] %vm81_vm0, %v6936_v34 }
 0x866   :  { %v6023_v0 = vpop.f32.mrf.mxu1 }
 0x867   :  { %v6024_v60 = vadd.f32 %v6023_v0, %v5294_v42  ;;  %6794 = vmatmul.bf16.gmra.mxu2 %v8477_v4  ;;  %v8501_v4 = vor.u32 %v9356_v44, %v8500_v46  ;;  %v8524_v46 = vld [vmem:[#allocation2 + $0x938] sm:$0xf]  ;;  %v9362_v44 = vld [vmem:[#allocation2 + $0x940] sm:$0xf0] }
 0x869   :  { %v6753_v6 = vadd.f32 %v6752_v41, %v6024_v60 }
 0x86a   :  { %v6755_v30 = vpop.f32.mrf.mxu2  ;;  %v6937_v61 = vpop.f32.mrf.mxu3 }
 0x86b   :  { %7216 = vst.msk [vmem:[%s13883_s4 + $0x558] sm:$0xff] %vm81_vm0, %v6753_v6  ;;  %v6938_v5 = vadd.f32 %v6937_v61, %v6209_v35  ;;  %v6219_v35 = vadd.f32 %v14255_v37, %v14254_v55  ;;  %v14262_v55 = vld [vmem:[#allocation8_spill] sm:$0xff] }
 0x86c   :  { %v5302_v26 = vpop.f32.mrf.mxu0  ;;  %v14263_v37 = vld [vmem:[#allocation72_spill] sm:$0xff] }
 0x86d   :  { %7290 = vst.msk [vmem:[%s13883_s4 + $0x7a8] sm:$0xff] %vm81_vm0, %v6938_v5 }
 0x86e   :  { %v6026_v19 = vpop.f32.mrf.mxu1 }
 0x86f   :  { %v6027_v36 = vadd.f32 %v6026_v19, %v5297_v10  ;;  %6979 = vmatmul.bf16.gmra.mxu3 %v8921_v31  ;;  %5341 = vmatmul.bf16.gmra.mxu0 %v8481_v17  ;;  %v8945_v31 = vor.u32 %v9467_v38, %v8944_v32  ;;  %v8505_v17 = vor.u32 %v9358_v52, %v8504_v13  ;;  %v8968_v32 = vld [vmem:[#allocation2 + $0xcb0] sm:$0xf]  ;;  %v9473_v38 = vld [vmem:[#allocation2 + $0xcb8] sm:$0xf0]  ;;  %v8528_v13 = vld [vmem:[#allocation2 + $0x948] sm:$0xf] }
 0x870   :  { %v9364_v52 = vld [vmem:[#allocation2 + $0x950] sm:$0xf0] }
 0x871   :  { %v6756_v27 = vadd.f32 %v6755_v30, %v6027_v36  ;;  %6065 = vmatmul.bf16.gmra.mxu1 %v8473_v48  ;;  %v8497_v48 = vor.u32 %v9354_v25, %v8494_v58  ;;  %v9360_v25 = vld [vmem:[#allocation2 + $0x934] sm:$0xf]  ;;  %v8518_v58 = vld [vmem:[#allocation2 + $0x93c] sm:$0xf0] }
 0x872   :  { %v6757_v20 = vpop.f32.mrf.mxu2  ;;  %v6940_v22 = vpop.f32.mrf.mxu3 }
 0x873   :  { %7217 = vst.msk [vmem:[%s13883_s4 + $0x560] sm:$0xff] %vm81_vm0, %v6756_v27  ;;  %v6941_v47 = vadd.f32 %v6940_v22, %v6212_v16  ;;  %v6222_v16 = vadd.f32 %v14257_v59, %v14256_v43  ;;  %v14264_v43 = vld [vmem:[#allocation5_spill] sm:$0xff] }
 0x874   :  { %v5304_v42 = vpop.f32.mrf.mxu0  ;;  %v14265_v59 = vld [vmem:[#allocation73_spill] sm:$0xff] }
 0x875   :  { %7291 = vst.msk [vmem:[%s13883_s4 + $0x7b0] sm:$0xff] %vm81_vm0, %v6941_v47 }
 0x876   :  { %v6028_v15 = vpop.f32.mrf.mxu1 }
 0x877   :  { %v6029_v39 = vadd.f32 %v6028_v15, %v5299_v12  ;;  %6799 = vmatmul.bf16.gmra.mxu2 %v8489_v40  ;;  %v8513_v40 = vor.u32 %v9359_v29, %v8512_v49  ;;  %v8536_v49 = vld [vmem:[#allocation2 + $0x950] sm:$0xf]  ;;  %v9365_v29 = vld [vmem:[#allocation2 + $0x958] sm:$0xf0] }
 0x879   :  { %v6758_v23 = vadd.f32 %v6757_v20, %v6029_v39 }
 0x87a   :  { %v6760_v11 = vpop.f32.mrf.mxu2  ;;  %v6942_v54 = vpop.f32.mrf.mxu3 }
 0x87b   :  { %7218 = vst.msk [vmem:[%s13883_s4 + $0x568] sm:$0xff] %vm81_vm0, %v6758_v23  ;;  %v6943_v9 = vadd.f32 %v6942_v54, %v6214_v45  ;;  %v6224_v45 = vadd.f32 %v14259_v63, %v14258_v28  ;;  %v14266_v28 = vld [vmem:[#allocation9_spill] sm:$0xff]  ;;  %v14267_v63 = vld [vmem:[#allocation74_spill] sm:$0xff] }
 0x87c   :  { %v5307_v10 = vpop.f32.mrf.mxu0 }
 0x87d   :  { %7292 = vst.msk [vmem:[%s13883_s4 + $0x7b8] sm:$0xff] %vm81_vm0, %v6943_v9 }
 0x87e   :  { %v6031_v62 = vpop.f32.mrf.mxu1 }
 0x87f   :  { %v6032_v21 = vadd.f32 %v6031_v62, %v5302_v26  ;;  %6984 = vmatmul.bf16.gmra.mxu3 %v8933_v24  ;;  %5346 = vmatmul.bf16.gmra.mxu0 %v8493_v56  ;;  %v8957_v24 = vor.u32 %v9470_v18, %v8956_v53  ;;  %v8517_v56 = vor.u32 %v9361_v14, %v8516_v1  ;;  %v8980_v53 = vld [vmem:[#allocation2 + $0xcc8] sm:$0xf]  ;;  %v9476_v18 = vld [vmem:[#allocation2 + $0xcd0] sm:$0xf0]  ;;  %v8540_v1 = vld [vmem:[#allocation2 + $0x960] sm:$0xf] }
 0x880   :  { %v9367_v14 = vld [vmem:[#allocation2 + $0x968] sm:$0xf0] }
 0x881   :  { %v6761_v51 = vadd.f32 %v6760_v11, %v6032_v21  ;;  %6070 = vmatmul.bf16.gmra.mxu1 %v8485_v33  ;;  %v8509_v33 = vor.u32 %v9357_v2, %v8506_v50  ;;  %v9363_v2 = vld [vmem:[#allocation2 + $0x94c] sm:$0xf]  ;;  %v8530_v50 = vld [vmem:[#allocation2 + $0x954] sm:$0xf0] }
 0x882   :  { %v6762_v41 = vpop.f32.mrf.mxu2  ;;  %v6945_v3 = vpop.f32.mrf.mxu3 }
 0x883   :  { %7219 = vst.msk [vmem:[%s13883_s4 + $0x570] sm:$0xff] %vm81_vm0, %v6761_v51  ;;  %v6946_v34 = vadd.f32 %v6945_v3, %v6217_v7  ;;  %v6227_v7 = vadd.f32 %v14261_v8, %v14260_v57  ;;  %v14268_v57 = vld [vmem:[#allocation11_spill] sm:$0xff] }
 0x884   :  { %v5309_v12 = vpop.f32.mrf.mxu0  ;;  %v14269_v8 = vld [vmem:[#allocation75_spill] sm:$0xff] }
 0x885   :  { %7293 = vst.msk [vmem:[%s13883_s4 + $0x7c0] sm:$0xff] %vm81_vm0, %v6946_v34 }
 0x886   :  { %v6033_v0 = vpop.f32.mrf.mxu1 }
 0x887   :  { %v6034_v60 = vadd.f32 %v6033_v0, %v5304_v42  ;;  %6804 = vmatmul.bf16.gmra.mxu2 %v8501_v4  ;;  %v8525_v4 = vor.u32 %v9362_v44, %v8524_v46  ;;  %v8548_v46 = vld [vmem:[#allocation2 + $0x968] sm:$0xf]  ;;  %v9368_v44 = vld [vmem:[#allocation2 + $0x970] sm:$0xf0] }
 0x889   :  { %v6763_v6 = vadd.f32 %v6762_v41, %v6034_v60 }
 0x88a   :  { %v6765_v30 = vpop.f32.mrf.mxu2  ;;  %v6947_v61 = vpop.f32.mrf.mxu3 }
 0x88b   :  { %7220 = vst.msk [vmem:[%s13883_s4 + $0x578] sm:$0xff] %vm81_vm0, %v6763_v6  ;;  %v6948_v5 = vadd.f32 %v6947_v61, %v6219_v35  ;;  %v6229_v35 = vadd.f32 %v14263_v37, %v14262_v55  ;;  %v14270_v55 = vld [vmem:[#allocation12_spill] sm:$0xff] }
 0x88c   :  { %v5312_v26 = vpop.f32.mrf.mxu0  ;;  %v14271_v37 = vld [vmem:[#allocation76_spill] sm:$0xff] }
 0x88d   :  { %7294 = vst.msk [vmem:[%s13883_s4 + $0x7c8] sm:$0xff] %vm81_vm0, %v6948_v5 }
 0x88e   :  { %v6036_v19 = vpop.f32.mrf.mxu1 }
 0x88f   :  { %v6037_v36 = vadd.f32 %v6036_v19, %v5307_v10  ;;  %6989 = vmatmul.bf16.gmra.mxu3 %v8945_v31  ;;  %5351 = vmatmul.bf16.gmra.mxu0 %v8505_v17  ;;  %v8969_v31 = vor.u32 %v9473_v38, %v8968_v32  ;;  %v8529_v17 = vor.u32 %v9364_v52, %v8528_v13  ;;  %v8992_v32 = vld [vmem:[#allocation2 + $0xce0] sm:$0xf]  ;;  %v9479_v38 = vld [vmem:[#allocation2 + $0xce8] sm:$0xf0]  ;;  %v8552_v13 = vld [vmem:[#allocation2 + $0x978] sm:$0xf] }
 0x890   :  { %v9370_v52 = vld [vmem:[#allocation2 + $0x980] sm:$0xf0] }
 0x891   :  { %v6766_v27 = vadd.f32 %v6765_v30, %v6037_v36  ;;  %6075 = vmatmul.bf16.gmra.mxu1 %v8497_v48  ;;  %v8521_v48 = vor.u32 %v9360_v25, %v8518_v58  ;;  %v9366_v25 = vld [vmem:[#allocation2 + $0x964] sm:$0xf]  ;;  %v8542_v58 = vld [vmem:[#allocation2 + $0x96c] sm:$0xf0] }
 0x892   :  { %v6767_v20 = vpop.f32.mrf.mxu2  ;;  %v6950_v22 = vpop.f32.mrf.mxu3 }
 0x893   :  { %7221 = vst.msk [vmem:[%s13883_s4 + $0x580] sm:$0xff] %vm81_vm0, %v6766_v27  ;;  %v6951_v47 = vadd.f32 %v6950_v22, %v6222_v16  ;;  %v6232_v16 = vadd.f32 %v14265_v59, %v14264_v43  ;;  %v14272_v43 = vld [vmem:[#allocation14_spill] sm:$0xff]  ;;  %v14273_v59 = vld [vmem:[#allocation77_spill] sm:$0xff] }
 0x894   :  { %v5314_v42 = vpop.f32.mrf.mxu0 }
 0x895   :  { %7295 = vst.msk [vmem:[%s13883_s4 + $0x7d0] sm:$0xff] %vm81_vm0, %v6951_v47 }
 0x896   :  { %v6038_v15 = vpop.f32.mrf.mxu1 }
 0x897   :  { %v6039_v39 = vadd.f32 %v6038_v15, %v5309_v12  ;;  %6809 = vmatmul.bf16.gmra.mxu2 %v8513_v40  ;;  %v8537_v40 = vor.u32 %v9365_v29, %v8536_v49  ;;  %v8560_v49 = vld [vmem:[#allocation2 + $0x980] sm:$0xf]  ;;  %v9371_v29 = vld [vmem:[#allocation2 + $0x988] sm:$0xf0] }
 0x899   :  { %v6768_v23 = vadd.f32 %v6767_v20, %v6039_v39 }
 0x89a   :  { %v6770_v11 = vpop.f32.mrf.mxu2  ;;  %v6952_v54 = vpop.f32.mrf.mxu3 }
 0x89b   :  { %7222 = vst.msk [vmem:[%s13883_s4 + $0x588] sm:$0xff] %vm81_vm0, %v6768_v23  ;;  %v6953_v9 = vadd.f32 %v6952_v54, %v6224_v45  ;;  %v6234_v45 = vadd.f32 %v14267_v63, %v14266_v28  ;;  %v14274_v28 = vld [vmem:[#allocation38_spill] sm:$0xff] }
 0x89c   :  { %v5317_v10 = vpop.f32.mrf.mxu0  ;;  %v14275_v63 = vld [vmem:[#allocation78_spill] sm:$0xff] }
 0x89d   :  { %7296 = vst.msk [vmem:[%s13883_s4 + $0x7d8] sm:$0xff] %vm81_vm0, %v6953_v9 }
 0x89e   :  { %v6041_v62 = vpop.f32.mrf.mxu1 }
 0x89f   :  { %v6042_v21 = vadd.f32 %v6041_v62, %v5312_v26  ;;  %6994 = vmatmul.bf16.gmra.mxu3 %v8957_v24  ;;  %5356 = vmatmul.bf16.gmra.mxu0 %v8517_v56  ;;  %v8981_v24 = vor.u32 %v9476_v18, %v8980_v53  ;;  %v8541_v56 = vor.u32 %v9367_v14, %v8540_v1  ;;  %v9004_v53 = vld [vmem:[#allocation2 + $0xcf8] sm:$0xf]  ;;  %v9482_v18 = vld [vmem:[#allocation2 + $0xd00] sm:$0xf0]  ;;  %v8564_v1 = vld [vmem:[#allocation2 + $0x990] sm:$0xf] }
 0x8a0   :  { %v9373_v14 = vld [vmem:[#allocation2 + $0x998] sm:$0xf0] }
 0x8a1   :  { %v6771_v51 = vadd.f32 %v6770_v11, %v6042_v21  ;;  %6080 = vmatmul.bf16.gmra.mxu1 %v8509_v33  ;;  %v8533_v33 = vor.u32 %v9363_v2, %v8530_v50  ;;  %v9369_v2 = vld [vmem:[#allocation2 + $0x97c] sm:$0xf]  ;;  %v8554_v50 = vld [vmem:[#allocation2 + $0x984] sm:$0xf0] }
 0x8a2   :  { %v6772_v41 = vpop.f32.mrf.mxu2  ;;  %v6955_v3 = vpop.f32.mrf.mxu3 }
 0x8a3   :  { %7223 = vst.msk [vmem:[%s13883_s4 + $0x590] sm:$0xff] %vm81_vm0, %v6771_v51  ;;  %v6956_v34 = vadd.f32 %v6955_v3, %v6227_v7  ;;  %v6237_v7 = vadd.f32 %v14269_v8, %v14268_v57  ;;  %v14276_v57 = vld [vmem:[#allocation13_spill] sm:$0xff]  ;;  %v14277_v8 = vld [vmem:[#allocation79_spill] sm:$0xff] }
 0x8a4   :  { %v5319_v12 = vpop.f32.mrf.mxu0 }
 0x8a5   :  { %7297 = vst.msk [vmem:[%s13883_s4 + $0x7e0] sm:$0xff] %vm81_vm0, %v6956_v34 }
 0x8a6   :  { %v6043_v0 = vpop.f32.mrf.mxu1 }
 0x8a7   :  { %v6044_v60 = vadd.f32 %v6043_v0, %v5314_v42  ;;  %6814 = vmatmul.bf16.gmra.mxu2 %v8525_v4  ;;  %v8549_v4 = vor.u32 %v9368_v44, %v8548_v46  ;;  %v8572_v46 = vld [vmem:[#allocation2 + $0x998] sm:$0xf]  ;;  %v9374_v44 = vld [vmem:[#allocation2 + $0x9a0] sm:$0xf0] }
 0x8a9   :  { %v6773_v6 = vadd.f32 %v6772_v41, %v6044_v60 }
 0x8aa   :  { %v6775_v30 = vpop.f32.mrf.mxu2  ;;  %v6957_v61 = vpop.f32.mrf.mxu3 }
 0x8ab   :  { %7224 = vst.msk [vmem:[%s13883_s4 + $0x598] sm:$0xff] %vm81_vm0, %v6773_v6  ;;  %v6958_v5 = vadd.f32 %v6957_v61, %v6229_v35  ;;  %v6239_v35 = vadd.f32 %v14271_v37, %v14270_v55  ;;  %v14278_v55 = vld [vmem:[#allocation16_spill] sm:$0xff] }
 0x8ac   :  { %v5322_v26 = vpop.f32.mrf.mxu0  ;;  %v14279_v37 = vld [vmem:[#allocation80_spill] sm:$0xff] }
 0x8ad   :  { %7298 = vst.msk [vmem:[%s13883_s4 + $0x7e8] sm:$0xff] %vm81_vm0, %v6958_v5 }
 0x8ae   :  { %v6046_v19 = vpop.f32.mrf.mxu1 }
 0x8af   :  { %v6047_v36 = vadd.f32 %v6046_v19, %v5317_v10  ;;  %6999 = vmatmul.bf16.gmra.mxu3 %v8969_v31  ;;  %5361 = vmatmul.bf16.gmra.mxu0 %v8529_v17  ;;  %v8993_v31 = vor.u32 %v9479_v38, %v8992_v32  ;;  %v8553_v17 = vor.u32 %v9370_v52, %v8552_v13  ;;  %v9016_v32 = vld [vmem:[#allocation2 + $0xd10] sm:$0xf]  ;;  %v9485_v38 = vld [vmem:[#allocation2 + $0xd18] sm:$0xf0]  ;;  %v8576_v13 = vld [vmem:[#allocation2 + $0x9a8] sm:$0xf] }
 0x8b0   :  { %v9376_v52 = vld [vmem:[#allocation2 + $0x9b0] sm:$0xf0] }
 0x8b1   :  { %v6776_v27 = vadd.f32 %v6775_v30, %v6047_v36  ;;  %6085 = vmatmul.bf16.gmra.mxu1 %v8521_v48  ;;  %v8545_v48 = vor.u32 %v9366_v25, %v8542_v58  ;;  %v9372_v25 = vld [vmem:[#allocation2 + $0x994] sm:$0xf]  ;;  %v8566_v58 = vld [vmem:[#allocation2 + $0x99c] sm:$0xf0] }
 0x8b2   :  { %v6777_v20 = vpop.f32.mrf.mxu2  ;;  %v6960_v22 = vpop.f32.mrf.mxu3 }
 0x8b3   :  { %7225 = vst.msk [vmem:[%s13883_s4 + $0x5a0] sm:$0xff] %vm81_vm0, %v6776_v27  ;;  %v6961_v47 = vadd.f32 %v6960_v22, %v6232_v16  ;;  %v6242_v16 = vadd.f32 %v14273_v59, %v14272_v43  ;;  %v14280_v43 = vld [vmem:[#allocation19_spill] sm:$0xff]  ;;  %v14281_v59 = vld [vmem:[#allocation81_spill] sm:$0xff] }
 0x8b4   :  { %v5324_v42 = vpop.f32.mrf.mxu0 }
 0x8b5   :  { %7299 = vst.msk [vmem:[%s13883_s4 + $0x7f0] sm:$0xff] %vm81_vm0, %v6961_v47 }
 0x8b6   :  { %v6048_v15 = vpop.f32.mrf.mxu1 }
 0x8b7   :  { %v6049_v39 = vadd.f32 %v6048_v15, %v5319_v12  ;;  %6819 = vmatmul.bf16.gmra.mxu2 %v8537_v40  ;;  %v8561_v40 = vor.u32 %v9371_v29, %v8560_v49  ;;  %v8584_v49 = vld [vmem:[#allocation2 + $0x9b0] sm:$0xf]  ;;  %v9377_v29 = vld [vmem:[#allocation2 + $0x9b8] sm:$0xf0] }
 0x8b9   :  { %v6778_v23 = vadd.f32 %v6777_v20, %v6049_v39 }
 0x8ba   :  { %v6780_v11 = vpop.f32.mrf.mxu2  ;;  %v6962_v54 = vpop.f32.mrf.mxu3 }
 0x8bb   :  { %7226 = vst.msk [vmem:[%s13883_s4 + $0x5a8] sm:$0xff] %vm81_vm0, %v6778_v23  ;;  %v6963_v9 = vadd.f32 %v6962_v54, %v6234_v45  ;;  %v6244_v45 = vadd.f32 %v14275_v63, %v14274_v28  ;;  %v14282_v28 = vld [vmem:[#allocation39_spill] sm:$0xff]  ;;  %v14283_v63 = vld [vmem:[#allocation82_spill] sm:$0xff] }
 0x8bc   :  { %v5327_v10 = vpop.f32.mrf.mxu0 }
 0x8bd   :  { %7300 = vst.msk [vmem:[%s13883_s4 + $0x7f8] sm:$0xff] %vm81_vm0, %v6963_v9 }
 0x8be   :  { %v6051_v62 = vpop.f32.mrf.mxu1 }
 0x8bf   :  { %v6052_v21 = vadd.f32 %v6051_v62, %v5322_v26  ;;  %7004 = vmatmul.bf16.gmra.mxu3 %v8981_v24  ;;  %5366 = vmatmul.bf16.gmra.mxu0 %v8541_v56  ;;  %v9005_v24 = vor.u32 %v9482_v18, %v9004_v53  ;;  %v8565_v56 = vor.u32 %v9373_v14, %v8564_v1  ;;  %v9028_v53 = vld [vmem:[#allocation2 + $0xd28] sm:$0xf]  ;;  %v9488_v18 = vld [vmem:[#allocation2 + $0xd30] sm:$0xf0]  ;;  %v8588_v1 = vld [vmem:[#allocation2 + $0x9c0] sm:$0xf] }
 0x8c0   :  { %v9379_v14 = vld [vmem:[#allocation2 + $0x9c8] sm:$0xf0] }
 0x8c1   :  { %v6781_v51 = vadd.f32 %v6780_v11, %v6052_v21  ;;  %6090 = vmatmul.bf16.gmra.mxu1 %v8533_v33  ;;  %v8557_v33 = vor.u32 %v9369_v2, %v8554_v50  ;;  %v9375_v2 = vld [vmem:[#allocation2 + $0x9ac] sm:$0xf]  ;;  %v8578_v50 = vld [vmem:[#allocation2 + $0x9b4] sm:$0xf0] }
 0x8c2   :  { %v6782_v41 = vpop.f32.mrf.mxu2  ;;  %v6965_v3 = vpop.f32.mrf.mxu3 }
 0x8c3   :  { %7227 = vst.msk [vmem:[%s13883_s4 + $0x5b0] sm:$0xff] %vm81_vm0, %v6781_v51  ;;  %v6966_v34 = vadd.f32 %v6965_v3, %v6237_v7  ;;  %v6247_v7 = vadd.f32 %v14277_v8, %v14276_v57  ;;  %v14284_v57 = vld [vmem:[#allocation20_spill] sm:$0xff]  ;;  %v14285_v8 = vld [vmem:[#allocation83_spill] sm:$0xff] }
 0x8c4   :  { %v5329_v12 = vpop.f32.mrf.mxu0 }
 0x8c5   :  { %7301 = vst.msk [vmem:[%s13883_s4 + $0x800] sm:$0xff] %vm81_vm0, %v6966_v34 }
 0x8c6   :  { %v6053_v0 = vpop.f32.mrf.mxu1 }
 0x8c7   :  { %v6054_v60 = vadd.f32 %v6053_v0, %v5324_v42  ;;  %6824 = vmatmul.bf16.gmra.mxu2 %v8549_v4  ;;  %v8573_v4 = vor.u32 %v9374_v44, %v8572_v46  ;;  %v8596_v46 = vld [vmem:[#allocation2 + $0x9c8] sm:$0xf]  ;;  %v9380_v44 = vld [vmem:[#allocation2 + $0x9d0] sm:$0xf0] }
 0x8c9   :  { %v6783_v6 = vadd.f32 %v6782_v41, %v6054_v60 }
 0x8ca   :  { %v6785_v30 = vpop.f32.mrf.mxu2  ;;  %v6967_v61 = vpop.f32.mrf.mxu3 }
 0x8cb   :  { %7228 = vst.msk [vmem:[%s13883_s4 + $0x5b8] sm:$0xff] %vm81_vm0, %v6783_v6  ;;  %v6968_v5 = vadd.f32 %v6967_v61, %v6239_v35  ;;  %v6249_v35 = vadd.f32 %v14279_v37, %v14278_v55  ;;  %v14286_v55 = vld [vmem:[#allocation18_spill] sm:$0xff]  ;;  %v14287_v37 = vld [vmem:[#allocation84_spill] sm:$0xff] }
 0x8cc   :  { %v5332_v26 = vpop.f32.mrf.mxu0 }
 0x8cd   :  { %7302 = vst.msk [vmem:[%s13883_s4 + $0x808] sm:$0xff] %vm81_vm0, %v6968_v5 }
 0x8ce   :  { %v6056_v19 = vpop.f32.mrf.mxu1 }
 0x8cf   :  { %v6057_v36 = vadd.f32 %v6056_v19, %v5327_v10  ;;  %7009 = vmatmul.bf16.gmra.mxu3 %v8993_v31  ;;  %5371 = vmatmul.bf16.gmra.mxu0 %v8553_v17  ;;  %v9017_v31 = vor.u32 %v9485_v38, %v9016_v32  ;;  %v8577_v17 = vor.u32 %v9376_v52, %v8576_v13  ;;  %v9040_v32 = vld [vmem:[#allocation2 + $0xd40] sm:$0xf]  ;;  %v9491_v38 = vld [vmem:[#allocation2 + $0xd48] sm:$0xf0]  ;;  %v8600_v13 = vld [vmem:[#allocation2 + $0x9d8] sm:$0xf] }
 0x8d0   :  { %v9382_v52 = vld [vmem:[#allocation2 + $0x9e0] sm:$0xf0] }
 0x8d1   :  { %v6786_v27 = vadd.f32 %v6785_v30, %v6057_v36  ;;  %6095 = vmatmul.bf16.gmra.mxu1 %v8545_v48  ;;  %v8569_v48 = vor.u32 %v9372_v25, %v8566_v58  ;;  %v9378_v25 = vld [vmem:[#allocation2 + $0x9c4] sm:$0xf]  ;;  %v8590_v58 = vld [vmem:[#allocation2 + $0x9cc] sm:$0xf0] }
 0x8d2   :  { %v6787_v20 = vpop.f32.mrf.mxu2  ;;  %v6970_v22 = vpop.f32.mrf.mxu3 }
 0x8d3   :  { %7229 = vst.msk [vmem:[%s13883_s4 + $0x5c0] sm:$0xff] %vm81_vm0, %v6786_v27  ;;  %v6971_v47 = vadd.f32 %v6970_v22, %v6242_v16  ;;  %v6252_v16 = vadd.f32 %v14281_v59, %v14280_v43  ;;  %v14288_v43 = vld [vmem:[#allocation15_spill] sm:$0xff]  ;;  %v14289_v59 = vld [vmem:[#allocation85_spill] sm:$0xff] }
 0x8d4   :  { %v5334_v42 = vpop.f32.mrf.mxu0 }
 0x8d5   :  { %7303 = vst.msk [vmem:[%s13883_s4 + $0x810] sm:$0xff] %vm81_vm0, %v6971_v47 }
 0x8d6   :  { %v6058_v15 = vpop.f32.mrf.mxu1 }
 0x8d7   :  { %v6059_v39 = vadd.f32 %v6058_v15, %v5329_v12  ;;  %6829 = vmatmul.bf16.gmra.mxu2 %v8561_v40  ;;  %v8585_v40 = vor.u32 %v9377_v29, %v8584_v49  ;;  %v8608_v49 = vld [vmem:[#allocation2 + $0x9e0] sm:$0xf]  ;;  %v9383_v29 = vld [vmem:[#allocation2 + $0x9e8] sm:$0xf0] }
 0x8d9   :  { %v6788_v23 = vadd.f32 %v6787_v20, %v6059_v39 }
 0x8da   :  { %v6790_v11 = vpop.f32.mrf.mxu2  ;;  %v6972_v54 = vpop.f32.mrf.mxu3 }
 0x8db   :  { %7230 = vst.msk [vmem:[%s13883_s4 + $0x5c8] sm:$0xff] %vm81_vm0, %v6788_v23  ;;  %v6973_v9 = vadd.f32 %v6972_v54, %v6244_v45  ;;  %v6254_v45 = vadd.f32 %v14283_v63, %v14282_v28  ;;  %v14290_v28 = vld [vmem:[#allocation17_spill] sm:$0xff]  ;;  %v14291_v63 = vld [vmem:[#allocation86_spill] sm:$0xff] }
 0x8dc   :  { %v5337_v10 = vpop.f32.mrf.mxu0 }
 0x8dd   :  { %7304 = vst.msk [vmem:[%s13883_s4 + $0x818] sm:$0xff] %vm81_vm0, %v6973_v9 }
 0x8de   :  { %v6061_v62 = vpop.f32.mrf.mxu1 }
 0x8df   :  { %v6062_v21 = vadd.f32 %v6061_v62, %v5332_v26  ;;  %7014 = vmatmul.bf16.gmra.mxu3 %v9005_v24  ;;  %5376 = vmatmul.bf16.gmra.mxu0 %v8565_v56  ;;  %v9029_v24 = vor.u32 %v9488_v18, %v9028_v53  ;;  %v8589_v56 = vor.u32 %v9379_v14, %v8588_v1  ;;  %v9052_v53 = vld [vmem:[#allocation2 + $0xd58] sm:$0xf]  ;;  %v9494_v18 = vld [vmem:[#allocation2 + $0xd60] sm:$0xf0]  ;;  %v8612_v1 = vld [vmem:[#allocation2 + $0x9f0] sm:$0xf] }
 0x8e0   :  { %v9385_v14 = vld [vmem:[#allocation2 + $0x9f8] sm:$0xf0] }
 0x8e1   :  { %v6791_v51 = vadd.f32 %v6790_v11, %v6062_v21  ;;  %6100 = vmatmul.bf16.gmra.mxu1 %v8557_v33  ;;  %v8581_v33 = vor.u32 %v9375_v2, %v8578_v50  ;;  %v9381_v2 = vld [vmem:[#allocation2 + $0x9dc] sm:$0xf]  ;;  %v8602_v50 = vld [vmem:[#allocation2 + $0x9e4] sm:$0xf0] }
 0x8e2   :  { %v6792_v41 = vpop.f32.mrf.mxu2  ;;  %v6975_v3 = vpop.f32.mrf.mxu3 }
 0x8e3   :  { %7231 = vst.msk [vmem:[%s13883_s4 + $0x5d0] sm:$0xff] %vm81_vm0, %v6791_v51  ;;  %v6976_v34 = vadd.f32 %v6975_v3, %v6247_v7  ;;  %v6257_v7 = vadd.f32 %v14285_v8, %v14284_v57  ;;  %v14292_v57 = vld [vmem:[#allocation25_spill] sm:$0xff]  ;;  %v14293_v8 = vld [vmem:[#allocation87_spill] sm:$0xff] }
 0x8e4   :  { %v5339_v12 = vpop.f32.mrf.mxu0 }
 0x8e5   :  { %7305 = vst.msk [vmem:[%s13883_s4 + $0x820] sm:$0xff] %vm81_vm0, %v6976_v34 }
 0x8e6   :  { %v6063_v0 = vpop.f32.mrf.mxu1 }
 0x8e7   :  { %v6064_v60 = vadd.f32 %v6063_v0, %v5334_v42  ;;  %6834 = vmatmul.bf16.gmra.mxu2 %v8573_v4  ;;  %v8597_v4 = vor.u32 %v9380_v44, %v8596_v46  ;;  %v8620_v46 = vld [vmem:[#allocation2 + $0x9f8] sm:$0xf]  ;;  %v9386_v44 = vld [vmem:[#allocation2 + $0xa00] sm:$0xf0] }
 0x8e9   :  { %v6793_v6 = vadd.f32 %v6792_v41, %v6064_v60 }
 0x8ea   :  { %v6795_v30 = vpop.f32.mrf.mxu2  ;;  %v6977_v61 = vpop.f32.mrf.mxu3 }
 0x8eb   :  { %7232 = vst.msk [vmem:[%s13883_s4 + $0x5d8] sm:$0xff] %vm81_vm0, %v6793_v6  ;;  %v6978_v5 = vadd.f32 %v6977_v61, %v6249_v35  ;;  %v6259_v35 = vadd.f32 %v14287_v37, %v14286_v55  ;;  %v14294_v55 = vld [vmem:[#allocation28_spill] sm:$0xff] }
 0x8ec   :  { %v5342_v26 = vpop.f32.mrf.mxu0  ;;  %v14295_v37 = vld [vmem:[#allocation88_spill] sm:$0xff] }
 0x8ed   :  { %7306 = vst.msk [vmem:[%s13883_s4 + $0x828] sm:$0xff] %vm81_vm0, %v6978_v5 }
 0x8ee   :  { %v6066_v19 = vpop.f32.mrf.mxu1 }
 0x8ef   :  { %v6067_v36 = vadd.f32 %v6066_v19, %v5337_v10  ;;  %7019 = vmatmul.bf16.gmra.mxu3 %v9017_v31  ;;  %5381 = vmatmul.bf16.gmra.mxu0 %v8577_v17  ;;  %v9041_v31 = vor.u32 %v9491_v38, %v9040_v32  ;;  %v8601_v17 = vor.u32 %v9382_v52, %v8600_v13  ;;  %v9064_v32 = vld [vmem:[#allocation2 + $0xd70] sm:$0xf]  ;;  %v9497_v38 = vld [vmem:[#allocation2 + $0xd78] sm:$0xf0]  ;;  %v8624_v13 = vld [vmem:[#allocation2 + $0xa08] sm:$0xf] }
 0x8f0   :  { %v9388_v52 = vld [vmem:[#allocation2 + $0xa10] sm:$0xf0] }
 0x8f1   :  { %v6796_v27 = vadd.f32 %v6795_v30, %v6067_v36  ;;  %6105 = vmatmul.bf16.gmra.mxu1 %v8569_v48  ;;  %v8593_v48 = vor.u32 %v9378_v25, %v8590_v58  ;;  %v9384_v25 = vld [vmem:[#allocation2 + $0x9f4] sm:$0xf]  ;;  %v8614_v58 = vld [vmem:[#allocation2 + $0x9fc] sm:$0xf0] }
 0x8f2   :  { %v6797_v20 = vpop.f32.mrf.mxu2  ;;  %v6980_v22 = vpop.f32.mrf.mxu3 }
 0x8f3   :  { %7233 = vst.msk [vmem:[%s13883_s4 + $0x5e0] sm:$0xff] %vm81_vm0, %v6796_v27  ;;  %v6981_v47 = vadd.f32 %v6980_v22, %v6252_v16  ;;  %v6262_v16 = vadd.f32 %v14289_v59, %v14288_v43  ;;  %v14296_v43 = vld [vmem:[#allocation21_spill] sm:$0xff] }
 0x8f4   :  { %v5344_v42 = vpop.f32.mrf.mxu0  ;;  %v14297_v59 = vld [vmem:[#allocation89_spill] sm:$0xff] }
 0x8f5   :  { %7307 = vst.msk [vmem:[%s13883_s4 + $0x830] sm:$0xff] %vm81_vm0, %v6981_v47 }
 0x8f6   :  { %v6068_v15 = vpop.f32.mrf.mxu1 }
 0x8f7   :  { %v6069_v39 = vadd.f32 %v6068_v15, %v5339_v12  ;;  %6839 = vmatmul.bf16.gmra.mxu2 %v8585_v40  ;;  %v8609_v40 = vor.u32 %v9383_v29, %v8608_v49  ;;  %v8632_v49 = vld [vmem:[#allocation2 + $0xa10] sm:$0xf]  ;;  %v9389_v29 = vld [vmem:[#allocation2 + $0xa18] sm:$0xf0] }
 0x8f9   :  { %v6798_v23 = vadd.f32 %v6797_v20, %v6069_v39 }
 0x8fa   :  { %v6800_v11 = vpop.f32.mrf.mxu2  ;;  %v6982_v54 = vpop.f32.mrf.mxu3 }
 0x8fb   :  { %7234 = vst.msk [vmem:[%s13883_s4 + $0x5e8] sm:$0xff] %vm81_vm0, %v6798_v23  ;;  %v6983_v9 = vadd.f32 %v6982_v54, %v6254_v45  ;;  %v6264_v45 = vadd.f32 %v14291_v63, %v14290_v28 }
 0x8fc   :  { %v5347_v10 = vpop.f32.mrf.mxu0 }
 0x8fd   :  { %7308 = vst.msk [vmem:[%s13883_s4 + $0x838] sm:$0xff] %vm81_vm0, %v6983_v9 }
 0x8fe   :  { %v6071_v62 = vpop.f32.mrf.mxu1 }
 0x8ff   :  { %v6072_v21 = vadd.f32 %v6071_v62, %v5342_v26  ;;  %7024 = vmatmul.bf16.gmra.mxu3 %v9029_v24  ;;  %5386 = vmatmul.bf16.gmra.mxu0 %v8589_v56  ;;  %v9053_v24 = vor.u32 %v9494_v18, %v9052_v53  ;;  %v8613_v56 = vor.u32 %v9385_v14, %v8612_v1  ;;  %v14298_v53 = vld [vmem:[#allocation26_spill] sm:$0xff] }
 0x900   :  { %v14299_v18 = vld [vmem:[#allocation90_spill] sm:$0xff] }
 0x901   :  { %v6801_v51 = vadd.f32 %v6800_v11, %v6072_v21  ;;  %6110 = vmatmul.bf16.gmra.mxu1 %v8581_v33  ;;  %v8605_v33 = vor.u32 %v9381_v2, %v8602_v50  ;;  %v6274_v1 = vadd.f32 %v14299_v18, %v14298_v53  ;;  %v14311_v53 = vld [vmem:[#allocation96_spill] sm:$0xff] }
 0x902   :  { %v6802_v41 = vpop.f32.mrf.mxu2  ;;  %v6985_v3 = vpop.f32.mrf.mxu3 }
 0x903   :  { %7235 = vst.msk [vmem:[%s13883_s4 + $0x5f0] sm:$0xff] %vm81_vm0, %v6801_v51  ;;  %v6986_v34 = vadd.f32 %v6985_v3, %v6257_v7  ;;  %v6267_v7 = vadd.f32 %v14293_v8, %v14292_v57 }
 0x904   :  { %v5349_v12 = vpop.f32.mrf.mxu0 }
 0x905   :  { %7309 = vst.msk [vmem:[%s13883_s4 + $0x840] sm:$0xff] %vm81_vm0, %v6986_v34 }
 0x906   :  { %v6073_v0 = vpop.f32.mrf.mxu1 }
 0x907   :  { %v6074_v60 = vadd.f32 %v6073_v0, %v5344_v42  ;;  %6844 = vmatmul.bf16.gmra.mxu2 %v8597_v4  ;;  %v8621_v4 = vor.u32 %v9386_v44, %v8620_v46 }
 0x909   :  { %v6803_v6 = vadd.f32 %v6802_v41, %v6074_v60 }
 0x90a   :  { %v6805_v30 = vpop.f32.mrf.mxu2  ;;  %v6987_v61 = vpop.f32.mrf.mxu3 }
 0x90b   :  { %7236 = vst.msk [vmem:[%s13883_s4 + $0x5f8] sm:$0xff] %vm81_vm0, %v6803_v6  ;;  %v6988_v5 = vadd.f32 %v6987_v61, %v6259_v35  ;;  %v6269_v35 = vadd.f32 %v14295_v37, %v14294_v55 }
 0x90c   :  { %v5352_v26 = vpop.f32.mrf.mxu0 }
 0x90d   :  { %7310 = vst.msk [vmem:[%s13883_s4 + $0x848] sm:$0xff] %vm81_vm0, %v6988_v5 }
 0x90e   :  { %v6076_v19 = vpop.f32.mrf.mxu1 }
 0x90f   :  { %v6077_v36 = vadd.f32 %v6076_v19, %v5347_v10  ;;  %7029 = vmatmul.bf16.gmra.mxu3 %v9041_v31  ;;  %5391 = vmatmul.bf16.gmra.mxu0 %v8601_v17  ;;  %v9065_v31 = vor.u32 %v9497_v38, %v9064_v32  ;;  %v8625_v17 = vor.u32 %v9388_v52, %v8624_v13  ;;  %v14304_v38 = vld [vmem:[#allocation24_spill] sm:$0xff]  ;;  %v14305_v13 = vld [vmem:[#allocation93_spill] sm:$0xff] }
 0x910   :  { %v6282_v52 = vadd.f32 %v14305_v13, %v14304_v38 }
 0x911   :  { %v6806_v27 = vadd.f32 %v6805_v30, %v6077_v36  ;;  %6115 = vmatmul.bf16.gmra.mxu1 %v8593_v48  ;;  %v8617_v48 = vor.u32 %v9384_v25, %v8614_v58  ;;  %v14306_v58 = vld [vmem:[#allocation43_spill] sm:$0xff] }
 0x912   :  { %v6807_v20 = vpop.f32.mrf.mxu2  ;;  %v6990_v22 = vpop.f32.mrf.mxu3 }
 0x913   :  { %7237 = vst.msk [vmem:[%s13883_s4 + $0x600] sm:$0xff] %vm81_vm0, %v6806_v27  ;;  %v6991_v47 = vadd.f32 %v6990_v22, %v6262_v16  ;;  %v6272_v16 = vadd.f32 %v14297_v59, %v14296_v43  ;;  %v14308_v43 = vld [vmem:[#allocation44_spill] sm:$0xff]  ;;  %v14309_v59 = vld [vmem:[#allocation95_spill] sm:$0xff] }
 0x914   :  { %v5354_v42 = vpop.f32.mrf.mxu0 }
 0x915   :  { %7311 = vst.msk [vmem:[%s13883_s4 + $0x850] sm:$0xff] %vm81_vm0, %v6991_v47 }
 0x916   :  { %v6078_v15 = vpop.f32.mrf.mxu1 }
 0x917   :  { %v6079_v39 = vadd.f32 %v6078_v15, %v5349_v12  ;;  %6849 = vmatmul.bf16.gmra.mxu2 %v8609_v40  ;;  %v8633_v40 = vor.u32 %v9389_v29, %v8632_v49 }
 0x919   :  { %v6808_v23 = vadd.f32 %v6807_v20, %v6079_v39 }
 0x91a   :  { %v6810_v11 = vpop.f32.mrf.mxu2  ;;  %v6992_v54 = vpop.f32.mrf.mxu3 }
 0x91b   :  { %7238 = vst.msk [vmem:[%s13883_s4 + $0x608] sm:$0xff] %vm81_vm0, %v6808_v23  ;;  %v6993_v9 = vadd.f32 %v6992_v54, %v6264_v45  ;;  %v9387_v45 = vld [vmem:[#allocation2 + $0xa0c] sm:$0xf]  ;;  %v8626_v23 = vld [vmem:[#allocation2 + $0xa14] sm:$0xf0] }
 0x91c   :  { %v5357_v10 = vpop.f32.mrf.mxu0  ;;  %v8629_v2 = vor.u32 %v9387_v45, %v8626_v23 }
 0x91d   :  { %7312 = vst.msk [vmem:[%s13883_s4 + $0x858] sm:$0xff] %vm81_vm0, %v6993_v9 }
 0x91e   :  { %v6081_v62 = vpop.f32.mrf.mxu1 }
 0x91f   :  { %v6082_v21 = vadd.f32 %v6081_v62, %v5352_v26  ;;  %7034 = vmatmul.bf16.gmra.mxu3 %v9053_v24  ;;  %5396 = vmatmul.bf16.gmra.mxu0 %v8613_v56  ;;  %v14300_v24 = vld [vmem:[#allocation23_spill] sm:$0xff] }
 0x920   :  { %v14301_v56 = vld [vmem:[#allocation91_spill] sm:$0xff] }
 0x921   :  { %v6811_v51 = vadd.f32 %v6810_v11, %v6082_v21  ;;  %6120 = vmatmul.bf16.gmra.mxu1 %v8605_v33 }
 0x922   :  { %v6812_v41 = vpop.f32.mrf.mxu2  ;;  %v6995_v3 = vpop.f32.mrf.mxu3 }
 0x923   :  { %7239 = vst.msk [vmem:[%s13883_s4 + $0x610] sm:$0xff] %vm81_vm0, %v6811_v51  ;;  %v6996_v34 = vadd.f32 %v6995_v3, %v6267_v7  ;;  %v14302_v7 = vld [vmem:[#allocation42_spill] sm:$0xff]  ;;  %v14303_v51 = vld [vmem:[#allocation92_spill] sm:$0xff] }
 0x924   :  { %v5359_v12 = vpop.f32.mrf.mxu0 }
 0x925   :  { %7313 = vst.msk [vmem:[%s13883_s4 + $0x860] sm:$0xff] %vm81_vm0, %v6996_v34 }
 0x926   :  { %v6083_v0 = vpop.f32.mrf.mxu1 }
 0x927   :  { %v6084_v60 = vadd.f32 %v6083_v0, %v5354_v42  ;;  %6854 = vmatmul.bf16.gmra.mxu2 %v8621_v4 }
 0x929   :  { %v6813_v6 = vadd.f32 %v6812_v41, %v6084_v60  ;;  %v6279_v41 = vadd.f32 %v14303_v51, %v14302_v7 }
 0x92a   :  { %v6815_v30 = vpop.f32.mrf.mxu2  ;;  %v6997_v61 = vpop.f32.mrf.mxu3 }
 0x92b   :  { %7240 = vst.msk [vmem:[%s13883_s4 + $0x618] sm:$0xff] %vm81_vm0, %v6813_v6  ;;  %v6998_v5 = vadd.f32 %v6997_v61, %v6269_v35 }
 0x92c   :  { %v5362_v26 = vpop.f32.mrf.mxu0 }
 0x92d   :  { %7314 = vst.msk [vmem:[%s13883_s4 + $0x868] sm:$0xff] %vm81_vm0, %v6998_v5  ;;  %v14307_v5 = vld [vmem:[#allocation94_spill] sm:$0xff] }
 0x92e   :  { %v6086_v19 = vpop.f32.mrf.mxu1 }
 0x92f   :  { %v6087_v36 = vadd.f32 %v6086_v19, %v5357_v10  ;;  %7039 = vmatmul.bf16.gmra.mxu3 %v9065_v31  ;;  %5401 = vmatmul.bf16.gmra.mxu0 %v8625_v17  ;;  %v6277_v10 = vadd.f32 %v14301_v56, %v14300_v24  ;;  %v6284_v31 = vadd.f32 %v14307_v5, %v14306_v58 }
 0x931   :  { %v6816_v27 = vadd.f32 %v6815_v30, %v6087_v36  ;;  %6125 = vmatmul.bf16.gmra.mxu1 %v8617_v48 }
 0x932   :  { %v6817_v20 = vpop.f32.mrf.mxu2  ;;  %v7000_v22 = vpop.f32.mrf.mxu3 }
 0x933   :  { %7241 = vst.msk [vmem:[%s13883_s4 + $0x620] sm:$0xff] %vm81_vm0, %v6816_v27  ;;  %v7001_v47 = vadd.f32 %v7000_v22, %v6272_v16  ;;  %v6287_v16 = vadd.f32 %v14309_v59, %v14308_v43 }
 0x934   :  { %v5364_v42 = vpop.f32.mrf.mxu0 }
 0x935   :  { %7315 = vst.msk [vmem:[%s13883_s4 + $0x870] sm:$0xff] %vm81_vm0, %v7001_v47 }
 0x936   :  { %v6088_v15 = vpop.f32.mrf.mxu1 }
 0x937   :  { %v6089_v39 = vadd.f32 %v6088_v15, %v5359_v12  ;;  %6859 = vmatmul.bf16.gmra.mxu2 %v8633_v40 }
 0x939   :  { %v6818_v14 = vadd.f32 %v6817_v20, %v6089_v39  ;;  %v14310_v39 = vld [vmem:[#allocation45_spill] sm:$0xff] }
 0x93a   :  { %v6820_v28 = vpop.f32.mrf.mxu2  ;;  %v7002_v63 = vpop.f32.mrf.mxu3  ;;  %v6289_v18 = vadd.f32 %v14311_v53, %v14310_v39 }
 0x93b   :  { %7242 = vst.msk [vmem:[%s13883_s4 + $0x628] sm:$0xff] %vm81_vm0, %v6818_v14  ;;  %v7003_v11 = vadd.f32 %v7002_v63, %v6274_v1 }
 0x93c   :  { %v5367_v54 = vpop.f32.mrf.mxu0 }
 0x93d   :  { %7316 = vst.msk [vmem:[%s13883_s4 + $0x878] sm:$0xff] %vm81_vm0, %v7003_v11 }
 0x93e   :  { %v6091_v50 = vpop.f32.mrf.mxu1 }
 0x93f   :  { %v6092_v9 = vadd.f32 %v6091_v50, %v5362_v26 }
 0x941   :  { %v6821_v33 = vadd.f32 %v6820_v28, %v6092_v9  ;;  %6130 = vmatmul.bf16.gmra.mxu1 %v8629_v2  ;;  %v14313_v2 = vld [vmem:[#allocation97_spill] sm:$0xff] }
 0x942   :  { %v6822_v62 = vpop.f32.mrf.mxu2  ;;  %v7005_v21 = vpop.f32.mrf.mxu3 }
 0x943   :  { %7243 = vst.msk [vmem:[%s13883_s4 + $0x630] sm:$0xff] %vm81_vm0, %v6821_v33  ;;  %v7006_v46 = vadd.f32 %v7005_v21, %v6277_v10 }
 0x944   :  { %v5369_v44 = vpop.f32.mrf.mxu0 }
 0x945   :  { %7317 = vst.msk [vmem:[%s13883_s4 + $0x880] sm:$0xff] %vm81_vm0, %v7006_v46  ;;  %v14314_v46 = vld [vmem:[#allocation47_spill] sm:$0xff] }
 0x946   :  { %v6093_v57 = vpop.f32.mrf.mxu1 }
 0x947   :  { %v6094_v8 = vadd.f32 %v6093_v57, %v5364_v42 }
 0x949   :  { %v6823_v3 = vadd.f32 %v6822_v62, %v6094_v8 }
 0x94a   :  { %v6825_v34 = vpop.f32.mrf.mxu2  ;;  %v7007_v4 = vpop.f32.mrf.mxu3 }
 0x94b   :  { %7244 = vst.msk [vmem:[%s13883_s4 + $0x638] sm:$0xff] %vm81_vm0, %v6823_v3  ;;  %v7008_v12 = vadd.f32 %v7007_v4, %v6279_v41 }
 0x94c   :  { %v5372_v0 = vpop.f32.mrf.mxu0 }
 0x94d   :  { %7318 = vst.msk [vmem:[%s13883_s4 + $0x888] sm:$0xff] %vm81_vm0, %v7008_v12  ;;  %v14316_v12 = vld [vmem:[#allocation48_spill] sm:$0xff] }
 0x94e   :  { %v6096_v60 = vpop.f32.mrf.mxu1 }
 0x94f   :  { %v6097_v32 = vadd.f32 %v6096_v60, %v5367_v54  ;;  %v14312_v54 = vld [vmem:[#allocation46_spill] sm:$0xff] }
 0x950   :  { %v6292_v50 = vadd.f32 %v14313_v2, %v14312_v54 }
 0x951   :  { %v6826_v55 = vadd.f32 %v6825_v34, %v6097_v32 }
 0x952   :  { %v6827_v37 = vpop.f32.mrf.mxu2  ;;  %v7010_v35 = vpop.f32.mrf.mxu3 }
 0x953   :  { %7245 = vst.msk [vmem:[%s13883_s4 + $0x640] sm:$0xff] %vm81_vm0, %v6826_v55  ;;  %v7011_v6 = vadd.f32 %v7010_v35, %v6282_v52  ;;  %v14318_v35 = vld [vmem:[#allocation49_spill] sm:$0xff] }
 0x954   :  { %v5374_v30 = vpop.f32.mrf.mxu0 }
 0x955   :  { %7319 = vst.msk [vmem:[%s13883_s4 + $0x890] sm:$0xff] %vm81_vm0, %v7011_v6  ;;  %v14319_v6 = vld [vmem:[#allocation100_spill] sm:$0xff] }
 0x956   :  { %v6098_v61 = vpop.f32.mrf.mxu1 }
 0x957   :  { %v6099_v25 = vadd.f32 %v6098_v61, %v5369_v44  ;;  %v14315_v44 = vld [vmem:[#allocation98_spill] sm:$0xff] }
 0x958   :  { %v6294_v57 = vadd.f32 %v14315_v44, %v14314_v46 }
 0x959   :  { %v6828_v17 = vadd.f32 %v6827_v37, %v6099_v25 }
 0x95a   :  { %v6830_v26 = vpop.f32.mrf.mxu2  ;;  %v7012_v48 = vpop.f32.mrf.mxu3 }
 0x95b   :  { %7246 = vst.msk [vmem:[%s13883_s4 + $0x648] sm:$0xff] %vm81_vm0, %v6828_v17  ;;  %v7013_v19 = vadd.f32 %v7012_v48, %v6284_v31  ;;  %v14320_v48 = vld [vmem:[#allocation50_spill] sm:$0xff] }
 0x95c   :  { %v5377_v36 = vpop.f32.mrf.mxu0 }
 0x95d   :  { %7320 = vst.msk [vmem:[%s13883_s4 + $0x898] sm:$0xff] %vm81_vm0, %v7013_v19  ;;  %v14321_v19 = vld [vmem:[#allocation101_spill] sm:$0xff] }
 0x95e   :  { %v6101_v49 = vpop.f32.mrf.mxu1 }
 0x95f   :  { %v6102_v29 = vadd.f32 %v6101_v49, %v5372_v0  ;;  %v14317_v0 = vld [vmem:[#allocation99_spill] sm:$0xff] }
 0x960   :  { %v6297_v60 = vadd.f32 %v14317_v0, %v14316_v12 }
 0x961   :  { %v6831_v27 = vadd.f32 %v6830_v26, %v6102_v29 }
 0x962   :  { %v6832_v20 = vpop.f32.mrf.mxu2  ;;  %v7015_v22 = vpop.f32.mrf.mxu3 }
 0x963   :  { %7247 = vst.msk [vmem:[%s13883_s4 + $0x650] sm:$0xff] %vm81_vm0, %v6831_v27  ;;  %v7016_v47 = vadd.f32 %v7015_v22, %v6287_v16  ;;  %v14322_v22 = vld [vmem:[#allocation51_spill] sm:$0xff] }
 0x964   :  { %v5379_v40 = vpop.f32.mrf.mxu0 }
 0x965   :  { %7321 = vst.msk [vmem:[%s13883_s4 + $0x8a0] sm:$0xff] %vm81_vm0, %v7016_v47  ;;  %v14323_v47 = vld [vmem:[#allocation102_spill] sm:$0xff] }
 0x966   :  { %v6103_v42 = vpop.f32.mrf.mxu1 }
 0x967   :  { %v6104_v15 = vadd.f32 %v6103_v42, %v5374_v30  ;;  %v6299_v30 = vadd.f32 %v14319_v6, %v14318_v35 }
 0x969   :  { %v6833_v1 = vadd.f32 %v6832_v20, %v6104_v15 }
 0x96a   :  { %v6835_v14 = vpop.f32.mrf.mxu2  ;;  %v7017_v28 = vpop.f32.mrf.mxu3 }
 0x96b   :  { %7248 = vst.msk [vmem:[%s13883_s4 + $0x658] sm:$0xff] %vm81_vm0, %v6833_v1  ;;  %v7018_v63 = vadd.f32 %v7017_v28, %v6289_v18  ;;  %v14324_v28 = vld [vmem:[#allocation52_spill] sm:$0xff] }
 0x96c   :  { %v5382_v45 = vpop.f32.mrf.mxu0 }
 0x96d   :  { %7322 = vst.msk [vmem:[%s13883_s4 + $0x8a8] sm:$0xff] %vm81_vm0, %v7018_v63  ;;  %v14325_v63 = vld [vmem:[#allocation103_spill] sm:$0xff] }
 0x96e   :  { %v6106_v23 = vpop.f32.mrf.mxu1 }
 0x96f   :  { %v6107_v11 = vadd.f32 %v6106_v23, %v5377_v36  ;;  %v6302_v36 = vadd.f32 %v14321_v19, %v14320_v48 }
 0x971   :  { %v6836_v9 = vadd.f32 %v6835_v14, %v6107_v11 }
 0x972   :  { %v6837_v24 = vpop.f32.mrf.mxu2  ;;  %v7020_v56 = vpop.f32.mrf.mxu3 }
 0x973   :  { %7249 = vst.msk [vmem:[%s13883_s4 + $0x660] sm:$0xff] %vm81_vm0, %v6836_v9  ;;  %v7021_v10 = vadd.f32 %v7020_v56, %v6292_v50  ;;  %v14326_v56 = vld [vmem:[#allocation53_spill] sm:$0xff] }
 0x974   :  { %v5384_v33 = vpop.f32.mrf.mxu0 }
 0x975   :  { %7323 = vst.msk [vmem:[%s13883_s4 + $0x8b0] sm:$0xff] %vm81_vm0, %v7021_v10  ;;  %v14327_v10 = vld [vmem:[#allocation104_spill] sm:$0xff] }
 0x976   :  { %v6108_v62 = vpop.f32.mrf.mxu1 }
 0x977   :  { %v6109_v21 = vadd.f32 %v6108_v62, %v5379_v40  ;;  %v6304_v40 = vadd.f32 %v14323_v47, %v14322_v22 }
 0x979   :  { %v6838_v8 = vadd.f32 %v6837_v24, %v6109_v21 }
 0x97a   :  { %v6840_v7 = vpop.f32.mrf.mxu2  ;;  %v7022_v51 = vpop.f32.mrf.mxu3 }
 0x97b   :  { %7250 = vst.msk [vmem:[%s13883_s4 + $0x668] sm:$0xff] %vm81_vm0, %v6838_v8  ;;  %v7023_v41 = vadd.f32 %v7022_v51, %v6294_v57  ;;  %v14329_v51 = vld [vmem:[#allocation105_spill] sm:$0xff] }
 0x97c   :  { %v5387_v4 = vpop.f32.mrf.mxu0 }
 0x97d   :  { %7324 = vst.msk [vmem:[%s13883_s4 + $0x8b8] sm:$0xff] %vm81_vm0, %v7023_v41 }
 0x97e   :  { %v6111_v3 = vpop.f32.mrf.mxu1 }
 0x97f   :  { %v6112_v34 = vadd.f32 %v6111_v3, %v5382_v45  ;;  %v6307_v45 = vadd.f32 %v14325_v63, %v14324_v28 }
 0x981   :  { %v6841_v32 = vadd.f32 %v6840_v7, %v6112_v34  ;;  %v14328_v7 = vld [vmem:[#allocation54_spill] sm:$0xff] }
 0x982   :  { %v6842_v38 = vpop.f32.mrf.mxu2  ;;  %v7025_v13 = vpop.f32.mrf.mxu3  ;;  %v6312_v41 = vadd.f32 %v14329_v51, %v14328_v7 }
 0x983   :  { %7251 = vst.msk [vmem:[%s13883_s4 + $0x670] sm:$0xff] %vm81_vm0, %v6841_v32  ;;  %v7026_v52 = vadd.f32 %v7025_v13, %v6297_v60  ;;  %v14331_v13 = vld [vmem:[#allocation106_spill] sm:$0xff] }
 0x984   :  { %v5389_v25 = vpop.f32.mrf.mxu0 }
 0x985   :  { %7325 = vst.msk [vmem:[%s13883_s4 + $0x8c0] sm:$0xff] %vm81_vm0, %v7026_v52 }
 0x986   :  { %v6113_v55 = vpop.f32.mrf.mxu1 }
 0x987   :  { %v6114_v37 = vadd.f32 %v6113_v55, %v5384_v33  ;;  %v6309_v33 = vadd.f32 %v14327_v10, %v14326_v56 }
 0x989   :  { %v6843_v61 = vadd.f32 %v6842_v38, %v6114_v37  ;;  %v14330_v38 = vld [vmem:[#allocation55_spill] sm:$0xff] }
 0x98a   :  { %v6845_v58 = vpop.f32.mrf.mxu2  ;;  %v7027_v5 = vpop.f32.mrf.mxu3  ;;  %v6314_v52 = vadd.f32 %v14331_v13, %v14330_v38 }
 0x98b   :  { %7252 = vst.msk [vmem:[%s13883_s4 + $0x678] sm:$0xff] %vm81_vm0, %v6843_v61  ;;  %v7028_v31 = vadd.f32 %v7027_v5, %v6299_v30 }
 0x98c   :  { %v5392_v16 = vpop.f32.mrf.mxu0 }
 0x98d   :  { %7326 = vst.msk [vmem:[%s13883_s4 + $0x8c8] sm:$0xff] %vm81_vm0, %v7028_v31 }
 0x98e   :  { %v6116_v17 = vpop.f32.mrf.mxu1 }
 0x98f   :  { %v6117_v26 = vadd.f32 %v6116_v17, %v5387_v4 }
 0x991   :  { %v6846_v49 = vadd.f32 %v6845_v58, %v6117_v26 }
 0x992   :  { %v6847_v29 = vpop.f32.mrf.mxu2  ;;  %v7030_v43 = vpop.f32.mrf.mxu3 }
 0x993   :  { %7253 = vst.msk [vmem:[%s13883_s4 + $0x680] sm:$0xff] %vm81_vm0, %v6846_v49  ;;  %v7031_v59 = vadd.f32 %v7030_v43, %v6302_v36 }
 0x994   :  { %v5394_v18 = vpop.f32.mrf.mxu0 }
 0x995   :  { %7327 = vst.msk [vmem:[%s13883_s4 + $0x8d0] sm:$0xff] %vm81_vm0, %v7031_v59 }
 0x996   :  { %v6118_v27 = vpop.f32.mrf.mxu1 }
 0x997   :  { %v6119_v20 = vadd.f32 %v6118_v27, %v5389_v25 }
 0x999   :  { %v6848_v42 = vadd.f32 %v6847_v29, %v6119_v20 }
 0x99a   :  { %v6850_v15 = vpop.f32.mrf.mxu2  ;;  %v7032_v39 = vpop.f32.mrf.mxu3 }
 0x99b   :  { %7254 = vst.msk [vmem:[%s13883_s4 + $0x688] sm:$0xff] %vm81_vm0, %v6848_v42  ;;  %v7033_v53 = vadd.f32 %v7032_v39, %v6304_v40 }
 0x99c   :  { %v5397_v24 = vpop.f32.mrf.mxu0 }
 0x99d   :  { %7328 = vst.msk [vmem:[%s13883_s4 + $0x8d8] sm:$0xff] %vm81_vm0, %v7033_v53 }
 0x99e   :  { %v6121_v1 = vpop.f32.mrf.mxu1 }
 0x99f   :  { %v6122_v14 = vadd.f32 %v6121_v1, %v5392_v16 }
 0x9a1   :  { %v6851_v23 = vadd.f32 %v6850_v15, %v6122_v14 }
 0x9a2   :  { %v6852_v11 = vpop.f32.mrf.mxu2  ;;  %v7035_v54 = vpop.f32.mrf.mxu3 }
 0x9a3   :  { %7255 = vst.msk [vmem:[%s13883_s4 + $0x690] sm:$0xff] %vm81_vm0, %v6851_v23  ;;  %v7036_v2 = vadd.f32 %v7035_v54, %v6307_v45 }
 0x9a4   :  { %v5399_v34 = vpop.f32.mrf.mxu0 }
 0x9a5   :  { %7329 = vst.msk [vmem:[%s13883_s4 + $0x8e0] sm:$0xff] %vm81_vm0, %v7036_v2 }
 0x9a6   :  { %v6123_v50 = vpop.f32.mrf.mxu1 }
 0x9a7   :  { %v6124_v9 = vadd.f32 %v6123_v50, %v5394_v18 }
 0x9a9   :  { %v6853_v62 = vadd.f32 %v6852_v11, %v6124_v9 }
 0x9aa   :  { %v6855_v21 = vpop.f32.mrf.mxu2  ;;  %v7037_v46 = vpop.f32.mrf.mxu3 }
 0x9ab   :  { %7256 = vst.msk [vmem:[%s13883_s4 + $0x698] sm:$0xff] %vm81_vm0, %v6853_v62  ;;  %v7038_v44 = vadd.f32 %v7037_v46, %v6309_v33 }
 0x9ac   :  { %v5402_v6 = vpop.f32.mrf.mxu0 }
 0x9ad   :  { %7330 = vst.msk [vmem:[%s13883_s4 + $0x8e8] sm:$0xff] %vm81_vm0, %v7038_v44 }
 0x9ae   :  { %v6126_v57 = vpop.f32.mrf.mxu1 }
 0x9af   :  { %v6127_v8 = vadd.f32 %v6126_v57, %v5397_v24 }
 0x9b1   :  { %v6856_v3 = vadd.f32 %v6855_v21, %v6127_v8 }
 0x9b2   :  { %v7040_v4 = vpop.f32.mrf.mxu3  ;;  %v6857_v0 = vpop.f32.mrf.mxu2 }
 0x9b3   :  { %7257 = vst.msk [vmem:[%s13883_s4 + $0x6a0] sm:$0xff] %vm81_vm0, %v6856_v3  ;;  %v7041_v12 = vadd.f32 %v7040_v4, %v6312_v41 }
 0x9b4   :  { %v5404_v5 = vpop.f32.mrf.mxu0 }
 0x9b5   :  { %7331 = vst.msk [vmem:[%s13883_s4 + $0x8f0] sm:$0xff] %vm81_vm0, %v7041_v12 }
 0x9b6   :  { %v6128_v60 = vpop.f32.mrf.mxu1 }
 0x9b7   :  { %v6129_v32 = vadd.f32 %v6128_v60, %v5399_v34 }
 0x9b9   :  { %v6858_v55 = vadd.f32 %v6857_v0, %v6129_v32 }
 0x9ba   :  { %v7042_v37 = vpop.f32.mrf.mxu3  ;;  %v6860_v30 = vpop.f32.mrf.mxu2 }
 0x9bb   :  { %7258 = vst.msk [vmem:[%s13883_s4 + $0x6a8] sm:$0xff] %vm81_vm0, %v6858_v55  ;;  %v7043_v35 = vadd.f32 %v7042_v37, %v6314_v52 }
 0x9bd   :  { %7332 = vst.msk [vmem:[%s13883_s4 + $0x8f8] sm:$0xff] %vm81_vm0, %v7043_v35 }
 0x9be   :  { %v6131_v61 = vpop.f32.mrf.mxu1 }
 0x9bf   :  { %v6132_v25 = vadd.f32 %v6131_v61, %v5402_v6 }
 0x9c1   :  { %v6861_v58 = vadd.f32 %v6860_v30, %v6132_v25 }
 0x9c2   :  { %v6862_v26 = vpop.f32.mrf.mxu2 }
 0x9c3   :  { %7259 = vst.msk [vmem:[%s13883_s4 + $0x6b0] sm:$0xff] %vm81_vm0, %v6861_v58 }
 0x9c6   :  { %v6133_v31 = vpop.f32.mrf.mxu1 }
 0x9c7   :  { %v6134_v17 = vadd.f32 %v6133_v31, %v5404_v5 }
 0x9c9   :  { %v6863_v48 = vadd.f32 %v6862_v26, %v6134_v17 }
 0x9cb   :  { %7260 = vst.msk [vmem:[%s13883_s4 + $0x6b8] sm:$0xff] %vm81_vm0, %v6863_v48 }
 0x9cc   :  { %7337 = vsyncpa [#allocation3], 1 }

</bundles_post_ra>
